<compile_context>
chip_gen: v7x
topology: tpu7x:2x2x1
jax: 0.10.0
libtpu: 0.0.40
codegen_flags: <defaults>
</compile_context>

<pallas_src>
import functools

import jax
import jax.numpy as jnp
from jax.experimental import pallas as pl
from jax.experimental.pallas import tpu as pltpu


def _scores_f32(x, w):
    """x: (TB, T, d) native dtype, w: (1, d) -> (TB, T) f32 logits."""
    prod = x * w.astype(x.dtype)[None, :, :]               # VPU, native dtype
    return jnp.sum(prod, axis=-1, dtype=jnp.float32)       # lane reduce, f32 acc


def _seqpool_single_kernel(x_ref, w_ref, o_ref):
    # Whole sequence resident: x_ref (TB, N, d), w_ref (1, d), o_ref (TB, d).
    x = x_ref[...]
    s = _scores_f32(x, w_ref[...])                                  # (TB, N)
    m = jnp.max(s, axis=-1, keepdims=True)                          # (TB, 1)
    p = jnp.exp(s - m)                                              # (TB, N)
    l = jnp.sum(p, axis=-1, keepdims=True)                          # (TB, 1)
    pooled = jnp.einsum(
        "bqt,btd->bqd", p[:, None, :].astype(x.dtype), x,
        preferred_element_type=jnp.float32,
    )[:, 0, :]                                                      # (TB, d) f32
    o_ref[...] = (pooled * pl.reciprocal(l, approx=False)).astype(o_ref.dtype)


def _seqpool_online_kernel(x_ref, w_ref, o_ref, m_sc, l_sc, acc_sc):
    # N split across trailing grid axis: x_ref (TB, TN, d) block.
    # scratch: m_sc (TB,1) running max, l_sc (TB,1) running denom,
    #          acc_sc (TB,d) running un-normalized pooled sum (all f32).
    n_idx = pl.program_id(1)

    @pl.when(n_idx == 0)
    def _init():
        m_sc[...] = jnp.full_like(m_sc, -jnp.inf)
        l_sc[...] = jnp.zeros_like(l_sc)
        acc_sc[...] = jnp.zeros_like(acc_sc)

    x = x_ref[...]
    s = _scores_f32(x, w_ref[...])                                  # (TB, TN)

    m_prev = m_sc[...]                                              # (TB, 1)
    m_new = jnp.maximum(m_prev, jnp.max(s, axis=-1, keepdims=True))
    alpha = jnp.exp(m_prev - m_new)                                 # rescale old state
    p = jnp.exp(s - m_new)                                          # (TB, TN)

    l_sc[...] = alpha * l_sc[...] + jnp.sum(p, axis=-1, keepdims=True)

    pooled = jnp.einsum(
        "bqt,btd->bqd", p[:, None, :].astype(x.dtype), x,
        preferred_element_type=jnp.float32,
    )[:, 0, :]                                                      # (TB, d) f32
    acc_sc[...] = alpha * acc_sc[...] + pooled
    m_sc[...] = m_new

    @pl.when(n_idx == pl.num_programs(1) - 1)
    def _finalize():
        inv_l = pl.reciprocal(l_sc[...], approx=False)              # (TB, 1)
        o_ref[...] = (acc_sc[...] * inv_l).astype(o_ref.dtype)


def _largest_aligned_divisor(total: int, cap: int, align: int) -> int:
    """Largest multiple of `align` that divides `total` and is <= cap.
    Falls back to the full extent when no aligned divisor exists (a full-extent
    block always satisfies the (8, 128) block rule)."""
    if total <= align or total % align != 0:
        return total
    t = min(cap, total)
    t -= t % align
    while t >= align:
        if total % t == 0:
            return t
        t -= align
    return total


@functools.partial(jax.jit, static_argnames=("batch_tile", "block_bytes"))
def sequence_pool(x: jax.Array, w: jax.Array, *, batch_tile: int = 8,
                  block_bytes: int = 4 * 1024 * 1024) -> jax.Array:
    """x: (B, N, d), w: (1, d) [PyTorch nn.Linear(d, 1).weight layout] -> (B, d)."""
    B, N, d = x.shape
    assert w.shape == (1, d), f"expected weight shape {(1, d)}, got {w.shape}"

    itemsize = jnp.dtype(x.dtype).itemsize
    # Batch tile: multiple of 8 for sublane-dense output stores; full B otherwise.
    TB = _largest_aligned_divisor(B, batch_tile, 8)
    # Sequence tile: largest aligned divisor of N whose x block stays under the
    # per-block VMEM budget (input blocks are double-buffered by the pipeline).
    max_tn = max(block_bytes // max(TB * d * itemsize, 1), 8)
    TN = _largest_aligned_divisor(N, max_tn, 8)

    out_shape = jax.ShapeDtypeStruct((B, d), x.dtype)
    w_spec = pl.BlockSpec((1, d), lambda *_: (0, 0))

    if TN == N:
        # Whole sequence in one block: plain softmax, no scratch, 1-D grid.
        return pl.pallas_call(
            _seqpool_single_kernel,
            out_shape=out_shape,
            grid_spec=pltpu.PrefetchScalarGridSpec(
                num_scalar_prefetch=0,
                grid=(B // TB,),
                in_specs=[
                    pl.BlockSpec((TB, N, d), lambda b: (b, 0, 0)),
                    w_spec,
                ],
                out_specs=pl.BlockSpec((TB, d), lambda b: (b, 0)),
            ),
            compiler_params=pltpu.CompilerParams(
                dimension_semantics=("parallel",),
            ),
        )(x, w)

    # N tiled: online-softmax reduction along the trailing "arbitrary" axis.
    return pl.pallas_call(
        _seqpool_online_kernel,
        out_shape=out_shape,
        grid_spec=pltpu.PrefetchScalarGridSpec(
            num_scalar_prefetch=0,
            grid=(B // TB, N // TN),
            in_specs=[
                pl.BlockSpec((TB, TN, d), lambda b, n: (b, n, 0)),
                w_spec,
            ],
            # Same output block across the N axis -> resident accumulator target.
            out_specs=pl.BlockSpec((TB, d), lambda b, n: (b, 0)),
            scratch_shapes=[
                pltpu.VMEM((TB, 1), jnp.float32),   # running max m
                pltpu.VMEM((TB, 1), jnp.float32),   # running denom l
                pltpu.VMEM((TB, d), jnp.float32),   # running pooled acc
            ],
        ),
        compiler_params=pltpu.CompilerParams(
            dimension_semantics=("parallel", "arbitrary"),
        ),
    )(x, w)


def sequence_pool_ref(x: jax.Array, w: jax.Array) -> jax.Array:
    """Pure-JAX reference matching the PyTorch forward exactly."""
    scores = jnp.einsum("bnd,od->bno", x, w)                    # (B, N, 1)
    attn = jax.nn.softmax(jnp.swapaxes(scores, 1, 2), axis=2)   # (B, 1, N)
    out = jnp.einsum("bon,bnd->bod", attn, x)                   # (B, 1, d)
    return out.reshape(x.shape[0], x.shape[2])


if __name__ == "__main__":
    def run_case(B, N, d, key, **kw):
        kx, kw_key = jax.random.split(key)
        x = jax.random.normal(kx, (B, N, d), dtype=jnp.float32)
        # nn.Linear(d, 1, bias=False).weight has PyTorch shape (1, d).
        w = (jax.random.uniform(kw_key, (1, d), dtype=jnp.float32) - 0.5) * (2.0 / (d ** 0.5))
        out = jax.block_until_ready(sequence_pool(x, w, **kw))
        ref = sequence_pool_ref(x, w)
        assert out.shape == (B, d)
        assert jnp.allclose(out, ref, atol=2e-5, rtol=1e-5), \
            f"mismatch vs reference for B={B}, N={N}, d={d}, kw={kw}"

    key = jax.random.PRNGKey(0)
    k1, k2, k3 = jax.random.split(key, 3)

    # Common CCT-sized case: batch-tiled, whole sequence in one block (single-pass body).
    run_case(B=8, N=256, d=128, key=k1)
    # Same shape forced through the N-tiled online-softmax body (small block budget).
    run_case(B=8, N=256, d=128, key=k2, block_bytes=128 * 1024)
    # Small ragged shape (module-sized): falls back to full-extent blocks.
    run_case(B=2, N=8, d=32, key=k3)

    print("KERNEL_OK")
</pallas_src>

<mosaic_0001>
module attributes {stable_mosaic.version = 11 : i64} {
  func.func @_seqpool_single_kernel(%arg0: i32, %arg1: memref<8x256x128xf32, #tpu.memory_space<vmem>>, %arg2: memref<1x128xf32, #tpu.memory_space<vmem>>, %arg3: memref<8x128xf32, #tpu.memory_space<vmem>>) attributes {dimension_semantics = [#tpu.dimension_semantics<parallel>], iteration_bounds = array<i64: 1>, scalar_prefetch = 0 : i64, scratch_operands = 0 : i64, tpu.core_type = #tpu.core_type<tc>, window_params = [{transform_indices = @transform_0, window_bounds = array<i64: 8, 256, 128>}, {pipeline_mode = #tpu.pipeline_mode<synchronous>, transform_indices = @transform_1, window_bounds = array<i64: 1, 128>}, {transform_indices = @transform_2, window_bounds = array<i64: 8, 128>}]} {
    %c0 = arith.constant 0 : index
    %c0_0 = arith.constant 0 : index
    %c0_1 = arith.constant 0 : index
    %0 = vector.load %arg1[%c0, %c0_0, %c0_1] : memref<8x256x128xf32, #tpu.memory_space<vmem>>, vector<8x256x128xf32>
    %c0_2 = arith.constant 0 : index
    %c0_3 = arith.constant 0 : index
    %1 = vector.load %arg2[%c0_2, %c0_3] : memref<1x128xf32, #tpu.memory_space<vmem>>, vector<1x128xf32>
    %2 = vector.shape_cast %1 : vector<1x128xf32> to vector<1x1x128xf32>
    %3 = vector.broadcast %2 : vector<1x1x128xf32> to vector<8x256x128xf32>
    %4 = arith.mulf %0, %3 : vector<8x256x128xf32>
    %cst = arith.constant dense<0.000000e+00> : vector<8x256xf32>
    %5 = vector.multi_reduction <add>, %4, %cst [2] : vector<8x256x128xf32> to vector<8x256xf32>
    %cst_4 = arith.constant dense<0xFF800000> : vector<8xf32>
    %6 = vector.multi_reduction <maximumf>, %5, %cst_4 [1] : vector<8x256xf32> to vector<8xf32>
    %7 = vector.shape_cast %6 : vector<8xf32> to vector<8x1xf32>
    %8 = vector.broadcast %7 : vector<8x1xf32> to vector<8x256xf32>
    %9 = arith.subf %5, %8 : vector<8x256xf32>
    %10 = math.exp %9 : vector<8x256xf32>
    %cst_5 = arith.constant dense<0.000000e+00> : vector<8xf32>
    %11 = vector.multi_reduction <add>, %10, %cst_5 [1] : vector<8x256xf32> to vector<8xf32>
    %12 = vector.shape_cast %11 : vector<8xf32> to vector<8x1xf32>
    %13 = vector.shape_cast %10 : vector<8x256xf32> to vector<8x1x256xf32>
    "tpu.trace_start"() <{level = 10 : i32, message = "bqt,btd->bqd"}> : () -> ()
    %cst_6 = arith.constant dense<0.000000e+00> : vector<8x1x128xf32>
    %14 = tpu.matmul %13, %0, %cst_6 {dimension_numbers = #tpu.dot_dimension_numbers<[2], [1], [1], [2], [0, 0, 0, 1, 1, 2], [0], [0]>} : vector<8x1x256xf32>, vector<8x256x128xf32>, vector<8x1x128xf32> -> vector<8x1x128xf32>
    "tpu.trace_stop"() : () -> ()
    %15 = vector.shape_cast %14 : vector<8x1x128xf32> to vector<8x128xf32>
    %16 = tpu.reciprocal %12 : vector<8x1xf32> -> vector<8x1xf32>
    %17 = vector.broadcast %16 : vector<8x1xf32> to vector<8x128xf32>
    %18 = arith.mulf %15, %17 : vector<8x128xf32>
    %c0_7 = arith.constant 0 : index
    %c0_8 = arith.constant 0 : index
    %19 = vector.load %arg3[%c0_7, %c0_8] : memref<8x128xf32, #tpu.memory_space<vmem>>, vector<8x128xf32>
    tpu.vector_store %arg3[%c0_7, %c0_8], %18 {strides = array<i32>} : memref<8x128xf32, #tpu.memory_space<vmem>>, vector<8x128xf32>,
    return
  }
  func.func @transform_0(%arg0: i32) -> (i32, i32, i32) {
    %c0_i32 = arith.constant 0 : i32
    %c0_i32_0 = arith.constant 0 : i32
    %c0_i32_1 = arith.constant 0 : i32
    return %arg0, %c0_i32, %c0_i32_0 : i32, i32, i32
  }
  func.func @transform_1(%arg0: i32) -> (i32, i32) {
    %c0_i32 = arith.constant 0 : i32
    %c0_i32_0 = arith.constant 0 : i32
    %c0_i32_1 = arith.constant 0 : i32
    return %c0_i32, %c0_i32_0 : i32, i32
  }
  func.func @transform_2(%arg0: i32) -> (i32, i32) {
    %c0_i32 = arith.constant 0 : i32
    %c0_i32_0 = arith.constant 0 : i32
    return %arg0, %c0_i32 : i32, i32
  }
}

</mosaic_0001>

<bundles_post_ra>
// kernel: sequence_pool.1
= control target key start
LH: loop header
LB: loop body
LE: loop exit
PB: predicated region body
PF: predicated region fallthrough
CT: control target
= control target key end

     0   :  { %7 = vsyncpa [#allocation3], 0  ;;  %s11727_s0 = inlined_call_operand.hbm [shape: f32[8,256,128], index: 0, kind: input, shape index: {}]   ;;  %s11728_s1 = inlined_call_operand.vmem [shape: f32[1,128], index: 1, kind: input, shape index: {}]   ;;  %s11729_s2 = inlined_call_operand.hbm [shape: f32[8,128], index: 2, kind: output, shape index: {}]  }
   0x1   :  { %8 = vsyncpa [#allocation4], 0  ;;  %s7587_s9 = smov [#allocation2]   ;;  %s7539_s13 = scalar_lea.hbm %s11727_s0, 32768 }
   0x2   :  { %s14_s10 = sshll.u32 %s7587_s9, 4  ;;  %p7540_p0 = scmp.ne.s32.totalorder %s11727_s0, %s7539_s13  ;;  %s15_s10 = int_to_ptr.vmem [resolvable:$true] %s14_s10 }
   0x3   :  { %p7543_p1 = scmp.lt.u32.totalorder %s7539_s13, %s11727_s0 }
   0x5   :  { %p7545_p2 = pnand %p7543_p1, %p7540_p0 }
   0x7   :  { %7548 = shalt.err (!%p7545_p2)
}
   0x8   :  { %s7549_s18 = scalar_lea.vmem %s15_s10, 32768  ;;  %p7554_p4 = scmp.lt.s32.totalorder %s15_s10, %s15_s10 }
   0x9   :  { %p7550_p3 = scmp.ne.s32.totalorder %s15_s10, %s7549_s18  ;;  %p7555_p5 = scmp.lt.s32.totalorder %s7549_s18, %s7549_s18 }
   0xb   :  { %p7556_p6 = por %p7555_p5, %p7554_p4 }
   0xd   :  { %p7557_p7 = pnand %p7556_p6, %p7550_p3 }
   0xf   :  { %7560 = shalt.err (!%p7557_p7)
}
  0x10   :  { %s7588_s19 = smov 128   ;;  %s7589_s20 = smov 8  }
  0x11   :  { %20 = dma.hbm_to_vmem [thread:$0]  %s11727_s0, 32768, %s15_s10, [#allocation3], %s7588_s19, %s7588_s19, %s7589_s20  }
  0x12   :  { %7583 = dma.done.wait [#allocation3], 32768  }
  0x13   :  { %7584 = vsyncadd [#allocation3], 4294934528  ;;  %v7619_v0 = vld [vmem:[#allocation2 + $0x10] sm:$0xff]  ;;  %v7621_v1 = vld [vmem:[#allocation2 + $0x18] sm:$0xff]  ;;  %vm1324_vm0 = vcmask 130112   ;;  %vm1331_vm1 = vcmask 195712  }
  0x14   :  { %12179 = vst [vmem:[#allocation8_spill] sm:$0xff] %v7619_v0  ;;  %12180 = vst [vmem:[#allocation9_spill] sm:$0xff] %v7621_v1  ;;  %v7626_v2 = vld [vmem:[%s11728_s1] ss:$0 sm:$0xff]  ;;  %v27_v6 = vld [vmem:[#allocation2 + $0x8] sm:$0xff]  ;;  %vm1338_vm2 = vcmask 261312  }
  0x15   :  { %v291_v3 = vmul.f32 %v7626_v2, %v7619_v0  ;;  %v26_v5 = vld [vmem:[#allocation2] sm:$0xff]  ;;  %v7633_v8 = vld [vmem:[#allocation2 + $0x28] sm:$0xff]  ;;  %v7637_v10 = vld [vmem:[#allocation2 + $0x38] sm:$0xff]  ;;  %v292_v11 = vmul.f32 %v7626_v2, %v7621_v1  ;;  %v290_v16 = vmul.f32 %v7626_v2, %v27_v6  ;;  %vm1345_vm3 = vcmask 326912  }
  0x16   :  { %v289_v7 = vmul.f32 %v7626_v2, %v26_v5  ;;  %12181 = vst [vmem:[#allocation10_spill] sm:$0xff] %v7633_v8  ;;  %v7635_v9 = vld [vmem:[#allocation2 + $0x20] sm:$0xff]  ;;  %12183 = vst [vmem:[#allocation12_spill] sm:$0xff] %v7637_v10  ;;  %v7643_v13 = vld [vmem:[#allocation2 + $0x30] sm:$0xff]  ;;  %v294_v27 = vmul.f32 %v7626_v2, %v7633_v8  ;;  %v296_v45 = vmul.f32 %v7626_v2, %v7637_v10  ;;  %vm1352_vm4 = vcmask 392512  }
  0x17   :  { %12182 = vst [vmem:[#allocation11_spill] sm:$0xff] %v7635_v9  ;;  %549 = vadd.xlane.f32.xlu1 %v291_v3  ;;  %12184 = vst [vmem:[#allocation13_spill] sm:$0xff] %v7643_v13  ;;  %v7645_v14 = vld [vmem:[#allocation2 + $0x48] sm:$0xff]  ;;  %v7647_v15 = vld [vmem:[#allocation2 + $0x40] sm:$0xff]  ;;  %v293_v32 = vmul.f32 %v7626_v2, %v7635_v9  ;;  %v295_v50 = vmul.f32 %v7626_v2, %v7643_v13  ;;  %vm12128_vm5 = vcmask 458112   ;;  %vm1366_vm6 = vcmask 523712  }
  0x18   :  { %12185 = vst [vmem:[#allocation14_spill] sm:$0xff] %v7645_v14  ;;  %12186 = vst [vmem:[#allocation15_spill] sm:$0xff] %v7647_v15  ;;  %545 = vadd.xlane.f32.xlu0 %v289_v7  ;;  %v7654_v19 = vld [vmem:[#allocation2 + $0x58] sm:$0xff]  ;;  %v7656_v20 = vld [vmem:[#allocation2 + $0x50] sm:$0xff]  ;;  %v298_v61 = vmul.f32 %v7626_v2, %v7645_v14  ;;  %v297_v6 = vmul.f32 %v7626_v2, %v7647_v15  ;;  %vm1373_vm7 = vcmask 589312   ;;  %vm12160_vm8 = vcmask 654912  }
  0x19   :  { %12187 = vst [vmem:[#allocation16_spill] sm:$0xff] %v7654_v19  ;;  %12188 = vst [vmem:[#allocation17_spill] sm:$0xff] %v7656_v20  ;;  %v7660_v22 = vld [vmem:[#allocation2 + $0x68] sm:$0xff]  ;;  %v7662_v23 = vld [vmem:[#allocation2 + $0x60] sm:$0xff]  ;;  %v300_v21 = vmul.f32 %v7626_v2, %v7654_v19  ;;  %v299_v46 = vmul.f32 %v7626_v2, %v7656_v20  ;;  %vm12156_vm9 = vcmask 720512   ;;  %vm12157_vm10 = vcmask 786112  }
  0x1a   :  { %12189 = vst [vmem:[#allocation18_spill] sm:$0xff] %v7660_v22  ;;  %12190 = vst [vmem:[#allocation19_spill] sm:$0xff] %v7662_v23  ;;  %v7666_v25 = vld [vmem:[#allocation2 + $0x78] sm:$0xff]  ;;  %v7668_v26 = vld [vmem:[#allocation2 + $0x70] sm:$0xff]  ;;  %v302_v41 = vmul.f32 %v7626_v2, %v7660_v22  ;;  %v301_v52 = vmul.f32 %v7626_v2, %v7662_v23  ;;  %vm12159_vm11 = vcmask 851712   ;;  %vm1408_vm12 = vcmask 917312  }
  0x1b   :  { %12191 = vst [vmem:[#allocation20_spill] sm:$0xff] %v7666_v25  ;;  %12192 = vst [vmem:[#allocation21_spill] sm:$0xff] %v7668_v26  ;;  %551 = vadd.xlane.f32.xlu1 %v292_v11  ;;  %v7674_v29 = vld [vmem:[#allocation2 + $0x98] sm:$0xff]  ;;  %v7676_v30 = vld [vmem:[#allocation2 + $0x90] sm:$0xff]  ;;  %v304_v13 = vmul.f32 %v7626_v2, %v7666_v25  ;;  %v303_v9 = vmul.f32 %v7626_v2, %v7668_v26  ;;  %vm1415_vm13 = vcmask 982912   ;;  %vm12124_vm14 = vcmask 1048512  }
  0x1c   :  { %12193 = vst [vmem:[#allocation22_spill] sm:$0xff] %v7674_v29  ;;  %12194 = vst [vmem:[#allocation23_spill] sm:$0xff] %v7676_v30  ;;  %v7678_v31 = vld [vmem:[#allocation2 + $0xa8] sm:$0xff]  ;;  %547 = vadd.xlane.f32.xlu0 %v290_v16  ;;  %v7684_v34 = vld [vmem:[#allocation2 + $0xa0] sm:$0xff]  ;;  %vm12123_vm15 = vcmask 1041409  }
  0x1d   :  { %12195 = vst [vmem:[#allocation24_spill] sm:$0xff] %v7678_v31  ;;  %12196 = vst [vmem:[#allocation25_spill] sm:$0xff] %v7684_v34  ;;  %v7686_v35 = vld [vmem:[#allocation2 + $0xb8] sm:$0xff]  ;;  %v7688_v36 = vld [vmem:[#allocation2 + $0xb0] sm:$0xff]  ;;  %v310_v8 = vmul.f32 %v7626_v2, %v7678_v31 }
  0x1e   :  { %12197 = vst [vmem:[#allocation26_spill] sm:$0xff] %v7686_v35  ;;  %12198 = vst [vmem:[#allocation27_spill] sm:$0xff] %v7688_v36  ;;  %v7694_v39 = vld [vmem:[#allocation2 + $0xc8] sm:$0xff]  ;;  %v7696_v40 = vld [vmem:[#allocation2 + $0xc0] sm:$0xff]  ;;  %v311_v31 = vmul.f32 %v7626_v2, %v7688_v36 }
  0x1f   :  { %12199 = vst [vmem:[#allocation28_spill] sm:$0xff] %v7694_v39  ;;  %12200 = vst [vmem:[#allocation29_spill] sm:$0xff] %v7696_v40  ;;  %v7700_v42 = vld [vmem:[#allocation2 + $0xd8] sm:$0xff]  ;;  %v7702_v43 = vld [vmem:[#allocation2 + $0xd0] sm:$0xff]  ;;  %555 = vadd.xlane.f32.xlu1 %v294_v27 }
  0x20   :  { %12201 = vst [vmem:[#allocation30_spill] sm:$0xff] %v7700_v42  ;;  %12202 = vst [vmem:[#allocation31_spill] sm:$0xff] %v7702_v43  ;;  %v7704_v44 = vld [vmem:[#allocation2 + $0xe8] sm:$0xff]  ;;  %v7710_v47 = vld [vmem:[#allocation2 + $0xe0] sm:$0xff]  ;;  %553 = vadd.xlane.f32.xlu0 %v293_v32  ;;  %v316_v36 = vmul.f32 %v7626_v2, %v7700_v42 }
  0x21   :  { %12203 = vst [vmem:[#allocation32_spill] sm:$0xff] %v7704_v44  ;;  %12204 = vst [vmem:[#allocation33_spill] sm:$0xff] %v7710_v47  ;;  %v7712_v48 = vld [vmem:[#allocation2 + $0xf8] sm:$0xff]  ;;  %v7714_v49 = vld [vmem:[#allocation2 + $0xf0] sm:$0xff]  ;;  %v317_v42 = vmul.f32 %v7626_v2, %v7710_v47 }
  0x22   :  { %12205 = vst [vmem:[#allocation34_spill] sm:$0xff] %v7712_v48  ;;  %12206 = vst [vmem:[#allocation35_spill] sm:$0xff] %v7714_v49  ;;  %v7722_v53 = vld [vmem:[#allocation2 + $0x118] sm:$0xff]  ;;  %v7724_v54 = vld [vmem:[#allocation2 + $0x110] sm:$0xff] }
  0x23   :  { %12207 = vst [vmem:[#allocation36_spill] sm:$0xff] %v7722_v53  ;;  %12208 = vst [vmem:[#allocation37_spill] sm:$0xff] %v7724_v54  ;;  %v7726_v55 = vld [vmem:[#allocation2 + $0x128] sm:$0xff]  ;;  %v7728_v56 = vld [vmem:[#allocation2 + $0x120] sm:$0xff]  ;;  %559 = vadd.xlane.f32.xlu1 %v296_v45 }
  0x24   :  { %12209 = vst [vmem:[#allocation38_spill] sm:$0xff] %v7726_v55  ;;  %12210 = vst [vmem:[#allocation39_spill] sm:$0xff] %v7728_v56  ;;  %v7734_v59 = vld [vmem:[#allocation2 + $0x138] sm:$0xff]  ;;  %v7736_v60 = vld [vmem:[#allocation2 + $0x130] sm:$0xff]  ;;  %557 = vadd.xlane.f32.xlu0 %v295_v50 }
  0x25   :  { %12211 = vst [vmem:[#allocation40_spill] sm:$0xff] %v7734_v59  ;;  %12212 = vst [vmem:[#allocation41_spill] sm:$0xff] %v7736_v60  ;;  %v7742_v63 = vld [vmem:[#allocation2 + $0x148] sm:$0xff]  ;;  %v7744_v3 = vld [vmem:[#allocation2 + $0x140] sm:$0xff] }
  0x26   :  { %12213 = vst [vmem:[#allocation42_spill] sm:$0xff] %v7742_v63  ;;  %12214 = vst [vmem:[#allocation43_spill] sm:$0xff] %v7744_v3  ;;  %v7746_v5 = vld [vmem:[#allocation2 + $0x158] sm:$0xff]  ;;  %v7752_v11 = vld [vmem:[#allocation2 + $0x150] sm:$0xff] }
  0x27   :  { %12215 = vst [vmem:[#allocation44_spill] sm:$0xff] %v7746_v5  ;;  %12216 = vst [vmem:[#allocation45_spill] sm:$0xff] %v7752_v11  ;;  %v7754_v16 = vld [vmem:[#allocation2 + $0x168] sm:$0xff]  ;;  %v7756_v27 = vld [vmem:[#allocation2 + $0x160] sm:$0xff]  ;;  %563 = vadd.xlane.f32.xlu1 %v298_v61 }
  0x28   :  { %12217 = vst [vmem:[#allocation46_spill] sm:$0xff] %v7754_v16  ;;  %12218 = vst [vmem:[#allocation47_spill] sm:$0xff] %v7756_v27  ;;  %v7762_v28 = vld [vmem:[#allocation2 + $0x178] sm:$0xff]  ;;  %v7764_v50 = vld [vmem:[#allocation2 + $0x170] sm:$0xff]  ;;  %561 = vadd.xlane.f32.xlu0 %v297_v6 }
  0x29   :  { %12219 = vst [vmem:[#allocation48_spill] sm:$0xff] %v7762_v28  ;;  %12220 = vst [vmem:[#allocation49_spill] sm:$0xff] %v7764_v50  ;;  %v7768_v24 = vld [vmem:[#allocation2 + $0x198] sm:$0xff]  ;;  %v7770_v51 = vld [vmem:[#allocation2 + $0x190] sm:$0xff] }
  0x2a   :  { %12221 = vst [vmem:[#allocation50_spill] sm:$0xff] %v7768_v24  ;;  %12222 = vst [vmem:[#allocation51_spill] sm:$0xff] %v7770_v51  ;;  %v7776_v7 = vld [vmem:[#allocation2 + $0x1a8] sm:$0xff]  ;;  %v7778_v45 = vld [vmem:[#allocation2 + $0x1a0] sm:$0xff] }
  0x2b   :  { %12223 = vst [vmem:[#allocation52_spill] sm:$0xff] %v7776_v7  ;;  %12224 = vst [vmem:[#allocation53_spill] sm:$0xff] %v7778_v45  ;;  %v7784_v18 = vld [vmem:[#allocation2 + $0x1b8] sm:$0xff]  ;;  %v7786_v61 = vld [vmem:[#allocation2 + $0x1b0] sm:$0xff]  ;;  %567 = vadd.xlane.f32.xlu1 %v300_v21 }
  0x2c   :  { %12225 = vst [vmem:[#allocation54_spill] sm:$0xff] %v7784_v18  ;;  %12226 = vst [vmem:[#allocation55_spill] sm:$0xff] %v7786_v61  ;;  %v7788_v62 = vld [vmem:[#allocation2 + $0x1c8] sm:$0xff]  ;;  %v7792_v17 = vld [vmem:[#allocation2 + $0x1c0] sm:$0xff]  ;;  %565 = vadd.xlane.f32.xlu0 %v299_v46 }
  0x2d   :  { %12227 = vst [vmem:[#allocation56_spill] sm:$0xff] %v7788_v62  ;;  %12228 = vst [vmem:[#allocation57_spill] sm:$0xff] %v7792_v17  ;;  %v7794_v58 = vld [vmem:[#allocation2 + $0x1d8] sm:$0xff]  ;;  %v7796_v6 = vld [vmem:[#allocation2 + $0x1d0] sm:$0xff] }
  0x2e   :  { %12229 = vst [vmem:[#allocation58_spill] sm:$0xff] %v7794_v58  ;;  %12230 = vst [vmem:[#allocation59_spill] sm:$0xff] %v7796_v6  ;;  %v7802_v12 = vld [vmem:[#allocation2 + $0x1e8] sm:$0xff]  ;;  %v7804_v57 = vld [vmem:[#allocation2 + $0x1e0] sm:$0xff] }
  0x2f   :  { %12231 = vst [vmem:[#allocation60_spill] sm:$0xff] %v7802_v12  ;;  %12232 = vst [vmem:[#allocation61_spill] sm:$0xff] %v7804_v57  ;;  %v7810_v32 = vld [vmem:[#allocation2 + $0x1f8] sm:$0xff]  ;;  %v7812_v4 = vld [vmem:[#allocation2 + $0x1f0] sm:$0xff]  ;;  %571 = vadd.xlane.f32.xlu1 %v302_v41 }
  0x30   :  { %12233 = vst [vmem:[#allocation62_spill] sm:$0xff] %v7810_v32  ;;  %12234 = vst [vmem:[#allocation63_spill] sm:$0xff] %v7812_v4  ;;  %v7814_v33 = vld [vmem:[#allocation2 + $0x208] sm:$0xff]  ;;  %v7820_v21 = vld [vmem:[#allocation2 + $0x200] sm:$0xff]  ;;  %569 = vadd.xlane.f32.xlu0 %v301_v52 }
  0x31   :  { %12235 = vst [vmem:[#allocation64_spill] sm:$0xff] %v7814_v33  ;;  %12236 = vst [vmem:[#allocation65_spill] sm:$0xff] %v7820_v21  ;;  %v7822_v20 = vld [vmem:[#allocation2 + $0x218] sm:$0xff]  ;;  %v7824_v22 = vld [vmem:[#allocation2 + $0x210] sm:$0xff] }
  0x32   :  { %12237 = vst [vmem:[#allocation66_spill] sm:$0xff] %v7822_v20  ;;  %12238 = vst [vmem:[#allocation67_spill] sm:$0xff] %v7824_v22  ;;  %v7830_v15 = vld [vmem:[#allocation2 + $0x228] sm:$0xff]  ;;  %v7832_v46 = vld [vmem:[#allocation2 + $0x220] sm:$0xff] }
  0x33   :  { %12239 = vst [vmem:[#allocation68_spill] sm:$0xff] %v7830_v15  ;;  %12240 = vst [vmem:[#allocation69_spill] sm:$0xff] %v7832_v46  ;;  %v7836_v38 = vld [vmem:[#allocation2 + $0x238] sm:$0xff]  ;;  %v7838_v14 = vld [vmem:[#allocation2 + $0x230] sm:$0xff]  ;;  %575 = vadd.xlane.f32.xlu1 %v304_v13  ;;  %v307_v13 = vmul.f32 %v7626_v2, %v7676_v30  ;;  %v309_v30 = vmul.f32 %v7626_v2, %v7684_v34  ;;  %v314_v34 = vmul.f32 %v7626_v2, %v7694_v39 }
  0x34   :  { %12241 = vst [vmem:[#allocation70_spill] sm:$0xff] %v7836_v38  ;;  %12242 = vst [vmem:[#allocation71_spill] sm:$0xff] %v7838_v14  ;;  %v7844_v10 = vld [vmem:[#allocation2 + $0x248] sm:$0xff]  ;;  %v7846_v19 = vld [vmem:[#allocation2 + $0x240] sm:$0xff]  ;;  %573 = vadd.xlane.f32.xlu0 %v303_v9  ;;  %v318_v39 = vmul.f32 %v7626_v2, %v7704_v44  ;;  %v319_v44 = vmul.f32 %v7626_v2, %v7714_v49  ;;  %v324_v49 = vmul.f32 %v7626_v2, %v7722_v53 }
  0x35   :  { %12243 = vst [vmem:[#allocation72_spill] sm:$0xff] %v7844_v10  ;;  %12244 = vst [vmem:[#allocation73_spill] sm:$0xff] %v7846_v19  ;;  %v43_v23 = vld [vmem:[#allocation2 + $0x88] sm:$0xff]  ;;  %v42_v0 = vld [vmem:[#allocation2 + $0x80] sm:$0xff]  ;;  %v308_v19 = vmul.f32 %v7626_v2, %v7674_v29 }
  0x36   :  { %v7852_v41 = vld [vmem:[#allocation2 + $0x258] sm:$0xff]  ;;  %v7854_v1 = vld [vmem:[#allocation2 + $0x250] sm:$0xff]  ;;  %v306_v25 = vmul.f32 %v7626_v2, %v43_v23  ;;  %v7859_v14 = vld [vmem:[#allocation2 + $0x268] sm:$0xff]  ;;  %v305_v26 = vmul.f32 %v7626_v2, %v42_v0 }
  0x37   :  { %12245 = vst [vmem:[#allocation74_spill] sm:$0xff] %v7852_v41  ;;  %12246 = vst [vmem:[#allocation75_spill] sm:$0xff] %v7854_v1  ;;  %v7861_v52 = vld [vmem:[#allocation2 + $0x260] sm:$0xff]  ;;  %v7868_v10 = vld [vmem:[#allocation2 + $0x278] sm:$0xff] }
  0x38   :  { %12247 = vst [vmem:[#allocation76_spill] sm:$0xff] %v7859_v14  ;;  %12248 = vst [vmem:[#allocation77_spill] sm:$0xff] %v7861_v52  ;;  %579 = vadd.xlane.f32.xlu1 %v306_v25  ;;  %v7870_v37 = vld [vmem:[#allocation2 + $0x270] sm:$0xff]  ;;  %577 = vadd.xlane.f32.xlu0 %v305_v26  ;;  %v7876_v23 = vld [vmem:[#allocation2 + $0x288] sm:$0xff] }
  0x39   :  { %12249 = vst [vmem:[#allocation78_spill] sm:$0xff] %v7868_v10  ;;  %12250 = vst [vmem:[#allocation79_spill] sm:$0xff] %v7870_v37  ;;  %v7878_v0 = vld [vmem:[#allocation2 + $0x280] sm:$0xff]  ;;  %v7884_v29 = vld [vmem:[#allocation2 + $0x298] sm:$0xff]  ;;  %v312_v37 = vmul.f32 %v7626_v2, %v7686_v35 }
  0x3a   :  { %12251 = vst [vmem:[#allocation80_spill] sm:$0xff] %v7876_v23  ;;  %12252 = vst [vmem:[#allocation81_spill] sm:$0xff] %v7878_v0  ;;  %v7886_v26 = vld [vmem:[#allocation2 + $0x290] sm:$0xff]  ;;  %v7894_v25 = vld [vmem:[#allocation2 + $0x2a8] sm:$0xff] }
  0x3b   :  { %12253 = vst [vmem:[#allocation82_spill] sm:$0xff] %v7884_v29  ;;  %12254 = vst [vmem:[#allocation83_spill] sm:$0xff] %v7886_v26  ;;  %v7906_v9 = vld [vmem:[#allocation2 + $0x2b8] sm:$0xff]  ;;  %v7908_v35 = vld [vmem:[#allocation2 + $0x2b0] sm:$0xff] }
  0x3c   :  { %583 = vadd.xlane.f32.xlu1 %v308_v19  ;;  %581 = vadd.xlane.f32.xlu0 %v307_v13  ;;  %12255 = vst [vmem:[#allocation84_spill] sm:$0xff] %v7894_v25  ;;  %v7896_v19 = vld [vmem:[#allocation2 + $0x2a0] sm:$0xff]  ;;  %12257 = vst [vmem:[#allocation86_spill] sm:$0xff] %v7906_v9  ;;  %v7914_v13 = vld [vmem:[#allocation2 + $0x2c8] sm:$0xff] }
  0x3d   :  { %12256 = vst [vmem:[#allocation85_spill] sm:$0xff] %v7896_v19  ;;  %12258 = vst [vmem:[#allocation87_spill] sm:$0xff] %v7908_v35  ;;  %v58_v47 = vld [vmem:[#allocation2 + $0x100] sm:$0xff]  ;;  %v75_v53 = vld [vmem:[#allocation2 + $0x188] sm:$0xff] }
  0x3e   :  { %12259 = vst [vmem:[#allocation88_spill] sm:$0xff] %v7914_v13 }
  0x40   :  { %587 = vadd.xlane.f32.xlu1 %v310_v8  ;;  %585 = vadd.xlane.f32.xlu0 %v309_v30  ;;  %v313_v8 = vmul.f32 %v7626_v2, %v7696_v40  ;;  %v7924_v30 = vld [vmem:[#allocation2 + $0x2d8] sm:$0xff]  ;;  %v7934_v40 = vld [vmem:[#allocation2 + $0x2e8] sm:$0xff] }
  0x41   :  { %12261 = vst [vmem:[#allocation90_spill] sm:$0xff] %v7924_v30  ;;  %12263 = vst [vmem:[#allocation92_spill] sm:$0xff] %v7934_v40  ;;  %v7952_v30 = vld [vmem:[#allocation2 + $0x308] sm:$0xff] }
  0x42   :  { %12267 = vst [vmem:[#allocation96_spill] sm:$0xff] %v7952_v30 }
  0x44   :  { %591 = vadd.xlane.f32.xlu1 %v312_v37  ;;  %589 = vadd.xlane.f32.xlu0 %v311_v31  ;;  %v7916_v37 = vld [vmem:[#allocation2 + $0x2c0] sm:$0xff]  ;;  %v315_v31 = vmul.f32 %v7626_v2, %v7702_v43  ;;  %v320_v43 = vmul.f32 %v7626_v2, %v7712_v48  ;;  %v321_v48 = vmul.f32 %v7626_v2, %v58_v47 }
  0x45   :  { %12260 = vst [vmem:[#allocation89_spill] sm:$0xff] %v7916_v37  ;;  %v59_v37 = vld [vmem:[#allocation2 + $0x108] sm:$0xff]  ;;  %v326_v47 = vmul.f32 %v7626_v2, %v7726_v55  ;;  %v327_v55 = vmul.f32 %v7626_v2, %v7736_v60  ;;  %v332_v60 = vmul.f32 %v7626_v2, %v7746_v5  ;;  %v333_v5 = vmul.f32 %v7626_v2, %v7756_v27  ;;  %v74_v27 = vld [vmem:[#allocation2 + $0x180] sm:$0xff] }
  0x48   :  { %595 = vadd.xlane.f32.xlu1 %v314_v34  ;;  %593 = vadd.xlane.f32.xlu0 %v313_v8  ;;  %v7926_v34 = vld [vmem:[#allocation2 + $0x2d0] sm:$0xff]  ;;  %v322_v8 = vmul.f32 %v7626_v2, %v59_v37  ;;  %v7962_v37 = vld [vmem:[#allocation2 + $0x318] sm:$0xff] }
  0x49   :  { %12262 = vst [vmem:[#allocation91_spill] sm:$0xff] %v7926_v34  ;;  %v7945_v34 = vld [vmem:[#allocation2 + $0x2f0] sm:$0xff]  ;;  %12269 = vst [vmem:[#allocation98_spill] sm:$0xff] %v7962_v37 }
  0x4a   :  { %12266 = vst [vmem:[#allocation95_spill] sm:$0xff] %v7945_v34 }
  0x4c   :  { %599 = vadd.xlane.f32.xlu1 %v316_v36  ;;  %597 = vadd.xlane.f32.xlu0 %v315_v31  ;;  %v7936_v36 = vld [vmem:[#allocation2 + $0x2e0] sm:$0xff] }
  0x4d   :  { %12264 = vst [vmem:[#allocation93_spill] sm:$0xff] %v7936_v36  ;;  %v7954_v31 = vld [vmem:[#allocation2 + $0x300] sm:$0xff] }
  0x4e   :  { %12268 = vst [vmem:[#allocation97_spill] sm:$0xff] %v7954_v31 }
  0x50   :  { %603 = vadd.xlane.f32.xlu1 %v318_v39  ;;  %601 = vadd.xlane.f32.xlu0 %v317_v42  ;;  %v7943_v39 = vld [vmem:[#allocation2 + $0x2f8] sm:$0xff]  ;;  %v325_v42 = vmul.f32 %v7626_v2, %v7728_v56  ;;  %v330_v56 = vmul.f32 %v7626_v2, %v7742_v63  ;;  %v334_v63 = vmul.f32 %v7626_v2, %v7754_v16 }
  0x51   :  { %12265 = vst [vmem:[#allocation94_spill] sm:$0xff] %v7943_v39  ;;  %v335_v16 = vmul.f32 %v7626_v2, %v7764_v50  ;;  %v340_v50 = vmul.f32 %v7626_v2, %v7768_v24  ;;  %v12324_v24 = vld [vmem:[#allocation91_spill] sm:$0xff] }
  0x54   :  { %607 = vadd.xlane.f32.xlu1 %v320_v43  ;;  %605 = vadd.xlane.f32.xlu0 %v319_v44  ;;  %v323_v43 = vmul.f32 %v7626_v2, %v7724_v54  ;;  %v328_v54 = vmul.f32 %v7626_v2, %v7734_v59  ;;  %v7972_v44 = vld [vmem:[#allocation2 + $0x328] sm:$0xff]  ;;  %v7986_v59 = vld [vmem:[#allocation2 + $0x330] sm:$0xff] }
  0x55   :  { %12271 = vst [vmem:[#allocation100_spill] sm:$0xff] %v7972_v44  ;;  %12274 = vst [vmem:[#allocation103_spill] sm:$0xff] %v7986_v59 }
  0x58   :  { %611 = vadd.xlane.f32.xlu1 %v322_v8  ;;  %609 = vadd.xlane.f32.xlu0 %v321_v48  ;;  %v7964_v8 = vld [vmem:[#allocation2 + $0x310] sm:$0xff]  ;;  %v7984_v48 = vld [vmem:[#allocation2 + $0x338] sm:$0xff] }
  0x59   :  { %12270 = vst [vmem:[#allocation99_spill] sm:$0xff] %v7964_v8  ;;  %12273 = vst [vmem:[#allocation102_spill] sm:$0xff] %v7984_v48 }
  0x5c   :  { %615 = vadd.xlane.f32.xlu1 %v324_v49  ;;  %613 = vadd.xlane.f32.xlu0 %v323_v43  ;;  %v7974_v49 = vld [vmem:[#allocation2 + $0x320] sm:$0xff]  ;;  %v7992_v43 = vld [vmem:[#allocation2 + $0x348] sm:$0xff] }
  0x5d   :  { %12272 = vst [vmem:[#allocation101_spill] sm:$0xff] %v7974_v49  ;;  %12275 = vst [vmem:[#allocation104_spill] sm:$0xff] %v7992_v43 }
  0x60   :  { %619 = vadd.xlane.f32.xlu1 %v326_v47  ;;  %617 = vadd.xlane.f32.xlu0 %v325_v42  ;;  %v329_v47 = vmul.f32 %v7626_v2, %v7744_v3  ;;  %v8002_v42 = vld [vmem:[#allocation2 + $0x358] sm:$0xff]  ;;  %v8012_v3 = vld [vmem:[#allocation2 + $0x368] sm:$0xff] }
  0x61   :  { %12277 = vst [vmem:[#allocation106_spill] sm:$0xff] %v8002_v42  ;;  %12279 = vst [vmem:[#allocation108_spill] sm:$0xff] %v8012_v3 }
  0x64   :  { %623 = vadd.xlane.f32.xlu1 %v328_v54  ;;  %621 = vadd.xlane.f32.xlu0 %v327_v55  ;;  %v7994_v54 = vld [vmem:[#allocation2 + $0x340] sm:$0xff]  ;;  %v331_v55 = vmul.f32 %v7626_v2, %v7752_v11  ;;  %v336_v11 = vmul.f32 %v7626_v2, %v7762_v28  ;;  %v337_v28 = vmul.f32 %v7626_v2, %v74_v27 }
  0x65   :  { %12276 = vst [vmem:[#allocation105_spill] sm:$0xff] %v7994_v54  ;;  %v344_v27 = vmul.f32 %v7626_v2, %v7784_v18  ;;  %v369_v18 = vmul.f32 %v7626_v2, %v7878_v0  ;;  %v374_v0 = vmul.f32 %v7626_v2, %v7894_v25  ;;  %v12320_v25 = vld [vmem:[#allocation89_spill] sm:$0xff] }
  0x68   :  { %627 = vadd.xlane.f32.xlu1 %v330_v56  ;;  %625 = vadd.xlane.f32.xlu0 %v329_v47  ;;  %v8004_v56 = vld [vmem:[#allocation2 + $0x350] sm:$0xff]  ;;  %v338_v47 = vmul.f32 %v7626_v2, %v75_v53  ;;  %v342_v53 = vmul.f32 %v7626_v2, %v7776_v7 }
  0x69   :  { %12278 = vst [vmem:[#allocation107_spill] sm:$0xff] %v8004_v56  ;;  %v8023_v56 = vld [vmem:[#allocation2 + $0x370] sm:$0xff] }
  0x6a   :  { %12282 = vst [vmem:[#allocation111_spill] sm:$0xff] %v8023_v56 }
  0x6c   :  { %631 = vadd.xlane.f32.xlu1 %v332_v60  ;;  %629 = vadd.xlane.f32.xlu0 %v331_v55  ;;  %v8014_v60 = vld [vmem:[#allocation2 + $0x360] sm:$0xff]  ;;  %v8072_v55 = vld [vmem:[#allocation2 + $0x418] sm:$0xff] }
  0x6d   :  { %12280 = vst [vmem:[#allocation109_spill] sm:$0xff] %v8014_v60  ;;  %12285 = vst [vmem:[#allocation114_spill] sm:$0xff] %v8072_v55 }
  0x70   :  { %635 = vadd.xlane.f32.xlu1 %v334_v63  ;;  %633 = vadd.xlane.f32.xlu0 %v333_v5  ;;  %v8021_v63 = vld [vmem:[#allocation2 + $0x378] sm:$0xff]  ;;  %v8064_v5 = vld [vmem:[#allocation2 + $0x400] sm:$0xff] }
  0x71   :  { %12281 = vst [vmem:[#allocation110_spill] sm:$0xff] %v8021_v63  ;;  %12284 = vst [vmem:[#allocation113_spill] sm:$0xff] %v8064_v5 }
  0x74   :  { %639 = vadd.xlane.f32.xlu1 %v336_v11  ;;  %637 = vadd.xlane.f32.xlu0 %v335_v16  ;;  %v339_v11 = vmul.f32 %v7626_v2, %v7770_v51  ;;  %v341_v16 = vmul.f32 %v7626_v2, %v7778_v45 }
  0x78   :  { %643 = vadd.xlane.f32.xlu1 %v338_v47  ;;  %641 = vadd.xlane.f32.xlu0 %v337_v28  ;;  %v343_v47 = vmul.f32 %v7626_v2, %v7786_v61  ;;  %v346_v28 = vmul.f32 %v7626_v2, %v7788_v62  ;;  %v8150_v61 = vld [vmem:[#allocation2 + $0x470] sm:$0xff] }
  0x79   :  { %12310 = vst [vmem:[#allocation135_spill] sm:$0xff] %v8150_v61 }
  0x7c   :  { %647 = vadd.xlane.f32.xlu1 %v340_v50  ;;  %645 = vadd.xlane.f32.xlu0 %v339_v11  ;;  %v345_v50 = vmul.f32 %v7626_v2, %v7792_v17  ;;  %v348_v11 = vmul.f32 %v7626_v2, %v7794_v58  ;;  %v8136_v58 = vld [vmem:[#allocation2 + $0x460] sm:$0xff] }
  0x7d   :  { %12305 = vst [vmem:[#allocation131_spill] sm:$0xff] %v8136_v58  ;;  %v12307_v17 = vld [vmem:[#allocation79_spill] sm:$0xff] }
  0x7e   :  { %v367_v62 = vmul.f32 %v7626_v2, %v12307_v17 }
  0x80   :  { %651 = vadd.xlane.f32.xlu1 %v342_v53  ;;  %649 = vadd.xlane.f32.xlu0 %v341_v16  ;;  %v347_v53 = vmul.f32 %v7626_v2, %v7796_v6  ;;  %v350_v16 = vmul.f32 %v7626_v2, %v7802_v12  ;;  %v365_v6 = vmul.f32 %v7626_v2, %v7861_v52 }
  0x84   :  { %655 = vadd.xlane.f32.xlu1 %v344_v27  ;;  %653 = vadd.xlane.f32.xlu0 %v343_v47  ;;  %v349_v27 = vmul.f32 %v7626_v2, %v7804_v57  ;;  %v352_v47 = vmul.f32 %v7626_v2, %v7810_v32  ;;  %v8098_v32 = vld [vmem:[#allocation2 + $0x438] sm:$0xff] }
  0x85   :  { %12294 = vst [vmem:[#allocation120_spill] sm:$0xff] %v8098_v32 }
  0x88   :  { %659 = vadd.xlane.f32.xlu1 %v346_v28  ;;  %657 = vadd.xlane.f32.xlu0 %v345_v50  ;;  %v351_v28 = vmul.f32 %v7626_v2, %v7812_v4  ;;  %v354_v50 = vmul.f32 %v7626_v2, %v7814_v33 }
  0x8c   :  { %663 = vadd.xlane.f32.xlu1 %v348_v11  ;;  %661 = vadd.xlane.f32.xlu0 %v347_v53  ;;  %v353_v11 = vmul.f32 %v7626_v2, %v7820_v21  ;;  %v356_v53 = vmul.f32 %v7626_v2, %v7822_v20  ;;  %v357_v20 = vmul.f32 %v7626_v2, %v7832_v46  ;;  %v12290_v46 = vld [vmem:[#allocation72_spill] sm:$0xff] }
  0x8d   :  { %v362_v33 = vmul.f32 %v7626_v2, %v12290_v46 }
  0x90   :  { %667 = vadd.xlane.f32.xlu1 %v350_v16  ;;  %665 = vadd.xlane.f32.xlu0 %v349_v27  ;;  %v8062_v16 = vld [vmem:[#allocation2 + $0x408] sm:$0xff]  ;;  %v355_v27 = vmul.f32 %v7626_v2, %v7824_v22  ;;  %v360_v22 = vmul.f32 %v7626_v2, %v7836_v38 }
  0x91   :  { %12283 = vst [vmem:[#allocation112_spill] sm:$0xff] %v8062_v16 }
  0x94   :  { %671 = vadd.xlane.f32.xlu1 %v352_v47  ;;  %669 = vadd.xlane.f32.xlu0 %v351_v28  ;;  %v358_v28 = vmul.f32 %v7626_v2, %v7830_v15  ;;  %v8082_v47 = vld [vmem:[#allocation2 + $0x428] sm:$0xff]  ;;  %v12289_v15 = vld [vmem:[#allocation71_spill] sm:$0xff] }
  0x95   :  { %12287 = vst [vmem:[#allocation116_spill] sm:$0xff] %v8082_v47  ;;  %v359_v21 = vmul.f32 %v7626_v2, %v12289_v15  ;;  %v8120_v15 = vld [vmem:[#allocation2 + $0x458] sm:$0xff] }
  0x96   :  { %12300 = vst [vmem:[#allocation126_spill] sm:$0xff] %v8120_v15 }
  0x98   :  { %675 = vadd.xlane.f32.xlu1 %v354_v50  ;;  %673 = vadd.xlane.f32.xlu0 %v353_v11  ;;  %v8074_v50 = vld [vmem:[#allocation2 + $0x410] sm:$0xff] }
  0x99   :  { %12286 = vst [vmem:[#allocation115_spill] sm:$0xff] %v8074_v50  ;;  %v12292_v11 = vld [vmem:[#allocation73_spill] sm:$0xff] }
  0x9a   :  { %v361_v38 = vmul.f32 %v7626_v2, %v12292_v11  ;;  %v363_v11 = vmul.f32 %v7626_v2, %v7854_v1 }
  0x9c   :  { %679 = vadd.xlane.f32.xlu1 %v356_v53  ;;  %677 = vadd.xlane.f32.xlu0 %v355_v27  ;;  %v8084_v53 = vld [vmem:[#allocation2 + $0x420] sm:$0xff]  ;;  %v8106_v27 = vld [vmem:[#allocation2 + $0x448] sm:$0xff] }
  0x9d   :  { %12288 = vst [vmem:[#allocation117_spill] sm:$0xff] %v8084_v53  ;;  %12296 = vst [vmem:[#allocation122_spill] sm:$0xff] %v8106_v27 }
  0xa0   :  { %683 = vadd.xlane.f32.xlu1 %v358_v28  ;;  %681 = vadd.xlane.f32.xlu0 %v357_v20  ;;  %v8100_v20 = vld [vmem:[#allocation2 + $0x430] sm:$0xff] }
  0xa1   :  { %12295 = vst [vmem:[#allocation121_spill] sm:$0xff] %v8100_v20 }
  0xa4   :  { %687 = vadd.xlane.f32.xlu1 %v360_v22  ;;  %685 = vadd.xlane.f32.xlu0 %v359_v21  ;;  %v8092_v28 = vpop.xlane.xlu1 %549  ;;  %v364_v22 = vmul.f32 %v7626_v2, %v7852_v41  ;;  %v8108_v21 = vld [vmem:[#allocation2 + $0x440] sm:$0xff]  ;;  %v8122_v41 = vld [vmem:[#allocation2 + $0x450] sm:$0xff] }
  0xa5   :  { %12291 = vst [vmem:[#allocation118_spill] sm:$0xff] %v8092_v28  ;;  %v8096_v4 = vpop.xlane.xlu0 %545  ;;  %12297 = vst [vmem:[#allocation123_spill] sm:$0xff] %v8108_v21 }
  0xa6   :  { %12293 = vst [vmem:[#allocation119_spill] sm:$0xff] %v8096_v4  ;;  %12301 = vst [vmem:[#allocation127_spill] sm:$0xff] %v8122_v41 }
  0xa8   :  { %691 = vadd.xlane.f32.xlu1 %v362_v33  ;;  %689 = vadd.xlane.f32.xlu0 %v361_v38  ;;  %v8110_v46 = vpop.xlane.xlu1 %551  ;;  %v366_v33 = vmul.f32 %v7626_v2, %v7859_v14  ;;  %v8134_v14 = vld [vmem:[#allocation2 + $0x468] sm:$0xff] }
  0xa9   :  { %12298 = vst [vmem:[#allocation124_spill] sm:$0xff] %v8110_v46  ;;  %v8116_v12 = vpop.xlane.xlu0 %547  ;;  %12304 = vst [vmem:[#allocation130_spill] sm:$0xff] %v8134_v14 }
  0xaa   :  { %12299 = vst [vmem:[#allocation125_spill] sm:$0xff] %v8116_v12 }
  0xac   :  { %695 = vadd.xlane.f32.xlu1 %v364_v22  ;;  %693 = vadd.xlane.f32.xlu0 %v363_v11  ;;  %v8124_v38 = vpop.xlane.xlu1 %555  ;;  %v368_v22 = vmul.f32 %v7626_v2, %v7868_v10  ;;  %v8148_v10 = vld [vmem:[#allocation2 + $0x478] sm:$0xff] }
  0xad   :  { %12302 = vst [vmem:[#allocation128_spill] sm:$0xff] %v8124_v38  ;;  %v8130_v57 = vpop.xlane.xlu0 %553  ;;  %12309 = vst [vmem:[#allocation134_spill] sm:$0xff] %v8148_v10 }
  0xae   :  { %12303 = vst [vmem:[#allocation129_spill] sm:$0xff] %v8130_v57 }
  0xb0   :  { %699 = vadd.xlane.f32.xlu1 %v366_v33  ;;  %697 = vadd.xlane.f32.xlu0 %v365_v6  ;;  %v8138_v11 = vpop.xlane.xlu1 %559  ;;  %v370_v33 = vmul.f32 %v7626_v2, %v7876_v23 }
  0xb1   :  { %12306 = vst [vmem:[#allocation132_spill] sm:$0xff] %v8138_v11  ;;  %v8144_v1 = vpop.xlane.xlu0 %557  ;;  %v140_v11 = vld [vmem:[#allocation2 + $0x390] sm:$0xff] }
  0xb2   :  { %12308 = vst [vmem:[#allocation133_spill] sm:$0xff] %v8144_v1  ;;  %v153_v1 = vld [vmem:[#allocation2 + $0x3f8] sm:$0xff] }
  0xb4   :  { %703 = vadd.xlane.f32.xlu1 %v368_v22  ;;  %701 = vadd.xlane.f32.xlu0 %v367_v62  ;;  %v8152_v6 = vpop.xlane.xlu1 %563  ;;  %v372_v22 = vmul.f32 %v7626_v2, %v7884_v29  ;;  %v371_v62 = vmul.f32 %v7626_v2, %v7886_v26 }
  0xb5   :  { %12311 = vst [vmem:[#allocation136_spill] sm:$0xff] %v8152_v6  ;;  %v8158_v52 = vpop.xlane.xlu0 %561 }
  0xb6   :  { %12312 = vst [vmem:[#allocation137_spill] sm:$0xff] %v8158_v52  ;;  %v8325_v52 = vld [vmem:[#allocation2 + $0x570] sm:$0xff] }
  0xb7   :  { %12362 = vst [vmem:[#allocation183_spill] sm:$0xff] %v8325_v52 }
  0xb8   :  { %707 = vadd.xlane.f32.xlu1 %v370_v33  ;;  %705 = vadd.xlane.f32.xlu0 %v369_v18  ;;  %v8162_v23 = vpop.xlane.xlu1 %567  ;;  %v373_v33 = vmul.f32 %v7626_v2, %v7896_v19  ;;  %v376_v18 = vmul.f32 %v7626_v2, %v7906_v9 }
  0xb9   :  { %12313 = vst [vmem:[#allocation138_spill] sm:$0xff] %v8162_v23  ;;  %v8166_v45 = vpop.xlane.xlu0 %565 }
  0xba   :  { %12314 = vst [vmem:[#allocation139_spill] sm:$0xff] %v8166_v45  ;;  %v8312_v45 = vld [vmem:[#allocation2 + $0x560] sm:$0xff] }
  0xbb   :  { %12358 = vst [vmem:[#allocation179_spill] sm:$0xff] %v8312_v45 }
  0xbc   :  { %711 = vadd.xlane.f32.xlu1 %v372_v22  ;;  %709 = vadd.xlane.f32.xlu0 %v371_v62  ;;  %v8170_v17 = vpop.xlane.xlu1 %571  ;;  %v375_v22 = vmul.f32 %v7626_v2, %v7908_v35  ;;  %v378_v62 = vmul.f32 %v7626_v2, %v7914_v13 }
  0xbd   :  { %12315 = vst [vmem:[#allocation140_spill] sm:$0xff] %v8170_v17  ;;  %v8174_v7 = vpop.xlane.xlu0 %569  ;;  %v389_v17 = vmul.f32 %v7626_v2, %v7974_v49  ;;  %v8296_v49 = vld [vmem:[#allocation2 + $0x558] sm:$0xff] }
  0xbe   :  { %12316 = vst [vmem:[#allocation141_spill] sm:$0xff] %v8174_v7  ;;  %12353 = vst [vmem:[#allocation174_spill] sm:$0xff] %v8296_v49 }
  0xc0   :  { %715 = vadd.xlane.f32.xlu1 %v374_v0  ;;  %713 = vadd.xlane.f32.xlu0 %v373_v33  ;;  %v8178_v26 = vpop.xlane.xlu1 %575  ;;  %v377_v0 = vmul.f32 %v7626_v2, %v12320_v25  ;;  %v12322_v33 = vld [vmem:[#allocation90_spill] sm:$0xff] }
  0xc1   :  { %12317 = vst [vmem:[#allocation142_spill] sm:$0xff] %v8178_v26  ;;  %v8182_v29 = vpop.xlane.xlu0 %573  ;;  %v380_v9 = vmul.f32 %v7626_v2, %v12322_v33 }
  0xc2   :  { %12318 = vst [vmem:[#allocation143_spill] sm:$0xff] %v8182_v29  ;;  %v8242_v29 = vld [vmem:[#allocation2 + $0x510] sm:$0xff] }
  0xc3   :  { %12337 = vst [vmem:[#allocation159_spill] sm:$0xff] %v8242_v29 }
  0xc4   :  { %719 = vadd.xlane.f32.xlu1 %v376_v18  ;;  %717 = vadd.xlane.f32.xlu0 %v375_v22  ;;  %v379_v18 = vmul.f32 %v7626_v2, %v12324_v24  ;;  %v382_v22 = vmul.f32 %v7626_v2, %v7934_v40 }
  0xc5   :  { %v8186_v19 = vpop.xlane.xlu1 %579  ;;  %v8190_v51 = vpop.xlane.xlu0 %577 }
  0xc6   :  { %12319 = vst [vmem:[#allocation144_spill] sm:$0xff] %v8186_v19  ;;  %12321 = vst [vmem:[#allocation145_spill] sm:$0xff] %v8190_v51 }
  0xc8   :  { %723 = vadd.xlane.f32.xlu1 %v378_v62  ;;  %721 = vadd.xlane.f32.xlu0 %v377_v0  ;;  %v381_v62 = vmul.f32 %v7626_v2, %v7936_v36  ;;  %v384_v0 = vmul.f32 %v7626_v2, %v7943_v39  ;;  %v8226_v39 = vld [vmem:[#allocation2 + $0x508] sm:$0xff] }
  0xc9   :  { %v8194_v35 = vpop.xlane.xlu1 %583  ;;  %v8198_v26 = vpop.xlane.xlu0 %581  ;;  %12332 = vst [vmem:[#allocation154_spill] sm:$0xff] %v8226_v39 }
  0xca   :  { %12323 = vst [vmem:[#allocation146_spill] sm:$0xff] %v8194_v35  ;;  %12325 = vst [vmem:[#allocation147_spill] sm:$0xff] %v8198_v26 }
  0xcc   :  { %727 = vadd.xlane.f32.xlu1 %v380_v9  ;;  %725 = vadd.xlane.f32.xlu0 %v379_v18  ;;  %v383_v9 = vmul.f32 %v7626_v2, %v7945_v34  ;;  %v386_v18 = vmul.f32 %v7626_v2, %v7952_v30  ;;  %v8228_v34 = vld [vmem:[#allocation2 + $0x500] sm:$0xff] }
  0xcd   :  { %v8202_v25 = vpop.xlane.xlu1 %587  ;;  %v8206_v13 = vpop.xlane.xlu0 %585  ;;  %12333 = vst [vmem:[#allocation155_spill] sm:$0xff] %v8228_v34 }
  0xce   :  { %12326 = vst [vmem:[#allocation148_spill] sm:$0xff] %v8202_v25  ;;  %12327 = vst [vmem:[#allocation149_spill] sm:$0xff] %v8206_v13  ;;  %v403_v25 = vmul.f32 %v7626_v2, %v140_v11 }
  0xd0   :  { %731 = vadd.xlane.f32.xlu1 %v382_v22  ;;  %729 = vadd.xlane.f32.xlu0 %v381_v62  ;;  %v385_v22 = vmul.f32 %v7626_v2, %v7954_v31  ;;  %v388_v62 = vmul.f32 %v7626_v2, %v7962_v37  ;;  %v8240_v37 = vld [vmem:[#allocation2 + $0x518] sm:$0xff] }
  0xd1   :  { %v8210_v24 = vpop.xlane.xlu1 %591  ;;  %v8214_v33 = vpop.xlane.xlu0 %589  ;;  %12336 = vst [vmem:[#allocation158_spill] sm:$0xff] %v8240_v37 }
  0xd2   :  { %12328 = vst [vmem:[#allocation150_spill] sm:$0xff] %v8210_v24  ;;  %12329 = vst [vmem:[#allocation151_spill] sm:$0xff] %v8214_v33  ;;  %v8323_v24 = vld [vmem:[#allocation2 + $0x578] sm:$0xff] }
  0xd3   :  { %12361 = vst [vmem:[#allocation182_spill] sm:$0xff] %v8323_v24 }
  0xd4   :  { %735 = vadd.xlane.f32.xlu1 %v384_v0  ;;  %733 = vadd.xlane.f32.xlu0 %v383_v9  ;;  %v387_v9 = vmul.f32 %v7626_v2, %v7964_v8 }
  0xd5   :  { %v8218_v36 = vpop.xlane.xlu1 %595  ;;  %v8222_v40 = vpop.xlane.xlu0 %593 }
  0xd6   :  { %12330 = vst [vmem:[#allocation152_spill] sm:$0xff] %v8218_v36  ;;  %12331 = vst [vmem:[#allocation153_spill] sm:$0xff] %v8222_v40  ;;  %v397_v36 = vmul.f32 %v7626_v2, %v8014_v60  ;;  %v399_v40 = vmul.f32 %v7626_v2, %v8023_v56  ;;  %v139_v60 = vld [vmem:[#allocation2 + $0x388] sm:$0xff]  ;;  %v141_v56 = vld [vmem:[#allocation2 + $0x398] sm:$0xff] }
  0xd8   :  { %739 = vadd.xlane.f32.xlu1 %v386_v18  ;;  %737 = vadd.xlane.f32.xlu0 %v385_v22  ;;  %v390_v18 = vmul.f32 %v7626_v2, %v7972_v44  ;;  %v8254_v44 = vld [vmem:[#allocation2 + $0x528] sm:$0xff] }
  0xd9   :  { %v8230_v0 = vpop.xlane.xlu1 %599  ;;  %v8236_v31 = vpop.xlane.xlu0 %597  ;;  %12340 = vst [vmem:[#allocation162_spill] sm:$0xff] %v8254_v44 }
  0xda   :  { %12334 = vst [vmem:[#allocation156_spill] sm:$0xff] %v8230_v0  ;;  %12335 = vst [vmem:[#allocation157_spill] sm:$0xff] %v8236_v31  ;;  %v8256_v0 = vld [vmem:[#allocation2 + $0x520] sm:$0xff] }
  0xdb   :  { %12341 = vst [vmem:[#allocation163_spill] sm:$0xff] %v8256_v0 }
  0xdc   :  { %743 = vadd.xlane.f32.xlu1 %v388_v62  ;;  %741 = vadd.xlane.f32.xlu0 %v387_v9  ;;  %v392_v62 = vmul.f32 %v7626_v2, %v7984_v48 }
  0xdd   :  { %v8244_v22 = vpop.xlane.xlu1 %603  ;;  %v8250_v30 = vpop.xlane.xlu0 %601 }
  0xde   :  { %12338 = vst [vmem:[#allocation160_spill] sm:$0xff] %v8244_v22  ;;  %12339 = vst [vmem:[#allocation161_spill] sm:$0xff] %v8250_v30  ;;  %v391_v22 = vmul.f32 %v7626_v2, %v7986_v59  ;;  %v8276_v59 = vld [vmem:[#allocation2 + $0x530] sm:$0xff] }
  0xdf   :  { %12347 = vst [vmem:[#allocation169_spill] sm:$0xff] %v8276_v59 }
  0xe0   :  { %747 = vadd.xlane.f32.xlu1 %v390_v18  ;;  %745 = vadd.xlane.f32.xlu0 %v389_v17  ;;  %v394_v18 = vmul.f32 %v7626_v2, %v7992_v43  ;;  %v393_v17 = vmul.f32 %v7626_v2, %v7994_v54  ;;  %v8282_v43 = vld [vmem:[#allocation2 + $0x548] sm:$0xff]  ;;  %v12351_v54 = vld [vmem:[#allocation107_spill] sm:$0xff] }
  0xe1   :  { %v8258_v9 = vpop.xlane.xlu1 %607  ;;  %v8264_v8 = vpop.xlane.xlu0 %605  ;;  %12348 = vst [vmem:[#allocation170_spill] sm:$0xff] %v8282_v43  ;;  %v395_v7 = vmul.f32 %v7626_v2, %v12351_v54 }
  0xe2   :  { %12342 = vst [vmem:[#allocation164_spill] sm:$0xff] %v8258_v9  ;;  %12343 = vst [vmem:[#allocation165_spill] sm:$0xff] %v8264_v8  ;;  %v8274_v9 = vld [vmem:[#allocation2 + $0x538] sm:$0xff] }
  0xe3   :  { %12346 = vst [vmem:[#allocation168_spill] sm:$0xff] %v8274_v9 }
  0xe4   :  { %751 = vadd.xlane.f32.xlu1 %v392_v62  ;;  %749 = vadd.xlane.f32.xlu0 %v391_v22  ;;  %v396_v62 = vmul.f32 %v7626_v2, %v8002_v42  ;;  %v8284_v22 = vld [vmem:[#allocation2 + $0x540] sm:$0xff]  ;;  %v8298_v42 = vld [vmem:[#allocation2 + $0x550] sm:$0xff] }
  0xe5   :  { %v8268_v48 = vpop.xlane.xlu1 %611  ;;  %v8272_v30 = vpop.xlane.xlu0 %609  ;;  %12349 = vst [vmem:[#allocation171_spill] sm:$0xff] %v8284_v22  ;;  %12354 = vst [vmem:[#allocation175_spill] sm:$0xff] %v8298_v42 }
  0xe6   :  { %12344 = vst [vmem:[#allocation166_spill] sm:$0xff] %v8268_v48  ;;  %12345 = vst [vmem:[#allocation167_spill] sm:$0xff] %v8272_v30 }
  0xe8   :  { %755 = vadd.xlane.f32.xlu1 %v394_v18  ;;  %753 = vadd.xlane.f32.xlu0 %v393_v17  ;;  %v398_v18 = vmul.f32 %v7626_v2, %v8012_v3  ;;  %v8310_v3 = vld [vmem:[#allocation2 + $0x568] sm:$0xff] }
  0xe9   :  { %v8286_v8 = vpop.xlane.xlu1 %615  ;;  %v8292_v23 = vpop.xlane.xlu0 %613  ;;  %12357 = vst [vmem:[#allocation178_spill] sm:$0xff] %v8310_v3 }
  0xea   :  { %12350 = vst [vmem:[#allocation172_spill] sm:$0xff] %v8286_v8  ;;  %12352 = vst [vmem:[#allocation173_spill] sm:$0xff] %v8292_v23 }
  0xec   :  { %759 = vadd.xlane.f32.xlu1 %v396_v62  ;;  %757 = vadd.xlane.f32.xlu0 %v395_v7  ;;  %v400_v62 = vmul.f32 %v7626_v2, %v8021_v63  ;;  %v402_v63 = vmul.f32 %v7626_v2, %v139_v60 }
  0xed   :  { %v8300_v17 = vpop.xlane.xlu1 %619  ;;  %v8306_v31 = vpop.xlane.xlu0 %617 }
  0xee   :  { %12355 = vst [vmem:[#allocation176_spill] sm:$0xff] %v8300_v17  ;;  %12356 = vst [vmem:[#allocation177_spill] sm:$0xff] %v8306_v31 }
  0xf0   :  { %763 = vadd.xlane.f32.xlu1 %v398_v18  ;;  %761 = vadd.xlane.f32.xlu0 %v397_v36  ;;  %v138_v18 = vld [vmem:[#allocation2 + $0x380] sm:$0xff] }
  0xf1   :  { %v8314_v7 = vpop.xlane.xlu1 %623  ;;  %v8320_v6 = vpop.xlane.xlu0 %621 }
  0xf2   :  { %12359 = vst [vmem:[#allocation180_spill] sm:$0xff] %v8314_v7  ;;  %12360 = vst [vmem:[#allocation181_spill] sm:$0xff] %v8320_v6  ;;  %v401_v7 = vmul.f32 %v7626_v2, %v138_v18 }
  0xf4   :  { %767 = vadd.xlane.f32.xlu1 %v400_v62  ;;  %765 = vadd.xlane.f32.xlu0 %v399_v40  ;;  %v404_v62 = vmul.f32 %v7626_v2, %v141_v56  ;;  %v143_v40 = vld [vmem:[#allocation2 + $0x3a8] sm:$0xff]  ;;  %v144_v56 = vld [vmem:[#allocation2 + $0x3b0] sm:$0xff] }
  0xf5   :  { %v8327_v36 = vpop.xlane.xlu1 %627  ;;  %v8332_v54 = vpop.xlane.xlu0 %625  ;;  %v406_v18 = vmul.f32 %v7626_v2, %v143_v40 }
  0xf6   :  { %12363 = vst [vmem:[#allocation184_spill] sm:$0xff] %v8327_v36  ;;  %12364 = vst [vmem:[#allocation185_spill] sm:$0xff] %v8332_v54  ;;  %v142_v36 = vld [vmem:[#allocation2 + $0x3a0] sm:$0xff] }
  0xf7   :  { %v405_v54 = vmul.f32 %v7626_v2, %v142_v36 }
  0xf8   :  { %771 = vadd.xlane.f32.xlu1 %v402_v63  ;;  %769 = vadd.xlane.f32.xlu0 %v401_v7  ;;  %v145_v63 = vld [vmem:[#allocation2 + $0x3b8] sm:$0xff] }
  0xf9   :  { %v8335_v60 = vpop.xlane.xlu1 %631  ;;  %v8338_v6 = vpop.xlane.xlu0 %629  ;;  %v408_v7 = vmul.f32 %v7626_v2, %v145_v63  ;;  %v8361_v63 = vld [vmem:[%s11728_s1] ss:$0 sm:$0xff] }
  0xfa   :  { %12365 = vst [vmem:[#allocation186_spill] sm:$0xff] %v8335_v60  ;;  %12366 = vst [vmem:[#allocation187_spill] sm:$0xff] %v8338_v6  ;;  %v407_v60 = vmul.f32 %v7626_v2, %v144_v56 }
  0xfc   :  { %775 = vadd.xlane.f32.xlu1 %v404_v62  ;;  %773 = vadd.xlane.f32.xlu0 %v403_v25  ;;  %v147_v62 = vld [vmem:[#allocation2 + $0x3c8] sm:$0xff]  ;;  %v146_v25 = vld [vmem:[#allocation2 + $0x3c0] sm:$0xff] }
  0xfd   :  { %v8341_v33 = vpop.xlane.xlu1 %635  ;;  %v8344_v17 = vpop.xlane.xlu0 %633  ;;  %v410_v40 = vmul.f32 %v7626_v2, %v147_v62  ;;  %v151_v62 = vld [vmem:[#allocation2 + $0x3e8] sm:$0xff] }
  0xfe   :  { %12367 = vst [vmem:[#allocation188_spill] sm:$0xff] %v8341_v33  ;;  %12368 = vst [vmem:[#allocation189_spill] sm:$0xff] %v8344_v17  ;;  %v409_v33 = vmul.f32 %v7626_v2, %v146_v25  ;;  %v150_v2 = vld [vmem:[#allocation2 + $0x3e0] sm:$0xff]  ;;  %v414_v25 = vmul.f32 %v8361_v63, %v151_v62 }
 0x100   :  { %779 = vadd.xlane.f32.xlu1 %v406_v18  ;;  %777 = vadd.xlane.f32.xlu0 %v405_v54  ;;  %v149_v18 = vld [vmem:[#allocation2 + $0x3d8] sm:$0xff]  ;;  %v148_v54 = vld [vmem:[#allocation2 + $0x3d0] sm:$0xff] }
 0x101   :  { %v8347_v11 = vpop.xlane.xlu1 %639  ;;  %v8350_v6 = vpop.xlane.xlu0 %637  ;;  %v412_v56 = vmul.f32 %v8361_v63, %v149_v18  ;;  %v416_v18 = vmul.f32 %v8361_v63, %v153_v1  ;;  %v420_v1 = vmul.f32 %v8361_v63, %v8072_v55  ;;  %v8405_v55 = vld [vmem:[#allocation2 + $0x618] sm:$0xff] }
 0x102   :  { %12369 = vst [vmem:[#allocation190_spill] sm:$0xff] %v8347_v11  ;;  %12370 = vst [vmem:[#allocation191_spill] sm:$0xff] %v8350_v6  ;;  %v413_v6 = vmul.f32 %v8361_v63, %v150_v2  ;;  %v417_v2 = vmul.f32 %v8361_v63, %v8064_v5 }
 0x103   :  { %12385 = vst [vmem:[#allocation206_spill] sm:$0xff] %v8405_v55 }
 0x104   :  { %783 = vadd.xlane.f32.xlu1 %v408_v7  ;;  %781 = vadd.xlane.f32.xlu0 %v407_v60  ;;  %v411_v60 = vmul.f32 %v8361_v63, %v148_v54 }
 0x105   :  { %v8353_v36 = vpop.xlane.xlu1 %643  ;;  %v8356_v17 = vpop.xlane.xlu0 %641 }
 0x106   :  { %12371 = vst [vmem:[#allocation192_spill] sm:$0xff] %v8353_v36  ;;  %12372 = vst [vmem:[#allocation193_spill] sm:$0xff] %v8356_v17 }
 0x108   :  { %787 = vadd.xlane.f32.xlu1 %v410_v40  ;;  %785 = vadd.xlane.f32.xlu0 %v409_v33  ;;  %v152_v33 = vld [vmem:[#allocation2 + $0x3f0] sm:$0xff] }
 0x109   :  { %v8364_v7 = vpop.xlane.xlu1 %647  ;;  %v8367_v11 = vpop.xlane.xlu0 %645 }
 0x10a   :  { %12373 = vst [vmem:[#allocation194_spill] sm:$0xff] %v8364_v7  ;;  %12374 = vst [vmem:[#allocation195_spill] sm:$0xff] %v8367_v11  ;;  %v415_v7 = vmul.f32 %v8361_v63, %v152_v33  ;;  %v8393_v33 = vld [vmem:[#allocation2 + $0x600] sm:$0xff] }
 0x10b   :  { %12382 = vst [vmem:[#allocation203_spill] sm:$0xff] %v8393_v33 }
 0x10c   :  { %791 = vadd.xlane.f32.xlu1 %v412_v56  ;;  %789 = vadd.xlane.f32.xlu0 %v411_v60  ;;  %v418_v60 = vmul.f32 %v8361_v63, %v8062_v16 }
 0x10d   :  { %v8370_v40 = vpop.xlane.xlu1 %651  ;;  %v8373_v13 = vpop.xlane.xlu0 %649 }
 0x10e   :  { %12375 = vst [vmem:[#allocation196_spill] sm:$0xff] %v8370_v40  ;;  %12376 = vst [vmem:[#allocation197_spill] sm:$0xff] %v8373_v13 }
 0x110   :  { %795 = vadd.xlane.f32.xlu1 %v414_v25  ;;  %793 = vadd.xlane.f32.xlu0 %v413_v6  ;;  %v8391_v6 = vld [vmem:[#allocation2 + $0x608] sm:$0xff] }
 0x111   :  { %v8376_v54 = vpop.xlane.xlu1 %655  ;;  %v8379_v56 = vpop.xlane.xlu0 %653  ;;  %12381 = vst [vmem:[#allocation202_spill] sm:$0xff] %v8391_v6 }
 0x112   :  { %12377 = vst [vmem:[#allocation198_spill] sm:$0xff] %v8376_v54  ;;  %12378 = vst [vmem:[#allocation199_spill] sm:$0xff] %v8379_v56  ;;  %v8490_v54 = vld [vmem:[#allocation2 + $0x670] sm:$0xff] }
 0x113   :  { %12410 = vst [vmem:[#allocation231_spill] sm:$0xff] %v8490_v54 }
 0x114   :  { %799 = vadd.xlane.f32.xlu1 %v416_v18  ;;  %797 = vadd.xlane.f32.xlu0 %v415_v7  ;;  %v419_v7 = vmul.f32 %v8361_v63, %v8074_v50 }
 0x115   :  { %v8383_v62 = vpop.xlane.xlu1 %659  ;;  %v8387_v25 = vpop.xlane.xlu0 %657 }
 0x116   :  { %12379 = vst [vmem:[#allocation200_spill] sm:$0xff] %v8383_v62  ;;  %12380 = vst [vmem:[#allocation201_spill] sm:$0xff] %v8387_v25  ;;  %v8407_v62 = vld [vmem:[#allocation2 + $0x610] sm:$0xff] }
 0x117   :  { %12386 = vst [vmem:[#allocation207_spill] sm:$0xff] %v8407_v62 }
 0x118   :  { %803 = vadd.xlane.f32.xlu1 %v418_v60  ;;  %801 = vadd.xlane.f32.xlu0 %v417_v2  ;;  %v422_v60 = vmul.f32 %v8361_v63, %v8082_v47  ;;  %v8419_v47 = vld [vmem:[#allocation2 + $0x628] sm:$0xff] }
 0x119   :  { %v8395_v18 = vpop.xlane.xlu1 %663  ;;  %v8401_v5 = vpop.xlane.xlu0 %661  ;;  %12389 = vst [vmem:[#allocation210_spill] sm:$0xff] %v8419_v47 }
 0x11a   :  { %12383 = vst [vmem:[#allocation204_spill] sm:$0xff] %v8395_v18  ;;  %12384 = vst [vmem:[#allocation205_spill] sm:$0xff] %v8401_v5  ;;  %v421_v18 = vmul.f32 %v8361_v63, %v8084_v53  ;;  %v8421_v5 = vld [vmem:[#allocation2 + $0x620] sm:$0xff]  ;;  %v8461_v53 = vld [vmem:[#allocation2 + $0x658] sm:$0xff] }
 0x11b   :  { %12390 = vst [vmem:[#allocation211_spill] sm:$0xff] %v8421_v5  ;;  %12401 = vst [vmem:[#allocation222_spill] sm:$0xff] %v8461_v53 }
 0x11c   :  { %807 = vadd.xlane.f32.xlu1 %v420_v1  ;;  %805 = vadd.xlane.f32.xlu0 %v419_v7  ;;  %v424_v1 = vmul.f32 %v8361_v63, %v8098_v32 }
 0x11d   :  { %v8409_v2 = vpop.xlane.xlu1 %667  ;;  %v8415_v16 = vpop.xlane.xlu0 %665 }
 0x11e   :  { %12387 = vst [vmem:[#allocation208_spill] sm:$0xff] %v8409_v2  ;;  %12388 = vst [vmem:[#allocation209_spill] sm:$0xff] %v8415_v16  ;;  %v423_v2 = vmul.f32 %v8361_v63, %v8100_v20  ;;  %v8441_v20 = vld [vmem:[#allocation2 + $0x630] sm:$0xff] }
 0x11f   :  { %12396 = vst [vmem:[#allocation217_spill] sm:$0xff] %v8441_v20 }
 0x120   :  { %811 = vadd.xlane.f32.xlu1 %v422_v60  ;;  %809 = vadd.xlane.f32.xlu0 %v421_v18  ;;  %v426_v60 = vmul.f32 %v8361_v63, %v8106_v27  ;;  %v425_v18 = vmul.f32 %v8361_v63, %v8108_v21  ;;  %v8447_v27 = vld [vmem:[#allocation2 + $0x648] sm:$0xff]  ;;  %v427_v21 = vmul.f32 %v8361_v63, %v8122_v41 }
 0x121   :  { %v8423_v7 = vpop.xlane.xlu1 %671  ;;  %v8429_v50 = vpop.xlane.xlu0 %669  ;;  %12397 = vst [vmem:[#allocation218_spill] sm:$0xff] %v8447_v27 }
 0x122   :  { %12391 = vst [vmem:[#allocation212_spill] sm:$0xff] %v8423_v7  ;;  %12392 = vst [vmem:[#allocation213_spill] sm:$0xff] %v8429_v50  ;;  %v8439_v7 = vld [vmem:[#allocation2 + $0x638] sm:$0xff] }
 0x123   :  { %12395 = vst [vmem:[#allocation216_spill] sm:$0xff] %v8439_v7 }
 0x124   :  { %815 = vadd.xlane.f32.xlu1 %v424_v1  ;;  %813 = vadd.xlane.f32.xlu0 %v423_v2  ;;  %v428_v1 = vmul.f32 %v8361_v63, %v8120_v15  ;;  %v8449_v2 = vld [vmem:[#allocation2 + $0x640] sm:$0xff]  ;;  %v8463_v15 = vld [vmem:[#allocation2 + $0x650] sm:$0xff] }
 0x125   :  { %v8433_v32 = vpop.xlane.xlu1 %675  ;;  %v8437_v16 = vpop.xlane.xlu0 %673  ;;  %12398 = vst [vmem:[#allocation219_spill] sm:$0xff] %v8449_v2  ;;  %12402 = vst [vmem:[#allocation223_spill] sm:$0xff] %v8463_v15 }
 0x126   :  { %12393 = vst [vmem:[#allocation214_spill] sm:$0xff] %v8433_v32  ;;  %12394 = vst [vmem:[#allocation215_spill] sm:$0xff] %v8437_v16 }
 0x128   :  { %819 = vadd.xlane.f32.xlu1 %v426_v60  ;;  %817 = vadd.xlane.f32.xlu0 %v425_v18  ;;  %v430_v60 = vmul.f32 %v8361_v63, %v8134_v14  ;;  %v8475_v14 = vld [vmem:[#allocation2 + $0x668] sm:$0xff] }
 0x129   :  { %v8451_v50 = vpop.xlane.xlu1 %679  ;;  %v8457_v32 = vpop.xlane.xlu0 %677  ;;  %12405 = vst [vmem:[#allocation226_spill] sm:$0xff] %v8475_v14 }
 0x12a   :  { %12399 = vst [vmem:[#allocation220_spill] sm:$0xff] %v8451_v50  ;;  %12400 = vst [vmem:[#allocation221_spill] sm:$0xff] %v8457_v32  ;;  %v429_v50 = vmul.f32 %v8361_v63, %v8136_v58  ;;  %v8477_v32 = vld [vmem:[#allocation2 + $0x660] sm:$0xff]  ;;  %v171_v58 = vld [vmem:[#allocation2 + $0x488] sm:$0xff] }
 0x12b   :  { %12406 = vst [vmem:[#allocation227_spill] sm:$0xff] %v8477_v32 }
 0x12c   :  { %823 = vadd.xlane.f32.xlu1 %v428_v1  ;;  %821 = vadd.xlane.f32.xlu0 %v427_v21  ;;  %v432_v1 = vmul.f32 %v8361_v63, %v8148_v10  ;;  %v434_v10 = vmul.f32 %v8361_v63, %v171_v58 }
 0x12d   :  { %v8465_v18 = vpop.xlane.xlu1 %683  ;;  %v8471_v16 = vpop.xlane.xlu0 %681 }
 0x12e   :  { %12403 = vst [vmem:[#allocation224_spill] sm:$0xff] %v8465_v18  ;;  %12404 = vst [vmem:[#allocation225_spill] sm:$0xff] %v8471_v16  ;;  %v431_v18 = vmul.f32 %v8361_v63, %v8150_v61  ;;  %v8488_v16 = vld [vmem:[#allocation2 + $0x678] sm:$0xff] }
 0x12f   :  { %12409 = vst [vmem:[#allocation230_spill] sm:$0xff] %v8488_v16  ;;  %v173_v61 = vld [vmem:[#allocation2 + $0x498] sm:$0xff] }
 0x130   :  { %827 = vadd.xlane.f32.xlu1 %v430_v60  ;;  %825 = vadd.xlane.f32.xlu0 %v429_v50  ;;  %v170_v60 = vld [vmem:[#allocation2 + $0x480] sm:$0xff] }
 0x131   :  { %v8479_v21 = vpop.xlane.xlu1 %687  ;;  %v8485_v25 = vpop.xlane.xlu0 %685 }
 0x132   :  { %12407 = vst [vmem:[#allocation228_spill] sm:$0xff] %v8479_v21  ;;  %12408 = vst [vmem:[#allocation229_spill] sm:$0xff] %v8485_v25  ;;  %v433_v21 = vmul.f32 %v8361_v63, %v170_v60  ;;  %v172_v25 = vld [vmem:[#allocation2 + $0x490] sm:$0xff] }
 0x133   :  { %v435_v40 = vmul.f32 %v8361_v63, %v172_v25 }
 0x134   :  { %831 = vadd.xlane.f32.xlu1 %v432_v1  ;;  %829 = vadd.xlane.f32.xlu0 %v431_v18  ;;  %v436_v1 = vmul.f32 %v8361_v63, %v173_v61  ;;  %v175_v18 = vld [vmem:[#allocation2 + $0x4a8] sm:$0xff]  ;;  %v176_v61 = vld [vmem:[#allocation2 + $0x4b0] sm:$0xff] }
 0x135   :  { %v8492_v50 = vpop.xlane.xlu1 %691  ;;  %v8497_v41 = vpop.xlane.xlu0 %689  ;;  %v438_v60 = vmul.f32 %v8361_v63, %v175_v18 }
 0x136   :  { %12411 = vst [vmem:[#allocation232_spill] sm:$0xff] %v8492_v50  ;;  %12412 = vst [vmem:[#allocation233_spill] sm:$0xff] %v8497_v41  ;;  %v174_v50 = vld [vmem:[#allocation2 + $0x4a0] sm:$0xff] }
 0x137   :  { %v437_v41 = vmul.f32 %v8361_v63, %v174_v50 }
 0x138   :  { %835 = vadd.xlane.f32.xlu1 %v434_v10  ;;  %833 = vadd.xlane.f32.xlu0 %v433_v21  ;;  %v177_v10 = vld [vmem:[#allocation2 + $0x4b8] sm:$0xff] }
 0x139   :  { %v8500_v58 = vpop.xlane.xlu1 %695  ;;  %v8503_v13 = vpop.xlane.xlu0 %693  ;;  %v440_v21 = vmul.f32 %v8361_v63, %v177_v10 }
 0x13a   :  { %12413 = vst [vmem:[#allocation234_spill] sm:$0xff] %v8500_v58  ;;  %12414 = vst [vmem:[#allocation235_spill] sm:$0xff] %v8503_v13  ;;  %v439_v58 = vmul.f32 %v8361_v63, %v176_v61 }
 0x13c   :  { %839 = vadd.xlane.f32.xlu1 %v436_v1  ;;  %837 = vadd.xlane.f32.xlu0 %v435_v40  ;;  %v179_v1 = vld [vmem:[#allocation2 + $0x4c8] sm:$0xff]  ;;  %v178_v40 = vld [vmem:[#allocation2 + $0x4c0] sm:$0xff] }
 0x13d   :  { %v8506_v56 = vpop.xlane.xlu1 %699  ;;  %v8509_v38 = vpop.xlane.xlu0 %697  ;;  %v442_v18 = vmul.f32 %v8361_v63, %v179_v1 }
 0x13e   :  { %12415 = vst [vmem:[#allocation236_spill] sm:$0xff] %v8506_v56  ;;  %12416 = vst [vmem:[#allocation237_spill] sm:$0xff] %v8509_v38  ;;  %v441_v56 = vmul.f32 %v8361_v63, %v178_v40 }
 0x140   :  { %843 = vadd.xlane.f32.xlu1 %v438_v60  ;;  %841 = vadd.xlane.f32.xlu0 %v437_v41  ;;  %v181_v60 = vld [vmem:[#allocation2 + $0x4d8] sm:$0xff]  ;;  %v180_v41 = vld [vmem:[#allocation2 + $0x4d0] sm:$0xff] }
 0x141   :  { %v8512_v25 = vpop.xlane.xlu1 %703  ;;  %v8515_v13 = vpop.xlane.xlu0 %701  ;;  %v444_v10 = vmul.f32 %v8361_v63, %v181_v60 }
 0x142   :  { %12417 = vst [vmem:[#allocation238_spill] sm:$0xff] %v8512_v25  ;;  %12418 = vst [vmem:[#allocation239_spill] sm:$0xff] %v8515_v13  ;;  %v443_v25 = vmul.f32 %v8361_v63, %v180_v41 }
 0x144   :  { %847 = vadd.xlane.f32.xlu1 %v440_v21  ;;  %845 = vadd.xlane.f32.xlu0 %v439_v58  ;;  %v183_v21 = vld [vmem:[#allocation2 + $0x4e8] sm:$0xff]  ;;  %v182_v58 = vld [vmem:[#allocation2 + $0x4e0] sm:$0xff] }
 0x145   :  { %v8518_v50 = vpop.xlane.xlu1 %707  ;;  %v8521_v38 = vpop.xlane.xlu0 %705  ;;  %v446_v1 = vmul.f32 %v8361_v63, %v183_v21 }
 0x146   :  { %12419 = vst [vmem:[#allocation240_spill] sm:$0xff] %v8518_v50  ;;  %12420 = vst [vmem:[#allocation241_spill] sm:$0xff] %v8521_v38  ;;  %v445_v38 = vmul.f32 %v8361_v63, %v182_v58  ;;  %v449_v58 = vmul.f32 %v8361_v63, %v8228_v34 }
 0x148   :  { %851 = vadd.xlane.f32.xlu1 %v442_v18  ;;  %849 = vadd.xlane.f32.xlu0 %v441_v56  ;;  %v185_v18 = vld [vmem:[#allocation2 + $0x4f8] sm:$0xff]  ;;  %v184_v56 = vld [vmem:[#allocation2 + $0x4f0] sm:$0xff] }
 0x149   :  { %v8524_v61 = vpop.xlane.xlu1 %711  ;;  %v8527_v13 = vpop.xlane.xlu0 %709  ;;  %v448_v60 = vmul.f32 %v8361_v63, %v185_v18  ;;  %v8551_v18 = vld [vmem:[#allocation2 + $0x708] sm:$0xff] }
 0x14a   :  { %12421 = vst [vmem:[#allocation242_spill] sm:$0xff] %v8524_v61  ;;  %12422 = vst [vmem:[#allocation243_spill] sm:$0xff] %v8527_v13  ;;  %v447_v61 = vmul.f32 %v8361_v63, %v184_v56  ;;  %v8553_v56 = vld [vmem:[#allocation2 + $0x700] sm:$0xff] }
 0x14b   :  { %12429 = vst [vmem:[#allocation250_spill] sm:$0xff] %v8551_v18  ;;  %12430 = vst [vmem:[#allocation251_spill] sm:$0xff] %v8553_v56 }
 0x14c   :  { %855 = vadd.xlane.f32.xlu1 %v444_v10  ;;  %853 = vadd.xlane.f32.xlu0 %v443_v25  ;;  %v450_v25 = vmul.f32 %v8361_v63, %v8226_v39 }
 0x14d   :  { %v8530_v40 = vpop.xlane.xlu1 %715  ;;  %v8533_v50 = vpop.xlane.xlu0 %713 }
 0x14e   :  { %12423 = vst [vmem:[#allocation244_spill] sm:$0xff] %v8530_v40  ;;  %12424 = vst [vmem:[#allocation245_spill] sm:$0xff] %v8533_v50  ;;  %v8637_v40 = vld [vmem:[#allocation2 + $0x760] sm:$0xff]  ;;  %v8650_v50 = vld [vmem:[#allocation2 + $0x770] sm:$0xff] }
 0x14f   :  { %12454 = vst [vmem:[#allocation275_spill] sm:$0xff] %v8637_v40  ;;  %12458 = vst [vmem:[#allocation279_spill] sm:$0xff] %v8650_v50 }
 0x150   :  { %859 = vadd.xlane.f32.xlu1 %v446_v1  ;;  %857 = vadd.xlane.f32.xlu0 %v445_v38  ;;  %v452_v38 = vmul.f32 %v8361_v63, %v8240_v37  ;;  %v8565_v37 = vld [vmem:[#allocation2 + $0x718] sm:$0xff] }
 0x151   :  { %v8536_v41 = vpop.xlane.xlu1 %719  ;;  %v8539_v10 = vpop.xlane.xlu0 %717  ;;  %12433 = vst [vmem:[#allocation254_spill] sm:$0xff] %v8565_v37 }
 0x152   :  { %12425 = vst [vmem:[#allocation246_spill] sm:$0xff] %v8536_v41  ;;  %12426 = vst [vmem:[#allocation247_spill] sm:$0xff] %v8539_v10  ;;  %v461_v10 = vmul.f32 %v8361_v63, %v8312_v45  ;;  %v203_v45 = vld [vmem:[#allocation2 + $0x588] sm:$0xff] }
 0x154   :  { %863 = vadd.xlane.f32.xlu1 %v448_v60  ;;  %861 = vadd.xlane.f32.xlu0 %v447_v61  ;;  %v451_v61 = vmul.f32 %v8361_v63, %v8242_v29 }
 0x155   :  { %v8543_v21 = vpop.xlane.xlu1 %723  ;;  %v8547_v1 = vpop.xlane.xlu0 %721 }
 0x156   :  { %12427 = vst [vmem:[#allocation248_spill] sm:$0xff] %v8543_v21  ;;  %12428 = vst [vmem:[#allocation249_spill] sm:$0xff] %v8547_v1  ;;  %v8567_v21 = vld [vmem:[#allocation2 + $0x710] sm:$0xff] }
 0x157   :  { %12434 = vst [vmem:[#allocation255_spill] sm:$0xff] %v8567_v21 }
 0x158   :  { %867 = vadd.xlane.f32.xlu1 %v450_v25  ;;  %865 = vadd.xlane.f32.xlu0 %v449_v58  ;;  %v454_v25 = vmul.f32 %v8361_v63, %v8254_v44  ;;  %v8579_v44 = vld [vmem:[#allocation2 + $0x728] sm:$0xff] }
 0x159   :  { %v8555_v60 = vpop.xlane.xlu1 %727  ;;  %v8561_v34 = vpop.xlane.xlu0 %725  ;;  %12437 = vst [vmem:[#allocation258_spill] sm:$0xff] %v8579_v44 }
 0x15a   :  { %12431 = vst [vmem:[#allocation252_spill] sm:$0xff] %v8555_v60  ;;  %12432 = vst [vmem:[#allocation253_spill] sm:$0xff] %v8561_v34  ;;  %v453_v60 = vmul.f32 %v8361_v63, %v8256_v0  ;;  %v8581_v34 = vld [vmem:[#allocation2 + $0x720] sm:$0xff]  ;;  %v8621_v0 = vld [vmem:[#allocation2 + $0x758] sm:$0xff] }
 0x15b   :  { %12438 = vst [vmem:[#allocation259_spill] sm:$0xff] %v8581_v34  ;;  %12449 = vst [vmem:[#allocation270_spill] sm:$0xff] %v8621_v0 }
 0x15c   :  { %871 = vadd.xlane.f32.xlu1 %v452_v38  ;;  %869 = vadd.xlane.f32.xlu0 %v451_v61  ;;  %v456_v38 = vmul.f32 %v8361_v63, %v8274_v9 }
 0x15d   :  { %v8569_v58 = vpop.xlane.xlu1 %731  ;;  %v8575_v39 = vpop.xlane.xlu0 %729 }
 0x15e   :  { %12435 = vst [vmem:[#allocation256_spill] sm:$0xff] %v8569_v58  ;;  %12436 = vst [vmem:[#allocation257_spill] sm:$0xff] %v8575_v39  ;;  %v455_v58 = vmul.f32 %v8361_v63, %v8276_v59  ;;  %v8597_v39 = vld [vmem:[#allocation2 + $0x738] sm:$0xff] }
 0x15f   :  { %12442 = vst [vmem:[#allocation263_spill] sm:$0xff] %v8597_v39 }
 0x160   :  { %875 = vadd.xlane.f32.xlu1 %v454_v25  ;;  %873 = vadd.xlane.f32.xlu0 %v453_v60  ;;  %v458_v25 = vmul.f32 %v8361_v63, %v8282_v43  ;;  %v457_v60 = vmul.f32 %v8361_v63, %v8284_v22  ;;  %v8607_v43 = vld [vmem:[#allocation2 + $0x748] sm:$0xff]  ;;  %v459_v22 = vmul.f32 %v8361_v63, %v8298_v42 }
 0x161   :  { %v8583_v61 = vpop.xlane.xlu1 %735  ;;  %v8589_v29 = vpop.xlane.xlu0 %733  ;;  %12445 = vst [vmem:[#allocation266_spill] sm:$0xff] %v8607_v43 }
 0x162   :  { %12439 = vst [vmem:[#allocation260_spill] sm:$0xff] %v8583_v61  ;;  %12440 = vst [vmem:[#allocation261_spill] sm:$0xff] %v8589_v29  ;;  %v8599_v61 = vld [vmem:[#allocation2 + $0x730] sm:$0xff] }
 0x163   :  { %12443 = vst [vmem:[#allocation264_spill] sm:$0xff] %v8599_v61 }
 0x164   :  { %879 = vadd.xlane.f32.xlu1 %v456_v38  ;;  %877 = vadd.xlane.f32.xlu0 %v455_v58  ;;  %v460_v38 = vmul.f32 %v8361_v63, %v8296_v49  ;;  %v8609_v58 = vld [vmem:[#allocation2 + $0x740] sm:$0xff]  ;;  %v8623_v49 = vld [vmem:[#allocation2 + $0x750] sm:$0xff] }
 0x165   :  { %v8593_v9 = vpop.xlane.xlu1 %739  ;;  %v8601_v59 = vpop.xlane.xlu0 %737  ;;  %12446 = vst [vmem:[#allocation267_spill] sm:$0xff] %v8609_v58  ;;  %12450 = vst [vmem:[#allocation271_spill] sm:$0xff] %v8623_v49 }
 0x166   :  { %12441 = vst [vmem:[#allocation262_spill] sm:$0xff] %v8593_v9  ;;  %12444 = vst [vmem:[#allocation265_spill] sm:$0xff] %v8601_v59 }
 0x168   :  { %883 = vadd.xlane.f32.xlu1 %v458_v25  ;;  %881 = vadd.xlane.f32.xlu0 %v457_v60  ;;  %v462_v25 = vmul.f32 %v8361_v63, %v8310_v3  ;;  %v8635_v3 = vld [vmem:[#allocation2 + $0x768] sm:$0xff] }
 0x169   :  { %v8611_v29 = vpop.xlane.xlu1 %743  ;;  %v8617_v41 = vpop.xlane.xlu0 %741  ;;  %12453 = vst [vmem:[#allocation274_spill] sm:$0xff] %v8635_v3 }
 0x16a   :  { %12447 = vst [vmem:[#allocation268_spill] sm:$0xff] %v8611_v29  ;;  %12448 = vst [vmem:[#allocation269_spill] sm:$0xff] %v8617_v41 }
 0x16c   :  { %887 = vadd.xlane.f32.xlu1 %v460_v38  ;;  %885 = vadd.xlane.f32.xlu0 %v459_v22  ;;  %v464_v38 = vmul.f32 %v8361_v63, %v8323_v24  ;;  %v466_v24 = vmul.f32 %v8361_v63, %v203_v45 }
 0x16d   :  { %v8625_v60 = vpop.xlane.xlu1 %747  ;;  %v8631_v1 = vpop.xlane.xlu0 %745 }
 0x16e   :  { %12451 = vst [vmem:[#allocation272_spill] sm:$0xff] %v8625_v60  ;;  %12452 = vst [vmem:[#allocation273_spill] sm:$0xff] %v8631_v1  ;;  %v463_v60 = vmul.f32 %v8361_v63, %v8325_v52  ;;  %v8648_v1 = vld [vmem:[#allocation2 + $0x778] sm:$0xff] }
 0x16f   :  { %12457 = vst [vmem:[#allocation278_spill] sm:$0xff] %v8648_v1  ;;  %v205_v52 = vld [vmem:[#allocation2 + $0x598] sm:$0xff] }
 0x170   :  { %891 = vadd.xlane.f32.xlu1 %v462_v25  ;;  %889 = vadd.xlane.f32.xlu0 %v461_v10  ;;  %v202_v25 = vld [vmem:[#allocation2 + $0x580] sm:$0xff] }
 0x171   :  { %v8639_v22 = vpop.xlane.xlu1 %751  ;;  %v8645_v29 = vpop.xlane.xlu0 %749 }
 0x172   :  { %12455 = vst [vmem:[#allocation276_spill] sm:$0xff] %v8639_v22  ;;  %12456 = vst [vmem:[#allocation277_spill] sm:$0xff] %v8645_v29  ;;  %v465_v22 = vmul.f32 %v8361_v63, %v202_v25  ;;  %v204_v29 = vld [vmem:[#allocation2 + $0x590] sm:$0xff] }
 0x173   :  { %v467_v59 = vmul.f32 %v8361_v63, %v204_v29 }
 0x174   :  { %895 = vadd.xlane.f32.xlu1 %v464_v38  ;;  %893 = vadd.xlane.f32.xlu0 %v463_v60  ;;  %v468_v38 = vmul.f32 %v8361_v63, %v205_v52  ;;  %v207_v60 = vld [vmem:[#allocation2 + $0x5a8] sm:$0xff]  ;;  %v208_v52 = vld [vmem:[#allocation2 + $0x5b0] sm:$0xff] }
 0x175   :  { %v8652_v10 = vpop.xlane.xlu1 %755  ;;  %v8657_v42 = vpop.xlane.xlu0 %753  ;;  %v470_v25 = vmul.f32 %v8361_v63, %v207_v60 }
 0x176   :  { %12459 = vst [vmem:[#allocation280_spill] sm:$0xff] %v8652_v10  ;;  %12460 = vst [vmem:[#allocation281_spill] sm:$0xff] %v8657_v42  ;;  %v206_v10 = vld [vmem:[#allocation2 + $0x5a0] sm:$0xff] }
 0x177   :  { %v469_v42 = vmul.f32 %v8361_v63, %v206_v10 }
 0x178   :  { %899 = vadd.xlane.f32.xlu1 %v466_v24  ;;  %897 = vadd.xlane.f32.xlu0 %v465_v22  ;;  %v209_v24 = vld [vmem:[#allocation2 + $0x5b8] sm:$0xff] }
 0x179   :  { %v8660_v45 = vpop.xlane.xlu1 %759  ;;  %v8663_v9 = vpop.xlane.xlu0 %757  ;;  %v472_v22 = vmul.f32 %v8361_v63, %v209_v24 }
 0x17a   :  { %12461 = vst [vmem:[#allocation282_spill] sm:$0xff] %v8660_v45  ;;  %12462 = vst [vmem:[#allocation283_spill] sm:$0xff] %v8663_v9  ;;  %v471_v45 = vmul.f32 %v8361_v63, %v208_v52 }
 0x17c   :  { %903 = vadd.xlane.f32.xlu1 %v468_v38  ;;  %901 = vadd.xlane.f32.xlu0 %v467_v59  ;;  %v211_v38 = vld [vmem:[#allocation2 + $0x5c8] sm:$0xff]  ;;  %v210_v59 = vld [vmem:[#allocation2 + $0x5c0] sm:$0xff] }
 0x17d   :  { %v8666_v41 = vpop.xlane.xlu1 %763  ;;  %v8669_v13 = vpop.xlane.xlu0 %761  ;;  %v474_v60 = vmul.f32 %v8361_v63, %v211_v38 }
 0x17e   :  { %12463 = vst [vmem:[#allocation284_spill] sm:$0xff] %v8666_v41  ;;  %12464 = vst [vmem:[#allocation285_spill] sm:$0xff] %v8669_v13  ;;  %v473_v41 = vmul.f32 %v8361_v63, %v210_v59 }
 0x180   :  { %907 = vadd.xlane.f32.xlu1 %v470_v25  ;;  %905 = vadd.xlane.f32.xlu0 %v469_v42  ;;  %v213_v25 = vld [vmem:[#allocation2 + $0x5d8] sm:$0xff]  ;;  %v212_v42 = vld [vmem:[#allocation2 + $0x5d0] sm:$0xff] }
 0x181   :  { %v8672_v29 = vpop.xlane.xlu1 %767  ;;  %v8675_v9 = vpop.xlane.xlu0 %765  ;;  %v476_v24 = vmul.f32 %v8361_v63, %v213_v25 }
 0x182   :  { %12465 = vst [vmem:[#allocation286_spill] sm:$0xff] %v8672_v29  ;;  %12466 = vst [vmem:[#allocation287_spill] sm:$0xff] %v8675_v9  ;;  %v475_v29 = vmul.f32 %v8361_v63, %v212_v42 }
 0x184   :  { %911 = vadd.xlane.f32.xlu1 %v472_v22  ;;  %909 = vadd.xlane.f32.xlu0 %v471_v45  ;;  %v215_v22 = vld [vmem:[#allocation2 + $0x5e8] sm:$0xff]  ;;  %v214_v45 = vld [vmem:[#allocation2 + $0x5e0] sm:$0xff] }
 0x185   :  { %v8678_v10 = vpop.xlane.xlu1 %771  ;;  %v8681_v13 = vpop.xlane.xlu0 %769  ;;  %v478_v38 = vmul.f32 %v8361_v63, %v215_v22 }
 0x186   :  { %12467 = vst [vmem:[#allocation288_spill] sm:$0xff] %v8678_v10  ;;  %12468 = vst [vmem:[#allocation289_spill] sm:$0xff] %v8681_v13  ;;  %v477_v13 = vmul.f32 %v8361_v63, %v214_v45  ;;  %v481_v45 = vmul.f32 %v8361_v63, %v8393_v33 }
 0x188   :  { %915 = vadd.xlane.f32.xlu1 %v474_v60  ;;  %913 = vadd.xlane.f32.xlu0 %v473_v41  ;;  %v217_v60 = vld [vmem:[#allocation2 + $0x5f8] sm:$0xff]  ;;  %v216_v41 = vld [vmem:[#allocation2 + $0x5f0] sm:$0xff] }
 0x189   :  { %v8684_v52 = vpop.xlane.xlu1 %775  ;;  %v8687_v9 = vpop.xlane.xlu0 %773  ;;  %v480_v25 = vmul.f32 %v8361_v63, %v217_v60 }
 0x18a   :  { %12469 = vst [vmem:[#allocation290_spill] sm:$0xff] %v8684_v52  ;;  %12470 = vst [vmem:[#allocation291_spill] sm:$0xff] %v8687_v9  ;;  %v479_v52 = vmul.f32 %v8361_v63, %v216_v41  ;;  %v483_v41 = vmul.f32 %v8361_v63, %v8407_v62 }
 0x18c   :  { %919 = vadd.xlane.f32.xlu1 %v476_v24  ;;  %917 = vadd.xlane.f32.xlu0 %v475_v29  ;;  %v482_v29 = vmul.f32 %v8361_v63, %v8391_v6 }
 0x18d   :  { %v8690_v59 = vpop.xlane.xlu1 %779  ;;  %v8693_v10 = vpop.xlane.xlu0 %777 }
 0x18e   :  { %12471 = vst [vmem:[#allocation292_spill] sm:$0xff] %v8690_v59  ;;  %12472 = vst [vmem:[#allocation293_spill] sm:$0xff] %v8693_v10 }
 0x190   :  { %923 = vadd.xlane.f32.xlu1 %v478_v38  ;;  %921 = vadd.xlane.f32.xlu0 %v477_v13  ;;  %v484_v13 = vmul.f32 %v8361_v63, %v8405_v55 }
 0x191   :  { %v8696_v42 = vpop.xlane.xlu1 %783  ;;  %v8699_v24 = vpop.xlane.xlu0 %781 }
 0x192   :  { %12473 = vst [vmem:[#allocation294_spill] sm:$0xff] %v8696_v42  ;;  %12474 = vst [vmem:[#allocation295_spill] sm:$0xff] %v8699_v24 }
 0x194   :  { %927 = vadd.xlane.f32.xlu1 %v480_v25  ;;  %925 = vadd.xlane.f32.xlu0 %v479_v52  ;;  %v486_v52 = vmul.f32 %v8361_v63, %v8419_v47 }
 0x195   :  { %v8703_v22 = vpop.xlane.xlu1 %787  ;;  %v8707_v38 = vpop.xlane.xlu0 %785 }
 0x196   :  { %12475 = vst [vmem:[#allocation296_spill] sm:$0xff] %v8703_v22  ;;  %12476 = vst [vmem:[#allocation297_spill] sm:$0xff] %v8707_v38 }
 0x198   :  { %931 = vadd.xlane.f32.xlu1 %v482_v29  ;;  %929 = vadd.xlane.f32.xlu0 %v481_v45  ;;  %v485_v29 = vmul.f32 %v8361_v63, %v8421_v5  ;;  %v488_v45 = vmul.f32 %v8361_v63, %v8439_v7 }
 0x199   :  { %v8711_v60 = vpop.xlane.xlu1 %791  ;;  %v8715_v25 = vpop.xlane.xlu0 %789 }
 0x19a   :  { %12477 = vst [vmem:[#allocation298_spill] sm:$0xff] %v8711_v60  ;;  %12478 = vst [vmem:[#allocation299_spill] sm:$0xff] %v8715_v25 }
 0x19c   :  { %935 = vadd.xlane.f32.xlu1 %v484_v13  ;;  %933 = vadd.xlane.f32.xlu0 %v483_v41  ;;  %v487_v13 = vmul.f32 %v8361_v63, %v8441_v20  ;;  %v490_v41 = vmul.f32 %v8361_v63, %v8447_v27 }
 0x19d   :  { %v8719_v33 = vpop.xlane.xlu1 %795  ;;  %v8723_v6 = vpop.xlane.xlu0 %793 }
 0x19e   :  { %12479 = vst [vmem:[#allocation300_spill] sm:$0xff] %v8719_v33  ;;  %12480 = vst [vmem:[#allocation301_spill] sm:$0xff] %v8723_v6 }
 0x1a0   :  { %939 = vadd.xlane.f32.xlu1 %v486_v52  ;;  %937 = vadd.xlane.f32.xlu0 %v485_v29  ;;  %v489_v52 = vmul.f32 %v8361_v63, %v8449_v2  ;;  %v492_v29 = vmul.f32 %v8361_v63, %v8461_v53  ;;  %v235_v53 = vld [vmem:[#allocation2 + $0x688] sm:$0xff] }
 0x1a1   :  { %v8727_v62 = vpop.xlane.xlu1 %799  ;;  %v8731_v55 = vpop.xlane.xlu0 %797 }
 0x1a2   :  { %12481 = vst [vmem:[#allocation302_spill] sm:$0xff] %v8727_v62  ;;  %12482 = vst [vmem:[#allocation303_spill] sm:$0xff] %v8731_v55  ;;  %v498_v55 = vmul.f32 %v8361_v63, %v235_v53  ;;  %v237_v62 = vld [vmem:[#allocation2 + $0x698] sm:$0xff]  ;;  %v238_v53 = vld [vmem:[#allocation2 + $0x6a0] sm:$0xff] }
 0x1a4   :  { %943 = vadd.xlane.f32.xlu1 %v488_v45  ;;  %941 = vadd.xlane.f32.xlu0 %v487_v13  ;;  %v491_v45 = vmul.f32 %v8361_v63, %v8463_v15  ;;  %v494_v13 = vmul.f32 %v8361_v63, %v8475_v14 }
 0x1a5   :  { %v8735_v5 = vpop.xlane.xlu1 %803  ;;  %v8739_v47 = vpop.xlane.xlu0 %801 }
 0x1a6   :  { %12483 = vst [vmem:[#allocation304_spill] sm:$0xff] %v8735_v5  ;;  %12484 = vst [vmem:[#allocation305_spill] sm:$0xff] %v8739_v47 }
 0x1a8   :  { %947 = vadd.xlane.f32.xlu1 %v490_v41  ;;  %945 = vadd.xlane.f32.xlu0 %v489_v52  ;;  %v493_v41 = vmul.f32 %v8361_v63, %v8477_v32  ;;  %v496_v52 = vmul.f32 %v8361_v63, %v8488_v16 }
 0x1a9   :  { %v8743_v20 = vpop.xlane.xlu1 %807  ;;  %v8747_v7 = vpop.xlane.xlu0 %805 }
 0x1aa   :  { %12485 = vst [vmem:[#allocation306_spill] sm:$0xff] %v8743_v20  ;;  %12486 = vst [vmem:[#allocation307_spill] sm:$0xff] %v8747_v7 }
 0x1ac   :  { %951 = vadd.xlane.f32.xlu1 %v492_v29  ;;  %949 = vadd.xlane.f32.xlu0 %v491_v45  ;;  %v495_v29 = vmul.f32 %v8361_v63, %v8490_v54  ;;  %v234_v45 = vld [vmem:[#allocation2 + $0x680] sm:$0xff] }
 0x1ad   :  { %v8751_v2 = vpop.xlane.xlu1 %811  ;;  %v8755_v27 = vpop.xlane.xlu0 %809 }
 0x1ae   :  { %12487 = vst [vmem:[#allocation308_spill] sm:$0xff] %v8751_v2  ;;  %12488 = vst [vmem:[#allocation309_spill] sm:$0xff] %v8755_v27 }
 0x1b0   :  { %955 = vadd.xlane.f32.xlu1 %v494_v13  ;;  %953 = vadd.xlane.f32.xlu0 %v493_v41  ;;  %v497_v13 = vmul.f32 %v8361_v63, %v234_v45  ;;  %v236_v41 = vld [vmem:[#allocation2 + $0x690] sm:$0xff] }
 0x1b1   :  { %v8759_v15 = vpop.xlane.xlu1 %815  ;;  %v8763_v14 = vpop.xlane.xlu0 %813 }
 0x1b2   :  { %12489 = vst [vmem:[#allocation310_spill] sm:$0xff] %v8759_v15  ;;  %12490 = vst [vmem:[#allocation311_spill] sm:$0xff] %v8763_v14  ;;  %v500_v15 = vmul.f32 %v8361_v63, %v237_v62  ;;  %v499_v14 = vmul.f32 %v8361_v63, %v236_v41  ;;  %v240_v62 = vld [vmem:[#allocation2 + $0x6b0] sm:$0xff] }
 0x1b4   :  { %959 = vadd.xlane.f32.xlu1 %v496_v52  ;;  %957 = vadd.xlane.f32.xlu0 %v495_v29  ;;  %v239_v52 = vld [vmem:[#allocation2 + $0x6a8] sm:$0xff] }
 0x1b5   :  { %v8766_v32 = vpop.xlane.xlu1 %819  ;;  %v8769_v16 = vpop.xlane.xlu0 %817  ;;  %v502_v29 = vmul.f32 %v8361_v63, %v239_v52 }
 0x1b6   :  { %12491 = vst [vmem:[#allocation312_spill] sm:$0xff] %v8766_v32  ;;  %12492 = vst [vmem:[#allocation313_spill] sm:$0xff] %v8769_v16  ;;  %v501_v32 = vmul.f32 %v8361_v63, %v238_v53 }
 0x1b8   :  { %963 = vadd.xlane.f32.xlu1 %v498_v55  ;;  %961 = vadd.xlane.f32.xlu0 %v497_v13  ;;  %v241_v55 = vld [vmem:[#allocation2 + $0x6b8] sm:$0xff] }
 0x1b9   :  { %v8772_v54 = vpop.xlane.xlu1 %823  ;;  %v8775_v33 = vpop.xlane.xlu0 %821  ;;  %v504_v13 = vmul.f32 %v8361_v63, %v241_v55 }
 0x1ba   :  { %12493 = vst [vmem:[#allocation314_spill] sm:$0xff] %v8772_v54  ;;  %12494 = vst [vmem:[#allocation315_spill] sm:$0xff] %v8775_v33  ;;  %v503_v54 = vmul.f32 %v8361_v63, %v240_v62 }
 0x1bc   :  { %967 = vadd.xlane.f32.xlu1 %v500_v15  ;;  %965 = vadd.xlane.f32.xlu0 %v499_v14  ;;  %v243_v15 = vld [vmem:[#allocation2 + $0x6c8] sm:$0xff]  ;;  %v242_v14 = vld [vmem:[#allocation2 + $0x6c0] sm:$0xff] }
 0x1bd   :  { %v8778_v45 = vpop.xlane.xlu1 %827  ;;  %v8781_v16 = vpop.xlane.xlu0 %825  ;;  %v506_v52 = vmul.f32 %v8361_v63, %v243_v15 }
 0x1be   :  { %12495 = vst [vmem:[#allocation316_spill] sm:$0xff] %v8778_v45  ;;  %12496 = vst [vmem:[#allocation317_spill] sm:$0xff] %v8781_v16  ;;  %v505_v45 = vmul.f32 %v8361_v63, %v242_v14 }
 0x1c0   :  { %971 = vadd.xlane.f32.xlu1 %v502_v29  ;;  %969 = vadd.xlane.f32.xlu0 %v501_v32  ;;  %v245_v29 = vld [vmem:[#allocation2 + $0x6d8] sm:$0xff]  ;;  %v244_v32 = vld [vmem:[#allocation2 + $0x6d0] sm:$0xff] }
 0x1c1   :  { %v8784_v41 = vpop.xlane.xlu1 %831  ;;  %v8787_v33 = vpop.xlane.xlu0 %829  ;;  %v508_v55 = vmul.f32 %v8361_v63, %v245_v29 }
 0x1c2   :  { %12497 = vst [vmem:[#allocation318_spill] sm:$0xff] %v8784_v41  ;;  %12498 = vst [vmem:[#allocation319_spill] sm:$0xff] %v8787_v33  ;;  %v507_v41 = vmul.f32 %v8361_v63, %v244_v32 }
 0x1c4   :  { %975 = vadd.xlane.f32.xlu1 %v504_v13  ;;  %973 = vadd.xlane.f32.xlu0 %v503_v54  ;;  %v247_v13 = vld [vmem:[#allocation2 + $0x6e8] sm:$0xff]  ;;  %v246_v54 = vld [vmem:[#allocation2 + $0x6e0] sm:$0xff] }
 0x1c5   :  { %v8790_v53 = vpop.xlane.xlu1 %835  ;;  %v8793_v16 = vpop.xlane.xlu0 %833  ;;  %v510_v15 = vmul.f32 %v8361_v63, %v247_v13  ;;  %v509_v2 = vmul.f32 %v8361_v63, %v246_v54  ;;  %v513_v54 = vmul.f32 %v8361_v63, %v8553_v56 }
 0x1c6   :  { %12499 = vst [vmem:[#allocation320_spill] sm:$0xff] %v8790_v53  ;;  %12500 = vst [vmem:[#allocation321_spill] sm:$0xff] %v8793_v16 }
 0x1c8   :  { %979 = vadd.xlane.f32.xlu1 %v506_v52  ;;  %977 = vadd.xlane.f32.xlu0 %v505_v45  ;;  %v249_v52 = vld [vmem:[#allocation2 + $0x6f8] sm:$0xff]  ;;  %v248_v45 = vld [vmem:[#allocation2 + $0x6f0] sm:$0xff] }
 0x1c9   :  { %v8796_v62 = vpop.xlane.xlu1 %839  ;;  %v8799_v33 = vpop.xlane.xlu0 %837  ;;  %v512_v29 = vmul.f32 %v8361_v63, %v249_v52 }
 0x1ca   :  { %12501 = vst [vmem:[#allocation322_spill] sm:$0xff] %v8796_v62  ;;  %12502 = vst [vmem:[#allocation323_spill] sm:$0xff] %v8799_v33  ;;  %v511_v62 = vmul.f32 %v8361_v63, %v248_v45  ;;  %v515_v45 = vmul.f32 %v8361_v63, %v8567_v21 }
 0x1cc   :  { %983 = vadd.xlane.f32.xlu1 %v508_v55  ;;  %981 = vadd.xlane.f32.xlu0 %v507_v41  ;;  %v514_v41 = vmul.f32 %v8361_v63, %v8551_v18 }
 0x1cd   :  { %v8802_v14 = vpop.xlane.xlu1 %843  ;;  %v8805_v16 = vpop.xlane.xlu0 %841 }
 0x1ce   :  { %12503 = vst [vmem:[#allocation324_spill] sm:$0xff] %v8802_v14  ;;  %12504 = vst [vmem:[#allocation325_spill] sm:$0xff] %v8805_v16 }
 0x1d0   :  { %987 = vadd.xlane.f32.xlu1 %v510_v15  ;;  %985 = vadd.xlane.f32.xlu0 %v509_v2  ;;  %v516_v2 = vmul.f32 %v8361_v63, %v8565_v37 }
 0x1d1   :  { %v8808_v32 = vpop.xlane.xlu1 %847  ;;  %v8811_v55 = vpop.xlane.xlu0 %845 }
 0x1d2   :  { %12505 = vst [vmem:[#allocation326_spill] sm:$0xff] %v8808_v32  ;;  %12506 = vst [vmem:[#allocation327_spill] sm:$0xff] %v8811_v55 }
 0x1d4   :  { %991 = vadd.xlane.f32.xlu1 %v512_v29  ;;  %989 = vadd.xlane.f32.xlu0 %v511_v62  ;;  %v518_v62 = vmul.f32 %v8361_v63, %v8579_v44 }
 0x1d5   :  { %v8815_v13 = vpop.xlane.xlu1 %851  ;;  %v8819_v15 = vpop.xlane.xlu0 %849 }
 0x1d6   :  { %12507 = vst [vmem:[#allocation328_spill] sm:$0xff] %v8815_v13  ;;  %12508 = vst [vmem:[#allocation329_spill] sm:$0xff] %v8819_v15  ;;  %v1313_v13 = vlaneseq }
 0x1d8   :  { %995 = vadd.xlane.f32.xlu1 %v514_v41  ;;  %993 = vadd.xlane.f32.xlu0 %v513_v54  ;;  %v517_v41 = vmul.f32 %v8361_v63, %v8581_v34  ;;  %v520_v54 = vmul.f32 %v8361_v63, %v8597_v39 }
 0x1d9   :  { %v8823_v52 = vpop.xlane.xlu1 %855  ;;  %v8827_v29 = vpop.xlane.xlu0 %853 }
 0x1da   :  { %12509 = vst [vmem:[#allocation330_spill] sm:$0xff] %v8823_v52  ;;  %12510 = vst [vmem:[#allocation331_spill] sm:$0xff] %v8827_v29 }
 0x1dc   :  { %999 = vadd.xlane.f32.xlu1 %v516_v2  ;;  %997 = vadd.xlane.f32.xlu0 %v515_v45  ;;  %v519_v2 = vmul.f32 %v8361_v63, %v8599_v61  ;;  %v522_v45 = vmul.f32 %v8361_v63, %v8607_v43 }
 0x1dd   :  { %v8831_v56 = vpop.xlane.xlu1 %859  ;;  %v8835_v18 = vpop.xlane.xlu0 %857 }
 0x1de   :  { %12511 = vst [vmem:[#allocation332_spill] sm:$0xff] %v8831_v56  ;;  %12512 = vst [vmem:[#allocation333_spill] sm:$0xff] %v8835_v18 }
 0x1e0   :  { %1003 = vadd.xlane.f32.xlu1 %v518_v62  ;;  %1001 = vadd.xlane.f32.xlu0 %v517_v41  ;;  %v521_v62 = vmul.f32 %v8361_v63, %v8609_v58  ;;  %v524_v41 = vmul.f32 %v8361_v63, %v8621_v0  ;;  %v267_v0 = vld [vmem:[#allocation2 + $0x788] sm:$0xff] }
 0x1e1   :  { %v8839_v21 = vpop.xlane.xlu1 %863  ;;  %v8843_v37 = vpop.xlane.xlu0 %861 }
 0x1e2   :  { %12513 = vst [vmem:[#allocation334_spill] sm:$0xff] %v8839_v21  ;;  %12514 = vst [vmem:[#allocation335_spill] sm:$0xff] %v8843_v37  ;;  %v530_v21 = vmul.f32 %v8361_v63, %v267_v0  ;;  %v269_v37 = vld [vmem:[#allocation2 + $0x798] sm:$0xff]  ;;  %v270_v0 = vld [vmem:[#allocation2 + $0x7a0] sm:$0xff] }
 0x1e3   :  { %v532_v56 = vmul.f32 %v8361_v63, %v269_v37  ;;  %v272_v37 = vld [vmem:[#allocation2 + $0x7b0] sm:$0xff] }
 0x1e4   :  { %1007 = vadd.xlane.f32.xlu1 %v520_v54  ;;  %1005 = vadd.xlane.f32.xlu0 %v519_v2  ;;  %v523_v54 = vmul.f32 %v8361_v63, %v8623_v49  ;;  %v526_v2 = vmul.f32 %v8361_v63, %v8635_v3 }
 0x1e5   :  { %v8847_v34 = vpop.xlane.xlu1 %867  ;;  %v8851_v44 = vpop.xlane.xlu0 %865 }
 0x1e6   :  { %12515 = vst [vmem:[#allocation336_spill] sm:$0xff] %v8847_v34  ;;  %12516 = vst [vmem:[#allocation337_spill] sm:$0xff] %v8851_v44 }
 0x1e8   :  { %1011 = vadd.xlane.f32.xlu1 %v522_v45  ;;  %1009 = vadd.xlane.f32.xlu0 %v521_v62  ;;  %v525_v45 = vmul.f32 %v8361_v63, %v8637_v40  ;;  %v528_v62 = vmul.f32 %v8361_v63, %v8648_v1 }
 0x1e9   :  { %v8855_v61 = vpop.xlane.xlu1 %871  ;;  %v8859_v39 = vpop.xlane.xlu0 %869 }
 0x1ea   :  { %12517 = vst [vmem:[#allocation338_spill] sm:$0xff] %v8855_v61  ;;  %12518 = vst [vmem:[#allocation339_spill] sm:$0xff] %v8859_v39 }
 0x1ec   :  { %1015 = vadd.xlane.f32.xlu1 %v524_v41  ;;  %1013 = vadd.xlane.f32.xlu0 %v523_v54  ;;  %v527_v41 = vmul.f32 %v8361_v63, %v8650_v50  ;;  %v266_v54 = vld [vmem:[#allocation2 + $0x780] sm:$0xff] }
 0x1ed   :  { %v8863_v58 = vpop.xlane.xlu1 %875  ;;  %v8867_v43 = vpop.xlane.xlu0 %873 }
 0x1ee   :  { %12519 = vst [vmem:[#allocation340_spill] sm:$0xff] %v8863_v58  ;;  %12520 = vst [vmem:[#allocation341_spill] sm:$0xff] %v8867_v43 }
 0x1f0   :  { %1019 = vadd.xlane.f32.xlu1 %v526_v2  ;;  %1017 = vadd.xlane.f32.xlu0 %v525_v45  ;;  %v529_v2 = vmul.f32 %v8361_v63, %v266_v54  ;;  %v268_v45 = vld [vmem:[#allocation2 + $0x790] sm:$0xff] }
 0x1f1   :  { %v8871_v49 = vpop.xlane.xlu1 %879  ;;  %v8875_v3 = vpop.xlane.xlu0 %877  ;;  %v531_v18 = vmul.f32 %v8361_v63, %v268_v45 }
 0x1f2   :  { %12521 = vst [vmem:[#allocation342_spill] sm:$0xff] %v8871_v49  ;;  %12522 = vst [vmem:[#allocation343_spill] sm:$0xff] %v8875_v3 }
 0x1f4   :  { %1023 = vadd.xlane.f32.xlu1 %v528_v62  ;;  %1021 = vadd.xlane.f32.xlu0 %v527_v41  ;;  %v271_v62 = vld [vmem:[#allocation2 + $0x7a8] sm:$0xff] }
 0x1f5   :  { %v8878_v40 = vpop.xlane.xlu1 %883  ;;  %v8881_v1 = vpop.xlane.xlu0 %881  ;;  %v534_v41 = vmul.f32 %v8361_v63, %v271_v62 }
 0x1f6   :  { %12523 = vst [vmem:[#allocation344_spill] sm:$0xff] %v8878_v40  ;;  %12524 = vst [vmem:[#allocation345_spill] sm:$0xff] %v8881_v1  ;;  %v533_v40 = vmul.f32 %v8361_v63, %v270_v0 }
 0x1f8   :  { %1027 = vadd.xlane.f32.xlu1 %v530_v21  ;;  %1025 = vadd.xlane.f32.xlu0 %v529_v2  ;;  %v273_v21 = vld [vmem:[#allocation2 + $0x7b8] sm:$0xff] }
 0x1f9   :  { %v8884_v50 = vpop.xlane.xlu1 %887  ;;  %v8887_v52 = vpop.xlane.xlu0 %885  ;;  %v536_v2 = vmul.f32 %v8361_v63, %v273_v21 }
 0x1fa   :  { %12525 = vst [vmem:[#allocation346_spill] sm:$0xff] %v8884_v50  ;;  %12526 = vst [vmem:[#allocation347_spill] sm:$0xff] %v8887_v52  ;;  %v535_v50 = vmul.f32 %v8361_v63, %v272_v37 }
 0x1fc   :  { %1031 = vadd.xlane.f32.xlu1 %v532_v56  ;;  %1029 = vadd.xlane.f32.xlu0 %v531_v18  ;;  %v275_v56 = vld [vmem:[#allocation2 + $0x7c8] sm:$0xff]  ;;  %v274_v18 = vld [vmem:[#allocation2 + $0x7c0] sm:$0xff] }
 0x1fd   :  { %v8890_v54 = vpop.xlane.xlu1 %891  ;;  %v8893_v1 = vpop.xlane.xlu0 %889  ;;  %v538_v62 = vmul.f32 %v8361_v63, %v275_v56 }
 0x1fe   :  { %12527 = vst [vmem:[#allocation348_spill] sm:$0xff] %v8890_v54  ;;  %12528 = vst [vmem:[#allocation349_spill] sm:$0xff] %v8893_v1  ;;  %v537_v54 = vmul.f32 %v8361_v63, %v274_v18 }
 0x200   :  { %1035 = vadd.xlane.f32.xlu1 %v534_v41  ;;  %1033 = vadd.xlane.f32.xlu0 %v533_v40  ;;  %v277_v41 = vld [vmem:[#allocation2 + $0x7d8] sm:$0xff]  ;;  %v276_v40 = vld [vmem:[#allocation2 + $0x7d0] sm:$0xff] }
 0x201   :  { %v8896_v45 = vpop.xlane.xlu1 %895  ;;  %v8899_v52 = vpop.xlane.xlu0 %893  ;;  %v540_v21 = vmul.f32 %v8361_v63, %v277_v41  ;;  %v7450_v41 = vld [vmem:[%s11728_s1] ss:$0 sm:$0xff]  ;;  %s7591_s1 = smov [#allocation5]  }
 0x202   :  { %12529 = vst [vmem:[#allocation350_spill] sm:$0xff] %v8896_v45  ;;  %12530 = vst [vmem:[#allocation351_spill] sm:$0xff] %v8899_v52  ;;  %v539_v45 = vmul.f32 %v8361_v63, %v276_v40  ;;  %s6382_s28 = sshll.u32 %s7591_s1, 4  ;;  %s6383_s28 = int_to_ptr.vmem [resolvable:$true] %s6382_s28 }
 0x203   :  { %s7561_s29 = scalar_lea.vmem %s6383_s28, 128  ;;  %p7566_p9 = scmp.lt.s32.totalorder %s6383_s28, %s6383_s28 }
 0x204   :  { %1039 = vadd.xlane.f32.xlu1 %v536_v2  ;;  %1037 = vadd.xlane.f32.xlu0 %v535_v50  ;;  %v279_v2 = vld [vmem:[#allocation2 + $0x7e8] sm:$0xff]  ;;  %v278_v50 = vld [vmem:[#allocation2 + $0x7e0] sm:$0xff]  ;;  %p7562_p8 = scmp.ne.s32.totalorder %s6383_s28, %s7561_s29  ;;  %p7567_p10 = scmp.lt.s32.totalorder %s7561_s29, %s7561_s29 }
 0x205   :  { %v8902_v0 = vpop.xlane.xlu1 %899  ;;  %v8905_v1 = vpop.xlane.xlu0 %897  ;;  %v542_v56 = vmul.f32 %v8361_v63, %v279_v2  ;;  %v541_v29 = vmul.f32 %v8361_v63, %v278_v50 }
 0x206   :  { %12531 = vst [vmem:[#allocation352_spill] sm:$0xff] %v8902_v0  ;;  %12532 = vst [vmem:[#allocation353_spill] sm:$0xff] %v8905_v1  ;;  %p7568_p11 = por %p7567_p10, %p7566_p9 }
 0x208   :  { %1043 = vadd.xlane.f32.xlu1 %v538_v62  ;;  %1041 = vadd.xlane.f32.xlu0 %v537_v54  ;;  %v281_v62 = vld [vmem:[#allocation2 + $0x7f8] sm:$0xff]  ;;  %v280_v54 = vld [vmem:[#allocation2 + $0x7f0] sm:$0xff]  ;;  %p7569_p12 = pnand %p7568_p11, %p7562_p8 }
 0x209   :  { %v8908_v37 = vpop.xlane.xlu1 %903  ;;  %v8911_v52 = vpop.xlane.xlu0 %901  ;;  %v544_v40 = vmul.f32 %v7450_v41, %v281_v62  ;;  %v543_v2 = vmul.f32 %v7450_v41, %v280_v54 }
 0x20a   :  { %12533 = vst [vmem:[#allocation354_spill] sm:$0xff] %v8908_v37  ;;  %12534 = vst [vmem:[#allocation355_spill] sm:$0xff] %v8911_v52 }
 0x20c   :  { %1047 = vadd.xlane.f32.xlu1 %v540_v21  ;;  %1045 = vadd.xlane.f32.xlu0 %v539_v45 }
 0x20d   :  { %v8914_v18 = vpop.xlane.xlu1 %907  ;;  %v8917_v49 = vpop.xlane.xlu0 %905 }
 0x20e   :  { %12535 = vst [vmem:[#allocation356_spill] sm:$0xff] %v8914_v18  ;;  %12536 = vst [vmem:[#allocation357_spill] sm:$0xff] %v8917_v49  ;;  %v1314_v18 = vand.u32 127, %v1313_v13  ;;  %v8930_v49 = vshrl.u32 %v1313_v13, 7 }
 0x210   :  { %1051 = vadd.xlane.f32.xlu1 %v542_v56  ;;  %1049 = vadd.xlane.f32.xlu0 %v541_v29  ;;  %v1319_v56 = vadd.s32 4294967288, %v1314_v18  ;;  %12541 = vst [vmem:[#allocation362_spill] sm:$0xff] %v8930_v49  ;;  %v1326_v54 = vadd.s32 4294967280, %v1314_v18  ;;  %v8940_v41 = vsub.s32 %v1314_v18, %v8930_v49  ;;  %v1368_v15 = vadd.s32 4294967232, %v1314_v18 }
 0x211   :  { %v8922_v21 = vpop.xlane.xlu1 %911  ;;  %v8924_v45 = vpop.xlane.xlu0 %909  ;;  %v1403_v1 = vadd.s32 4294967192, %v1314_v18  ;;  %v1396_v0 = vadd.s32 4294967200, %v1314_v18 }
 0x212   :  { %12537 = vst [vmem:[#allocation358_spill] sm:$0xff] %v8922_v21  ;;  %12538 = vst [vmem:[#allocation359_spill] sm:$0xff] %v8924_v45  ;;  %v8937_v29 = vsub.s32 %v1319_v56, %v8930_v49  ;;  %v1354_v56 = vadd.s32 4294967248, %v1314_v18  ;;  %v1318_v45 = vrot.slane %v8096_v4, %v8940_v41  ;;  %v1382_v4 = vadd.s32 4294967216, %v1314_v18 }
 0x214   :  { %1055 = vadd.xlane.f32.xlu1 %v544_v40  ;;  %1053 = vadd.xlane.f32.xlu0 %v543_v2  ;;  %12544 = vst [vmem:[#allocation365_spill] sm:$0xff] %v8937_v29  ;;  %v1333_v40 = vadd.s32 4294967272, %v1314_v18  ;;  %v1323_v13 = vrot.slane %v8116_v12, %v8937_v29 }
 0x215   :  { %v8926_v63 = vpop.xlane.xlu1 %915  ;;  %v8928_v50 = vpop.xlane.xlu0 %913 }
 0x216   :  { %12539 = vst [vmem:[#allocation360_spill] sm:$0xff] %v8926_v63  ;;  %12540 = vst [vmem:[#allocation361_spill] sm:$0xff] %v8928_v50  ;;  %v1347_v63 = vadd.s32 4294967256, %v1314_v18  ;;  %v1340_v50 = vadd.s32 4294967264, %v1314_v18  ;;  %v8954_v3 = vsub.s32 %v1333_v40, %v8930_v49  ;;  %v1325_v32 = vsel %vm1324_vm0, %v1323_v13, %v1318_v45 }
 0x218   :  { %v8959_v12 = vsub.s32 %v1347_v63, %v8930_v49  ;;  %v8965_v52 = vsub.s32 %v1340_v50, %v8930_v49  ;;  %v8973_v63 = vsub.s32 %v1354_v56, %v8930_v49  ;;  %v1506_v50 = vrot.slane %v8272_v30, %v8940_v41 }
 0x219   :  { %v8932_v37 = vpop.xlane.xlu1 %919  ;;  %v8934_v62 = vpop.xlane.xlu0 %917  ;;  %v1410_v30 = vadd.s32 4294967184, %v1314_v18 }
 0x21a   :  { %12542 = vst [vmem:[#allocation363_spill] sm:$0xff] %v8932_v37  ;;  %12543 = vst [vmem:[#allocation364_spill] sm:$0xff] %v8934_v62  ;;  %v1361_v37 = vadd.s32 4294967240, %v1314_v18  ;;  %v8949_v62 = vsub.s32 %v1326_v54, %v8930_v49  ;;  %v1389_v54 = vadd.s32 4294967208, %v1314_v18 }
 0x21c   :  { %v8968_v40 = vsub.s32 %v1361_v37, %v8930_v49  ;;  %v1510_v37 = vrot.slane %v8268_v48, %v8937_v29  ;;  %v8998_v48 = vsub.s32 %v1382_v4, %v8930_v49 }
 0x21d   :  { %v8942_v2 = vpop.xlane.xlu1 %923  ;;  %v8944_v21 = vpop.xlane.xlu0 %921 }
 0x21e   :  { %12545 = vst [vmem:[#allocation366_spill] sm:$0xff] %v8942_v2  ;;  %12546 = vst [vmem:[#allocation367_spill] sm:$0xff] %v8944_v21  ;;  %v1375_v2 = vadd.s32 4294967224, %v1314_v18 }
 0x220   :  { %v8978_v45 = vsub.s32 %v1375_v2, %v8930_v49  ;;  %v1515_v2 = vrot.slane %v8292_v23, %v8949_v62  ;;  %v1436_v23 = vrot.slane %v8198_v26, %v8949_v62 }
 0x221   :  { %v8956_v21 = vpop.xlane.xlu1 %927  ;;  %v8961_v58 = vpop.xlane.xlu0 %925 }
 0x222   :  { %12547 = vst [vmem:[#allocation368_spill] sm:$0xff] %v8956_v21  ;;  %12548 = vst [vmem:[#allocation369_spill] sm:$0xff] %v8961_v58  ;;  %v1330_v21 = vrot.slane %v8092_v28, %v8949_v62  ;;  %v1337_v58 = vrot.slane %v8110_v46, %v8954_v3  ;;  %v8988_v28 = vsub.s32 %v1368_v15, %v8930_v49 }
 0x223   :  { %v8991_v46 = vsub.s32 %v1389_v54, %v8930_v49  ;;  %v9005_v15 = vsub.s32 %v1403_v1, %v8930_v49  ;;  %v1417_v54 = vadd.s32 4294967176, %v1314_v18  ;;  %v1525_v18 = vrot.slane %v8306_v31, %v8965_v52 }
 0x224   :  { %v1332_v56 = vsel %vm1331_vm1, %v1330_v21, %v1325_v32  ;;  %v1427_v32 = vrot.slane %v8190_v51, %v8940_v41  ;;  %v9008_v21 = vsub.s32 %v1396_v0, %v8930_v49  ;;  %v1520_v51 = vrot.slane %v8286_v8, %v8954_v3 }
 0x225   :  { %v8984_v13 = vpop.xlane.xlu1 %931  ;;  %v8995_v43 = vpop.xlane.xlu0 %929  ;;  %v1339_v4 = vsel %vm1338_vm2, %v1337_v58, %v1332_v56  ;;  %v1589_v58 = vrot.slane %v8353_v36, %v8937_v29  ;;  %v1585_v56 = vrot.slane %v8356_v17, %v8940_v41  ;;  %v1441_v8 = vrot.slane %v8194_v35, %v8954_v3  ;;  %v12556_v35 = vld [vmem:[#allocation176_spill] sm:$0xff] }
 0x226   :  { %12549 = vst [vmem:[#allocation370_spill] sm:$0xff] %v8984_v13  ;;  %12550 = vst [vmem:[#allocation371_spill] sm:$0xff] %v8995_v43  ;;  %v1431_v13 = vrot.slane %v8186_v19, %v8937_v29  ;;  %v1344_v43 = vrot.slane %v8130_v57, %v8965_v52  ;;  %v1511_v19 = vsel %vm1324_vm0, %v1510_v37, %v1506_v50  ;;  %v12554_v57 = vld [vmem:[#allocation149_spill] sm:$0xff] }
 0x227   :  { %v1516_v0 = vsel %vm1331_vm1, %v1515_v2, %v1511_v19  ;;  %v9030_v37 = vsub.s32 %v1410_v30, %v8930_v49  ;;  %v1594_v19 = vrot.slane %v8367_v11, %v8949_v62  ;;  %v12553_v2 = vld [vmem:[#allocation128_spill] sm:$0xff]  ;;  %v9040_v36 = vsub.s32 %v1417_v54, %v8930_v49 }
 0x228   :  { %v1432_v50 = vsel %vm1324_vm0, %v1431_v13, %v1427_v32  ;;  %v1351_v31 = vrot.slane %v12553_v2, %v8959_v12  ;;  %v1446_v30 = vrot.slane %v12554_v57, %v8965_v52  ;;  %v12555_v13 = vld [vmem:[#allocation133_spill] sm:$0xff]  ;;  %v1530_v11 = vrot.slane %v12556_v35, %v8959_v12  ;;  %v12561_v49 = vld [vmem:[#allocation148_spill] sm:$0xff] }
 0x229   :  { %v9018_v1 = vpop.xlane.xlu1 %935  ;;  %v9027_v26 = vpop.xlane.xlu0 %933  ;;  %v1437_v17 = vsel %vm1331_vm1, %v1436_v23, %v1432_v50  ;;  %v1358_v32 = vrot.slane %v12555_v13, %v8973_v63  ;;  %v12558_v23 = vld [vmem:[#allocation181_spill] sm:$0xff]  ;;  %v1590_v57 = vsel %vm1324_vm0, %v1589_v58, %v1585_v56  ;;  %v1451_v35 = vrot.slane %v12561_v49, %v8959_v12 }
 0x22a   :  { %12551 = vst [vmem:[#allocation372_spill] sm:$0xff] %v9018_v1  ;;  %12552 = vst [vmem:[#allocation373_spill] sm:$0xff] %v9027_v26  ;;  %v1346_v1 = vsel %vm1345_vm3, %v1344_v43, %v1339_v4  ;;  %v1521_v26 = vsel %vm1338_vm2, %v1520_v51, %v1516_v0  ;;  %v1535_v50 = vrot.slane %v12558_v23, %v8973_v63  ;;  %v12559_v43 = vld [vmem:[#allocation194_spill] sm:$0xff]  ;;  %v12565_v49 = vld [vmem:[#allocation137_spill] sm:$0xff] }
 0x22b   :  { %v1526_v54 = vsel %vm1345_vm3, %v1525_v18, %v1521_v26  ;;  %v1599_v4 = vrot.slane %v12559_v43, %v8954_v3  ;;  %v1442_v51 = vsel %vm1338_vm2, %v1441_v8, %v1437_v17  ;;  %v1595_v0 = vsel %vm1331_vm1, %v1594_v19, %v1590_v57  ;;  %v12563_v18 = vld [vmem:[#allocation132_spill] sm:$0xff]  ;;  %v12564_v43 = vld [vmem:[#allocation151_spill] sm:$0xff] }
 0x22c   :  { %v1365_v23 = vrot.slane %v12563_v18, %v8968_v40  ;;  %v1353_v58 = vsel %vm1352_vm4, %v1351_v31, %v1346_v1  ;;  %v1447_v56 = vsel %vm1345_vm3, %v1446_v30, %v1442_v51  ;;  %v1372_v8 = vrot.slane %v12565_v49, %v8988_v28  ;;  %v12566_v57 = vld [vmem:[#allocation180_spill] sm:$0xff]  ;;  %v12568_v1 = vld [vmem:[#allocation185_spill] sm:$0xff]  ;;  %v12571_v49 = vld [vmem:[#allocation150_spill] sm:$0xff] }
 0x22d   :  { %v9051_v2 = vpop.xlane.xlu1 %939  ;;  %v9059_v13 = vpop.xlane.xlu0 %937  ;;  %v1360_v55 = vsel %vm12128_vm5, %v1358_v32, %v1353_v58  ;;  %v1540_v17 = vrot.slane %v12566_v57, %v8968_v40  ;;  %v1531_v19 = vsel %vm1352_vm4, %v1530_v11, %v1526_v54  ;;  %v1545_v30 = vrot.slane %v12568_v1, %v8988_v28  ;;  %v12569_v51 = vld [vmem:[#allocation196_spill] sm:$0xff]  ;;  %v12572_v18 = vld [vmem:[#allocation199_spill] sm:$0xff] }
 0x22e   :  { %12557 = vst [vmem:[#allocation374_spill] sm:$0xff] %v9051_v2  ;;  %12560 = vst [vmem:[#allocation375_spill] sm:$0xff] %v9059_v13  ;;  %v12562_v2 = vld [vmem:[#allocation197_spill] sm:$0xff]  ;;  %v1456_v13 = vrot.slane %v12564_v43, %v8973_v63  ;;  %v1536_v31 = vsel %vm12128_vm5, %v1535_v50, %v1531_v19  ;;  %v1609_v32 = vrot.slane %v12569_v51, %v8959_v12  ;;  %v12573_v19 = vld [vmem:[#allocation136_spill] sm:$0xff] }
 0x22f   :  { %v1604_v26 = vrot.slane %v12562_v2, %v8965_v52  ;;  %v1600_v58 = vsel %vm1338_vm2, %v1599_v4, %v1595_v0  ;;  %v1461_v57 = vrot.slane %v12571_v49, %v8968_v40  ;;  %v1452_v11 = vsel %vm1352_vm4, %v1451_v35, %v1447_v56  ;;  %v12574_v4 = vld [vmem:[#allocation153_spill] sm:$0xff]  ;;  %v12575_v49 = vld [vmem:[#allocation139_spill] sm:$0xff] }
 0x230   :  { %v1614_v50 = vrot.slane %v12572_v18, %v8973_v63  ;;  %v1379_v1 = vrot.slane %v12573_v19, %v8978_v45  ;;  %v1457_v51 = vsel %vm12128_vm5, %v1456_v13, %v1452_v11  ;;  %v1466_v0 = vrot.slane %v12574_v4, %v8988_v28  ;;  %v12581_v4 = vld [vmem:[#allocation152_spill] sm:$0xff] }
 0x231   :  { %v9079_v2 = vpop.xlane.xlu1 %943  ;;  %v9087_v43 = vpop.xlane.xlu0 %941  ;;  %v1605_v54 = vsel %vm1345_vm3, %v1604_v26, %v1600_v58  ;;  %v1386_v35 = vrot.slane %v12575_v49, %v8998_v48  ;;  %v12576_v26 = vld [vmem:[#allocation184_spill] sm:$0xff]  ;;  %v1541_v58 = vsel %vm1366_vm6, %v1540_v17, %v1536_v31  ;;  %v1462_v17 = vsel %vm1366_vm6, %v1461_v57, %v1457_v51  ;;  %v12585_v57 = vld [vmem:[#allocation141_spill] sm:$0xff] }
 0x232   :  { %12567 = vst [vmem:[#allocation376_spill] sm:$0xff] %v9079_v2  ;;  %12570 = vst [vmem:[#allocation377_spill] sm:$0xff] %v9087_v43  ;;  %v1367_v2 = vsel %vm1366_vm6, %v1365_v23, %v1360_v55  ;;  %v1550_v56 = vrot.slane %v12576_v26, %v8978_v45  ;;  %v1546_v19 = vsel %vm1373_vm7, %v1545_v30, %v1541_v58  ;;  %v12578_v55 = vld [vmem:[#allocation187_spill] sm:$0xff]  ;;  %v12579_v23 = vld [vmem:[#allocation198_spill] sm:$0xff] }
 0x233   :  { %v1374_v43 = vsel %vm1373_vm7, %v1372_v8, %v1367_v2  ;;  %v1555_v13 = vrot.slane %v12578_v55, %v8998_v48  ;;  %v1619_v11 = vrot.slane %v12579_v23, %v8968_v40  ;;  %v1610_v2 = vsel %vm1352_vm4, %v1609_v32, %v1605_v54  ;;  %v12582_v30 = vld [vmem:[#allocation201_spill] sm:$0xff]  ;;  %v12583_v55 = vld [vmem:[#allocation138_spill] sm:$0xff] }
 0x234   :  { %v1471_v26 = vrot.slane %v12581_v4, %v8978_v45  ;;  %v1615_v31 = vsel %vm12128_vm5, %v1614_v50, %v1610_v2  ;;  %v1624_v58 = vrot.slane %v12582_v30, %v8988_v28  ;;  %v1393_v49 = vrot.slane %v12583_v55, %v8991_v46  ;;  %v12584_v54 = vld [vmem:[#allocation157_spill] sm:$0xff]  ;;  %v12586_v50 = vld [vmem:[#allocation186_spill] sm:$0xff]  ;;  %v12591_v55 = vld [vmem:[#allocation156_spill] sm:$0xff] }
 0x235   :  { %v9107_v18 = vpop.xlane.xlu1 %947  ;;  %v9115_v8 = vpop.xlane.xlu0 %945  ;;  %v1381_v23 = vsel %vm12160_vm8, %v1379_v1, %v1374_v43  ;;  %v1467_v32 = vsel %vm1373_vm7, %v1466_v0, %v1462_v17  ;;  %v1400_v51 = vrot.slane %v12585_v57, %v9008_v21  ;;  %v1560_v2 = vrot.slane %v12586_v50, %v8991_v46  ;;  %v12588_v1 = vld [vmem:[#allocation189_spill] sm:$0xff]  ;;  %v12589_v17 = vld [vmem:[#allocation200_spill] sm:$0xff] }
 0x236   :  { %12577 = vst [vmem:[#allocation378_spill] sm:$0xff] %v9107_v18  ;;  %12580 = vst [vmem:[#allocation379_spill] sm:$0xff] %v9115_v8  ;;  %v1476_v18 = vrot.slane %v12584_v54, %v8998_v48  ;;  %v1388_v4 = vsel %vm12156_vm9, %v1386_v35, %v1381_v23  ;;  %v1551_v30 = vsel %vm12160_vm8, %v1550_v56, %v1546_v19  ;;  %v12592_v56 = vld [vmem:[#allocation205_spill] sm:$0xff] }
 0x237   :  { %v1556_v43 = vsel %vm12156_vm9, %v1555_v13, %v1551_v30  ;;  %v1565_v0 = vrot.slane %v12588_v1, %v9008_v21  ;;  %v1629_v54 = vrot.slane %v12589_v17, %v8978_v45  ;;  %v1620_v35 = vsel %vm1366_vm6, %v1619_v11, %v1615_v31  ;;  %v12593_v17 = vld [vmem:[#allocation161_spill] sm:$0xff]  ;;  %v12594_v31 = vld [vmem:[#allocation140_spill] sm:$0xff] }
 0x238   :  { %v1481_v57 = vrot.slane %v12591_v55, %v8991_v46  ;;  %v1472_v50 = vsel %vm12160_vm8, %v1471_v26, %v1467_v32  ;;  %v1625_v19 = vsel %vm1373_vm7, %v1624_v58, %v1620_v35  ;;  %v1634_v13 = vrot.slane %v12592_v56, %v8998_v48  ;;  %v12595_v26 = vld [vmem:[#allocation188_spill] sm:$0xff] }
 0x239   :  { %v9135_v8 = vpop.xlane.xlu1 %951  ;;  %v9143_v23 = vpop.xlane.xlu0 %949  ;;  %v1395_v30 = vsel %vm12157_vm10, %v1393_v49, %v1388_v4  ;;  %v1477_v1 = vsel %vm12156_vm9, %v1476_v18, %v1472_v50  ;;  %v1486_v11 = vrot.slane %v12593_v17, %v9008_v21  ;;  %v1570_v32 = vrot.slane %v12595_v26, %v9005_v15  ;;  %v12597_v4 = vld [vmem:[#allocation191_spill] sm:$0xff]  ;;  %v12598_v50 = vld [vmem:[#allocation204_spill] sm:$0xff] }
 0x23a   :  { %12587 = vst [vmem:[#allocation380_spill] sm:$0xff] %v9135_v8  ;;  %12590 = vst [vmem:[#allocation381_spill] sm:$0xff] %v9143_v23  ;;  %v1407_v8 = vrot.slane %v12594_v31, %v9005_v15  ;;  %v1402_v55 = vsel %vm12159_vm11, %v1400_v51, %v1395_v30  ;;  %v1561_v58 = vsel %vm12157_vm10, %v1560_v2, %v1556_v43  ;;  %v12600_v51 = vld [vmem:[#allocation143_spill] sm:$0xff]  ;;  %v12601_v43 = vld [vmem:[#allocation209_spill] sm:$0xff] }
 0x23b   :  { %v1566_v49 = vsel %vm12159_vm11, %v1565_v0, %v1561_v58  ;;  %v1575_v18 = vrot.slane %v12597_v4, %v9030_v37  ;;  %v1639_v56 = vrot.slane %v12598_v50, %v8991_v46  ;;  %v1630_v17 = vsel %vm12160_vm8, %v1629_v54, %v1625_v19  ;;  %v12602_v58 = vld [vmem:[#allocation160_spill] sm:$0xff]  ;;  %v12603_v54 = vld [vmem:[#allocation214_spill] sm:$0xff] }
 0x23c   :  { %v1414_v30 = vrot.slane %v12600_v51, %v9030_v37  ;;  %v1482_v26 = vsel %vm12157_vm10, %v1481_v57, %v1477_v1  ;;  %v1635_v2 = vsel %vm12156_vm9, %v1634_v13, %v1630_v17  ;;  %v1644_v0 = vrot.slane %v12601_v43, %v9008_v21  ;;  %v12605_v51 = vld [vmem:[#allocation165_spill] sm:$0xff]  ;;  %v12606_v1 = vld [vmem:[#allocation190_spill] sm:$0xff] }
 0x23d   :  { %v9161_v35 = vpop.xlane.xlu1 %955  ;;  %v9169_v31 = vpop.xlane.xlu0 %953  ;;  %v1491_v4 = vrot.slane %v12602_v58, %v9005_v15  ;;  %v1487_v50 = vsel %vm12159_vm11, %v1486_v11, %v1482_v26  ;;  %v1668_v19 = vrot.slane %v12603_v54, %v8937_v29  ;;  %v1496_v57 = vrot.slane %v12605_v51, %v9030_v37  ;;  %v12607_v43 = vld [vmem:[#allocation221_spill] sm:$0xff]  ;;  %v12609_v54 = vld [vmem:[#allocation208_spill] sm:$0xff] }
 0x23e   :  { %12596 = vst [vmem:[#allocation382_spill] sm:$0xff] %v9161_v35  ;;  %12599 = vst [vmem:[#allocation383_spill] sm:$0xff] %v9169_v31  ;;  %v12604_v35 = vld [vmem:[#allocation215_spill] sm:$0xff]  ;;  %v1580_v17 = vrot.slane %v12606_v1, %v9040_v36  ;;  %v1571_v13 = vsel %vm1408_vm12, %v1570_v32, %v1566_v49  ;;  %v1673_v23 = vrot.slane %v12607_v43, %v8949_v62  ;;  %v12611_v1 = vld [vmem:[#allocation142_spill] sm:$0xff] }
 0x23f   :  { %v1664_v31 = vrot.slane %v12604_v35, %v8940_v41  ;;  %v1409_v11 = vsel %vm1408_vm12, %v1407_v8, %v1402_v55  ;;  %v1576_v26 = vsel %vm1415_vm13, %v1575_v18, %v1571_v13  ;;  %v1649_v35 = vrot.slane %v12609_v54, %v9005_v15  ;;  %v12612_v43 = vld [vmem:[#allocation213_spill] sm:$0xff]  ;;  %v12613_v55 = vld [vmem:[#allocation164_spill] sm:$0xff] }
 0x240   :  { %v1640_v61 = vsel %vm12157_vm10, %v1639_v56, %v1635_v2  ;;  %v1421_v14 = vrot.slane %v12611_v1, %v9040_v36  ;;  %v1416_v32 = vsel %vm1415_vm13, %v1414_v30, %v1409_v11  ;;  %v1501_v8 = vrot.slane %v12613_v55, %v9040_v36  ;;  %v12614_v56 = vld [vmem:[#allocation220_spill] sm:$0xff] }
 0x241   :  { %v9191_v58 = vpop.xlane.xlu1 %959  ;;  %v9198_v51 = vpop.xlane.xlu0 %957  ;;  %v1645_v49 = vsel %vm12159_vm11, %v1644_v0, %v1640_v61  ;;  %v1492_v18 = vsel %vm1408_vm12, %v1491_v4, %v1487_v50  ;;  %v1669_v13 = vsel %vm1324_vm0, %v1668_v19, %v1664_v31  ;;  %v1678_v2 = vrot.slane %v12614_v56, %v8954_v3  ;;  %v12615_v61 = vld [vmem:[#allocation225_spill] sm:$0xff]  ;;  %v12618_v31 = vld [vmem:[#allocation240_spill] sm:$0xff] }
 0x242   :  { %12608 = vst [vmem:[#allocation384_spill] sm:$0xff] %v9191_v58  ;;  %12610 = vst [vmem:[#allocation385_spill] sm:$0xff] %v9198_v51  ;;  %v1654_v58 = vrot.slane %v12612_v43, %v9030_v37  ;;  %v1497_v54 = vsel %vm1415_vm13, %v1496_v57, %v1492_v18  ;;  %v1581_v1 = vsel %vm12124_vm14, %v1580_v17, %v1576_v26  ;;  %v12617_v43 = vld [vmem:[#allocation212_spill] sm:$0xff]  ;;  %v12619_v19 = vld [vmem:[#allocation241_spill] sm:$0xff] }
 0x243   :  { %v1674_v30 = vsel %vm1331_vm1, %v1673_v23, %v1669_v13  ;;  %v1683_v0 = vrot.slane %v12615_v61, %v8965_v52  ;;  %v1659_v55 = vrot.slane %v12617_v43, %v9040_v36  ;;  %v1650_v4 = vsel %vm1408_vm12, %v1649_v35, %v1645_v49  ;;  %v12621_v17 = vld [vmem:[#allocation243_spill] sm:$0xff]  ;;  %v12622_v13 = vld [vmem:[#allocation262_spill] sm:$0xff]  ;;  %v12623_v43 = vld [vmem:[#allocation265_spill] sm:$0xff] }
 0x244   :  { %v1747_v50 = vrot.slane %v12618_v31, %v8937_v29  ;;  %v1743_v57 = vrot.slane %v12619_v19, %v8940_v41  ;;  %v1655_v23 = vsel %vm1415_vm13, %v1654_v58, %v1650_v4  ;;  %v1752_v26 = vrot.slane %v12621_v17, %v8949_v62  ;;  %v12624_v35 = vld [vmem:[#allocation224_spill] sm:$0xff]  ;;  %v12625_v19 = vld [vmem:[#allocation269_spill] sm:$0xff] }
 0x245   :  { %v9217_v11 = vpop.xlane.xlu1 %963  ;;  %v9226_v18 = vpop.xlane.xlu0 %961  ;;  %v1826_v56 = vrot.slane %v12622_v13, %v8937_v29  ;;  %v1822_v61 = vrot.slane %v12623_v43, %v8940_v41  ;;  %v1688_v49 = vrot.slane %v12624_v35, %v8959_v12  ;;  %v1679_v31 = vsel %vm1338_vm2, %v1678_v2, %v1674_v30  ;;  %v12626_v17 = vld [vmem:[#allocation229_spill] sm:$0xff]  ;;  %v12628_v30 = vld [vmem:[#allocation242_spill] sm:$0xff] }
 0x246   :  { %12616 = vst [vmem:[#allocation386_spill] sm:$0xff] %v9217_v11  ;;  %12620 = vst [vmem:[#allocation387_spill] sm:$0xff] %v9226_v18  ;;  %v1831_v51 = vrot.slane %v12625_v19, %v8949_v62  ;;  %v1423_v18 = vsel %vm12124_vm14, %v1421_v14, %v1416_v32  ;;  %v1502_v58 = vsel %vm12124_vm14, %v1501_v8, %v1497_v54  ;;  %v12630_v32 = vld [vmem:[#allocation245_spill] sm:$0xff] }
 0x247   :  { %v1684_v4 = vsel %vm1345_vm3, %v1683_v0, %v1679_v31  ;;  %v1693_v13 = vrot.slane %v12626_v17, %v8973_v63  ;;  %v9248_v43 = vsel %vm12123_vm15, %v1581_v1, %v1423_v18  ;;  %v1660_v35 = vsel %vm12124_vm14, %v1659_v55, %v1655_v23  ;;  %v12631_v31 = vld [vmem:[#allocation268_spill] sm:$0xff]  ;;  %v12633_v23 = vld [vmem:[#allocation273_spill] sm:$0xff] }
 0x248   :  { %v1748_v2 = vsel %vm1324_vm0, %v1747_v50, %v1743_v57  ;;  %v1757_v19 = vrot.slane %v12628_v30, %v8954_v3  ;;  %v1762_v8 = vrot.slane %v12630_v32, %v8965_v52  ;;  %v1827_v0 = vsel %vm1324_vm0, %v1826_v56, %v1822_v61  ;;  %v12632_v18 = vld [vmem:[#allocation228_spill] sm:$0xff] }
 0x249   :  { %v9245_v11 = vpop.xlane.xlu1 %967  ;;  %v9254_v14 = vpop.xlane.xlu0 %965  ;;  %v1753_v54 = vsel %vm1331_vm1, %v1752_v26, %v1748_v2  ;;  %v1836_v1 = vrot.slane %v12631_v31, %v8954_v3  ;;  %v1698_v55 = vrot.slane %v12632_v18, %v8968_v40  ;;  %v1689_v50 = vsel %vm1352_vm4, %v1688_v49, %v1684_v4  ;;  %v12634_v2 = vld [vmem:[#allocation233_spill] sm:$0xff]  ;;  %v12635_v56 = vld [vmem:[#allocation288_spill] sm:$0xff] }
 0x24a   :  { %12627 = vst [vmem:[#allocation388_spill] sm:$0xff] %v9245_v11  ;;  %12629 = vst [vmem:[#allocation389_spill] sm:$0xff] %v9254_v14  ;;  %v1832_v57 = vsel %vm1331_vm1, %v1831_v51, %v1827_v0  ;;  %v1841_v30 = vrot.slane %v12633_v23, %v8965_v52  ;;  %v1694_v26 = vsel %vm12128_vm5, %v1693_v13, %v1689_v50  ;;  %v12636_v31 = vld [vmem:[#allocation289_spill] sm:$0xff]  ;;  %v12638_v51 = vld [vmem:[#allocation244_spill] sm:$0xff] }
 0x24b   :  { %v1703_v32 = vrot.slane %v12634_v2, %v8988_v28  ;;  %v1905_v61 = vrot.slane %v12635_v56, %v8937_v29  ;;  %v1901_v17 = vrot.slane %v12636_v31, %v8940_v41  ;;  %v9278_v49 = vsel %vm12123_vm15, %v1660_v35, %v1502_v58  ;;  %v12640_v23 = vld [vmem:[#allocation247_spill] sm:$0xff]  ;;  %v12641_v18 = vld [vmem:[#allocation272_spill] sm:$0xff] }
 0x24c   :  { %v1767_v4 = vrot.slane %v12638_v51, %v8959_v12  ;;  %v1758_v0 = vsel %vm1338_vm2, %v1757_v19, %v1753_v54  ;;  %v1910_v13 = vrot.slane %v8687_v9, %v8949_v62  ;;  %v1772_v31 = vrot.slane %v12640_v23, %v8973_v63  ;;  %v12642_v58 = vld [vmem:[#allocation232_spill] sm:$0xff]  ;;  %v12643_v9 = vld [vmem:[#allocation277_spill] sm:$0xff] }
 0x24d   :  { %v9275_v11 = vpop.xlane.xlu1 %971  ;;  %v9285_v50 = vpop.xlane.xlu0 %969  ;;  %v1763_v56 = vsel %vm1345_vm3, %v1762_v8, %v1758_v0  ;;  %v1846_v2 = vrot.slane %v12641_v18, %v8959_v12  ;;  %v1837_v35 = vsel %vm1338_vm2, %v1836_v1, %v1832_v57  ;;  %v1708_v51 = vrot.slane %v12642_v58, %v8978_v45  ;;  %v12644_v0 = vld [vmem:[#allocation235_spill] sm:$0xff]  ;;  %v12645_v18 = vld [vmem:[#allocation290_spill] sm:$0xff] }
 0x24e   :  { %12637 = vst [vmem:[#allocation390_spill] sm:$0xff] %v9275_v11  ;;  %12639 = vst [vmem:[#allocation391_spill] sm:$0xff] %v9285_v50  ;;  %v1699_v19 = vsel %vm1366_vm6, %v1698_v55, %v1694_v26  ;;  %v1842_v54 = vsel %vm1345_vm3, %v1841_v30, %v1837_v35  ;;  %v1851_v11 = vrot.slane %v12643_v9, %v8973_v63  ;;  %v12647_v58 = vld [vmem:[#allocation246_spill] sm:$0xff]  ;;  %vm12129_vm15 = vcmask 1042434  }
 0x24f   :  { %v1704_v8 = vsel %vm1373_vm7, %v1703_v32, %v1699_v19  ;;  %v1713_v23 = vrot.slane %v12644_v0, %v8998_v48  ;;  %v1906_v50 = vsel %vm1324_vm0, %v1905_v61, %v1901_v17  ;;  %v1915_v1 = vrot.slane %v12645_v18, %v8954_v3  ;;  %v12649_v17 = vld [vmem:[#allocation249_spill] sm:$0xff]  ;;  %v12650_v18 = vld [vmem:[#allocation276_spill] sm:$0xff] }
 0x250   :  { %v1777_v55 = vrot.slane %v12647_v58, %v8968_v40  ;;  %v1768_v30 = vsel %vm1352_vm4, %v1767_v4, %v1763_v56  ;;  %v1911_v26 = vsel %vm1331_vm1, %v1910_v13, %v1906_v50  ;;  %v1920_v32 = vrot.slane %v8693_v10, %v8965_v52  ;;  %v12651_v58 = vld [vmem:[#allocation234_spill] sm:$0xff]  ;;  %v12652_v50 = vld [vmem:[#allocation281_spill] sm:$0xff] }
 0x251   :  { %v9305_v57 = vpop.xlane.xlu1 %975  ;;  %v9313_v35 = vpop.xlane.xlu0 %973  ;;  %v1773_v19 = vsel %vm12128_vm5, %v1772_v31, %v1768_v30  ;;  %v1782_v61 = vrot.slane %v12649_v17, %v8988_v28  ;;  %v1856_v9 = vrot.slane %v12650_v18, %v8968_v40  ;;  %v1847_v0 = vsel %vm1352_vm4, %v1846_v2, %v1842_v54  ;;  %v12653_v30 = vld [vmem:[#allocation237_spill] sm:$0xff] }
 0x252   :  { %12646 = vst [vmem:[#allocation392_spill] sm:$0xff] %v9305_v57  ;;  %12648 = vst [vmem:[#allocation393_spill] sm:$0xff] %v9313_v35  ;;  %v1718_v56 = vrot.slane %v12651_v58, %v8991_v46  ;;  %v1709_v4 = vsel %vm12160_vm8, %v1708_v51, %v1704_v8  ;;  %v1852_v13 = vsel %vm12128_vm5, %v1851_v11, %v1847_v0  ;;  %v12655_v58 = vld [vmem:[#allocation248_spill] sm:$0xff] }
 0x253   :  { %v1861_v10 = vrot.slane %v12652_v50, %v8988_v28  ;;  %v1714_v31 = vsel %vm12156_vm9, %v1713_v23, %v1709_v4  ;;  %v1723_v17 = vrot.slane %v12653_v30, %v9008_v21  ;;  %v1925_v18 = vrot.slane %v8690_v59, %v8959_v12  ;;  %v12657_v59 = vld [vmem:[#allocation253_spill] sm:$0xff] }
 0x254   :  { %v1916_v2 = vsel %vm1338_vm2, %v1915_v1, %v1911_v26  ;;  %v1787_v51 = vrot.slane %v12655_v58, %v8978_v45  ;;  %v1778_v11 = vsel %vm1366_vm6, %v1777_v55, %v1773_v19  ;;  %v1930_v23 = vrot.slane %v8699_v24, %v8973_v63  ;;  %v12658_v1 = vld [vmem:[#allocation280_spill] sm:$0xff] }
 0x255   :  { %v9333_v54 = vpop.xlane.xlu1 %979  ;;  %v1921_v8 = vsel %vm1345_vm3, %v1920_v32, %v1916_v2  ;;  %v9341_v0 = vpop.xlane.xlu0 %977  ;;  %v1783_v4 = vsel %vm1373_vm7, %v1782_v61, %v1778_v11  ;;  %v1792_v50 = vrot.slane %v12657_v59, %v8998_v48  ;;  %v1866_v26 = vrot.slane %v12658_v1, %v8978_v45  ;;  %v12659_v58 = vld [vmem:[#allocation236_spill] sm:$0xff]  ;;  %v12660_v2 = vld [vmem:[#allocation283_spill] sm:$0xff] }
 0x256   :  { %12654 = vst [vmem:[#allocation394_spill] sm:$0xff] %v9333_v54  ;;  %12656 = vst [vmem:[#allocation395_spill] sm:$0xff] %v9341_v0  ;;  %v1857_v30 = vsel %vm1366_vm6, %v1856_v9, %v1852_v13  ;;  %v1728_v55 = vrot.slane %v12659_v58, %v9005_v15  ;;  %v1719_v32 = vsel %vm12157_vm10, %v1718_v56, %v1714_v31  ;;  %v12661_v11 = vld [vmem:[#allocation239_spill] sm:$0xff]  ;;  %v12663_v58 = vld [vmem:[#allocation252_spill] sm:$0xff] }
 0x257   :  { %v1862_v19 = vsel %vm1373_vm7, %v1861_v10, %v1857_v30  ;;  %v1871_v24 = vrot.slane %v12660_v2, %v8998_v48  ;;  %v1724_v61 = vsel %vm12159_vm11, %v1723_v17, %v1719_v32  ;;  %v1733_v59 = vrot.slane %v12661_v11, %v9030_v37 }
 0x258   :  { %v1935_v1 = vrot.slane %v8696_v42, %v8968_v40  ;;  %v1926_v9 = vsel %vm1352_vm4, %v1925_v18, %v1921_v8  ;;  %v1797_v56 = vrot.slane %v12663_v58, %v8991_v46  ;;  %v1788_v10 = vsel %vm12160_vm8, %v1787_v51, %v1783_v4  ;;  %v12665_v42 = vld [vmem:[#allocation257_spill] sm:$0xff]  ;;  %v12666_v18 = vld [vmem:[#allocation282_spill] sm:$0xff] }
 0x259   :  { %v9361_v13 = vpop.xlane.xlu1 %983  ;;  %v1931_v31 = vsel %vm12128_vm5, %v1930_v23, %v1926_v9  ;;  %v1940_v17 = vrot.slane %v8707_v38, %v8988_v28  ;;  %v9369_v30 = vpop.xlane.xlu0 %981  ;;  %v1793_v32 = vsel %vm12156_vm9, %v1792_v50, %v1788_v10  ;;  %v1802_v2 = vrot.slane %v12665_v42, %v9008_v21  ;;  %v12667_v58 = vld [vmem:[#allocation238_spill] sm:$0xff]  ;;  %v12668_v9 = vld [vmem:[#allocation285_spill] sm:$0xff] }
 0x25a   :  { %12662 = vst [vmem:[#allocation396_spill] sm:$0xff] %v9361_v13  ;;  %12664 = vst [vmem:[#allocation397_spill] sm:$0xff] %v9369_v30  ;;  %v1876_v8 = vrot.slane %v12666_v18, %v8991_v46  ;;  %v1867_v11 = vsel %vm12160_vm8, %v1866_v26, %v1862_v19  ;;  %v1738_v51 = vrot.slane %v12667_v58, %v9040_v36 }
 0x25b   :  { %v1729_v23 = vsel %vm1408_vm12, %v1728_v55, %v1724_v61  ;;  %v1872_v4 = vsel %vm12156_vm9, %v1871_v24, %v1867_v11  ;;  %v1881_v38 = vrot.slane %v12668_v9, %v9008_v21  ;;  %v1945_v50 = vrot.slane %v8703_v22, %v8978_v45 }
 0x25c   :  { %v1936_v10 = vsel %vm1366_vm6, %v1935_v1, %v1931_v31  ;;  %v1984_v18 = vrot.slane %v8735_v5, %v8937_v29  ;;  %v1980_v26 = vrot.slane %v8739_v47, %v8940_v41  ;;  %v1798_v55 = vsel %vm12157_vm10, %v1797_v56, %v1793_v32  ;;  %v12671_v31 = vld [vmem:[#allocation256_spill] sm:$0xff]  ;;  %v12672_v56 = vld [vmem:[#allocation261_spill] sm:$0xff] }
 0x25d   :  { %v9390_v19 = vpop.xlane.xlu1 %987  ;;  %v1941_v24 = vsel %vm1373_vm7, %v1940_v17, %v1936_v10  ;;  %v1950_v61 = vrot.slane %v8715_v25, %v8998_v48  ;;  %v1989_v11 = vrot.slane %v8747_v7, %v8949_v62  ;;  %v9398_v22 = vpop.xlane.xlu0 %985  ;;  %v1734_v1 = vsel %vm1415_vm13, %v1733_v59, %v1729_v23  ;;  %v12673_v32 = vld [vmem:[#allocation284_spill] sm:$0xff]  ;;  %v12674_v7 = vld [vmem:[#allocation287_spill] sm:$0xff] }
 0x25e   :  { %12669 = vst [vmem:[#allocation398_spill] sm:$0xff] %v9390_v19  ;;  %12670 = vst [vmem:[#allocation399_spill] sm:$0xff] %v9398_v22  ;;  %v1807_v5 = vrot.slane %v12671_v31, %v9005_v15  ;;  %v1803_v47 = vsel %vm12159_vm11, %v1802_v2, %v1798_v55  ;;  %v1877_v9 = vsel %vm12157_vm10, %v1876_v8, %v1872_v4  ;;  %v12704_v31 = vld [vmem:[#allocation340_spill] sm:$0xff] }
 0x25f   :  { %v1812_v17 = vrot.slane %v12672_v56, %v9030_v37  ;;  %v1886_v10 = vrot.slane %v12673_v32, %v9005_v15  ;;  %v1882_v25 = vsel %vm12159_vm11, %v1881_v38, %v1877_v9  ;;  %v1891_v42 = vrot.slane %v12674_v7, %v9030_v37  ;;  %v12717_v22 = vld [vmem:[#allocation316_spill] sm:$0xff] }
 0x260   :  { %v1955_v59 = vrot.slane %v8711_v60, %v8991_v46  ;;  %v1946_v23 = vsel %vm12160_vm8, %v1945_v50, %v1941_v24  ;;  %v1985_v2 = vsel %vm1324_vm0, %v1984_v18, %v1980_v26  ;;  %v1994_v8 = vrot.slane %v8743_v20, %v8954_v3  ;;  %v12677_v50 = vld [vmem:[#allocation260_spill] sm:$0xff] }
 0x261   :  { %v9418_v4 = vpop.xlane.xlu1 %991  ;;  %v1951_v55 = vsel %vm12156_vm9, %v1950_v61, %v1946_v23  ;;  %v1960_v38 = vrot.slane %v8723_v6, %v9008_v21  ;;  %v1990_v9 = vsel %vm1331_vm1, %v1989_v11, %v1985_v2  ;;  %v1999_v32 = vrot.slane %v8755_v27, %v8965_v52  ;;  %v9426_v60 = vpop.xlane.xlu0 %989  ;;  %v12678_v61 = vld [vmem:[#allocation321_spill] sm:$0xff]  ;;  %v12679_v11 = vld [vmem:[#allocation286_spill] sm:$0xff] }
 0x262   :  { %12675 = vst [vmem:[#allocation400_spill] sm:$0xff] %v9418_v4  ;;  %12676 = vst [vmem:[#allocation401_spill] sm:$0xff] %v9426_v60  ;;  %v1817_v18 = vrot.slane %v12677_v50, %v9040_v36  ;;  %v1808_v26 = vsel %vm1408_vm12, %v1807_v5, %v1803_v47  ;;  %v2063_v24 = vrot.slane %v8790_v53, %v8937_v29  ;;  %v12680_v47 = vld [vmem:[#allocation308_spill] sm:$0xff]  ;;  %v12707_v60 = vld [vmem:[#allocation314_spill] sm:$0xff] }
 0x263   :  { %v2059_v23 = vrot.slane %v12678_v61, %v8940_v41  ;;  %v1813_v20 = vsel %vm1415_vm13, %v1812_v17, %v1808_v26  ;;  %v1896_v2 = vrot.slane %v12679_v11, %v9040_v36  ;;  %v1887_v27 = vsel %vm1408_vm12, %v1886_v10, %v1882_v25  ;;  %v12682_v17 = vld [vmem:[#allocation300_spill] sm:$0xff]  ;;  %v12683_v10 = vld [vmem:[#allocation311_spill] sm:$0xff] }
 0x264   :  { %v2068_v6 = vrot.slane %v8799_v33, %v8949_v62  ;;  %v1892_v7 = vsel %vm1415_vm13, %v1891_v42, %v1887_v27  ;;  %v1956_v5 = vsel %vm12157_vm10, %v1955_v59, %v1951_v55  ;;  %v2004_v53 = vrot.slane %v12680_v47, %v8959_v12  ;;  %v12685_v59 = vld [vmem:[#allocation322_spill] sm:$0xff]  ;;  %v12694_v47 = vld [vmem:[#allocation341_spill] sm:$0xff] }
 0x265   :  { %v1995_v50 = vsel %vm1338_vm2, %v1994_v8, %v1990_v9  ;;  %v9446_v61 = vpop.xlane.xlu1 %995  ;;  %v1965_v26 = vrot.slane %v12682_v17, %v9005_v15  ;;  %v1961_v11 = vsel %vm12159_vm11, %v1960_v38, %v1956_v5  ;;  %v2009_v33 = vrot.slane %v12683_v10, %v8973_v63  ;;  %v9454_v27 = vpop.xlane.xlu0 %993 }
 0x266   :  { %12681 = vst [vmem:[#allocation402_spill] sm:$0xff] %v9446_v61  ;;  %v2000_v25 = vsel %vm1345_vm3, %v1999_v32, %v1995_v50  ;;  %12684 = vst [vmem:[#allocation403_spill] sm:$0xff] %v9454_v27  ;;  %v2064_v42 = vsel %vm1324_vm0, %v2063_v24, %v2059_v23  ;;  %v2073_v55 = vrot.slane %v12685_v59, %v8954_v3 }
 0x267   :  { %v2142_v8 = vrot.slane %v8847_v34, %v8937_v29  ;;  %v2138_v9 = vrot.slane %v8851_v44, %v8940_v41  ;;  %v9464_v38 = vsel %vm12124_vm14, %v1738_v51, %v1734_v1  ;;  %v2069_v32 = vsel %vm1331_vm1, %v2068_v6, %v2064_v42  ;;  %v12686_v34 = vld [vmem:[#allocation310_spill] sm:$0xff] }
 0x268   :  { %v2078_v50 = vrot.slane %v8805_v16, %v8965_v52  ;;  %v2147_v24 = vrot.slane %v8859_v39, %v8949_v62  ;;  %v9472_v23 = vsel %vm12124_vm14, %v1817_v18, %v1813_v20  ;;  %v9475_v5 = vsel %vm12124_vm14, %v1896_v2, %v1892_v7  ;;  %v12688_v6 = vld [vmem:[#allocation302_spill] sm:$0xff]  ;;  %v12689_v20 = vld [vmem:[#allocation313_spill] sm:$0xff]  ;;  %v12691_v2 = vld [vmem:[#allocation324_spill] sm:$0xff] }
 0x269   :  { %v2014_v44 = vrot.slane %v12686_v34, %v8968_v40  ;;  %v2005_v51 = vsel %vm1352_vm4, %v2004_v53, %v2000_v25  ;;  %v9480_v1 = vpop.xlane.xlu1 %999  ;;  %v9485_v59 = vsel %vm1408_vm12, %v1965_v26, %v1961_v11  ;;  %v2019_v18 = vrot.slane %v12689_v20, %v8988_v28  ;;  %v9490_v7 = vpop.xlane.xlu0 %997  ;;  %v12692_v34 = vld [vmem:[#allocation338_spill] sm:$0xff]  ;;  %v12693_v26 = vld [vmem:[#allocation327_spill] sm:$0xff]  ;;  %v12695_v20 = vld [vmem:[#allocation312_spill] sm:$0xff] }
 0x26a   :  { %12687 = vst [vmem:[#allocation404_spill] sm:$0xff] %v9480_v1  ;;  %v2010_v39 = vsel %vm12128_vm5, %v2009_v33, %v2005_v51  ;;  %12690 = vst [vmem:[#allocation405_spill] sm:$0xff] %v9490_v7  ;;  %v2083_v16 = vrot.slane %v12691_v2, %v8959_v12  ;;  %v2074_v53 = vsel %vm1338_vm2, %v2073_v55, %v2069_v32  ;;  %v12697_v32 = vld [vmem:[#allocation353_spill] sm:$0xff]  ;;  %vm12158_vm14 = vcmask 1043459  }
 0x26b   :  { %v2143_v25 = vsel %vm1324_vm0, %v2142_v8, %v2138_v9  ;;  %v2152_v42 = vrot.slane %v12692_v34, %v8954_v3  ;;  %v2079_v11 = vsel %vm1345_vm3, %v2078_v50, %v2074_v53  ;;  %v2088_v33 = vrot.slane %v12693_v26, %v8973_v63  ;;  %v12696_v8 = vld [vmem:[#allocation352_spill] sm:$0xff]  ;;  %v12699_v53 = vld [vmem:[#allocation303_spill] sm:$0xff] }
 0x26c   :  { %v2148_v51 = vsel %vm1331_vm1, %v2147_v24, %v2143_v25  ;;  %v2157_v17 = vrot.slane %v12694_v47, %v8965_v52  ;;  %v2024_v2 = vrot.slane %v12695_v20, %v8978_v45  ;;  %v2015_v55 = vsel %vm1366_vm6, %v2014_v44, %v2010_v39  ;;  %v12700_v25 = vld [vmem:[#allocation315_spill] sm:$0xff]  ;;  %v12703_v44 = vld [vmem:[#allocation326_spill] sm:$0xff] }
 0x26d   :  { %v2221_v9 = vrot.slane %v12696_v8, %v8937_v29  ;;  %v2217_v34 = vrot.slane %v12697_v32, %v8940_v41  ;;  %v9511_v50 = vpop.xlane.xlu1 %1003  ;;  %v1970_v26 = vrot.slane %v12699_v53, %v9030_v37  ;;  %v2020_v24 = vsel %vm1373_vm7, %v2019_v18, %v2015_v55  ;;  %v12701_v20 = vld [vmem:[#allocation355_spill] sm:$0xff]  ;;  %v9520_v39 = vpop.xlane.xlu0 %1001  ;;  %v12705_v55 = vld [vmem:[#allocation329_spill] sm:$0xff] }
 0x26e   :  { %12698 = vst [vmem:[#allocation406_spill] sm:$0xff] %v9511_v50  ;;  %v2029_v47 = vrot.slane %v12700_v25, %v8998_v48  ;;  %v2226_v10 = vrot.slane %v12701_v20, %v8949_v62  ;;  %12702 = vst [vmem:[#allocation407_spill] sm:$0xff] %v9520_v39  ;;  %v2093_v8 = vrot.slane %v12703_v44, %v8968_v40  ;;  %v12706_v20 = vld [vmem:[#allocation343_spill] sm:$0xff] }
 0x26f   :  { %v2084_v32 = vsel %vm1352_vm4, %v2083_v16, %v2079_v11  ;;  %v2162_v56 = vrot.slane %v12704_v31, %v8959_v12  ;;  %v2153_v53 = vsel %vm1338_vm2, %v2152_v42, %v2148_v51  ;;  %v2098_v25 = vrot.slane %v12705_v55, %v8988_v28  ;;  %v12708_v31 = vld [vmem:[#allocation354_spill] sm:$0xff] }
 0x270   :  { %v2089_v18 = vsel %vm12128_vm5, %v2088_v33, %v2084_v32  ;;  %v2158_v58 = vsel %vm1345_vm3, %v2157_v17, %v2153_v53  ;;  %v2167_v4 = vrot.slane %v12706_v20, %v8973_v63  ;;  %v2034_v44 = vrot.slane %v12707_v60, %v8991_v46  ;;  %v12710_v17 = vld [vmem:[#allocation317_spill] sm:$0xff] }
 0x271   :  { %v2025_v16 = vsel %vm12160_vm8, %v2024_v2, %v2020_v24  ;;  %v2222_v11 = vsel %vm1324_vm0, %v2221_v9, %v2217_v34  ;;  %v2231_v42 = vrot.slane %v12708_v31, %v8954_v3  ;;  %v9540_v51 = vpop.xlane.xlu1 %1007  ;;  %v2039_v32 = vrot.slane %v12710_v17, %v9008_v21  ;;  %v12711_v20 = vld [vmem:[#allocation357_spill] sm:$0xff]  ;;  %v9548_v60 = vpop.xlane.xlu0 %1005  ;;  %v12713_v34 = vld [vmem:[#allocation328_spill] sm:$0xff]  ;;  %v12714_v24 = vld [vmem:[#allocation342_spill] sm:$0xff] }
 0x272   :  { %12709 = vst [vmem:[#allocation408_spill] sm:$0xff] %v9540_v51  ;;  %v2030_v33 = vsel %vm12156_vm9, %v2029_v47, %v2025_v16  ;;  %v2227_v53 = vsel %vm1331_vm1, %v2226_v10, %v2222_v11  ;;  %v2236_v55 = vrot.slane %v12711_v20, %v8965_v52  ;;  %12712 = vst [vmem:[#allocation409_spill] sm:$0xff] %v9548_v60  ;;  %v12715_v10 = vld [vmem:[#allocation331_spill] sm:$0xff]  ;;  %v12716_v17 = vld [vmem:[#allocation345_spill] sm:$0xff] }
 0x273   :  { %v2103_v2 = vrot.slane %v12713_v34, %v8978_v45  ;;  %v2094_v9 = vsel %vm1366_vm6, %v2093_v8, %v2089_v18  ;;  %v2172_v31 = vrot.slane %v12714_v24, %v8968_v40  ;;  %v2163_v47 = vsel %vm1352_vm4, %v2162_v56, %v2158_v58  ;;  %v12718_v18 = vld [vmem:[#allocation356_spill] sm:$0xff] }
 0x274   :  { %v2099_v16 = vsel %vm1373_vm7, %v2098_v25, %v2094_v9  ;;  %v2108_v11 = vrot.slane %v12715_v10, %v8998_v48  ;;  %v2168_v20 = vsel %vm12128_vm5, %v2167_v4, %v2163_v47  ;;  %v2177_v19 = vrot.slane %v12716_v17, %v8988_v28  ;;  %v12720_v9 = vld [vmem:[#allocation319_spill] sm:$0xff] }
 0x275   :  { %v2044_v34 = vrot.slane %v12717_v22, %v9005_v15  ;;  %v2035_v8 = vsel %vm12157_vm10, %v2034_v44, %v2030_v33  ;;  %v2241_v24 = vrot.slane %v12718_v18, %v8959_v12  ;;  %v2232_v58 = vsel %vm1338_vm2, %v2231_v42, %v2227_v53  ;;  %v9568_v56 = vpop.xlane.xlu1 %1011  ;;  %v12721_v17 = vld [vmem:[#allocation359_spill] sm:$0xff]  ;;  %v9576_v22 = vpop.xlane.xlu0 %1009  ;;  %v12723_v44 = vld [vmem:[#allocation330_spill] sm:$0xff]  ;;  %v12724_v42 = vld [vmem:[#allocation344_spill] sm:$0xff] }
 0x276   :  { %12719 = vst [vmem:[#allocation410_spill] sm:$0xff] %v9568_v56  ;;  %v2040_v25 = vsel %vm12159_vm11, %v2039_v32, %v2035_v8  ;;  %v2049_v4 = vrot.slane %v12720_v9, %v9030_v37  ;;  %v2237_v47 = vsel %vm1345_vm3, %v2236_v55, %v2232_v58  ;;  %v2246_v10 = vrot.slane %v12721_v17, %v8973_v63  ;;  %v12725_v9 = vld [vmem:[#allocation333_spill] sm:$0xff]  ;;  %v12726_v17 = vld [vmem:[#allocation347_spill] sm:$0xff] }
 0x277   :  { %12722 = vst [vmem:[#allocation411_spill] sm:$0xff] %v9576_v22  ;;  %v2113_v33 = vrot.slane %v12723_v44, %v8991_v46  ;;  %v2104_v18 = vsel %vm12160_vm8, %v2103_v2, %v2099_v16  ;;  %v2182_v53 = vrot.slane %v12724_v42, %v8978_v45  ;;  %v2173_v32 = vsel %vm1366_vm6, %v2172_v31, %v2168_v20  ;;  %v12727_v16 = vld [vmem:[#allocation358_spill] sm:$0xff] }
 0x278   :  { %v2109_v8 = vsel %vm12156_vm9, %v2108_v11, %v2104_v18  ;;  %v2118_v55 = vrot.slane %v12725_v9, %v9008_v21  ;;  %v2178_v58 = vsel %vm1373_vm7, %v2177_v19, %v2173_v32  ;;  %v2187_v13 = vrot.slane %v12726_v17, %v8998_v48  ;;  %v12729_v11 = vld [vmem:[#allocation318_spill] sm:$0xff]  ;;  %v12730_v17 = vld [vmem:[#allocation361_spill] sm:$0xff] }
 0x279   :  { %v1971_v44 = vsel %vm1415_vm13, %v1970_v26, %v9485_v59  ;;  %v2045_v2 = vsel %vm1408_vm12, %v2044_v34, %v2040_v25  ;;  %v2251_v42 = vrot.slane %v12727_v16, %v8968_v40  ;;  %v2242_v31 = vsel %vm1352_vm4, %v2241_v24, %v2237_v47  ;;  %v9596_v20 = vpop.xlane.xlu1 %1015  ;;  %v9604_v59 = vpop.xlane.xlu0 %1013  ;;  %v12732_v26 = vld [vmem:[#allocation332_spill] sm:$0xff]  ;;  %v12733_v24 = vld [vmem:[#allocation346_spill] sm:$0xff] }
 0x27a   :  { %12728 = vst [vmem:[#allocation412_spill] sm:$0xff] %v9596_v20  ;;  %v2054_v18 = vrot.slane %v12729_v11, %v9040_v36  ;;  %v2050_v19 = vsel %vm1415_vm13, %v2049_v4, %v2045_v2  ;;  %v2247_v32 = vsel %vm12128_vm5, %v2246_v10, %v2242_v31  ;;  %v2256_v9 = vrot.slane %v12730_v17, %v8988_v28  ;;  %v12734_v4 = vld [vmem:[#allocation335_spill] sm:$0xff]  ;;  %v12735_v31 = vld [vmem:[#allocation349_spill] sm:$0xff] }
 0x27b   :  { %12731 = vst [vmem:[#allocation413_spill] sm:$0xff] %v9604_v59  ;;  %v2123_v34 = vrot.slane %v12732_v26, %v9005_v15  ;;  %v2114_v25 = vsel %vm12157_vm10, %v2113_v33, %v2109_v8  ;;  %v2192_v47 = vrot.slane %v12733_v24, %v8991_v46  ;;  %v2183_v16 = vsel %vm12160_vm8, %v2182_v53, %v2178_v58  ;;  %v12736_v53 = vld [vmem:[#allocation360_spill] sm:$0xff] }
 0x27c   :  { %v2119_v11 = vsel %vm12159_vm11, %v2118_v55, %v2114_v25  ;;  %v2128_v10 = vrot.slane %v12734_v4, %v9030_v37  ;;  %v2188_v2 = vsel %vm12156_vm9, %v2187_v13, %v2183_v16  ;;  %v2197_v17 = vrot.slane %v12735_v31, %v9008_v21  ;;  %v12757_v4 = vld [vmem:[#allocation367_spill] sm:$0xff] }
 0x27d   :  { %v2612_v26 = vsel %vm12129_vm15, %v9464_v38, %v9248_v43  ;;  %v9624_v33 = vsel %vm12129_vm15, %v9472_v23, %v9278_v49  ;;  %v2261_v8 = vrot.slane %v12736_v53, %v8978_v45  ;;  %v2252_v55 = vsel %vm1366_vm6, %v2251_v42, %v2247_v32  ;;  %v9629_v58 = vpop.xlane.xlu1 %1019  ;;  %v12741_v38 = vld [vmem:[#allocation364_spill] sm:$0xff]  ;;  %v9644_v25 = vpop.xlane.xlu0 %1017 }
 0x27e   :  { %12737 = vst [vmem:[#allocation414_spill] sm:$0xff] %v9629_v58  ;;  %v9633_v13 = vsel %vm12158_vm14, %v9475_v5, %v2612_v26  ;;  %v12739_v16 = vrot.slane %v12688_v6, %v9040_v36  ;;  %vm12740_vm5 = vcmask 1048512   ;;  %v2257_v49 = vsel %vm1373_vm7, %v2256_v9, %v2252_v55  ;;  %12742 = vst [vmem:[#allocation416_spill] sm:$0xff] %v9644_v25  ;;  %v12745_v5 = vld [vmem:[#allocation348_spill] sm:$0xff] }
 0x27f   :  { %12738 = vst [vmem:[#allocation415_spill] sm:$0xff] %v9633_v13  ;;  %v2266_v23 = vrot.slane %v12741_v38, %v8998_v48  ;;  %vm12743_vm15 = vmmov %vm12740_vm5  ;;  %v2124_v32 = vsel %vm1408_vm12, %v2123_v34, %v2119_v11  ;;  %v2202_v26 = vrot.slane %v12745_v5, %v9005_v15  ;;  %v2193_v53 = vsel %vm12157_vm10, %v2192_v47, %v2188_v2  ;;  %v12747_v38 = vld [vmem:[#allocation351_spill] sm:$0xff]  ;;  %v12749_v34 = vld [vmem:[#allocation370_spill] sm:$0xff] }
 0x280   :  { %v9639_v43 = vsel %vm12740_vm5, %v12739_v16, %v1971_v44  ;;  %v9647_v42 = vsel %vm12743_vm15, %v2054_v18, %v2050_v19  ;;  %v12746_v44 = vld [vmem:[#allocation334_spill] sm:$0xff]  ;;  %v9656_v9 = vsel %vm1415_vm13, %v2128_v10, %v2124_v32  ;;  %v2198_v55 = vsel %vm12159_vm11, %v2197_v17, %v2193_v53  ;;  %v12748_v18 = vld [vmem:[#allocation363_spill] sm:$0xff]  ;;  %v12752_v17 = vld [vmem:[#allocation373_spill] sm:$0xff] }
 0x281   :  { %12744 = vst [vmem:[#allocation417_spill] sm:$0xff] %v9647_v42  ;;  %v2207_v24 = vrot.slane %v12747_v38, %v9030_v37  ;;  %v2271_v19 = vrot.slane %v12748_v18, %v8991_v46  ;;  %v2262_v11 = vsel %vm12160_vm8, %v2261_v8, %v2257_v49  ;;  %v2300_v5 = vrot.slane %v12749_v34, %v8937_v29  ;;  %v12750_v47 = vld [vmem:[#allocation371_spill] sm:$0xff]  ;;  %v9668_v16 = vpop.xlane.xlu1 %1023  ;;  %v12753_v32 = vld [vmem:[#allocation386_spill] sm:$0xff]  ;;  %v9677_v8 = vpop.xlane.xlu0 %1021 }
 0x282   :  { %v2296_v2 = vrot.slane %v12750_v47, %v8940_v41  ;;  %12751 = vst [vmem:[#allocation334_spill] sm:$0xff] %v9668_v16  ;;  %v2267_v10 = vsel %vm12156_vm9, %v2266_v23, %v2262_v11  ;;  %v2305_v53 = vrot.slane %v12752_v17, %v8949_v62  ;;  %v2379_v38 = vrot.slane %v12753_v32, %v8937_v29  ;;  %v12754_v18 = vld [vmem:[#allocation387_spill] sm:$0xff]  ;;  %v12756_v49 = vld [vmem:[#allocation350_spill] sm:$0xff] }
 0x283   :  { %v2375_v31 = vrot.slane %v12754_v18, %v8940_v41  ;;  %12755 = vst [vmem:[#allocation418_spill] sm:$0xff] %v9677_v8  ;;  %v2203_v47 = vsel %vm1408_vm12, %v2202_v26, %v2198_v55  ;;  %v2276_v6 = vrot.slane %v12757_v4, %v9008_v21  ;;  %v2384_v23 = vrot.slane %v9254_v14, %v8949_v62  ;;  %v12758_v17 = vld [vmem:[#allocation366_spill] sm:$0xff]  ;;  %v12759_v4 = vld [vmem:[#allocation372_spill] sm:$0xff]  ;;  %v12761_v14 = vld [vmem:[#allocation375_spill] sm:$0xff] }
 0x284   :  { %v9687_v11 = vsel %vm1415_vm13, %v2207_v24, %v2203_v47  ;;  %v2458_v18 = vrot.slane %v9446_v61, %v8937_v29  ;;  %v2454_v34 = vrot.slane %v9454_v27, %v8940_v41  ;;  %v2272_v26 = vsel %vm12157_vm10, %v2271_v19, %v2267_v10  ;;  %v12762_v27 = vld [vmem:[#allocation388_spill] sm:$0xff] }
 0x285   :  { %v2301_v55 = vsel %vm1324_vm0, %v2300_v5, %v2296_v2  ;;  %v2310_v42 = vrot.slane %v12759_v4, %v8954_v3  ;;  %v2463_v24 = vrot.slane %v9490_v7, %v8949_v62  ;;  %v9701_v47 = vpop.xlane.xlu1 %1027  ;;  %v2315_v61 = vrot.slane %v12761_v14, %v8965_v52  ;;  %v9709_v10 = vpop.xlane.xlu0 %1025  ;;  %v12764_v2 = vld [vmem:[#allocation368_spill] sm:$0xff] }
 0x286   :  { %12760 = vst [vmem:[#allocation350_spill] sm:$0xff] %v9701_v47  ;;  %v2306_v32 = vsel %vm1331_vm1, %v2305_v53, %v2301_v55  ;;  %v2380_v13 = vsel %vm1324_vm0, %v2379_v38, %v2375_v31  ;;  %v2389_v19 = vrot.slane %v12762_v27, %v8954_v3  ;;  %12763 = vst [vmem:[#allocation419_spill] sm:$0xff] %v9709_v10  ;;  %v12765_v53 = vld [vmem:[#allocation391_spill] sm:$0xff]  ;;  %vm12773_vm5 = vcmask 458112  }
 0x287   :  { %v9712_v5 = vsel %vm12159_vm11, %v2276_v6, %v2272_v26  ;;  %v2385_v4 = vsel %vm1331_vm1, %v2384_v23, %v2380_v13  ;;  %v2394_v55 = vrot.slane %v12765_v53, %v8965_v52  ;;  %v2459_v14 = vsel %vm1324_vm0, %v2458_v18, %v2454_v34  ;;  %v12766_v26 = vld [vmem:[#allocation374_spill] sm:$0xff]  ;;  %v12768_v53 = vld [vmem:[#allocation377_spill] sm:$0xff]  ;;  %vm12777_vm15 = vmmov %vm12773_vm5 }
 0x288   :  { %v2468_v31 = vrot.slane %v9480_v1, %v8954_v3  ;;  %v2537_v38 = vrot.slane %v9701_v47, %v8937_v29  ;;  %v2533_v6 = vrot.slane %v9709_v10, %v8940_v41  ;;  %v2320_v27 = vrot.slane %v12766_v26, %v8959_v12  ;;  %v12769_v47 = vld [vmem:[#allocation390_spill] sm:$0xff] }
 0x289   :  { %v2311_v7 = vsel %vm1338_vm2, %v2310_v42, %v2306_v32  ;;  %v2464_v13 = vsel %vm1331_vm1, %v2463_v24, %v2459_v14  ;;  %v2473_v23 = vrot.slane %v9520_v39, %v8965_v52  ;;  %v9732_v18 = vpop.xlane.xlu1 %1031  ;;  %v2325_v1 = vrot.slane %v12768_v53, %v8973_v63  ;;  %v9740_v26 = vpop.xlane.xlu0 %1029  ;;  %v12771_v42 = vld [vmem:[#allocation376_spill] sm:$0xff] }
 0x28a   :  { %12767 = vst [vmem:[#allocation420_spill] sm:$0xff] %v9732_v18  ;;  %v2316_v34 = vsel %vm1345_vm3, %v2315_v61, %v2311_v7  ;;  %v2399_v10 = vrot.slane %v12769_v47, %v8959_v12  ;;  %v2390_v29 = vsel %vm1338_vm2, %v2389_v19, %v2385_v4  ;;  %12770 = vst [vmem:[#allocation421_spill] sm:$0xff] %v9740_v26 }
 0x28b   :  { %v2330_v14 = vrot.slane %v12771_v42, %v8968_v40  ;;  %v2395_v32 = vsel %vm1345_vm3, %v2394_v55, %v2390_v29  ;;  %v2404_v24 = vrot.slane %v9313_v35, %v8973_v63  ;;  %v2542_v61 = vrot.slane %v9740_v26, %v8949_v62 }
 0x28c   :  { %v2478_v7 = vrot.slane %v9511_v50, %v8959_v12  ;;  %v2469_v47 = vsel %vm1338_vm2, %v2468_v31, %v2464_v13  ;;  %v2538_v4 = vsel %vm1324_vm0, %v2537_v38, %v2533_v6  ;;  %v2547_v19 = vrot.slane %v9732_v18, %v8954_v3  ;;  %v12774_v31 = vld [vmem:[#allocation379_spill] sm:$0xff] }
 0x28d   :  { %v2321_v42 = vsel %vm1352_vm4, %v2320_v27, %v2316_v34  ;;  %v2474_v29 = vsel %vm1345_vm3, %v2473_v23, %v2469_v47  ;;  %v2483_v55 = vrot.slane %v9548_v60, %v8973_v63  ;;  %v2543_v35 = vsel %vm1331_vm1, %v2542_v61, %v2538_v4  ;;  %v9760_v53 = vpop.xlane.xlu1 %1035  ;;  %v9768_v27 = vpop.xlane.xlu0 %1033  ;;  %v12776_v47 = vld [vmem:[#allocation378_spill] sm:$0xff] }
 0x28e   :  { %12772 = vst [vmem:[#allocation422_spill] sm:$0xff] %v9760_v53  ;;  %v2326_v50 = vsel %vm12773_vm5, %v2325_v1, %v2321_v42  ;;  %v2335_v13 = vrot.slane %v12774_v31, %v8988_v28  ;;  %v2409_v38 = vrot.slane %v9305_v57, %v8968_v40  ;;  %v2400_v6 = vsel %vm1352_vm4, %v2399_v10, %v2395_v32 }
 0x28f   :  { %12775 = vst [vmem:[#allocation423_spill] sm:$0xff] %v9768_v27  ;;  %v2340_v23 = vrot.slane %v12776_v47, %v8978_v45  ;;  %v2405_v34 = vsel %vm12777_vm15, %v2404_v24, %v2400_v6  ;;  %v2414_v61 = vrot.slane %v9341_v0, %v8988_v28  ;;  %v2552_v1 = vrot.slane %v9768_v27, %v8965_v52  ;;  %vm12782_vm15 = vmmov %vm12773_vm5 }
 0x290   :  { %v2488_v42 = vrot.slane %v9540_v51, %v8968_v40  ;;  %v2479_v4 = vsel %vm1352_vm4, %v2478_v7, %v2474_v29  ;;  %v2548_v10 = vsel %vm1338_vm2, %v2547_v19, %v2543_v35  ;;  %v2557_v32 = vrot.slane %v9760_v53, %v8959_v12  ;;  %v12779_v7 = vld [vmem:[#allocation381_spill] sm:$0xff] }
 0x291   :  { %v2331_v57 = vsel %vm1366_vm6, %v2330_v14, %v2326_v50  ;;  %v2484_v24 = vsel %vm12773_vm5, %v2483_v55, %v2479_v4  ;;  %v2493_v6 = vrot.slane %v9576_v22, %v8988_v28  ;;  %v2553_v0 = vsel %vm1345_vm3, %v2552_v1, %v2548_v10  ;;  %v9788_v47 = vpop.xlane.xlu1 %1039  ;;  %v9796_v50 = vpop.xlane.xlu0 %1037  ;;  %v12781_v14 = vld [vmem:[#allocation380_spill] sm:$0xff] }
 0x292   :  { %12778 = vst [vmem:[#allocation424_spill] sm:$0xff] %v9788_v47  ;;  %v2336_v51 = vsel %vm1373_vm7, %v2335_v13, %v2331_v57  ;;  %v2345_v29 = vrot.slane %v12779_v7, %v8998_v48  ;;  %v2419_v35 = vrot.slane %v9333_v54, %v8978_v45  ;;  %v2410_v19 = vsel %vm1366_vm6, %v2409_v38, %v2405_v34 }
 0x293   :  { %12780 = vst [vmem:[#allocation425_spill] sm:$0xff] %v9796_v50  ;;  %v2350_v55 = vrot.slane %v12781_v14, %v8991_v46  ;;  %v2415_v4 = vsel %vm1373_vm7, %v2414_v61, %v2410_v19  ;;  %v2424_v1 = vrot.slane %v9369_v30, %v8998_v48  ;;  %v2562_v57 = vrot.slane %v9796_v50, %v8973_v63 }
 0x294   :  { %v2498_v13 = vrot.slane %v9568_v56, %v8978_v45  ;;  %v2489_v10 = vsel %vm1366_vm6, %v2488_v42, %v2484_v24  ;;  %v2558_v38 = vsel %vm1352_vm4, %v2557_v32, %v2553_v0  ;;  %v2567_v34 = vrot.slane %v9788_v47, %v8968_v40  ;;  %v12784_v42 = vld [vmem:[#allocation383_spill] sm:$0xff]  ;;  %v12785_v0 = vld [vmem:[#allocation396_spill] sm:$0xff] }
 0x295   :  { %v2341_v54 = vsel %vm12160_vm8, %v2340_v23, %v2336_v51  ;;  %v2494_v61 = vsel %vm1373_vm7, %v2493_v6, %v2489_v10  ;;  %v2503_v19 = vrot.slane %v9604_v59, %v8998_v48  ;;  %v2563_v30 = vsel %vm12782_vm15, %v2562_v57, %v2558_v38  ;;  %v9816_v14 = vpop.xlane.xlu1 %1043  ;;  %v9824_v51 = vpop.xlane.xlu0 %1041  ;;  %v12787_v23 = vld [vmem:[#allocation369_spill] sm:$0xff]  ;;  %v12788_v57 = vld [vmem:[#allocation399_spill] sm:$0xff] }
 0x296   :  { %12783 = vst [vmem:[#allocation426_spill] sm:$0xff] %v9816_v14  ;;  %v2346_v56 = vsel %vm12156_vm9, %v2345_v29, %v2341_v54  ;;  %v2355_v24 = vrot.slane %v12784_v42, %v9008_v21  ;;  %v2429_v32 = vrot.slane %v12785_v0, %v8991_v46  ;;  %v2420_v47 = vsel %vm12160_vm8, %v2419_v35, %v2415_v4 }
 0x297   :  { %12786 = vst [vmem:[#allocation427_spill] sm:$0xff] %v9824_v51  ;;  %v2286_v6 = vrot.slane %v12787_v23, %v9030_v37  ;;  %v2425_v10 = vsel %vm12156_vm9, %v2424_v1, %v2420_v47  ;;  %v2434_v38 = vrot.slane %v12788_v57, %v9008_v21  ;;  %v2572_v54 = vrot.slane %v9824_v51, %v8988_v28 }
 0x298   :  { %v2508_v29 = vrot.slane %v9596_v20, %v8991_v46  ;;  %v2499_v0 = vsel %vm12160_vm8, %v2498_v13, %v2494_v61  ;;  %v2568_v35 = vsel %vm1366_vm6, %v2567_v34, %v2563_v30  ;;  %v2577_v4 = vrot.slane %v9816_v14, %v8978_v45  ;;  %v12790_v20 = vld [vmem:[#allocation382_spill] sm:$0xff] }
 0x299   :  { %vm2615_vm5 = vcmask 1044484   ;;  %v2351_v42 = vsel %vm12157_vm10, %v2350_v55, %v2346_v56  ;;  %v2504_v47 = vsel %vm12156_vm9, %v2503_v19, %v2499_v0  ;;  %v2513_v1 = vrot.slane %v9644_v25, %v9008_v21  ;;  %v9844_v51 = vpop.xlane.xlu1 %1047  ;;  %v12791_v34 = vld [vmem:[#allocation398_spill] sm:$0xff]  ;;  %v9852_v56 = vpop.xlane.xlu0 %1045  ;;  %v12793_v55 = vld [vmem:[#allocation385_spill] sm:$0xff] }
 0x29a   :  { %v2573_v57 = vsel %vm1373_vm7, %v2572_v54, %v2568_v35  ;;  %12789 = vst [vmem:[#allocation428_spill] sm:$0xff] %v9844_v51  ;;  %v2360_v13 = vrot.slane %v12790_v20, %v9005_v15  ;;  %v2356_v30 = vsel %vm12159_vm11, %v2355_v24, %v2351_v42  ;;  %v2439_v61 = vrot.slane %v12791_v34, %v9005_v15  ;;  %v12794_v54 = vld [vmem:[#allocation401_spill] sm:$0xff] }
 0x29b   :  { %v2430_v14 = vsel %vm12157_vm10, %v2429_v32, %v2425_v10  ;;  %12792 = vst [vmem:[#allocation429_spill] sm:$0xff] %v9852_v56  ;;  %vm2617_vm15 = vcmask 1045509   ;;  %v2365_v19 = vrot.slane %v12793_v55, %v9030_v37  ;;  %v2444_v35 = vrot.slane %v12794_v54, %v9030_v37 }
 0x29c   :  { %v2435_v0 = vsel %vm12159_vm11, %v2434_v38, %v2430_v14  ;;  %v2582_v25 = vrot.slane %v9852_v56, %v8998_v48  ;;  %v2518_v42 = vrot.slane %v9629_v58, %v9005_v15  ;;  %v2509_v24 = vsel %vm12157_vm10, %v2508_v29, %v2504_v47  ;;  %v12797_v29 = vld [vmem:[#allocation384_spill] sm:$0xff] }
 0x29d   :  { %v2578_v32 = vsel %vm12160_vm8, %v2577_v4, %v2573_v57  ;;  %v2587_v10 = vrot.slane %v9844_v51, %v8991_v46  ;;  %v12795_v14 = vrot.slane %v12758_v17, %v9005_v15  ;;  %v2514_v54 = vsel %vm12159_vm11, %v2513_v1, %v2509_v24  ;;  %v9876_v55 = vpop.xlane.xlu1 %1051  ;;  %v9883_v56 = vpop.xlane.xlu0 %1049  ;;  %v12799_v1 = vld [vmem:[#allocation400_spill] sm:$0xff] }
 0x29e   :  { %v2523_v34 = vrot.slane %v9677_v8, %v9030_v37  ;;  %v2583_v58 = vsel %vm12156_vm9, %v2582_v25, %v2578_v32  ;;  %12796 = vst [vmem:[#allocation430_spill] sm:$0xff] %v9876_v55  ;;  %v2370_v4 = vrot.slane %v12797_v29, %v9040_v36  ;;  %v2361_v47 = vsel %vm1408_vm12, %v2360_v13, %v2356_v30 }
 0x29f   :  { %v2282_v38 = vsel %vm1408_vm12, %v12795_v14, %v9712_v5  ;;  %v2440_v51 = vsel %vm1408_vm12, %v2439_v61, %v2435_v0  ;;  %12798 = vst [vmem:[#allocation431_spill] sm:$0xff] %v9883_v56  ;;  %v2366_v5 = vsel %vm1415_vm13, %v2365_v19, %v2361_v47  ;;  %v2449_v24 = vrot.slane %v12799_v1, %v9040_v36 }
 0x2a0   :  { %v2287_v57 = vsel %vm1415_vm13, %v2286_v6, %v2282_v38  ;;  %v2445_v25 = vsel %vm1415_vm13, %v2444_v35, %v2440_v51  ;;  %v2592_v32 = vrot.slane %v9883_v56, %v9008_v21  ;;  %v2528_v6 = vrot.slane %v9668_v16, %v9040_v36 }
 0x2a1   :  { %v2519_v14 = vsel %vm1408_vm12, %v2518_v42, %v2514_v54  ;;  %v2588_v13 = vsel %vm12157_vm10, %v2587_v10, %v2583_v58  ;;  %v2597_v30 = vrot.slane %v9876_v55, %v9005_v15  ;;  %v2625_v61 = vsel %vm12158_vm14, %v9639_v43, %v9624_v33  ;;  %v9907_v54 = vpop.xlane.xlu1 %1055  ;;  %v9918_v10 = vpop.xlane.xlu0 %1053 }
 0x2a2   :  { %v12800_v51 = vrot.slane %v12746_v44, %v9040_v36  ;;  %vm12801_vm9 = vcmask 1048512   ;;  %v2524_v0 = vsel %vm1415_vm13, %v2523_v34, %v2519_v14  ;;  %v2593_v35 = vsel %vm12159_vm11, %v2592_v32, %v2588_v13  ;;  %12802 = vst [vmem:[#allocation432_spill] sm:$0xff] %v9907_v54  ;;  %12807 = vst [vmem:[#allocation433_spill] sm:$0xff] %v9918_v10  ;;  %v12810_v32 = vld [vmem:[#allocation415_spill] sm:$0xff] }
 0x2a3   :  { %v12803_v58 = vrot.slane %v12756_v49, %v9040_v36  ;;  %vm12804_vm10 = vmmov %vm12801_vm9  ;;  %v12805_v33 = vrot.slane %v12764_v2, %v9040_v36  ;;  %v2602_v34 = vrot.slane %v9918_v10, %v9030_v37  ;;  %v2598_v13 = vsel %vm1408_vm12, %v2597_v30, %v2593_v35  ;;  %v13001_v2 = vld [vmem:[#allocation281_spill] sm:$0xff] }
 0x2a4   :  { %v2134_v19 = vsel %vm12801_vm9, %v12800_v51, %v9656_v9  ;;  %vm12806_vm14 = vmmov %vm12801_vm9  ;;  %v2607_v9 = vrot.slane %v9907_v54, %v9040_v36  ;;  %vm2619_vm9 = vcmask 1046534  }
 0x2a5   :  { %v2213_v42 = vsel %vm12804_vm10, %v12803_v58, %v9687_v11  ;;  %v2292_v43 = vsel %vm12806_vm14, %v12805_v33, %v2287_v57  ;;  %vm12808_vm11 = vmmov %vm12804_vm10  ;;  %v12811_v11 = vld [vmem:[#allocation417_spill] sm:$0xff]  ;;  %vm12178_vm14 = vcmask 1047559   ;;  %v2626_v51 = vsel %vm2615_vm5, %v2134_v19, %v2625_v61  ;;  %v12814_v61 = vld [vmem:[#allocation362_spill] sm:$0xff] }
 0x2a6   :  { %v2371_v38 = vsel %vm12808_vm11, %v2370_v4, %v2366_v5  ;;  %vm12809_vm8 = vmmov %vm12804_vm10  ;;  %v2616_v14 = vsel %vm2615_vm5, %v12811_v11, %v12810_v32  ;;  %v2603_v58 = vsel %vm1415_vm13, %v2602_v34, %v2598_v13  ;;  %v2627_v16 = vsel %vm2617_vm15, %v2292_v43, %v2626_v51  ;;  %v12815_v43 = vld [vmem:[#allocation119_spill] sm:$0xff] }
 0x2a7   :  { %v2450_v47 = vsel %vm12809_vm8, %v2449_v24, %v2445_v25  ;;  %vm12812_vm10 = vmmov %vm12809_vm8  ;;  %v2618_v33 = vsel %vm2617_vm15, %v2213_v42, %v2616_v14  ;;  %v2638_v19 = vsub.s32 0, %v12814_v61  ;;  %v12818_v14 = vld [vmem:[#allocation124_spill] sm:$0xff]  ;;  %v12819_v51 = vld [vmem:[#allocation139_spill] sm:$0xff] }
 0x2a8   :  { %v2529_v57 = vsel %vm12812_vm10, %v2528_v6, %v2524_v0  ;;  %vm12813_vm11 = vmmov %vm12809_vm8  ;;  %v2620_v5 = vsel %vm2619_vm9, %v2371_v38, %v2618_v33  ;;  %v2628_v24 = vsel %vm2619_vm9, %v2450_v47, %v2627_v16  ;;  %v7590_v0 = vmov 0   ;;  %v12816_v16 = vld [vmem:[#allocation125_spill] sm:$0xff]  ;;  %v12817_v38 = vld [vmem:[#allocation118_spill] sm:$0xff] }
 0x2a9   :  { %v2608_v4 = vsel %vm12813_vm11, %v2607_v9, %v2603_v58  ;;  %v2622_v25 = vsel %vm12178_vm14, %v2529_v57, %v2620_v5  ;;  %6934 = vset.pattern.permute.xlu0 %v7590_v0  ;;  %6933 = vset.pattern.permute.xlu1 %v7590_v0  ;;  %v12820_v33 = vld [vmem:[#allocation129_spill] sm:$0xff]  ;;  %vm13008_vm8 = vcmask 458112   ;;  %vm13012_vm11 = vcmask 654912  }
 0x2aa   :  { %v2629_v30 = vsel %vm12178_vm14, %v2608_v4, %v2628_v24  ;;  %v12821_v24 = vld [vmem:[#allocation141_spill] sm:$0xff]  ;;  %vm13010_vm10 = vmmov %vm13008_vm8 }
 0x2ab   :  { %v2632_v6 = vmax.f32 %v2622_v25, %v2629_v30 }
 0x2ad   :  { %2633 = vmax.xlane.f32.xlu0 %v2632_v6  ;;  %v12822_v6 = vld [vmem:[#allocation128_spill] sm:$0xff] }
 0x33a   :  { %v9941_v35 = vpop.xlane.xlu0 %2633 }
 0x33b   :  { %v9944_v42 = vrot.slane %v9941_v35, %v2638_v19 }
 0x33d   :  { %v2676_v9 = vsub.f32 %v12815_v43, %v9944_v42  ;;  %v2677_v34 = vsub.f32 %v12816_v16, %v9944_v42  ;;  %v2678_v47 = vsub.f32 %v12817_v38, %v9944_v42  ;;  %v2679_v13 = vsub.f32 %v12818_v14, %v9944_v42 }
 0x33e   :  { %v2686_v58 = vsub.f32 %v12819_v51, %v9944_v42  ;;  %v2680_v4 = vsub.f32 %v12820_v33, %v9944_v42  ;;  %v2688_v25 = vsub.f32 %v12821_v24, %v9944_v42  ;;  %v2681_v0 = vsub.f32 %v12822_v6, %v9944_v42  ;;  %v12827_v24 = vld [vmem:[#allocation147_spill] sm:$0xff] }
 0x33f   :  { %v2932_v32 = vmul.f32 1.442695, %v2676_v9  ;;  %v2934_v11 = vmul.f32 1.442695, %v2677_v34  ;;  %v2936_v57 = vmul.f32 1.442695, %v2678_v47 }
 0x340   :  { %v2938_v5 = vmul.f32 1.442695, %v2679_v13  ;;  %v2952_v30 = vmul.f32 1.442695, %v2686_v58  ;;  %v2940_v19 = vmul.f32 1.442695, %v2680_v4 }
 0x341   :  { %6935 = vpow2.f32 %v2932_v32  ;;  %v12823_v9 = vld [vmem:[#allocation143_spill] sm:$0xff]  ;;  %v2956_v34 = vmul.f32 1.442695, %v2688_v25  ;;  %v12824_v47 = vld [vmem:[#allocation133_spill] sm:$0xff]  ;;  %v12826_v58 = vld [vmem:[#allocation132_spill] sm:$0xff]  ;;  %v2694_v25 = vsub.f32 %v12827_v24, %v9944_v42 }
 0x342   :  { %6937 = vpow2.f32 %v2934_v11  ;;  %v2690_v16 = vsub.f32 %v12823_v9, %v9944_v42  ;;  %v2682_v32 = vsub.f32 %v12824_v47, %v9944_v42  ;;  %v2942_v11 = vmul.f32 1.442695, %v2681_v0  ;;  %v12825_v13 = vld [vmem:[#allocation145_spill] sm:$0xff] }
 0x343   :  { %6939 = vpow2.f32 %v2936_v57  ;;  %v2692_v57 = vsub.f32 %v12825_v13, %v9944_v42  ;;  %v2683_v33 = vsub.f32 %v12826_v58, %v9944_v42  ;;  %v12828_v0 = vld [vmem:[#allocation137_spill] sm:$0xff] }
 0x344   :  { %6941 = vpow2.f32 %v2938_v5  ;;  %v2960_v51 = vmul.f32 1.442695, %v2690_v16  ;;  %v2944_v4 = vmul.f32 1.442695, %v2682_v32  ;;  %v12829_v16 = vld [vmem:[#allocation149_spill] sm:$0xff]  ;;  %v12830_v32 = vld [vmem:[#allocation136_spill] sm:$0xff] }
 0x345   :  { %6943 = vpow2.f32 %v2952_v30  ;;  %v2964_v30 = vmul.f32 1.442695, %v2692_v57  ;;  %v12831_v57 = vld [vmem:[#allocation151_spill] sm:$0xff] }
 0x346   :  { %6945 = vpow2.f32 %v2940_v19  ;;  %v2684_v19 = vsub.f32 %v12828_v0, %v9944_v42 }
 0x347   :  { %6947 = vpow2.f32 %v2956_v34  ;;  %v2696_v34 = vsub.f32 %v12829_v16, %v9944_v42 }
 0x348   :  { %6949 = vpow2.f32 %v2942_v11  ;;  %v2685_v11 = vsub.f32 %v12830_v32, %v9944_v42 }
 0x349   :  { %6951 = vpow2.f32 %v2960_v51  ;;  %v2698_v51 = vsub.f32 %v12831_v57, %v9944_v42  ;;  %v2972_v58 = vmul.f32 1.442695, %v2696_v34 }
 0x34a   :  { %6953 = vpow2.f32 %v2944_v4  ;;  %v12832_v4 = vld [vmem:[#allocation138_spill] sm:$0xff]  ;;  %v2950_v24 = vmul.f32 1.442695, %v2685_v11 }
 0x34b   :  { %v6936_v43 = vpop.eup %6935  ;;  %6955 = vpow2.f32 %v2964_v30  ;;  %v12833_v30 = vld [vmem:[#allocation153_spill] sm:$0xff]  ;;  %v2976_v0 = vmul.f32 1.442695, %v2698_v51 }
 0x34c   :  { %v6938_v38 = vpop.eup %6937  ;;  %3701 = vperm.xlu1 %6933, %v6936_v43   ;;  %v2946_v43 = vmul.f32 1.442695, %v2683_v33 }
 0x34d   :  { %3704 = vperm.xlu0 %6934, %v6938_v38   ;;  %v6940_v14 = vpop.eup %6939  ;;  %v2968_v38 = vmul.f32 1.442695, %v2694_v25 }
 0x34e   :  { %v6942_v5 = vpop.eup %6941  ;;  %6957 = vpow2.f32 %v2946_v43  ;;  %v12834_v43 = vld [vmem:[#allocation140_spill] sm:$0xff] }
 0x34f   :  { %v6944_v6 = vpop.eup %6943  ;;  %6959 = vpow2.f32 %v2968_v38  ;;  %v12835_v38 = vld [vmem:[#allocation157_spill] sm:$0xff] }
 0x350   :  { %3707 = vperm.xlu1 %6933, %v6940_v14   ;;  %v6946_v9 = vpop.eup %6945  ;;  %v2948_v14 = vmul.f32 1.442695, %v2684_v19 }
 0x351   :  { %3731 = vperm.xlu0 %6934, %v6944_v6   ;;  %v6948_v47 = vpop.eup %6947  ;;  %v2700_v6 = vsub.f32 %v12833_v30, %v9944_v42 }
 0x352   :  { %v6950_v13 = vpop.eup %6949  ;;  %6961 = vpow2.f32 %v2948_v14  ;;  %v12836_v14 = vld [vmem:[#allocation142_spill] sm:$0xff] }
 0x353   :  { %v6952_v33 = vpop.eup %6951  ;;  %6963 = vpow2.f32 %v2972_v58  ;;  %v2980_v32 = vmul.f32 1.442695, %v2700_v6  ;;  %v2642_v58 = vsub.s32 1, %v12814_v61 }
 0x354   :  { %3710 = vperm.xlu1 %6933, %v6942_v5   ;;  %v2687_v5 = vsub.f32 %v12832_v4, %v9944_v42  ;;  %v6954_v25 = vpop.eup %6953  ;;  %6965 = vpow2.f32 %v2950_v24 }
 0x355   :  { %3737 = vperm.xlu0 %6934, %v6948_v47   ;;  %v6956_v19 = vpop.eup %6955  ;;  %v2702_v47 = vsub.f32 %v12835_v38, %v9944_v42  ;;  %6967 = vpow2.f32 %v2976_v0  ;;  %v12840_v38 = vld [vmem:[#allocation146_spill] sm:$0xff] }
 0x356   :  { %v2954_v16 = vmul.f32 1.442695, %v2687_v5 }
 0x357   :  { %v2984_v5 = vmul.f32 1.442695, %v2702_v47  ;;  %v2695_v47 = vsub.f32 %v12840_v38, %v9944_v42 }
 0x358   :  { %3713 = vperm.xlu1 %6933, %v6946_v9   ;;  %v2689_v9 = vsub.f32 %v12834_v43, %v9944_v42  ;;  %v6958_v34 = vpop.eup %6957  ;;  %6969 = vpow2.f32 %v2954_v16  ;;  %v12839_v43 = vld [vmem:[#allocation165_spill] sm:$0xff] }
 0x359   :  { %3743 = vperm.xlu0 %6934, %v6952_v33   ;;  %v6960_v11 = vpop.eup %6959  ;;  %v12837_v33 = vld [vmem:[#allocation161_spill] sm:$0xff]  ;;  %6971 = vpow2.f32 %v2980_v32 }
 0x35a   :  { %v2958_v57 = vmul.f32 1.442695, %v2689_v9  ;;  %v2704_v4 = vsub.f32 %v12837_v33, %v9944_v42  ;;  %v2706_v9 = vsub.f32 %v12839_v43, %v9944_v42 }
 0x35c   :  { %3716 = vperm.xlu1 %6933, %v6950_v13   ;;  %v2691_v13 = vsub.f32 %v12836_v14, %v9944_v42  ;;  %v6962_v51 = vpop.eup %6961  ;;  %6973 = vpow2.f32 %v2958_v57  ;;  %v2988_v16 = vmul.f32 1.442695, %v2704_v4  ;;  %v12841_v14 = vld [vmem:[#allocation167_spill] sm:$0xff]  ;;  %v2992_v57 = vmul.f32 1.442695, %v2706_v9 }
 0x35d   :  { %3749 = vperm.xlu0 %6934, %v6956_v19   ;;  %v6964_v24 = vpop.eup %6963  ;;  %v9996_v19 = vrot.slane %v9941_v35, %v2642_v58  ;;  %6975 = vpow2.f32 %v2984_v5  ;;  %v12842_v58 = vld [vmem:[#allocation148_spill] sm:$0xff]  ;;  %v2970_v4 = vmul.f32 1.442695, %v2695_v47 }
 0x35e   :  { %v2962_v6 = vmul.f32 1.442695, %v2691_v13  ;;  %v6966_v0 = vpop.eup %6965  ;;  %v2697_v33 = vsub.f32 %v12842_v58, %v9944_v42 }
 0x35f   :  { %v2708_v13 = vsub.f32 %v12841_v14, %v9996_v19 }
 0x360   :  { %3719 = vperm.xlu1 %6933, %v6954_v25   ;;  %v12838_v25 = vld [vmem:[#allocation144_spill] sm:$0xff]  ;;  %6977 = vpow2.f32 %v2962_v6  ;;  %v2974_v9 = vmul.f32 1.442695, %v2697_v33 }
 0x361   :  { %3755 = vperm.xlu0 %6934, %v6960_v11   ;;  %v2693_v30 = vsub.f32 %v12838_v25, %v9944_v42  ;;  %6979 = vpow2.f32 %v2988_v16 }
 0x363   :  { %v2966_v32 = vmul.f32 1.442695, %v2693_v30  ;;  %v2996_v30 = vmul.f32 1.442695, %v2708_v13 }
 0x364   :  { %3722 = vperm.xlu1 %6933, %v6958_v34   ;;  %v6968_v34 = vpop.eup %6967 }
 0x365   :  { %3761 = vperm.xlu0 %6934, %v6964_v24   ;;  %v6970_v11 = vpop.eup %6969  ;;  %6981 = vpow2.f32 %v2966_v32  ;;  %v12843_v24 = vld [vmem:[#allocation173_spill] sm:$0xff] }
 0x366   :  { %v2710_v25 = vsub.f32 %v12843_v24, %v9996_v19  ;;  %6983 = vpow2.f32 %v2992_v57 }
 0x367   :  { %6985 = vpow2.f32 %v2970_v4 }
 0x368   :  { %3725 = vperm.xlu1 %6933, %v6962_v51   ;;  %v6972_v51 = vpop.eup %6971  ;;  %v3000_v47 = vmul.f32 1.442695, %v2710_v25  ;;  %6987 = vpow2.f32 %v2996_v30 }
 0x369   :  { %3767 = vperm.xlu0 %6934, %v6968_v34   ;;  %v6974_v5 = vpop.eup %6973  ;;  %v12845_v34 = vld [vmem:[#allocation177_spill] sm:$0xff]  ;;  %6989 = vpow2.f32 %v2974_v9 }
 0x36a   :  { %v6976_v6 = vpop.eup %6975  ;;  %v2712_v38 = vsub.f32 %v12845_v34, %v9996_v19  ;;  %6991 = vpow2.f32 %v3000_v47 }
 0x36b   :  { %v6978_v16 = vpop.eup %6977 }
 0x36c   :  { %3728 = vperm.xlu1 %6933, %v6966_v0   ;;  %v12844_v0 = vld [vmem:[#allocation150_spill] sm:$0xff]  ;;  %v6980_v32 = vpop.eup %6979  ;;  %v3004_v33 = vmul.f32 1.442695, %v2712_v38 }
 0x36d   :  { %3773 = vperm.xlu0 %6934, %v6972_v51   ;;  %v2699_v43 = vsub.f32 %v12844_v0, %v9944_v42  ;;  %v12847_v51 = vld [vmem:[#allocation181_spill] sm:$0xff] }
 0x36e   :  { %v2714_v58 = vsub.f32 %v12847_v51, %v9996_v19 }
 0x36f   :  { %v2978_v13 = vmul.f32 1.442695, %v2699_v43  ;;  %v6982_v57 = vpop.eup %6981 }
 0x370   :  { %3734 = vperm.xlu1 %6933, %v6970_v11   ;;  %v12846_v11 = vld [vmem:[#allocation152_spill] sm:$0xff]  ;;  %v6984_v4 = vpop.eup %6983  ;;  %v3008_v43 = vmul.f32 1.442695, %v2714_v58 }
 0x371   :  { %3779 = vperm.xlu0 %6934, %v6976_v6   ;;  %v2701_v14 = vsub.f32 %v12846_v11, %v9944_v42  ;;  %6993 = vpow2.f32 %v2978_v13  ;;  %v6986_v30 = vpop.eup %6985  ;;  %v12849_v6 = vld [vmem:[#allocation185_spill] sm:$0xff] }
 0x372   :  { %v2716_v0 = vsub.f32 %v12849_v6, %v9996_v19  ;;  %6995 = vpow2.f32 %v3004_v33  ;;  %v6988_v9 = vpop.eup %6987 }
 0x373   :  { %v2982_v25 = vmul.f32 1.442695, %v2701_v14  ;;  %v6990_v47 = vpop.eup %6989 }
 0x374   :  { %3740 = vperm.xlu1 %6933, %v6974_v5   ;;  %v12848_v5 = vld [vmem:[#allocation156_spill] sm:$0xff]  ;;  %v3012_v14 = vmul.f32 1.442695, %v2716_v0  ;;  %v6992_v13 = vpop.eup %6991 }
 0x375   :  { %3785 = vperm.xlu0 %6934, %v6980_v32   ;;  %v2703_v24 = vsub.f32 %v12848_v5, %v9944_v42  ;;  %6997 = vpow2.f32 %v2982_v25  ;;  %v12851_v32 = vld [vmem:[#allocation187_spill] sm:$0xff] }
 0x376   :  { %v2718_v11 = vsub.f32 %v12851_v32, %v9996_v19  ;;  %6999 = vpow2.f32 %v3008_v43 }
 0x377   :  { %v2986_v38 = vmul.f32 1.442695, %v2703_v24 }
 0x378   :  { %3746 = vperm.xlu1 %6933, %v6978_v16   ;;  %v12850_v16 = vld [vmem:[#allocation160_spill] sm:$0xff]  ;;  %v3016_v24 = vmul.f32 1.442695, %v2718_v11 }
 0x379   :  { %3791 = vperm.xlu0 %6934, %v6984_v4   ;;  %v2705_v34 = vsub.f32 %v12850_v16, %v9944_v42  ;;  %7001 = vpow2.f32 %v2986_v38  ;;  %v12853_v4 = vld [vmem:[#allocation189_spill] sm:$0xff]  ;;  %v12856_v38 = vld [vmem:[#allocation172_spill] sm:$0xff] }
 0x37a   :  { %v2720_v5 = vsub.f32 %v12853_v4, %v9996_v19  ;;  %7003 = vpow2.f32 %v3012_v14  ;;  %v12857_v14 = vld [vmem:[#allocation193_spill] sm:$0xff] }
 0x37b   :  { %v2990_v58 = vmul.f32 1.442695, %v2705_v34  ;;  %v6994_v33 = vpop.eup %6993 }
 0x37c   :  { %3752 = vperm.xlu1 %6933, %v6982_v57   ;;  %v12852_v57 = vld [vmem:[#allocation164_spill] sm:$0xff]  ;;  %v6996_v25 = vpop.eup %6995  ;;  %v3020_v16 = vmul.f32 1.442695, %v2720_v5 }
 0x37d   :  { %3797 = vperm.xlu0 %6934, %v6988_v9   ;;  %v2707_v51 = vsub.f32 %v12852_v57, %v9944_v42  ;;  %7005 = vpow2.f32 %v2990_v58  ;;  %v12855_v42 = vld [vmem:[#allocation191_spill] sm:$0xff]  ;;  %v12858_v58 = vld [vmem:[#allocation176_spill] sm:$0xff] }
 0x37e   :  { %v2722_v9 = vsub.f32 %v12855_v42, %v9996_v19  ;;  %7007 = vpow2.f32 %v3016_v24  ;;  %v12859_v24 = vld [vmem:[#allocation195_spill] sm:$0xff] }
 0x37f   :  { %v2994_v0 = vmul.f32 1.442695, %v2707_v51  ;;  %v6998_v43 = vpop.eup %6997 }
 0x380   :  { %3758 = vperm.xlu1 %6933, %v6986_v30   ;;  %v12854_v30 = vld [vmem:[#allocation166_spill] sm:$0xff]  ;;  %v7000_v34 = vpop.eup %6999  ;;  %v3024_v57 = vmul.f32 1.442695, %v2722_v9 }
 0x381   :  { %3803 = vperm.xlu0 %6934, %v6992_v13   ;;  %v2709_v6 = vsub.f32 %v12854_v30, %v9996_v19  ;;  %7009 = vpow2.f32 %v2994_v0  ;;  %v2724_v13 = vsub.f32 %v12857_v14, %v9996_v19  ;;  %v12860_v0 = vld [vmem:[#allocation180_spill] sm:$0xff] }
 0x382   :  { %7011 = vpow2.f32 %v3020_v16  ;;  %v12861_v16 = vld [vmem:[#allocation197_spill] sm:$0xff] }
 0x383   :  { %v2998_v32 = vmul.f32 1.442695, %v2709_v6  ;;  %v7002_v11 = vpop.eup %7001  ;;  %v3028_v30 = vmul.f32 1.442695, %v2724_v13 }
 0x384   :  { %3764 = vperm.xlu1 %6933, %v6990_v47   ;;  %v2711_v47 = vsub.f32 %v12856_v38, %v9996_v19  ;;  %v7004_v51 = vpop.eup %7003 }
 0x385   :  { %3809 = vperm.xlu0 %6934, %v6996_v25   ;;  %7013 = vpow2.f32 %v2998_v32  ;;  %v2726_v25 = vsub.f32 %v12859_v24, %v9996_v19  ;;  %v12862_v32 = vld [vmem:[#allocation184_spill] sm:$0xff] }
 0x386   :  { %v3002_v4 = vmul.f32 1.442695, %v2711_v47  ;;  %7015 = vpow2.f32 %v3024_v57  ;;  %v12863_v57 = vld [vmem:[#allocation199_spill] sm:$0xff] }
 0x387   :  { %v7006_v5 = vpop.eup %7005  ;;  %v3032_v38 = vmul.f32 1.442695, %v2726_v25 }
 0x388   :  { %3770 = vperm.xlu1 %6933, %v6994_v33   ;;  %v2713_v33 = vsub.f32 %v12858_v58, %v9996_v19  ;;  %v7008_v6 = vpop.eup %7007  ;;  %7017 = vpow2.f32 %v3002_v4  ;;  %v12864_v4 = vld [vmem:[#allocation186_spill] sm:$0xff] }
 0x389   :  { %3815 = vperm.xlu0 %6934, %v7000_v34   ;;  %v2728_v34 = vsub.f32 %v12861_v16, %v9996_v19  ;;  %7019 = vpow2.f32 %v3028_v30  ;;  %v12865_v30 = vld [vmem:[#allocation201_spill] sm:$0xff] }
 0x38a   :  { %v3006_v42 = vmul.f32 1.442695, %v2713_v33 }
 0x38b   :  { %v7010_v9 = vpop.eup %7009  ;;  %v3036_v58 = vmul.f32 1.442695, %v2728_v34 }
 0x38c   :  { %3776 = vperm.xlu1 %6933, %v6998_v43   ;;  %v2715_v43 = vsub.f32 %v12860_v0, %v9996_v19  ;;  %v7012_v47 = vpop.eup %7011  ;;  %7021 = vpow2.f32 %v3006_v42  ;;  %v12866_v42 = vld [vmem:[#allocation188_spill] sm:$0xff] }
 0x38d   :  { %3821 = vperm.xlu0 %6934, %v7004_v51   ;;  %v2730_v51 = vsub.f32 %v12863_v57, %v9996_v19  ;;  %7023 = vpow2.f32 %v3032_v38  ;;  %v12867_v38 = vld [vmem:[#allocation205_spill] sm:$0xff] }
 0x38e   :  { %v3010_v14 = vmul.f32 1.442695, %v2715_v43 }
 0x38f   :  { %v7014_v13 = vpop.eup %7013  ;;  %v3040_v0 = vmul.f32 1.442695, %v2730_v51 }
 0x390   :  { %3782 = vperm.xlu1 %6933, %v7002_v11   ;;  %v2717_v11 = vsub.f32 %v12862_v32, %v9996_v19  ;;  %v7016_v33 = vpop.eup %7015  ;;  %7025 = vpow2.f32 %v3010_v14  ;;  %v12868_v14 = vld [vmem:[#allocation190_spill] sm:$0xff] }
 0x391   :  { %3827 = vperm.xlu0 %6934, %v7008_v6   ;;  %v2732_v6 = vsub.f32 %v12865_v30, %v9996_v19  ;;  %7027 = vpow2.f32 %v3036_v58  ;;  %v2646_v58 = vsub.s32 2, %v12814_v61 }
 0x392   :  { %v3014_v24 = vmul.f32 1.442695, %v2717_v11  ;;  %v7018_v25 = vpop.eup %7017 }
 0x393   :  { %v7020_v43 = vpop.eup %7019  ;;  %v3044_v32 = vmul.f32 1.442695, %v2732_v6 }
 0x394   :  { %3788 = vperm.xlu1 %6933, %v7006_v5   ;;  %v2719_v5 = vsub.f32 %v12864_v4, %v9996_v19  ;;  %7029 = vpow2.f32 %v3014_v24 }
 0x395   :  { %3833 = vperm.xlu0 %6934, %v7012_v47   ;;  %v2734_v47 = vsub.f32 %v12867_v38, %v9996_v19  ;;  %7031 = vpow2.f32 %v3040_v0  ;;  %v12872_v38 = vld [vmem:[#allocation194_spill] sm:$0xff] }
 0x396   :  { %v3018_v16 = vmul.f32 1.442695, %v2719_v5  ;;  %v7022_v34 = vpop.eup %7021 }
 0x397   :  { %v7024_v11 = vpop.eup %7023  ;;  %v3048_v5 = vmul.f32 1.442695, %v2734_v47  ;;  %v2727_v47 = vsub.f32 %v12872_v38, %v9996_v19 }
 0x398   :  { %3794 = vperm.xlu1 %6933, %v7010_v9   ;;  %v2721_v9 = vsub.f32 %v12866_v42, %v9996_v19  ;;  %7033 = vpow2.f32 %v3018_v16  ;;  %v12871_v42 = vld [vmem:[#allocation213_spill] sm:$0xff] }
 0x399   :  { %3839 = vperm.xlu0 %6934, %v7016_v33   ;;  %v12869_v33 = vld [vmem:[#allocation209_spill] sm:$0xff]  ;;  %7035 = vpow2.f32 %v3044_v32 }
 0x39a   :  { %v3022_v57 = vmul.f32 1.442695, %v2721_v9  ;;  %v7026_v51 = vpop.eup %7025  ;;  %v2736_v4 = vsub.f32 %v12869_v33, %v9996_v19  ;;  %v2738_v9 = vsub.f32 %v12871_v42, %v9996_v19 }
 0x39b   :  { %v7028_v24 = vpop.eup %7027 }
 0x39c   :  { %3800 = vperm.xlu1 %6933, %v7014_v13   ;;  %v2723_v13 = vsub.f32 %v12868_v14, %v9996_v19  ;;  %7037 = vpow2.f32 %v3022_v57  ;;  %v3052_v16 = vmul.f32 1.442695, %v2736_v4  ;;  %v12873_v14 = vld [vmem:[#allocation215_spill] sm:$0xff]  ;;  %v3056_v57 = vmul.f32 1.442695, %v2738_v9 }
 0x39d   :  { %3845 = vperm.xlu0 %6934, %v7020_v43   ;;  %v10064_v43 = vrot.slane %v9941_v35, %v2646_v58  ;;  %7039 = vpow2.f32 %v3048_v5  ;;  %v12874_v58 = vld [vmem:[#allocation196_spill] sm:$0xff]  ;;  %v3034_v4 = vmul.f32 1.442695, %v2727_v47 }
 0x39e   :  { %v3026_v6 = vmul.f32 1.442695, %v2723_v13  ;;  %v7030_v0 = vpop.eup %7029  ;;  %v2729_v33 = vsub.f32 %v12874_v58, %v9996_v19 }
 0x39f   :  { %v2740_v13 = vsub.f32 %v12873_v14, %v10064_v43 }
 0x3a0   :  { %3806 = vperm.xlu1 %6933, %v7018_v25   ;;  %v12870_v25 = vld [vmem:[#allocation192_spill] sm:$0xff]  ;;  %7041 = vpow2.f32 %v3026_v6  ;;  %v3038_v9 = vmul.f32 1.442695, %v2729_v33 }
 0x3a1   :  { %3851 = vperm.xlu0 %6934, %v7024_v11   ;;  %v2725_v30 = vsub.f32 %v12870_v25, %v9996_v19  ;;  %7043 = vpow2.f32 %v3052_v16 }
 0x3a3   :  { %v3030_v32 = vmul.f32 1.442695, %v2725_v30  ;;  %v3060_v30 = vmul.f32 1.442695, %v2740_v13 }
 0x3a4   :  { %3812 = vperm.xlu1 %6933, %v7022_v34   ;;  %v7032_v34 = vpop.eup %7031 }
 0x3a5   :  { %3857 = vperm.xlu0 %6934, %v7028_v24   ;;  %v7034_v11 = vpop.eup %7033  ;;  %7045 = vpow2.f32 %v3030_v32  ;;  %v12875_v24 = vld [vmem:[#allocation221_spill] sm:$0xff] }
 0x3a6   :  { %v2742_v25 = vsub.f32 %v12875_v24, %v10064_v43  ;;  %7047 = vpow2.f32 %v3056_v57 }
 0x3a7   :  { %7049 = vpow2.f32 %v3034_v4 }
 0x3a8   :  { %3818 = vperm.xlu1 %6933, %v7026_v51   ;;  %v7036_v51 = vpop.eup %7035  ;;  %v3064_v47 = vmul.f32 1.442695, %v2742_v25  ;;  %7051 = vpow2.f32 %v3060_v30 }
 0x3a9   :  { %3863 = vperm.xlu0 %6934, %v7032_v34   ;;  %v7038_v5 = vpop.eup %7037  ;;  %v12877_v34 = vld [vmem:[#allocation225_spill] sm:$0xff]  ;;  %7053 = vpow2.f32 %v3038_v9  ;;  %v7451_v9 = vld [vmem:[#allocation2 + $0x88] sm:$0xff] }
 0x3aa   :  { %v7040_v6 = vpop.eup %7039  ;;  %v2744_v38 = vsub.f32 %v12877_v34, %v10064_v43  ;;  %7055 = vpow2.f32 %v3064_v47  ;;  %v7454_v47 = vld [vmem:[#allocation2 + $0x8] sm:$0xff] }
 0x3ab   :  { %v7042_v16 = vpop.eup %7041 }
 0x3ac   :  { %3824 = vperm.xlu1 %6933, %v7030_v0   ;;  %v12876_v0 = vld [vmem:[#allocation198_spill] sm:$0xff]  ;;  %v7044_v32 = vpop.eup %7043  ;;  %v3068_v33 = vmul.f32 1.442695, %v2744_v38  ;;  %v7453_v38 = vld [vmem:[#allocation2] sm:$0xff] }
 0x3ad   :  { %3869 = vperm.xlu0 %6934, %v7036_v51   ;;  %v2731_v42 = vsub.f32 %v12876_v0, %v9996_v19  ;;  %v12879_v51 = vld [vmem:[#allocation229_spill] sm:$0xff] }
 0x3ae   :  { %v2746_v58 = vsub.f32 %v12879_v51, %v10064_v43 }
 0x3af   :  { %v3042_v13 = vmul.f32 1.442695, %v2731_v42  ;;  %v7046_v57 = vpop.eup %7045 }
 0x3b0   :  { %3830 = vperm.xlu1 %6933, %v7034_v11   ;;  %v12878_v11 = vld [vmem:[#allocation200_spill] sm:$0xff]  ;;  %v7048_v4 = vpop.eup %7047  ;;  %v3072_v42 = vmul.f32 1.442695, %v2746_v58 }
 0x3b1   :  { %3875 = vperm.xlu0 %6934, %v7040_v6   ;;  %v2733_v14 = vsub.f32 %v12878_v11, %v9996_v19  ;;  %7057 = vpow2.f32 %v3042_v13  ;;  %v7050_v30 = vpop.eup %7049  ;;  %v12881_v6 = vld [vmem:[#allocation233_spill] sm:$0xff]  ;;  %v7455_v13 = vld [vmem:[#allocation2 + $0x188] sm:$0xff] }
 0x3b2   :  { %v2748_v0 = vsub.f32 %v12881_v6, %v10064_v43  ;;  %7059 = vpow2.f32 %v3068_v33  ;;  %v7052_v11 = vpop.eup %7051  ;;  %v7457_v58 = vld [vmem:[#allocation2 + $0x108] sm:$0xff]  ;;  %v7458_v33 = vld [vmem:[#allocation2 + $0x100] sm:$0xff] }
 0x3b3   :  { %v3046_v25 = vmul.f32 1.442695, %v2733_v14  ;;  %v7054_v6 = vpop.eup %7053 }
 0x3b4   :  { %3836 = vperm.xlu1 %6933, %v7038_v5   ;;  %v12880_v5 = vld [vmem:[#allocation204_spill] sm:$0xff]  ;;  %v3076_v8 = vmul.f32 1.442695, %v2748_v0 }
 0x3b5   :  { %3881 = vperm.xlu0 %6934, %v7044_v32   ;;  %v2735_v24 = vsub.f32 %v12880_v5, %v9996_v19  ;;  %v6674_v32 = vpack.c.bf16 %v7454_v47, %v7453_v38  ;;  %7061 = vpow2.f32 %v3046_v25  ;;  %v12884_v38 = vld [vmem:[#allocation22_spill] sm:$0xff]  ;;  %v12885_v47 = vld [vmem:[#allocation23_spill] sm:$0xff]  ;;  %v7056_v25 = vpop.eup %7055 }
 0x3b6   :  { %7063 = vpow2.f32 %v3072_v42 }
 0x3b7   :  { %v3050_v14 = vmul.f32 1.442695, %v2735_v24  ;;  %v12886_v24 = vpack.c.bf16 %v12884_v38, %v12885_v47 }
 0x3b8   :  { %3842 = vperm.xlu1 %6933, %v7042_v16   ;;  %v7452_v16 = vld [vmem:[#allocation2 + $0x80] sm:$0xff] }
 0x3b9   :  { %3887 = vperm.xlu0 %6934, %v7048_v4   ;;  %v6672_v34 = vpack.c.bf16 %v7451_v9, %v7452_v16  ;;  %v7456_v4 = vld [vmem:[#allocation2 + $0x180] sm:$0xff]  ;;  %7065 = vpow2.f32 %v3050_v14 }
 0x3ba   :  { %v6704_v5 = vpack.c.bf16 %v7455_v13, %v7456_v4  ;;  %v12883_v9 = vld [vmem:[#allocation235_spill] sm:$0xff]  ;;  %v12888_v4 = vld [vmem:[#allocation237_spill] sm:$0xff]  ;;  %7067 = vpow2.f32 %v3076_v8  ;;  %v12899_v8 = vld [vmem:[#allocation36_spill] sm:$0xff] }
 0x3bb   :  { %6673 = vmatprep.subr.bf16.mxu0 %v6672_v34  ;;  %v2750_v16 = vsub.f32 %v12883_v9, %v10064_v43  ;;  %v12887_v34 = vld [vmem:[#allocation212_spill] sm:$0xff]  ;;  %v7058_v13 = vpop.eup %7057  ;;  %v2752_v0 = vsub.f32 %v12888_v4, %v10064_v43  ;;  %v12893_v9 = vld [vmem:[#allocation51_spill] sm:$0xff] }
 0x3bc   :  { %3848 = vperm.xlu1 %6933, %v7046_v57   ;;  %v12882_v57 = vld [vmem:[#allocation208_spill] sm:$0xff]  ;;  %6675 = vmatpush3.bf16.msra.mxu0 %v6674_v32  ;;  %v12889_v32 = vld [vmem:[#allocation9_spill] sm:$0xff]  ;;  %v12902_v4 = vld [vmem:[#allocation239_spill] sm:$0xff] }
 0x3bd   :  { %v2737_v51 = vsub.f32 %v12882_v57, %v9996_v19  ;;  %3893 = vperm.xlu0 %6934, %v7052_v11   ;;  %6677 = vmatprep.subr.bf16.mxu0 %v12886_v24  ;;  %v2739_v11 = vsub.f32 %v12887_v34, %v9996_v19  ;;  %v3080_v42 = vmul.f32 1.442695, %v2750_v16  ;;  %v12895_v19 = vld [vmem:[#allocation24_spill] sm:$0xff]  ;;  %v12900_v16 = vld [vmem:[#allocation37_spill] sm:$0xff] }
 0x3be   :  { %6705 = vmatprep.subr.bf16.mxu1 %v6704_v5  ;;  %v7060_v5 = vpop.eup %7059 }
 0x3bf   :  { %v3054_v57 = vmul.f32 1.442695, %v2737_v51  ;;  %v12896_v51 = vld [vmem:[#allocation25_spill] sm:$0xff]  ;;  %v3058_v24 = vmul.f32 1.442695, %v2739_v11  ;;  %v7062_v34 = vpop.eup %7061 }
 0x3c0   :  { %3854 = vperm.xlu1 %6933, %v7050_v30   ;;  %v6706_v30 = vpack.c.bf16 %v7457_v58, %v7458_v33  ;;  %v12890_v58 = vld [vmem:[#allocation8_spill] sm:$0xff]  ;;  %v12897_v14 = vpack.c.bf16 %v12895_v19, %v12896_v51  ;;  %v12907_v11 = vld [vmem:[#allocation53_spill] sm:$0xff]  ;;  %v12909_v19 = vld [vmem:[#allocation26_spill] sm:$0xff] }
 0x3c1   :  { %3899 = vperm.xlu0 %6934, %v7056_v25   ;;  %v12891_v33 = vpack.c.bf16 %v12889_v32, %v12890_v58  ;;  %7069 = vpow2.f32 %v3054_v57  ;;  %v12901_v25 = vpack.c.bf16 %v12899_v8, %v12900_v16  ;;  %v2754_v32 = vsub.f32 %v12902_v4, %v10064_v43  ;;  %v12910_v51 = vld [vmem:[#allocation27_spill] sm:$0xff]  ;;  %v12913_v8 = vld [vmem:[#allocation38_spill] sm:$0xff] }
 0x3c2   :  { %6707 = vmatpush3.bf16.msra.mxu1 %v6706_v30  ;;  %v12898_v30 = vld [vmem:[#allocation214_spill] sm:$0xff]  ;;  %7071 = vpow2.f32 %v3080_v42  ;;  %v12914_v16 = vld [vmem:[#allocation39_spill] sm:$0xff] }
 0x3c3   :  { %6679 = vmatpush3.bf16.msra.mxu0 %v12891_v33  ;;  %v2741_v47 = vsub.f32 %v12898_v30, %v10064_v43  ;;  %v12903_v33 = vld [vmem:[#allocation10_spill] sm:$0xff]  ;;  %v12912_v30 = vld [vmem:[#allocation220_spill] sm:$0xff]  ;;  %7073 = vpow2.f32 %v3058_v24  ;;  %v12921_v24 = vld [vmem:[#allocation55_spill] sm:$0xff] }
 0x3c4   :  { %3860 = vperm.xlu1 %6933, %v7054_v6   ;;  %v12892_v6 = vld [vmem:[#allocation50_spill] sm:$0xff]  ;;  %6681 = vmatprep.subr.bf16.mxu0 %v12897_v14  ;;  %v12911_v14 = vpack.c.bf16 %v12909_v19, %v12910_v51 }
 0x3c5   :  { %v12894_v38 = vpack.c.bf16 %v12892_v6, %v12893_v9  ;;  %3905 = vperm.xlu0 %6934, %v7060_v5   ;;  %v12904_v6 = vld [vmem:[#allocation11_spill] sm:$0xff]  ;;  %v7064_v5 = vpop.eup %7063  ;;  %v3062_v42 = vmul.f32 1.442695, %v2741_v47  ;;  %v12920_v47 = vld [vmem:[#allocation54_spill] sm:$0xff] }
 0x3c6   :  { %v12905_v9 = vpack.c.bf16 %v12903_v33, %v12904_v6  ;;  %v7066_v4 = vpop.eup %7065  ;;  %v12916_v33 = vld [vmem:[#allocation241_spill] sm:$0xff]  ;;  %v12922_v51 = vpack.c.bf16 %v12920_v47, %v12921_v24 }
 0x3c7   :  { %6709 = vmatprep.subr.bf16.mxu1 %v12894_v38  ;;  %v12906_v38 = vld [vmem:[#allocation52_spill] sm:$0xff]  ;;  %v2756_v6 = vsub.f32 %v12916_v33, %v10064_v43  ;;  %v12928_v33 = vld [vmem:[#allocation41_spill] sm:$0xff] }
 0x3c8   :  { %3866 = vperm.xlu1 %6933, %v7058_v13   ;;  %6711 = vmatpush3.bf16.msra.mxu1 %v12901_v25  ;;  %v3084_v13 = vmul.f32 1.442695, %v2752_v0  ;;  %v12908_v57 = vpack.c.bf16 %v12906_v38, %v12907_v11  ;;  %v2743_v0 = vsub.f32 %v12912_v30, %v10064_v43  ;;  %v12915_v25 = vpack.c.bf16 %v12913_v8, %v12914_v16  ;;  %v12917_v11 = vld [vmem:[#allocation12_spill] sm:$0xff]  ;;  %v7068_v8 = vpop.eup %7067 }
 0x3c9   :  { %6683 = vmatpush3.bf16.msra.mxu0 %v12905_v9  ;;  %3911 = vperm.xlu0 %6934, %v7064_v5   ;;  %v12924_v5 = vld [vmem:[#allocation29_spill] sm:$0xff] }
 0x3ca   :  { %6713 = vmatprep.subr.bf16.mxu1 %v12908_v57  ;;  %6685 = vmatprep.subr.bf16.mxu0 %v12911_v14  ;;  %7075 = vpow2.f32 %v3084_v13  ;;  %v12918_v57 = vld [vmem:[#allocation13_spill] sm:$0xff]  ;;  %v12923_v14 = vld [vmem:[#allocation28_spill] sm:$0xff]  ;;  %v3066_v16 = vmul.f32 1.442695, %v2743_v0 }
 0x3cb   :  { %v10115_v58 = vpop.permute.xlu1 %3701  ;;  %v12919_v19 = vpack.c.bf16 %v12917_v11, %v12918_v57  ;;  %v12925_v30 = vpack.c.bf16 %v12923_v14, %v12924_v5  ;;  %7077 = vpow2.f32 %v3062_v42  ;;  %v7070_v57 = vpop.eup %7069  ;;  %v12932_v14 = vld [vmem:[#allocation15_spill] sm:$0xff]  ;;  %v12935_v0 = vld [vmem:[#allocation57_spill] sm:$0xff] }
 0x3cc   :  { %3872 = vperm.xlu1 %6933, %v7062_v34   ;;  %6715 = vmatpush3.bf16.msra.mxu1 %v12915_v25  ;;  %v3088_v34 = vmul.f32 1.442695, %v2754_v32  ;;  %v10133_v9 = vpop.permute.xlu0 %3704  ;;  %v12926_v32 = vld [vmem:[#allocation224_spill] sm:$0xff] }
 0x3cd   :  { %6687 = vmatpush3.bf16.msra.mxu0 %v12919_v19  ;;  %6717 = vmatprep.subr.bf16.mxu1 %v12922_v51  ;;  %v2745_v13 = vsub.f32 %v12926_v32, %v10064_v43  ;;  %v12927_v25 = vld [vmem:[#allocation40_spill] sm:$0xff]  ;;  %v12930_v19 = vld [vmem:[#allocation243_spill] sm:$0xff]  ;;  %v12931_v51 = vld [vmem:[#allocation14_spill] sm:$0xff] }
 0x3ce   :  { %6689 = vmatprep.subr.bf16.mxu0 %v12925_v30  ;;  %3917 = vperm.xlu0 %6934, %v7068_v8   ;;  %v12929_v11 = vpack.c.bf16 %v12927_v25, %v12928_v33  ;;  %v2758_v47 = vsub.f32 %v12930_v19, %v10064_v43  ;;  %7079 = vpow2.f32 %v3088_v34  ;;  %v12933_v5 = vpack.c.bf16 %v12931_v51, %v12932_v14  ;;  %v12934_v30 = vld [vmem:[#allocation56_spill] sm:$0xff]  ;;  %v12937_v8 = vld [vmem:[#allocation30_spill] sm:$0xff]  ;;  %v12938_v32 = vld [vmem:[#allocation31_spill] sm:$0xff]  ;;  %v7072_v33 = vpop.eup %7071 }
 0x3cf   :  { %v10135_v38 = vpop.permute.xlu1 %3707  ;;  %v12936_v42 = vpack.c.bf16 %v12934_v30, %v12935_v0  ;;  %v12939_v25 = vpack.c.bf16 %v12937_v8, %v12938_v32  ;;  %v3070_v34 = vmul.f32 1.442695, %v2745_v13  ;;  %7081 = vpow2.f32 %v3066_v16  ;;  %v12941_v51 = vld [vmem:[#allocation42_spill] sm:$0xff]  ;;  %v12942_v14 = vld [vmem:[#allocation43_spill] sm:$0xff]  ;;  %v7074_v30 = vpop.eup %7073  ;;  %v12945_v32 = vld [vmem:[#allocation16_spill] sm:$0xff] }
 0x3d0   :  { %3878 = vperm.xlu1 %6933, %v7066_v4   ;;  %6719 = vmatpush3.bf16.msra.mxu1 %v12929_v11  ;;  %v3092_v4 = vmul.f32 1.442695, %v2756_v6  ;;  %v12940_v11 = vld [vmem:[#allocation228_spill] sm:$0xff]  ;;  %v10166_v19 = vpop.permute.xlu0 %3731  ;;  %v12948_v13 = vld [vmem:[#allocation58_spill] sm:$0xff]  ;;  %v12949_v16 = vld [vmem:[#allocation59_spill] sm:$0xff] }
 0x3d1   :  { %6691 = vmatpush3.bf16.msra.mxu0 %v12933_v5  ;;  %6721 = vmatprep.subr.bf16.mxu1 %v12936_v42  ;;  %v2747_v6 = vsub.f32 %v12940_v11, %v10064_v43  ;;  %v12943_v5 = vpack.c.bf16 %v12941_v51, %v12942_v14  ;;  %v3096_v42 = vmul.f32 1.442695, %v2758_v47  ;;  %v12950_v10 = vpack.c.bf16 %v12948_v13, %v12949_v16  ;;  %v12952_v51 = vld [vmem:[#allocation33_spill] sm:$0xff] }
 0x3d2   :  { %6693 = vmatprep.subr.bf16.mxu0 %v12939_v25  ;;  %3923 = vperm.xlu0 %6934, %v7072_v33   ;;  %7083 = vpow2.f32 %v3092_v4  ;;  %v12946_v25 = vld [vmem:[#allocation17_spill] sm:$0xff]  ;;  %v12951_v33 = vld [vmem:[#allocation32_spill] sm:$0xff] }
 0x3d3   :  { %v10153_v24 = vpop.permute.xlu1 %3710  ;;  %v12947_v11 = vpack.c.bf16 %v12945_v32, %v12946_v25  ;;  %v12953_v14 = vpack.c.bf16 %v12951_v33, %v12952_v51  ;;  %v3074_v4 = vmul.f32 1.442695, %v2747_v6  ;;  %7085 = vpow2.f32 %v3070_v34  ;;  %v12955_v32 = vld [vmem:[#allocation44_spill] sm:$0xff]  ;;  %v12956_v25 = vld [vmem:[#allocation45_spill] sm:$0xff]  ;;  %v12959_v51 = vld [vmem:[#allocation18_spill] sm:$0xff] }
 0x3d4   :  { %3884 = vperm.xlu1 %6933, %v7070_v57   ;;  %6723 = vmatpush3.bf16.msra.mxu1 %v12943_v5  ;;  %v12944_v57 = vld [vmem:[#allocation245_spill] sm:$0xff]  ;;  %v7076_v5 = vpop.eup %7075  ;;  %v10186_v1 = vpop.permute.xlu0 %3737  ;;  %7087 = vpow2.f32 %v3096_v42  ;;  %v12962_v6 = vld [vmem:[#allocation60_spill] sm:$0xff] }
 0x3d5   :  { %v2760_v0 = vsub.f32 %v12944_v57, %v10064_v43  ;;  %6695 = vmatpush3.bf16.msra.mxu0 %v12947_v11  ;;  %6725 = vmatprep.subr.bf16.mxu1 %v12950_v10  ;;  %v12954_v57 = vld [vmem:[#allocation232_spill] sm:$0xff]  ;;  %v12957_v11 = vpack.c.bf16 %v12955_v32, %v12956_v25  ;;  %v7078_v13 = vpop.eup %7077  ;;  %v12958_v10 = vld [vmem:[#allocation247_spill] sm:$0xff]  ;;  %v12963_v34 = vld [vmem:[#allocation61_spill] sm:$0xff]  ;;  %7089 = vpow2.f32 %v3074_v4 }
 0x3d6   :  { %6697 = vmatprep.subr.bf16.mxu0 %v12953_v14  ;;  %v2749_v47 = vsub.f32 %v12954_v57, %v10064_v43  ;;  %3929 = vperm.xlu0 %6934, %v7076_v5   ;;  %v12960_v14 = vld [vmem:[#allocation19_spill] sm:$0xff]  ;;  %v12964_v55 = vpack.c.bf16 %v12962_v6, %v12963_v34  ;;  %v12965_v5 = vld [vmem:[#allocation34_spill] sm:$0xff] }
 0x3d7   :  { %v10173_v8 = vpop.permute.xlu1 %3713  ;;  %v3100_v16 = vmul.f32 1.442695, %v2760_v0  ;;  %v12961_v57 = vpack.c.bf16 %v12959_v51, %v12960_v14  ;;  %v12966_v32 = vld [vmem:[#allocation35_spill] sm:$0xff]  ;;  %v12969_v51 = vld [vmem:[#allocation46_spill] sm:$0xff] }
 0x3d8   :  { %3890 = vperm.xlu1 %6933, %v7074_v30   ;;  %6727 = vmatpush3.bf16.msra.mxu1 %v12957_v11  ;;  %v2762_v30 = vsub.f32 %v12958_v10, %v10064_v43  ;;  %v12967_v25 = vpack.c.bf16 %v12965_v5, %v12966_v32  ;;  %v7080_v11 = vpop.eup %7079  ;;  %v12968_v10 = vld [vmem:[#allocation234_spill] sm:$0xff]  ;;  %v3078_v42 = vmul.f32 1.442695, %v2749_v47  ;;  %v10206_v56 = vpop.permute.xlu0 %3743  ;;  %v12970_v14 = vld [vmem:[#allocation47_spill] sm:$0xff]  ;;  %v12973_v32 = vld [vmem:[#allocation20_spill] sm:$0xff] }
 0x3d9   :  { %6699 = vmatpush3.bf16.msra.mxu0 %v12961_v57  ;;  %6729 = vmatprep.subr.bf16.mxu1 %v12964_v55  ;;  %v2751_v0 = vsub.f32 %v12968_v10, %v10064_v43  ;;  %v12971_v57 = vpack.c.bf16 %v12969_v51, %v12970_v14  ;;  %v7082_v6 = vpop.eup %7081  ;;  %v12972_v55 = vld [vmem:[#allocation249_spill] sm:$0xff]  ;;  %7091 = vpow2.f32 %v3100_v16  ;;  %v12976_v47 = vld [vmem:[#allocation62_spill] sm:$0xff]  ;;  %v12977_v4 = vld [vmem:[#allocation63_spill] sm:$0xff] }
 0x3da   :  { %6701 = vmatprep.subr.bf16.mxu0 %v12967_v25  ;;  %3935 = vperm.xlu0 %6934, %v7080_v11   ;;  %v3104_v34 = vmul.f32 1.442695, %v2762_v30  ;;  %v12974_v25 = vld [vmem:[#allocation21_spill] sm:$0xff]  ;;  %v12978_v54 = vpack.c.bf16 %v12976_v47, %v12977_v4  ;;  %v12979_v11 = vld [vmem:[#allocation80_spill] sm:$0xff]  ;;  %7093 = vpow2.f32 %v3078_v42 }
 0x3db   :  { %v10193_v33 = vpop.permute.xlu1 %3716  ;;  %v12975_v10 = vpack.c.bf16 %v12973_v32, %v12974_v25  ;;  %v12980_v51 = vld [vmem:[#allocation81_spill] sm:$0xff]  ;;  %v3082_v16 = vmul.f32 1.442695, %v2751_v0  ;;  %v12983_v32 = vld [vmem:[#allocation48_spill] sm:$0xff]  ;;  %v12987_v0 = vld [vmem:[#allocation238_spill] sm:$0xff] }
 0x3dc   :  { %3896 = vperm.xlu1 %6933, %v7078_v13   ;;  %6731 = vmatpush3.bf16.msra.mxu1 %v12971_v57  ;;  %v2764_v13 = vsub.f32 %v12972_v55, %v10064_v43  ;;  %v12981_v14 = vpack.c.bf16 %v12979_v11, %v12980_v51  ;;  %v7084_v57 = vpop.eup %7083  ;;  %v12982_v55 = vld [vmem:[#allocation236_spill] sm:$0xff]  ;;  %v10226_v29 = vpop.permute.xlu0 %3749  ;;  %v12984_v25 = vld [vmem:[#allocation49_spill] sm:$0xff]  ;;  %7095 = vpow2.f32 %v3104_v34  ;;  %v2755_v42 = vsub.f32 %v12987_v0, %v10064_v43 }
 0x3dd   :  { %6703 = vmatpush3.bf16.msra.mxu0 %v12975_v10  ;;  %6733 = vmatprep.subr.bf16.mxu1 %v12978_v54  ;;  %v2753_v30 = vsub.f32 %v12982_v55, %v10064_v43  ;;  %v12985_v10 = vpack.c.bf16 %v12983_v32, %v12984_v25  ;;  %v7086_v47 = vpop.eup %7085  ;;  %v12986_v54 = vld [vmem:[#allocation253_spill] sm:$0xff]  ;;  %7097 = vpow2.f32 %v3082_v16  ;;  %v2650_v32 = vsub.s32 3, %v12814_v61 }
 0x3de   :  { %6737 = vmatprep.subr.bf16.mxu0 %v12981_v14  ;;  %3941 = vperm.xlu0 %6934, %v7084_v57   ;;  %v3108_v4 = vmul.f32 1.442695, %v2764_v13  ;;  %v7088_v51 = vpop.eup %7087  ;;  %v12988_v25 = vld [vmem:[#allocation257_spill] sm:$0xff] }
 0x3df   :  { %v10213_v5 = vpop.permute.xlu1 %3719  ;;  %v3086_v14 = vmul.f32 1.442695, %v2753_v30  ;;  %v7090_v55 = vpop.eup %7089  ;;  %v3090_v30 = vmul.f32 1.442695, %v2755_v42  ;;  %v10249_v20 = vrot.slane %v9941_v35, %v2650_v32  ;;  %v12992_v32 = vld [vmem:[#allocation265_spill] sm:$0xff] }
 0x3e0   :  { %3902 = vperm.xlu1 %6933, %v7082_v6   ;;  %6735 = vmatpush3.bf16.msra.mxu1 %v12985_v10  ;;  %v2766_v6 = vsub.f32 %v12986_v54, %v10064_v43  ;;  %v10237_v57 = vpop.permute.xlu0 %3755  ;;  %v2768_v10 = vsub.f32 %v12988_v25, %v10064_v43  ;;  %7099 = vpow2.f32 %v3108_v4  ;;  %v12989_v54 = vld [vmem:[#allocation240_spill] sm:$0xff]  ;;  %v12990_v25 = vld [vmem:[#allocation261_spill] sm:$0xff] }
 0x3e1   :  { %v2757_v0 = vsub.f32 %v12989_v54, %v10064_v43  ;;  %7101 = vpow2.f32 %v3086_v14  ;;  %v12991_v54 = vld [vmem:[#allocation242_spill] sm:$0xff]  ;;  %v2772_v50 = vsub.f32 %v12992_v32, %v10249_v20 }
 0x3e2   :  { %3947 = vperm.xlu0 %6934, %v7088_v51   ;;  %v3112_v13 = vmul.f32 1.442695, %v2766_v6  ;;  %v2770_v6 = vsub.f32 %v12990_v25, %v10064_v43  ;;  %v3116_v4 = vmul.f32 1.442695, %v2768_v10  ;;  %v2759_v42 = vsub.f32 %v12991_v54, %v10064_v43 }
 0x3e3   :  { %v10233_v11 = vpop.permute.xlu1 %3722  ;;  %v3094_v14 = vmul.f32 1.442695, %v2757_v0  ;;  %v3124_v31 = vmul.f32 1.442695, %v2772_v50 }
 0x3e4   :  { %3908 = vperm.xlu1 %6933, %v7086_v47   ;;  %v7092_v47 = vpop.eup %7091  ;;  %v10246_v16 = vpop.permute.xlu0 %3761  ;;  %7103 = vpow2.f32 %v3112_v13  ;;  %v3120_v22 = vmul.f32 1.442695, %v2770_v6  ;;  %v3098_v53 = vmul.f32 1.442695, %v2759_v42 }
 0x3e5   :  { %v7094_v51 = vpop.eup %7093  ;;  %7105 = vpow2.f32 %v3090_v30 }
 0x3e6   :  { %3953 = vperm.xlu0 %6934, %v7092_v47   ;;  %7107 = vpow2.f32 %v3116_v4 }
 0x3e7   :  { %v10242_v34 = vpop.permute.xlu1 %3725  ;;  %7109 = vpow2.f32 %v3094_v14 }
 0x3e8   :  { %3914 = vperm.xlu1 %6933, %v7090_v55   ;;  %v7096_v55 = vpop.eup %7095  ;;  %v10257_v7 = vpop.permute.xlu0 %3767  ;;  %7111 = vpow2.f32 %v3120_v22 }
 0x3e9   :  { %v7098_v47 = vpop.eup %7097  ;;  %7113 = vpow2.f32 %v3098_v53 }
 0x3ea   :  { %3959 = vperm.xlu0 %6934, %v7096_v55   ;;  %v7100_v13 = vpop.eup %7099  ;;  %v12994_v55 = vld [vmem:[#allocation269_spill] sm:$0xff]  ;;  %7115 = vpow2.f32 %v3124_v31  ;;  %v4550_v31 = vrot.slane %v10226_v29, %v8940_v41  ;;  %v4559_v29 = vrot.slane %v10237_v57, %v8949_v62 }
 0x3eb   :  { %v10253_v59 = vpop.permute.xlu1 %3728  ;;  %v7102_v30 = vpop.eup %7101  ;;  %v2774_v54 = vsub.f32 %v12994_v55, %v10249_v20 }
 0x3ec   :  { %3920 = vperm.xlu1 %6933, %v7094_v51   ;;  %v12993_v51 = vld [vmem:[#allocation244_spill] sm:$0xff]  ;;  %v10265_v0 = vpop.permute.xlu0 %3773 }
 0x3ed   :  { %v2761_v25 = vsub.f32 %v12993_v51, %v10064_v43  ;;  %v3128_v60 = vmul.f32 1.442695, %v2774_v54 }
 0x3ee   :  { %3965 = vperm.xlu0 %6934, %v7100_v13   ;;  %v7104_v4 = vpop.eup %7103  ;;  %v12996_v13 = vld [vmem:[#allocation273_spill] sm:$0xff] }
 0x3ef   :  { %v10261_v10 = vpop.permute.xlu1 %3734  ;;  %v3102_v27 = vmul.f32 1.442695, %v2761_v25  ;;  %v7106_v14 = vpop.eup %7105  ;;  %v2776_v51 = vsub.f32 %v12996_v13, %v10249_v20 }
 0x3f0   :  { %3926 = vperm.xlu1 %6933, %v7098_v47   ;;  %v12995_v47 = vld [vmem:[#allocation246_spill] sm:$0xff]  ;;  %v10273_v42 = vpop.permute.xlu0 %3779  ;;  %v7108_v22 = vpop.eup %7107 }
 0x3f1   :  { %v2763_v32 = vsub.f32 %v12995_v47, %v10064_v43  ;;  %7117 = vpow2.f32 %v3102_v27  ;;  %v7110_v53 = vpop.eup %7109  ;;  %v3132_v26 = vmul.f32 1.442695, %v2776_v51 }
 0x3f2   :  { %3971 = vperm.xlu0 %6934, %v7104_v4   ;;  %v12998_v4 = vld [vmem:[#allocation277_spill] sm:$0xff]  ;;  %7119 = vpow2.f32 %v3128_v60  ;;  %v7112_v39 = vpop.eup %7111 }
 0x3f3   :  { %v10269_v6 = vpop.permute.xlu1 %3740  ;;  %v3106_v18 = vmul.f32 1.442695, %v2763_v32  ;;  %v2778_v47 = vsub.f32 %v12998_v4, %v10249_v20  ;;  %v13000_v32 = vld [vmem:[#allocation252_spill] sm:$0xff]  ;;  %v2780_v4 = vsub.f32 %v13001_v2, %v10249_v20  ;;  %v7114_v51 = vpop.eup %7113 }
 0x3f4   :  { %3932 = vperm.xlu1 %6933, %v7102_v30   ;;  %v12997_v30 = vld [vmem:[#allocation248_spill] sm:$0xff]  ;;  %v10281_v25 = vpop.permute.xlu0 %3785  ;;  %v2767_v27 = vsub.f32 %v13000_v32, %v10064_v43 }
 0x3f5   :  { %v2765_v55 = vsub.f32 %v12997_v30, %v10064_v43  ;;  %7121 = vpow2.f32 %v3106_v18  ;;  %v3136_v17 = vmul.f32 1.442695, %v2778_v47  ;;  %v13002_v18 = vld [vmem:[#allocation256_spill] sm:$0xff] }
 0x3f6   :  { %3977 = vperm.xlu0 %6934, %v7108_v22   ;;  %7123 = vpow2.f32 %v3132_v26  ;;  %v2769_v32 = vsub.f32 %v13002_v18, %v10064_v43  ;;  %v3114_v23 = vmul.f32 1.442695, %v2767_v27  ;;  %v13003_v47 = vld [vmem:[#allocation260_spill] sm:$0xff] }
 0x3f7   :  { %v10277_v50 = vpop.permute.xlu1 %3746  ;;  %v3110_v30 = vmul.f32 1.442695, %v2765_v55  ;;  %v7116_v55 = vpop.eup %7115  ;;  %v2771_v26 = vsub.f32 %v13003_v47, %v10064_v43  ;;  %v13005_v43 = vld [vmem:[#allocation262_spill] sm:$0xff] }
 0x3f8   :  { %3938 = vperm.xlu1 %6933, %v7106_v14   ;;  %v12999_v14 = vld [vmem:[#allocation365_spill] sm:$0xff]  ;;  %v10290_v22 = vpop.permute.xlu0 %3791  ;;  %v2773_v18 = vsub.f32 %v13005_v43, %v10249_v20 }
 0x3f9   :  { %7125 = vpow2.f32 %v3110_v30  ;;  %v4475_v27 = vrot.slane %v10133_v9, %v12999_v14  ;;  %v4471_v30 = vrot.slane %v10115_v58, %v8940_v41  ;;  %v4485_v58 = vrot.slane %v10153_v24, %v8954_v3 }
 0x3fa   :  { %3983 = vperm.xlu0 %6934, %v7112_v39   ;;  %7127 = vpow2.f32 %v3136_v17  ;;  %v4495_v24 = vrot.slane %v10193_v33, %v8959_v12  ;;  %v4505_v33 = vrot.slane %v10233_v11, %v8968_v40  ;;  %v4589_v11 = vrot.slane %v10265_v0, %v8988_v28 }
 0x3fb   :  { %v3753_v54 = vpop.permute.xlu1 %3752  ;;  %7129 = vpow2.f32 %v3114_v23  ;;  %v4476_v23 = vsel %vm1324_vm0, %v4475_v27, %v4471_v30 }
 0x3fc   :  { %v4554_v13 = vrot.slane %v3753_v54, %v12999_v14  ;;  %3944 = vperm.xlu1 %6933, %v7110_v53   ;;  %v10300_v2 = vpop.permute.xlu0 %3797 }
 0x3fe   :  { %v4555_v60 = vsel %vm1324_vm0, %v4554_v13, %v4550_v31  ;;  %v13004_v31 = vld [vmem:[#allocation283_spill] sm:$0xff]  ;;  %v3140_v13 = vmul.f32 1.442695, %v2780_v4  ;;  %3989 = vperm.xlu0 %6934, %v7116_v55   ;;  %v13006_v4 = vld [vmem:[#allocation285_spill] sm:$0xff] }
 0x3ff   :  { %v3759_v53 = vpop.permute.xlu1 %3758  ;;  %v4560_v39 = vsel %vm1331_vm1, %v4559_v29, %v4555_v60  ;;  %v2782_v57 = vsub.f32 %v13004_v31, %v10249_v20  ;;  %v4569_v60 = vrot.slane %v10246_v16, %v8965_v52  ;;  %v2784_v55 = vsub.f32 %v13006_v4, %v10249_v20  ;;  %v13007_v31 = vld [vmem:[#allocation287_spill] sm:$0xff] }
 0x400   :  { %v4564_v54 = vrot.slane %v3759_v53, %v8954_v3  ;;  %3950 = vperm.xlu1 %6933, %v7114_v51   ;;  %v7118_v53 = vpop.eup %7117  ;;  %v10323_v16 = vpop.permute.xlu0 %3803  ;;  %v2786_v43 = vsub.f32 %v13007_v31, %v10249_v20  ;;  %7131 = vpow2.f32 %v3140_v13 }
 0x401   :  { %v7120_v9 = vpop.eup %7119  ;;  %v3144_v4 = vmul.f32 1.442695, %v2782_v57 }
 0x402   :  { %v4565_v51 = vsel %vm1338_vm2, %v4564_v54, %v4560_v39  ;;  %v4480_v54 = vrot.slane %v10135_v38, %v8949_v62  ;;  %v3118_v39 = vmul.f32 1.442695, %v2769_v32  ;;  %v4490_v38 = vrot.slane %v10173_v8, %v8965_v52  ;;  %3995 = vperm.xlu0 %6934, %v7120_v9  }
 0x403   :  { %v3765_v29 = vpop.permute.xlu1 %3764  ;;  %v4570_v47 = vsel %vm1345_vm3, %v4569_v60, %v4565_v51  ;;  %v4579_v32 = vrot.slane %v10257_v7, %v8973_v63  ;;  %v3122_v60 = vmul.f32 1.442695, %v2771_v26  ;;  %v4500_v8 = vrot.slane %v10213_v5, %v8973_v63 }
 0x404   :  { %v4574_v17 = vrot.slane %v3765_v29, %v8959_v12  ;;  %3956 = vperm.xlu1 %6933, %v7118_v53   ;;  %v7122_v29 = vpop.eup %7121  ;;  %v4481_v57 = vsel %vm1331_vm1, %v4480_v54, %v4476_v23  ;;  %7133 = vpow2.f32 %v3118_v39  ;;  %v10343_v27 = vpop.permute.xlu0 %3809  ;;  %v3148_v26 = vmul.f32 1.442695, %v2784_v55  ;;  %v13009_v55 = vld [vmem:[#allocation268_spill] sm:$0xff] }
 0x405   :  { %v4486_v13 = vsel %vm1338_vm2, %v4485_v58, %v4481_v57  ;;  %v4510_v5 = vrot.slane %v10242_v34, %v8988_v28  ;;  %7135 = vpow2.f32 %v3144_v4  ;;  %v4515_v58 = vrot.slane %v10253_v59, %v8978_v45  ;;  %v13011_v59 = vld [vmem:[#allocation289_spill] sm:$0xff] }
 0x406   :  { %v4575_v53 = vsel %vm1352_vm4, %v4574_v17, %v4570_v47  ;;  %v7124_v17 = vpop.eup %7123  ;;  %v4491_v30 = vsel %vm1345_vm3, %v4490_v38, %v4486_v13  ;;  %v2775_v38 = vsub.f32 %v13009_v55, %v10249_v20  ;;  %v3126_v23 = vmul.f32 1.442695, %v2773_v18 }
 0x407   :  { %v3771_v51 = vpop.permute.xlu1 %3770  ;;  %v4580_v7 = vsel %vm13008_vm8, %v4579_v32, %v4575_v53  ;;  %4001 = vperm.xlu0 %6934, %v7124_v17   ;;  %v7126_v47 = vpop.eup %7125  ;;  %v4496_v39 = vsel %vm1352_vm4, %v4495_v24, %v4491_v30  ;;  %7137 = vpow2.f32 %v3122_v60  ;;  %v2788_v32 = vsub.f32 %v13011_v59, %v10249_v20  ;;  %vm13013_vm8 = vmmov %vm13012_vm11  ;;  %v13014_v30 = vld [vmem:[#allocation272_spill] sm:$0xff] }
 0x408   :  { %v4584_v9 = vrot.slane %v3771_v51, %v8968_v40  ;;  %3962 = vperm.xlu1 %6933, %v7122_v29   ;;  %v4501_v53 = vsel %vm13010_vm10, %v4500_v8, %v4496_v39  ;;  %v7128_v29 = vpop.eup %7127  ;;  %v10360_v24 = vpop.permute.xlu0 %3815  ;;  %v3152_v51 = vmul.f32 1.442695, %v2786_v43  ;;  %7139 = vpow2.f32 %v3148_v26 }
 0x409   :  { %v4506_v4 = vsel %vm1366_vm6, %v4505_v33, %v4501_v53  ;;  %v4599_v60 = vrot.slane %v10273_v42, %v8998_v48  ;;  %v4525_v17 = vrot.slane %v10261_v10, %v8991_v46  ;;  %v4520_v33 = vrot.slane %v10166_v19, %v8998_v48 }
 0x40a   :  { %v4585_v54 = vsel %vm1366_vm6, %v4584_v9, %v4580_v7  ;;  %v4511_v57 = vsel %vm1373_vm7, %v4510_v5, %v4506_v4  ;;  %v7130_v9 = vpop.eup %7129  ;;  %v2777_v5 = vsub.f32 %v13014_v30, %v10249_v20  ;;  %v3130_v26 = vmul.f32 1.442695, %v2775_v38  ;;  %v13020_v4 = vld [vmem:[#allocation276_spill] sm:$0xff] }
 0x40b   :  { %v3777_v31 = vpop.permute.xlu1 %3776  ;;  %v4590_v0 = vsel %vm1373_vm7, %v4589_v11, %v4585_v54  ;;  %4007 = vperm.xlu0 %6934, %v7128_v29   ;;  %v4516_v18 = vsel %vm13013_vm8, %v4515_v58, %v4511_v57  ;;  %v7132_v7 = vpop.eup %7131  ;;  %7141 = vpow2.f32 %v3126_v23  ;;  %vm13015_vm10 = vcmask 720512   ;;  %v13024_v30 = vld [vmem:[#allocation280_spill] sm:$0xff] }
 0x40c   :  { %v4594_v34 = vrot.slane %v3777_v31, %v8978_v45  ;;  %3968 = vperm.xlu1 %6933, %v7126_v47   ;;  %v10377_v54 = vpop.permute.xlu0 %3821  ;;  %v13016_v47 = vld [vmem:[#allocation291_spill] sm:$0xff]  ;;  %v3156_v39 = vmul.f32 1.442695, %v2788_v32  ;;  %vm13018_vm8 = vcmask 786112   ;;  %7143 = vpow2.f32 %v3152_v51  ;;  %v13022_v51 = vld [vmem:[#allocation293_spill] sm:$0xff] }
 0x40d   :  { %v2790_v10 = vsub.f32 %v13016_v47, %v10249_v20  ;;  %vm13019_vm14 = vmmov %vm13018_vm8  ;;  %v4609_v55 = vrot.slane %v10281_v25, %v9008_v21  ;;  %v4535_v38 = vrot.slane %v10269_v6, %v9005_v15  ;;  %v3134_v59 = vmul.f32 1.442695, %v2777_v5 }
 0x40e   :  { %v4595_v8 = vsel %vm13012_vm11, %v4594_v34, %v4590_v0  ;;  %vm13017_vm11 = vmmov %vm13015_vm10  ;;  %v7134_v58 = vpop.eup %7133  ;;  %v4530_v34 = vrot.slane %v10186_v1, %v9008_v21  ;;  %v2779_v0 = vsub.f32 %v13020_v4, %v10249_v20  ;;  %7145 = vpow2.f32 %v3130_v26  ;;  %v13029_v4 = vld [vmem:[#allocation64_spill] sm:$0xff] }
 0x40f   :  { %v3783_v13 = vpop.permute.xlu1 %3782  ;;  %v4600_v42 = vsel %vm13015_vm10, %v4599_v60, %v4595_v8  ;;  %v4521_v11 = vsel %vm13017_vm11, %v4520_v33, %v4516_v18  ;;  %4013 = vperm.xlu0 %6934, %v7132_v7   ;;  %v7136_v23 = vpop.eup %7135  ;;  %v2792_v6 = vsub.f32 %v13022_v51, %v10249_v20  ;;  %v3160_v57 = vmul.f32 1.442695, %v2790_v10  ;;  %v13026_v10 = vld [vmem:[#allocation295_spill] sm:$0xff] }
 0x410   :  { %v4604_v43 = vrot.slane %v3783_v13, %v8991_v46  ;;  %3974 = vperm.xlu1 %6933, %v7130_v9   ;;  %v4526_v31 = vsel %vm13019_vm14, %v4525_v17, %v4521_v11  ;;  %v10394_v32 = vpop.permute.xlu0 %3827  ;;  %vm13021_vm14 = vcmask 851712   ;;  %7147 = vpow2.f32 %v3156_v39  ;;  %v13033_v51 = vld [vmem:[#allocation83_spill] sm:$0xff] }
 0x411   :  { %vm13023_vm10 = vmmov %vm13021_vm14  ;;  %v7138_v9 = vpop.eup %7137  ;;  %v4619_v18 = vrot.slane %v10290_v22, %v9030_v37  ;;  %v4545_v60 = vrot.slane %v10277_v50, %v9040_v36  ;;  %v4540_v33 = vrot.slane %v10206_v56, %v9030_v37  ;;  %v2781_v5 = vsub.f32 %v13024_v30, %v10249_v20 }
 0x412   :  { %v4605_v19 = vsel %vm13018_vm8, %v4604_v43, %v4600_v42  ;;  %v4531_v8 = vsel %vm13023_vm10, %v4530_v34, %v4526_v31  ;;  %v7140_v7 = vpop.eup %7139  ;;  %v3138_v26 = vmul.f32 1.442695, %v2779_v0  ;;  %7149 = vpow2.f32 %v3134_v59  ;;  %v13030_v0 = vld [vmem:[#allocation65_spill] sm:$0xff] }
 0x413   :  { %v3789_v53 = vpop.permute.xlu1 %3788  ;;  %v4610_v25 = vsel %vm13021_vm14, %v4609_v55, %v4605_v19  ;;  %4019 = vperm.xlu0 %6934, %v7136_v23   ;;  %v4536_v13 = vsel %vm1408_vm12, %v4535_v38, %v4531_v8  ;;  %vm13025_vm11 = vcmask 1048512   ;;  %v2794_v39 = vsub.f32 %v13026_v10, %v10249_v20  ;;  %v13041_v10 = vld [vmem:[#allocation85_spill] sm:$0xff] }
 0x414   :  { %v4614_v29 = vrot.slane %v3789_v53, %v9005_v15  ;;  %3980 = vperm.xlu1 %6933, %v7134_v58   ;;  %v10411_v42 = vpop.permute.xlu0 %3833  ;;  %v4541_v47 = vsel %vm1415_vm13, %v4540_v33, %v4536_v13  ;;  %v3164_v11 = vmul.f32 1.442695, %v2792_v6  ;;  %7151 = vpow2.f32 %v3160_v57  ;;  %vm13027_vm8 = vmmov %vm13025_vm11  ;;  %v13028_v53 = vld [vmem:[#allocation282_spill] sm:$0xff]  ;;  %v13036_v33 = vld [vmem:[#allocation284_spill] sm:$0xff] }
 0x415   :  { %v7142_v56 = vpop.eup %7141  ;;  %v10422_v58 = vsel %vm13027_vm8, %v4545_v60, %v4541_v47  ;;  %v4629_v31 = vrot.slane %v10300_v2, %v8940_v41  ;;  %v2783_v34 = vsub.f32 %v13028_v53, %v10249_v20  ;;  %7153 = vpow2.f32 %v3138_v26  ;;  %v13037_v26 = vld [vmem:[#allocation66_spill] sm:$0xff] }
 0x416   :  { %v4615_v1 = vsel %vm1408_vm12, %v4614_v29, %v4610_v25  ;;  %v7144_v38 = vpop.eup %7143  ;;  %v3142_v29 = vmul.f32 1.442695, %v2781_v5  ;;  %v13031_v59 = vpack.c.bf16 %v13029_v4, %v13030_v0  ;;  %v13032_v25 = vld [vmem:[#allocation82_spill] sm:$0xff]  ;;  %7155 = vpow2.f32 %v3164_v11 }
 0x417   :  { %v3795_v17 = vpop.permute.xlu1 %3794  ;;  %v4620_v22 = vsel %vm1415_vm13, %v4619_v18, %v4615_v1  ;;  %4025 = vperm.xlu0 %6934, %v7140_v7   ;;  %v13034_v6 = vpack.c.bf16 %v13032_v25, %v13033_v51  ;;  %v13035_v1 = vld [vmem:[#allocation297_spill] sm:$0xff]  ;;  %v4638_v18 = vrot.slane %v10323_v16, %v8949_v62  ;;  %v3146_v7 = vmul.f32 1.442695, %v2783_v34  ;;  %v13044_v4 = vld [vmem:[#allocation286_spill] sm:$0xff]  ;;  %v13045_v51 = vld [vmem:[#allocation68_spill] sm:$0xff] }
 0x418   :  { %v4624_v43 = vrot.slane %v3795_v17, %v9040_v36  ;;  %3986 = vperm.xlu1 %6933, %v7138_v9   ;;  %v10430_v23 = vpop.permute.xlu0 %3839  ;;  %v7146_v57 = vpop.eup %7145  ;;  %v2796_v8 = vsub.f32 %v13035_v1, %v10249_v20  ;;  %v3168_v9 = vmul.f32 1.442695, %v2794_v39  ;;  %7157 = vpow2.f32 %v3142_v29 }
 0x419   :  { %v2787_v0 = vsub.f32 %v13044_v4, %v10249_v20  ;;  %vm13053_vm14 = vcmask 458112   ;;  %vm13065_vm10 = vcmask 654912   ;;  %vm13075_vm8 = vcmask 786112  }
 0x41a   :  { %v10415_v50 = vsel %vm13025_vm11, %v4624_v43, %v4620_v22  ;;  %v7148_v13 = vpop.eup %7147  ;;  %v2785_v43 = vsub.f32 %v13036_v33, %v10249_v20  ;;  %v13038_v22 = vld [vmem:[#allocation67_spill] sm:$0xff]  ;;  %7159 = vpow2.f32 %v3168_v9  ;;  %vm13071_vm11 = vcmask 720512  }
 0x41b   :  { %5817 = vmatprep.mubr.f32.mxu0 %v10415_v50  ;;  %v3801_v19 = vpop.permute.xlu1 %3800  ;;  %4031 = vperm.xlu0 %6934, %v7144_v38   ;;  %v13039_v47 = vpack.c.bf16 %v13037_v26, %v13038_v22  ;;  %v4648_v38 = vrot.slane %v10343_v27, %v8965_v52  ;;  %7161 = vpow2.f32 %v3146_v7  ;;  %v2654_v27 = vsub.s32 4, %v12814_v61  ;;  %v13049_v9 = vld [vmem:[#allocation87_spill] sm:$0xff]  ;;  %v13052_v22 = vld [vmem:[#allocation288_spill] sm:$0xff] }
 0x41c   :  { %v4633_v55 = vrot.slane %v3801_v19, %v12999_v14  ;;  %3992 = vperm.xlu1 %6933, %v7142_v56   ;;  %5818 = vmatmul.mubr.f32.vlgmr.msra.gmra.mrb[0].mxu0 %v10422_v58  ;;  %v10446_v30 = vpop.permute.xlu0 %3845  ;;  %v13040_v56 = vld [vmem:[#allocation84_spill] sm:$0xff]  ;;  %v7150_v11 = vpop.eup %7149  ;;  %v13043_v19 = vld [vmem:[#allocation299_spill] sm:$0xff] }
 0x41d   :  { %6739 = vmatpush3.bf16.msra.mxu0 %v13031_v59  ;;  %v13042_v39 = vpack.c.bf16 %v13040_v56, %v13041_v10  ;;  %v3150_v59 = vmul.f32 1.442695, %v2785_v43  ;;  %v4658_v43 = vrot.slane %v10360_v24, %v8973_v63  ;;  %v10488_v24 = vrot.slane %v9941_v35, %v2654_v27 }
 0x41e   :  { %v4634_v2 = vsel %vm1324_vm0, %v4633_v55, %v4629_v31  ;;  %6741 = vmatprep.subr.bf16.mxu0 %v13034_v6  ;;  %v2798_v31 = vsub.f32 %v13043_v19, %v10249_v20  ;;  %v3172_v55 = vmul.f32 1.442695, %v2796_v8  ;;  %v7152_v29 = vpop.eup %7151  ;;  %v13046_v6 = vld [vmem:[#allocation69_spill] sm:$0xff]  ;;  %v13048_v8 = vld [vmem:[#allocation86_spill] sm:$0xff] }
 0x41f   :  { %v3807_v60 = vpop.permute.xlu1 %3806  ;;  %v4639_v5 = vsel %vm1331_vm1, %v4638_v18, %v4634_v2  ;;  %4037 = vperm.xlu0 %6934, %v7148_v13   ;;  %v13050_v18 = vpack.c.bf16 %v13048_v8, %v13049_v9 }
 0x420   :  { %v4643_v17 = vrot.slane %v3807_v60, %v8954_v3  ;;  %3998 = vperm.xlu1 %6933, %v7146_v57   ;;  %v10463_v2 = vpop.permute.xlu0 %3851  ;;  %v13047_v57 = vpack.c.bf16 %v13045_v51, %v13046_v6  ;;  %v7154_v60 = vpop.eup %7153  ;;  %v3176_v33 = vmul.f32 1.442695, %v2798_v31  ;;  %7163 = vpow2.f32 %v3172_v55  ;;  %v13057_v55 = vld [vmem:[#allocation88_spill] sm:$0xff] }
 0x421   :  { %6743 = vmatpush3.bf16.msra.mxu0 %v13039_v47  ;;  %v7156_v26 = vpop.eup %7155  ;;  %v2789_v47 = vsub.f32 %v13052_v22, %v10249_v20  ;;  %7165 = vpow2.f32 %v3150_v59  ;;  %v4668_v59 = vrot.slane %v10377_v54, %v8988_v28 }
 0x422   :  { %v4644_v16 = vsel %vm1338_vm2, %v4643_v17, %v4639_v5  ;;  %6745 = vmatprep.subr.bf16.mxu0 %v13042_v39  ;;  %v13051_v17 = vld [vmem:[#allocation301_spill] sm:$0xff]  ;;  %v13054_v39 = vld [vmem:[#allocation70_spill] sm:$0xff]  ;;  %7167 = vpow2.f32 %v3176_v33  ;;  %v13067_v33 = vld [vmem:[#allocation91_spill] sm:$0xff] }
 0x423   :  { %v3813_v53 = vpop.permute.xlu1 %3812  ;;  %v4649_v25 = vsel %vm1345_vm3, %v4648_v38, %v4644_v16  ;;  %4043 = vperm.xlu0 %6934, %v7152_v29   ;;  %v2800_v13 = vsub.f32 %v13051_v17, %v10249_v20  ;;  %v3154_v16 = vmul.f32 1.442695, %v2787_v0  ;;  %v13058_v38 = vld [vmem:[#allocation89_spill] sm:$0xff]  ;;  %v13060_v29 = vld [vmem:[#allocation303_spill] sm:$0xff] }
 0x424   :  { %v4653_v34 = vrot.slane %v3813_v53, %v8959_v12  ;;  %4004 = vperm.xlu1 %6933, %v7150_v11   ;;  %v10481_v56 = vpop.permute.xlu0 %3857  ;;  %v13055_v11 = vld [vmem:[#allocation71_spill] sm:$0xff]  ;;  %v13059_v53 = vpack.c.bf16 %v13057_v55, %v13058_v38  ;;  %v2802_v4 = vsub.f32 %v13060_v29, %v10249_v20 }
 0x425   :  { %6747 = vmatpush3.bf16.msra.mxu0 %v13047_v57  ;;  %v13056_v19 = vpack.c.bf16 %v13054_v39, %v13055_v11  ;;  %v3180_v0 = vmul.f32 1.442695, %v2800_v13  ;;  %v13061_v57 = vld [vmem:[#allocation290_spill] sm:$0xff]  ;;  %7169 = vpow2.f32 %v3154_v16  ;;  %v13070_v11 = vld [vmem:[#allocation292_spill] sm:$0xff] }
 0x426   :  { %v4654_v1 = vsel %vm1352_vm4, %v4653_v34, %v4649_v25  ;;  %6749 = vmatprep.subr.bf16.mxu0 %v13050_v18  ;;  %v7158_v34 = vpop.eup %7157  ;;  %v2791_v27 = vsub.f32 %v13061_v57, %v10249_v20  ;;  %v13062_v18 = vld [vmem:[#allocation72_spill] sm:$0xff]  ;;  %v13066_v13 = vld [vmem:[#allocation90_spill] sm:$0xff]  ;;  %v3184_v22 = vmul.f32 1.442695, %v2802_v4 }
 0x427   :  { %v3819_v7 = vpop.permute.xlu1 %3818  ;;  %v4659_v10 = vsel %vm13053_vm14, %v4658_v43, %v4654_v1  ;;  %4049 = vperm.xlu0 %6934, %v7156_v26   ;;  %v7160_v6 = vpop.eup %7159  ;;  %v3158_v1 = vmul.f32 1.442695, %v2789_v47  ;;  %v13068_v43 = vpack.c.bf16 %v13066_v13, %v13067_v33  ;;  %7171 = vpow2.f32 %v3180_v0  ;;  %v13076_v4 = vld [vmem:[#allocation92_spill] sm:$0xff]  ;;  %v13077_v0 = vld [vmem:[#allocation93_spill] sm:$0xff] }
 0x428   :  { %v4663_v5 = vrot.slane %v3819_v7, %v8968_v40  ;;  %4010 = vperm.xlu1 %6933, %v7154_v60   ;;  %v10501_v8 = vpop.permute.xlu0 %3863  ;;  %v13063_v60 = vld [vmem:[#allocation73_spill] sm:$0xff]  ;;  %v7162_v7 = vpop.eup %7161  ;;  %v4678_v47 = vrot.slane %v10394_v32, %v8998_v48  ;;  %vm13081_vm14 = vcmask 851712  }
 0x429   :  { %6751 = vmatpush3.bf16.msra.mxu0 %v13056_v19  ;;  %v13064_v17 = vpack.c.bf16 %v13062_v18, %v13063_v60  ;;  %v2793_v19 = vsub.f32 %v13070_v11, %v10249_v20  ;;  %7173 = vpow2.f32 %v3158_v1  ;;  %v13080_v60 = vld [vmem:[#allocation294_spill] sm:$0xff] }
 0x42a   :  { %v4664_v31 = vsel %vm1366_vm6, %v4663_v5, %v4659_v10  ;;  %6753 = vmatprep.subr.bf16.mxu0 %v13059_v53  ;;  %v13069_v5 = vld [vmem:[#allocation305_spill] sm:$0xff]  ;;  %v7164_v39 = vpop.eup %7163  ;;  %v13072_v53 = vld [vmem:[#allocation74_spill] sm:$0xff]  ;;  %7175 = vpow2.f32 %v3184_v22  ;;  %v13086_v22 = vld [vmem:[#allocation95_spill] sm:$0xff] }
 0x42b   :  { %v3825_v25 = vpop.permute.xlu1 %3824  ;;  %v4669_v9 = vsel %vm1373_vm7, %v4668_v59, %v4664_v31  ;;  %4055 = vperm.xlu0 %6934, %v7160_v6   ;;  %v2804_v26 = vsub.f32 %v13069_v5, %v10488_v24  ;;  %v3162_v31 = vmul.f32 1.442695, %v2791_v27  ;;  %v13078_v59 = vpack.c.bf16 %v13076_v4, %v13077_v0 }
 0x42c   :  { %v4673_v51 = vrot.slane %v3825_v25, %v8978_v45  ;;  %4016 = vperm.xlu1 %6933, %v7158_v34   ;;  %v10518_v55 = vpop.permute.xlu0 %3869  ;;  %v13073_v34 = vld [vmem:[#allocation75_spill] sm:$0xff]  ;;  %v7166_v25 = vpop.eup %7165  ;;  %v4688_v27 = vrot.slane %v10411_v42, %v9008_v21 }
 0x42d   :  { %6755 = vmatpush3.bf16.msra.mxu0 %v13064_v17  ;;  %v13074_v29 = vpack.c.bf16 %v13072_v53, %v13073_v34  ;;  %v3188_v57 = vmul.f32 1.442695, %v2804_v26  ;;  %v7168_v18 = vpop.eup %7167  ;;  %v2795_v17 = vsub.f32 %v13080_v60, %v10249_v20  ;;  %7177 = vpow2.f32 %v3162_v31  ;;  %v13085_v26 = vld [vmem:[#allocation94_spill] sm:$0xff]  ;;  %v13089_v34 = vld [vmem:[#allocation296_spill] sm:$0xff] }
 0x42e   :  { %v4674_v54 = vsel %vm13065_vm10, %v4673_v51, %v4669_v9  ;;  %6757 = vmatprep.subr.bf16.mxu0 %v13068_v43  ;;  %v13079_v51 = vld [vmem:[#allocation307_spill] sm:$0xff]  ;;  %v13082_v43 = vld [vmem:[#allocation76_spill] sm:$0xff]  ;;  %vm13093_vm10 = vcmask 1048512   ;;  %v4708_v60 = vrot.slane %v10446_v30, %v8940_v41  ;;  %v4717_v30 = vrot.slane %v10463_v2, %v8949_v62 }
 0x42f   :  { %v3831_v16 = vpop.permute.xlu1 %3830  ;;  %v4679_v38 = vsel %vm13071_vm11, %v4678_v47, %v4674_v54  ;;  %4061 = vperm.xlu0 %6934, %v7164_v39   ;;  %v2806_v6 = vsub.f32 %v13079_v51, %v10488_v24  ;;  %v3166_v54 = vmul.f32 1.442695, %v2793_v19  ;;  %v13087_v47 = vpack.c.bf16 %v13085_v26, %v13086_v22 }
 0x430   :  { %v4683_v10 = vrot.slane %v3831_v16, %v8991_v46  ;;  %4022 = vperm.xlu1 %6933, %v7162_v7   ;;  %v10535_v13 = vpop.permute.xlu0 %3875  ;;  %v13083_v7 = vld [vmem:[#allocation77_spill] sm:$0xff]  ;;  %v7170_v16 = vpop.eup %7169  ;;  %7179 = vpow2.f32 %v3188_v57  ;;  %v4698_v19 = vrot.slane %v10430_v23, %v9030_v37  ;;  %v13094_v57 = vld [vmem:[#allocation311_spill] sm:$0xff]  ;;  %vm13095_vm11 = vcmask 1041409  }
 0x431   :  { %6759 = vmatpush3.bf16.msra.mxu0 %v13074_v29  ;;  %v13084_v5 = vpack.c.bf16 %v13082_v43, %v13083_v7  ;;  %v3192_v11 = vmul.f32 1.442695, %v2806_v6  ;;  %v7172_v53 = vpop.eup %7171  ;;  %v2797_v29 = vsub.f32 %v13089_v34, %v10249_v20  ;;  %7181 = vpow2.f32 %v3166_v54 }
 0x432   :  { %v4684_v32 = vsel %vm13075_vm8, %v4683_v10, %v4679_v38  ;;  %6761 = vmatprep.subr.bf16.mxu0 %v13078_v59  ;;  %v13088_v10 = vld [vmem:[#allocation309_spill] sm:$0xff]  ;;  %v13090_v59 = vld [vmem:[#allocation78_spill] sm:$0xff]  ;;  %vm13103_vm8 = vcmask 458112  }
 0x433   :  { %v3837_v1 = vpop.permute.xlu1 %3836  ;;  %v4689_v33 = vsel %vm13081_vm14, %v4688_v27, %v4684_v32  ;;  %4067 = vperm.xlu0 %6934, %v7168_v18   ;;  %v2808_v39 = vsub.f32 %v13088_v10, %v10488_v24  ;;  %v3170_v32 = vmul.f32 1.442695, %v2795_v17  ;;  %v7174_v6 = vpop.eup %7173  ;;  %v2810_v27 = vsub.f32 %v13094_v57, %v10488_v24 }
 0x434   :  { %v4693_v9 = vrot.slane %v3837_v1, %v9005_v15  ;;  %4028 = vperm.xlu1 %6933, %v7166_v25   ;;  %v10552_v4 = vpop.permute.xlu0 %3881  ;;  %v13091_v25 = vld [vmem:[#allocation79_spill] sm:$0xff]  ;;  %7183 = vpow2.f32 %v3192_v11  ;;  %v7176_v54 = vpop.eup %7175  ;;  %v3174_v7 = vmul.f32 1.442695, %v2797_v29  ;;  %v13098_v11 = vld [vmem:[#allocation300_spill] sm:$0xff]  ;;  %vm13106_vm14 = vcmask 654912  }
 0x435   :  { %6763 = vmatpush3.bf16.msra.mxu0 %v13084_v5  ;;  %v13092_v51 = vpack.c.bf16 %v13090_v59, %v13091_v25  ;;  %v3196_v1 = vmul.f32 1.442695, %v2808_v39  ;;  %7185 = vpow2.f32 %v3170_v32  ;;  %v7459_v29 = vld [vmem:[#allocation2 + $0x388] sm:$0xff]  ;;  %v7460_v32 = vld [vmem:[#allocation2 + $0x380] sm:$0xff] }
 0x436   :  { %v4694_v42 = vsel %vm1408_vm12, %v4693_v9, %v4689_v33  ;;  %6765 = vmatprep.subr.bf16.mxu0 %v13087_v47  ;;  %v13096_v33 = vld [vmem:[#allocation298_spill] sm:$0xff]  ;;  %v3200_v47 = vmul.f32 1.442695, %v2810_v27  ;;  %v6768_v2 = vpack.c.bf16 %v7459_v29, %v7460_v32  ;;  %v13099_v59 = vld [vmem:[#allocation315_spill] sm:$0xff]  ;;  %v4747_v29 = vrot.slane %v10518_v55, %v8988_v28  ;;  %v13107_v55 = vld [vmem:[#allocation321_spill] sm:$0xff] }
 0x437   :  { %v3843_v31 = vpop.permute.xlu1 %3842  ;;  %v4699_v0 = vsel %vm1415_vm13, %v4698_v19, %v4694_v42  ;;  %4073 = vperm.xlu0 %6934, %v7172_v53   ;;  %v2799_v43 = vsub.f32 %v13096_v33, %v10249_v20  ;;  %v7178_v26 = vpop.eup %7177  ;;  %7187 = vpow2.f32 %v3196_v1  ;;  %v2801_v19 = vsub.f32 %v13098_v11, %v10249_v20 }
 0x438   :  { %v4703_v38 = vrot.slane %v3843_v31, %v9040_v36  ;;  %4034 = vperm.xlu1 %6933, %v7170_v16   ;;  %v10573_v5 = vpop.permute.xlu0 %3887  ;;  %7189 = vpow2.f32 %v3174_v7  ;;  %v2814_v25 = vsub.f32 %v13099_v59, %v10488_v24  ;;  %6769 = vmatprep.subr.bf16.mxu1 %v6768_v2  ;;  %v13105_v59 = vld [vmem:[#allocation306_spill] sm:$0xff] }
 0x439   :  { %6767 = vmatpush3.bf16.msra.mxu0 %v13092_v51  ;;  %v3178_v31 = vmul.f32 1.442695, %v2799_v43  ;;  %7191 = vpow2.f32 %v3200_v47 }
 0x43a   :  { %v10559_v23 = vsel %vm13093_vm10, %v4703_v38, %v4699_v0  ;;  %v7180_v39 = vpop.eup %7179  ;;  %vm13109_vm10 = vcmask 720512  }
 0x43b   :  { %v3849_v9 = vpop.permute.xlu1 %3848  ;;  %v10566_v18 = vsel %vm13095_vm11, %v10559_v23, %v10422_v58  ;;  %4079 = vperm.xlu0 %6934, %v7176_v54   ;;  %v13097_v58 = vld [vmem:[#allocation313_spill] sm:$0xff]  ;;  %v7182_v0 = vpop.eup %7181  ;;  %7193 = vpow2.f32 %v3178_v31  ;;  %vm13110_vm11 = vcmask 786112  }
 0x43c   :  { %v4712_v17 = vrot.slane %v3849_v9, %v12999_v14  ;;  %4040 = vperm.xlu1 %6933, %v7174_v6   ;;  %v2812_v22 = vsub.f32 %v13097_v58, %v10488_v24  ;;  %v10583_v38 = vpop.permute.xlu0 %3893  ;;  %v4727_v6 = vrot.slane %v10481_v56, %v8965_v52  ;;  %v13100_v9 = vld [vmem:[#allocation302_spill] sm:$0xff]  ;;  %v13101_v56 = vld [vmem:[#allocation317_spill] sm:$0xff]  ;;  %v4737_v58 = vrot.slane %v10501_v8, %v8973_v63  ;;  %v13104_v8 = vld [vmem:[#allocation319_spill] sm:$0xff] }
 0x43e   :  { %v4713_v42 = vsel %vm1324_vm0, %v4712_v17, %v4708_v60  ;;  %v3204_v51 = vmul.f32 1.442695, %v2812_v22  ;;  %v7184_v1 = vpop.eup %7183  ;;  %v2803_v60 = vsub.f32 %v13100_v9, %v10249_v20  ;;  %v3182_v17 = vmul.f32 1.442695, %v2801_v19 }
 0x43f   :  { %v3855_v16 = vpop.permute.xlu1 %3854  ;;  %v4718_v53 = vsel %vm1331_vm1, %v4717_v30, %v4713_v42  ;;  %4085 = vperm.xlu0 %6934, %v7180_v39   ;;  %v7186_v7 = vpop.eup %7185  ;;  %v2816_v42 = vsub.f32 %v13101_v56, %v10488_v24  ;;  %v13102_v30 = vld [vmem:[#allocation304_spill] sm:$0xff]  ;;  %v2820_v9 = vsub.f32 %v13107_v55, %v10488_v24 }
 0x440   :  { %v4722_v10 = vrot.slane %v3855_v16, %v8954_v3  ;;  %4046 = vperm.xlu1 %6933, %v7178_v26   ;;  %v10594_v54 = vpop.permute.xlu0 %3899  ;;  %v3208_v26 = vmul.f32 1.442695, %v2814_v25  ;;  %7195 = vpow2.f32 %v3204_v51  ;;  %v2805_v16 = vsub.f32 %v13102_v30, %v10488_v24  ;;  %v13108_v56 = vld [vmem:[#allocation308_spill] sm:$0xff] }
 0x441   :  { %v7188_v47 = vpop.eup %7187  ;;  %7197 = vpow2.f32 %v3182_v17  ;;  %v2807_v25 = vsub.f32 %v13105_v59, %v10488_v24  ;;  %v4757_v17 = vrot.slane %v10535_v13, %v8998_v48  ;;  %v13111_v13 = vld [vmem:[#allocation323_spill] sm:$0xff]  ;;  %v13115_v55 = vld [vmem:[#allocation312_spill] sm:$0xff] }
 0x442   :  { %v4723_v34 = vsel %vm1338_vm2, %v4722_v10, %v4718_v53  ;;  %v3186_v10 = vmul.f32 1.442695, %v2803_v60  ;;  %v7190_v31 = vpop.eup %7189  ;;  %v2818_v53 = vsub.f32 %v13104_v8, %v10488_v24  ;;  %7199 = vpow2.f32 %v3208_v26  ;;  %v13112_v8 = vld [vmem:[#allocation310_spill] sm:$0xff] }
 0x443   :  { %v3861_v57 = vpop.permute.xlu1 %3860  ;;  %v4728_v33 = vsel %vm1345_vm3, %v4727_v6, %v4723_v34  ;;  %4091 = vperm.xlu0 %6934, %v7184_v1   ;;  %v3212_v34 = vmul.f32 1.442695, %v2816_v42  ;;  %v3190_v51 = vmul.f32 1.442695, %v2805_v16  ;;  %v2809_v42 = vsub.f32 %v13108_v56, %v10488_v24  ;;  %v7462_v56 = vld [vmem:[#allocation2 + $0x390] sm:$0xff] }
 0x444   :  { %v4732_v27 = vrot.slane %v3861_v57, %v8959_v12  ;;  %4052 = vperm.xlu1 %6933, %v7182_v0   ;;  %v10605_v39 = vpop.permute.xlu0 %3905  ;;  %v7192_v0 = vpop.eup %7191  ;;  %7201 = vpow2.f32 %v3186_v10  ;;  %v3216_v60 = vmul.f32 1.442695, %v2818_v53  ;;  %v3194_v26 = vmul.f32 1.442695, %v2807_v25 }
 0x445   :  { %v7194_v1 = vpop.eup %7193  ;;  %7203 = vpow2.f32 %v3212_v34  ;;  %v2822_v30 = vsub.f32 %v13111_v13, %v10488_v24  ;;  %v3220_v16 = vmul.f32 1.442695, %v2820_v9  ;;  %v4767_v10 = vrot.slane %v10552_v4, %v9008_v21  ;;  %v13114_v4 = vld [vmem:[#allocation325_spill] sm:$0xff] }
 0x446   :  { %v4733_v43 = vsel %vm1352_vm4, %v4732_v27, %v4728_v33  ;;  %7205 = vpow2.f32 %v3190_v51  ;;  %v2811_v53 = vsub.f32 %v13112_v8, %v10488_v24  ;;  %v3198_v34 = vmul.f32 1.442695, %v2809_v42 }
 0x447   :  { %v3867_v22 = vpop.permute.xlu1 %3866  ;;  %v4738_v11 = vsel %vm13103_vm8, %v4737_v58, %v4733_v43  ;;  %4097 = vperm.xlu0 %6934, %v7188_v47   ;;  %7207 = vpow2.f32 %v3216_v60  ;;  %vm13113_vm8 = vcmask 851712   ;;  %v2824_v59 = vsub.f32 %v13114_v4, %v10488_v24  ;;  %v13123_v4 = vld [vmem:[#allocation329_spill] sm:$0xff] }
 0x448   :  { %v4742_v20 = vrot.slane %v3867_v22, %v8968_v40  ;;  %4058 = vperm.xlu1 %6933, %v7186_v7   ;;  %v10616_v6 = vpop.permute.xlu0 %3911  ;;  %7209 = vpow2.f32 %v3194_v26  ;;  %v3224_v25 = vmul.f32 1.442695, %v2822_v30  ;;  %v4777_v51 = vrot.slane %v10573_v5, %v9030_v37  ;;  %v13117_v26 = vld [vmem:[#allocation327_spill] sm:$0xff] }
 0x449   :  { %7211 = vpow2.f32 %v3220_v16  ;;  %v2813_v9 = vsub.f32 %v13115_v55, %v10488_v24  ;;  %v3202_v60 = vmul.f32 1.442695, %v2811_v53  ;;  %v4787_v30 = vrot.slane %v10583_v38, %v8940_v41  ;;  %v13121_v53 = vld [vmem:[#allocation97_spill] sm:$0xff]  ;;  %v13124_v55 = vld [vmem:[#allocation316_spill] sm:$0xff] }
 0x44a   :  { %v4743_v19 = vsel %vm1366_vm6, %v4742_v20, %v4738_v11  ;;  %v7196_v7 = vpop.eup %7195  ;;  %7213 = vpow2.f32 %v3198_v34 }
 0x44b   :  { %v3873_v32 = vpop.permute.xlu1 %3872  ;;  %v4748_v57 = vsel %vm1373_vm7, %v4747_v29, %v4743_v19  ;;  %4103 = vperm.xlu0 %6934, %v7192_v0   ;;  %v7198_v47 = vpop.eup %7197  ;;  %7215 = vpow2.f32 %v3224_v25 }
 0x44c   :  { %v4752_v2 = vrot.slane %v3873_v32, %v8978_v45  ;;  %4064 = vperm.xlu1 %6933, %v7190_v31   ;;  %v7200_v31 = vpop.eup %7199  ;;  %7217 = vpow2.f32 %v3202_v60 }
 0x44d   :  { %v10627_v58 = vpop.permute.xlu0 %3917 }
 0x44e   :  { %v4753_v27 = vsel %vm13106_vm14, %v4752_v2, %v4748_v57  ;;  %v7202_v0 = vpop.eup %7201  ;;  %vm13116_vm14 = vcmask 1048512  }
 0x44f   :  { %v3879_v33 = vpop.permute.xlu1 %3878  ;;  %v4758_v22 = vsel %vm13109_vm10, %v4757_v17, %v4753_v27  ;;  %4109 = vperm.xlu0 %6934, %v7196_v7   ;;  %v7461_v7 = vld [vmem:[#allocation2 + $0x398] sm:$0xff]  ;;  %vm13118_vm10 = vcmask 1041409  }
 0x450   :  { %v4762_v43 = vrot.slane %v3879_v33, %v8991_v46  ;;  %4070 = vperm.xlu1 %6933, %v7194_v1   ;;  %v7204_v1 = vpop.eup %7203  ;;  %v6772_v5 = vpack.c.bf16 %v7461_v7, %v7462_v56  ;;  %v13125_v7 = vld [vmem:[#allocation98_spill] sm:$0xff]  ;;  %v13126_v56 = vld [vmem:[#allocation99_spill] sm:$0xff] }
 0x451   :  { %v10638_v29 = vpop.permute.xlu0 %3923  ;;  %v7206_v42 = vpop.eup %7205 }
 0x452   :  { %v4763_v20 = vsel %vm13110_vm11, %v4762_v43, %v4758_v22  ;;  %v2826_v22 = vsub.f32 %v13117_v26, %v10488_v24  ;;  %v7466_v26 = vld [vmem:[#allocation2 + $0x3b0] sm:$0xff]  ;;  %vm13135_vm11 = vcmask 458112  }
 0x453   :  { %v3885_v11 = vpop.permute.xlu1 %3884  ;;  %v4768_v32 = vsel %vm13113_vm8, %v4767_v10, %v4763_v20  ;;  %4115 = vperm.xlu0 %6934, %v7200_v31   ;;  %v3228_v20 = vmul.f32 1.442695, %v2824_v59  ;;  %v7208_v10 = vpop.eup %7207  ;;  %v3206_v31 = vmul.f32 1.442695, %v2813_v9  ;;  %v2828_v59 = vsub.f32 %v13123_v4, %v10488_v24 }
 0x454   :  { %v4772_v19 = vrot.slane %v3885_v11, %v9005_v15  ;;  %4076 = vperm.xlu1 %6933, %v7198_v47   ;;  %v13119_v11 = vld [vmem:[#allocation314_spill] sm:$0xff]  ;;  %v3232_v25 = vmul.f32 1.442695, %v2826_v22  ;;  %v2817_v9 = vsub.f32 %v13124_v55, %v10488_v24  ;;  %vm13144_vm8 = vcmask 654912  }
 0x455   :  { %v10649_v17 = vpop.permute.xlu0 %3929  ;;  %7219 = vpow2.f32 %v3228_v20 }
 0x456   :  { %v4773_v2 = vsel %vm1408_vm12, %v4772_v19, %v4768_v32  ;;  %v2815_v19 = vsub.f32 %v13119_v11, %v10488_v24  ;;  %v7463_v32 = vld [vmem:[#allocation2 + $0x3a8] sm:$0xff]  ;;  %7221 = vpow2.f32 %v3206_v31 }
 0x457   :  { %v3891_v57 = vpop.permute.xlu1 %3890  ;;  %v4778_v33 = vsel %vm1415_vm13, %v4777_v51, %v4773_v2  ;;  %4121 = vperm.xlu0 %6934, %v7204_v1   ;;  %v7464_v2 = vld [vmem:[#allocation2 + $0x3a0] sm:$0xff]  ;;  %v4796_v51 = vrot.slane %v10594_v54, %v8949_v62  ;;  %7223 = vpow2.f32 %v3232_v25 }
 0x458   :  { %v4782_v27 = vrot.slane %v3891_v57, %v9040_v36  ;;  %4082 = vperm.xlu1 %6933, %v7202_v0   ;;  %v6776_v0 = vpack.c.bf16 %v7463_v32, %v7464_v2  ;;  %v3210_v60 = vmul.f32 1.442695, %v2815_v19  ;;  %v13130_v2 = vld [vmem:[#allocation100_spill] sm:$0xff]  ;;  %v7468_v25 = vld [vmem:[#allocation2 + $0x3c0] sm:$0xff] }
 0x459   :  { %v10665_v8 = vpop.permute.xlu0 %3935 }
 0x45a   :  { %v4783_v43 = vsel %vm13116_vm14, %v4782_v27, %v4778_v33  ;;  %7225 = vpow2.f32 %v3210_v60  ;;  %vm13147_vm14 = vcmask 720512  }
 0x45b   :  { %v10657_v47 = vsel %vm13118_vm10, %v4783_v43, %v10415_v50  ;;  %5889 = vmatprep.mubr.f32.mxu1 %v4783_v43  ;;  %v3897_v13 = vpop.permute.xlu1 %3896  ;;  %v13120_v50 = vld [vmem:[#allocation96_spill] sm:$0xff]  ;;  %4127 = vperm.xlu0 %6934, %v7208_v10   ;;  %v4806_v10 = vrot.slane %v10605_v39, %v8965_v52  ;;  %v2658_v39 = vsub.s32 5, %v12814_v61  ;;  %vm13151_vm10 = vcmask 786112  }
 0x45c   :  { %v4791_v16 = vrot.slane %v3897_v13, %v12999_v14  ;;  %4088 = vperm.xlu1 %6933, %v7206_v42   ;;  %5890 = vmatmul.mubr.f32.vlgmr.msra.gmra.mrb[0].mxu1 %v10559_v23  ;;  %v13122_v34 = vpack.c.bf16 %v13120_v50, %v13121_v53  ;;  %v7210_v23 = vpop.eup %7209  ;;  %v7465_v42 = vld [vmem:[#allocation2 + $0x3b8] sm:$0xff]  ;;  %v13128_v13 = vld [vmem:[#allocation331_spill] sm:$0xff] }
 0x45d   :  { %v7212_v1 = vpop.eup %7211  ;;  %v10678_v33 = vpop.permute.xlu0 %3941  ;;  %v6780_v22 = vpack.c.bf16 %v7465_v42, %v7466_v26  ;;  %v13129_v50 = vld [vmem:[#allocation318_spill] sm:$0xff] }
 0x45e   :  { %6771 = vmatpush3.bf16.msra.mxu1 %v13122_v34  ;;  %v4792_v38 = vsel %vm1324_vm0, %v4791_v16, %v4787_v30  ;;  %v7214_v20 = vpop.eup %7213  ;;  %v2830_v30 = vsub.f32 %v13128_v13, %v10488_v24  ;;  %v3236_v16 = vmul.f32 1.442695, %v2828_v59  ;;  %v2819_v53 = vsub.f32 %v13129_v50, %v10488_v24  ;;  %v7467_v59 = vld [vmem:[#allocation2 + $0x3c8] sm:$0xff] }
 0x45f   :  { %6773 = vmatprep.subr.bf16.mxu1 %v6772_v5  ;;  %v3903_v57 = vpop.permute.xlu1 %3902  ;;  %v4797_v43 = vsel %vm1331_vm1, %v4796_v51, %v4792_v38  ;;  %v13127_v5 = vpack.c.bf16 %v13125_v7, %v13126_v56  ;;  %4133 = vperm.xlu0 %6934, %v7212_v1   ;;  %v7216_v31 = vpop.eup %7215  ;;  %v3214_v34 = vmul.f32 1.442695, %v2817_v9  ;;  %v6784_v51 = vpack.c.bf16 %v7467_v59, %v7468_v25  ;;  %v13134_v56 = vld [vmem:[#allocation320_spill] sm:$0xff] }
 0x460   :  { %v4801_v27 = vrot.slane %v3903_v57, %v8954_v3  ;;  %4094 = vperm.xlu1 %6933, %v7210_v23   ;;  %v7218_v57 = vpop.eup %7217  ;;  %v3240_v55 = vmul.f32 1.442695, %v2830_v30  ;;  %7227 = vpow2.f32 %v3236_v16  ;;  %v4816_v9 = vrot.slane %v10616_v6, %v8973_v63  ;;  %v7469_v16 = vld [vmem:[#allocation2 + $0x3d8] sm:$0xff] }
 0x461   :  { %v10692_v38 = vpop.permute.xlu0 %3947  ;;  %v7220_v7 = vpop.eup %7219  ;;  %7229 = vpow2.f32 %v3214_v34  ;;  %v10714_v6 = vrot.slane %v9941_v35, %v2658_v39  ;;  %v4826_v34 = vrot.slane %v10627_v58, %v8988_v28 }
 0x462   :  { %6775 = vmatpush3.bf16.msra.mxu1 %v13127_v5  ;;  %v4802_v54 = vsel %vm1338_vm2, %v4801_v27, %v4797_v43  ;;  %v13133_v27 = vld [vmem:[#allocation333_spill] sm:$0xff]  ;;  %v2821_v5 = vsub.f32 %v13134_v56, %v10488_v24  ;;  %7231 = vpow2.f32 %v3240_v55  ;;  %v7472_v55 = vld [vmem:[#allocation2 + $0x3e0] sm:$0xff] }
 0x463   :  { %6777 = vmatprep.subr.bf16.mxu1 %v6776_v0  ;;  %v3909_v11 = vpop.permute.xlu1 %3908  ;;  %v4807_v32 = vsel %vm1345_vm3, %v4806_v10, %v4802_v54  ;;  %v13131_v0 = vld [vmem:[#allocation101_spill] sm:$0xff]  ;;  %4139 = vperm.xlu0 %6934, %v7216_v31   ;;  %v2832_v1 = vsub.f32 %v13133_v27, %v10488_v24  ;;  %v3218_v54 = vmul.f32 1.442695, %v2819_v53  ;;  %v13139_v31 = vld [vmem:[#allocation335_spill] sm:$0xff] }
 0x464   :  { %v4811_v19 = vrot.slane %v3909_v11, %v8959_v12  ;;  %4100 = vperm.xlu1 %6933, %v7214_v20   ;;  %v13132_v23 = vpack.c.bf16 %v13130_v2, %v13131_v0  ;;  %v13137_v20 = vld [vmem:[#allocation103_spill] sm:$0xff]  ;;  %v7470_v10 = vld [vmem:[#allocation2 + $0x3d0] sm:$0xff]  ;;  %v2834_v50 = vsub.f32 %v13139_v31, %v10488_v24 }
 0x465   :  { %v10707_v42 = vpop.permute.xlu0 %3953  ;;  %v6788_v11 = vpack.c.bf16 %v7469_v16, %v7470_v10  ;;  %v3244_v53 = vmul.f32 1.442695, %v2832_v1  ;;  %7233 = vpow2.f32 %v3218_v54  ;;  %v7471_v1 = vld [vmem:[#allocation2 + $0x3e8] sm:$0xff] }
 0x466   :  { %6779 = vmatpush3.bf16.msra.mxu1 %v13132_v23  ;;  %v4812_v4 = vsel %vm1352_vm4, %v4811_v19, %v4807_v32  ;;  %v7222_v19 = vpop.eup %7221  ;;  %v13140_v23 = vld [vmem:[#allocation322_spill] sm:$0xff]  ;;  %v3248_v56 = vmul.f32 1.442695, %v2834_v50 }
 0x467   :  { %6781 = vmatprep.subr.bf16.mxu1 %v6780_v22  ;;  %v3915_v60 = vpop.permute.xlu1 %3914  ;;  %v4817_v26 = vsel %vm13135_vm11, %v4816_v9, %v4812_v4  ;;  %v13136_v22 = vld [vmem:[#allocation102_spill] sm:$0xff]  ;;  %4145 = vperm.xlu0 %6934, %v7220_v7   ;;  %v7224_v0 = vpop.eup %7223  ;;  %v2823_v39 = vsub.f32 %v13140_v23, %v10488_v24  ;;  %v3222_v4 = vmul.f32 1.442695, %v2821_v5  ;;  %v6792_v9 = vpack.c.bf16 %v7471_v1, %v7472_v55 }
 0x468   :  { %v4821_v43 = vrot.slane %v3915_v60, %v8968_v40  ;;  %4106 = vperm.xlu1 %6933, %v7218_v57   ;;  %v13138_v13 = vpack.c.bf16 %v13136_v22, %v13137_v20  ;;  %v13142_v57 = vld [vmem:[#allocation105_spill] sm:$0xff]  ;;  %v7226_v60 = vpop.eup %7225  ;;  %7235 = vpow2.f32 %v3244_v53  ;;  %v4836_v5 = vrot.slane %v10638_v29, %v8998_v48  ;;  %v13146_v20 = vld [vmem:[#allocation324_spill] sm:$0xff]  ;;  %v7473_v50 = vld [vmem:[#allocation2 + $0x3f8] sm:$0xff] }
 0x469   :  { %v10724_v59 = vpop.permute.xlu0 %3959  ;;  %7237 = vpow2.f32 %v3222_v4  ;;  %v7474_v53 = vld [vmem:[#allocation2 + $0x3f0] sm:$0xff]  ;;  %vm13154_vm11 = vcmask 851712  }
 0x46a   :  { %6783 = vmatpush3.bf16.msra.mxu1 %v13138_v13  ;;  %v4822_v30 = vsel %vm1366_vm6, %v4821_v43, %v4817_v26  ;;  %v13145_v43 = vld [vmem:[#allocation337_spill] sm:$0xff]  ;;  %v7228_v22 = vpop.eup %7227  ;;  %v2825_v13 = vsub.f32 %v13146_v20, %v10488_v24  ;;  %7239 = vpow2.f32 %v3248_v56 }
 0x46b   :  { %6785 = vmatprep.subr.bf16.mxu1 %v6784_v51  ;;  %v3921_v32 = vpop.permute.xlu1 %3920  ;;  %v4827_v25 = vsel %vm1373_vm7, %v4826_v34, %v4822_v30  ;;  %v13141_v51 = vld [vmem:[#allocation104_spill] sm:$0xff]  ;;  %4151 = vperm.xlu0 %6934, %v7224_v0   ;;  %v2836_v7 = vsub.f32 %v13145_v43, %v10714_v6  ;;  %v3226_v30 = vmul.f32 1.442695, %v2823_v39  ;;  %v6796_v34 = vpack.c.bf16 %v7473_v50, %v7474_v53  ;;  %v13158_v56 = vld [vmem:[#allocation341_spill] sm:$0xff]  ;;  %v13161_v50 = vld [vmem:[#allocation111_spill] sm:$0xff] }
 0x46c   :  { %v4831_v2 = vrot.slane %v3921_v32, %v8978_v45  ;;  %4112 = vperm.xlu1 %6933, %v7222_v19   ;;  %v13143_v27 = vpack.c.bf16 %v13141_v51, %v13142_v57  ;;  %v13149_v19 = vld [vmem:[#allocation107_spill] sm:$0xff]  ;;  %v7230_v32 = vpop.eup %7229  ;;  %v4846_v39 = vrot.slane %v10649_v17, %v9008_v21  ;;  %v13153_v57 = vld [vmem:[#allocation326_spill] sm:$0xff] }
 0x46d   :  { %v10738_v16 = vpop.permute.xlu0 %3965  ;;  %v3252_v23 = vmul.f32 1.442695, %v2836_v7  ;;  %v7232_v51 = vpop.eup %7231  ;;  %7241 = vpow2.f32 %v3226_v30  ;;  %v13159_v30 = vld [vmem:[#allocation328_spill] sm:$0xff] }
 0x46e   :  { %6787 = vmatpush3.bf16.msra.mxu1 %v13143_v27  ;;  %v4832_v58 = vsel %vm13144_vm8, %v4831_v2, %v4827_v25  ;;  %v13152_v2 = vld [vmem:[#allocation339_spill] sm:$0xff]  ;;  %v2827_v27 = vsub.f32 %v13153_v57, %v10488_v24  ;;  %vm13163_vm8 = vcmask 1048512   ;;  %v13166_v57 = vld [vmem:[#allocation330_spill] sm:$0xff] }
 0x46f   :  { %6789 = vmatprep.subr.bf16.mxu1 %v6788_v11  ;;  %v3927_v54 = vpop.permute.xlu1 %3926  ;;  %v4837_v10 = vsel %vm13147_vm14, %v4836_v5, %v4832_v58  ;;  %v13148_v11 = vld [vmem:[#allocation106_spill] sm:$0xff]  ;;  %4157 = vperm.xlu0 %6934, %v7228_v22   ;;  %v2838_v0 = vsub.f32 %v13152_v2, %v10714_v6  ;;  %v3230_v58 = vmul.f32 1.442695, %v2825_v13  ;;  %v7234_v7 = vpop.eup %7233  ;;  %v2840_v5 = vsub.f32 %v13158_v56, %v10714_v6 }
 0x470   :  { %v4841_v26 = vrot.slane %v3927_v54, %v8991_v46  ;;  %4118 = vperm.xlu1 %6933, %v7226_v60   ;;  %v13150_v31 = vpack.c.bf16 %v13148_v11, %v13149_v19  ;;  %v13156_v60 = vld [vmem:[#allocation109_spill] sm:$0xff]  ;;  %7243 = vpow2.f32 %v3252_v23  ;;  %v3234_v11 = vmul.f32 1.442695, %v2827_v27 }
 0x471   :  { %v10752_v1 = vpop.permute.xlu0 %3971  ;;  %v3256_v54 = vmul.f32 1.442695, %v2838_v0  ;;  %7245 = vpow2.f32 %v3230_v58  ;;  %v3260_v0 = vmul.f32 1.442695, %v2840_v5  ;;  %vm13165_vm14 = vcmask 1042434  }
 0x472   :  { %6791 = vmatpush3.bf16.msra.mxu1 %v13150_v31  ;;  %v4842_v29 = vsel %vm13151_vm10, %v4841_v26, %v4837_v10  ;;  %v4856_v26 = vrot.slane %v10665_v8, %v9030_v37  ;;  %v7236_v13 = vpop.eup %7235  ;;  %v2829_v10 = vsub.f32 %v13159_v30, %v10488_v24  ;;  %v2831_v27 = vsub.f32 %v13166_v57, %v10488_v24 }
 0x473   :  { %6793 = vmatprep.subr.bf16.mxu1 %v6792_v9  ;;  %v3933_v4 = vpop.permute.xlu1 %3932  ;;  %v4847_v55 = vsel %vm13154_vm11, %v4846_v39, %v4842_v29  ;;  %v13155_v9 = vld [vmem:[#allocation108_spill] sm:$0xff]  ;;  %4163 = vperm.xlu0 %6934, %v7232_v51   ;;  %v13160_v29 = vld [vmem:[#allocation110_spill] sm:$0xff]  ;;  %7247 = vpow2.f32 %v3256_v54  ;;  %vm13172_vm10 = vcmask 458112   ;;  %vm13175_vm11 = vcmask 654912  }
 0x474   :  { %v4851_v25 = vrot.slane %v3933_v4, %v9005_v15  ;;  %4124 = vperm.xlu1 %6933, %v7230_v32   ;;  %v13157_v43 = vpack.c.bf16 %v13155_v9, %v13156_v60  ;;  %v13162_v53 = vpack.c.bf16 %v13160_v29, %v13161_v50  ;;  %v13164_v32 = vld [vmem:[#allocation343_spill] sm:$0xff]  ;;  %v4866_v4 = vrot.slane %v10678_v33, %v8940_v41  ;;  %v13168_v54 = vld [vmem:[#allocation332_spill] sm:$0xff] }
 0x475   :  { %v10766_v19 = vpop.permute.xlu0 %3977  ;;  %v2842_v2 = vsub.f32 %v13164_v32, %v10714_v6  ;;  %v3238_v58 = vmul.f32 1.442695, %v2829_v10  ;;  %7249 = vpow2.f32 %v3234_v11  ;;  %v4875_v33 = vrot.slane %v10692_v38, %v8949_v62  ;;  %v7475_v10 = vld [vmem:[#allocation2 + $0x488] sm:$0xff]  ;;  %v7476_v11 = vld [vmem:[#allocation2 + $0x480] sm:$0xff] }
 0x476   :  { %6795 = vmatpush3.bf16.msra.mxu1 %v13157_v43  ;;  %v4852_v17 = vsel %vm1408_vm12, %v4851_v25, %v4847_v55  ;;  %7251 = vpow2.f32 %v3260_v0  ;;  %v6800_v38 = vpack.c.bf16 %v7475_v10, %v7476_v11  ;;  %v13169_v29 = vld [vmem:[#allocation347_spill] sm:$0xff] }
 0x477   :  { %6797 = vmatprep.subr.bf16.mxu1 %v6796_v34  ;;  %v3939_v22 = vpop.permute.xlu1 %3938  ;;  %v4857_v31 = vsel %vm1415_vm13, %v4856_v26, %v4852_v17  ;;  %4169 = vperm.xlu0 %6934, %v7236_v13   ;;  %v7238_v34 = vpop.eup %7237  ;;  %v3264_v17 = vmul.f32 1.442695, %v2842_v2  ;;  %v2833_v26 = vsub.f32 %v13168_v54, %v10488_v24  ;;  %7253 = vpow2.f32 %v3238_v58 }
 0x478   :  { %v4861_v20 = vrot.slane %v3939_v22, %v9040_v36  ;;  %4130 = vperm.xlu1 %6933, %v7234_v7   ;;  %v7240_v51 = vpop.eup %7239  ;;  %v3242_v22 = vmul.f32 1.442695, %v2831_v27  ;;  %v2846_v50 = vsub.f32 %v13169_v29, %v10714_v6  ;;  %6801 = vmatprep.subr.bf16.mxu0 %v6800_v38  ;;  %v13174_v38 = vld [vmem:[#allocation338_spill] sm:$0xff] }
 0x479   :  { %v10787_v55 = vpop.permute.xlu0 %3983  ;;  %v7242_v60 = vpop.eup %7241  ;;  %7255 = vpow2.f32 %v3264_v17 }
 0x47a   :  { %6799 = vmatpush3.bf16.msra.mxu1 %v13162_v53  ;;  %v10773_v8 = vsel %vm13163_vm8, %v4861_v20, %v4857_v31  ;;  %v7244_v5 = vpop.eup %7243  ;;  %7257 = vpow2.f32 %v3242_v22  ;;  %vm13178_vm8 = vcmask 720512  }
 0x47b   :  { %v3945_v23 = vpop.permute.xlu1 %3944  ;;  %v10780_v39 = vsel %vm13165_vm14, %v10773_v8, %v10566_v18  ;;  %4175 = vperm.xlu0 %6934, %v7240_v51   ;;  %v13167_v18 = vld [vmem:[#allocation345_spill] sm:$0xff]  ;;  %v7246_v31 = vpop.eup %7245  ;;  %vm13179_vm14 = vcmask 786112  }
 0x47c   :  { %v4870_v25 = vrot.slane %v3945_v23, %v12999_v14  ;;  %4136 = vperm.xlu1 %6933, %v7238_v34   ;;  %v2844_v43 = vsub.f32 %v13167_v18, %v10714_v6  ;;  %v4885_v34 = vrot.slane %v10707_v42, %v8965_v52  ;;  %v2835_v23 = vsub.f32 %v12746_v44, %v10488_v24  ;;  %v13170_v42 = vld [vmem:[#allocation349_spill] sm:$0xff] }
 0x47d   :  { %v10797_v20 = vpop.permute.xlu0 %3989  ;;  %v7248_v0 = vpop.eup %7247  ;;  %v2848_v58 = vsub.f32 %v13170_v42, %v10714_v6 }
 0x47e   :  { %v4871_v9 = vsel %vm1324_vm0, %v4870_v25, %v4866_v4  ;;  %v3268_v53 = vmul.f32 1.442695, %v2844_v43  ;;  %v3246_v4 = vmul.f32 1.442695, %v2833_v26  ;;  %v13171_v43 = vld [vmem:[#allocation336_spill] sm:$0xff] }
 0x47f   :  { %v3951_v7 = vpop.permute.xlu1 %3950  ;;  %v4876_v13 = vsel %vm1331_vm1, %v4875_v33, %v4871_v9  ;;  %4181 = vperm.xlu0 %6934, %v7244_v5   ;;  %v7250_v27 = vpop.eup %7249  ;;  %v3272_v9 = vmul.f32 1.442695, %v2846_v50  ;;  %v2837_v17 = vsub.f32 %v13171_v43, %v10714_v6  ;;  %v3250_v33 = vmul.f32 1.442695, %v2835_v23 }
 0x480   :  { %v4880_v56 = vrot.slane %v3951_v7, %v8954_v3  ;;  %4142 = vperm.xlu1 %6933, %v7242_v60   ;;  %7259 = vpow2.f32 %v3268_v53  ;;  %v4895_v60 = vrot.slane %v10724_v59, %v8973_v63  ;;  %v7252_v24 = vpop.eup %7251  ;;  %v13173_v59 = vld [vmem:[#allocation351_spill] sm:$0xff]  ;;  %v3276_v22 = vmul.f32 1.442695, %v2848_v58 }
 0x481   :  { %v10808_v25 = vpop.permute.xlu0 %3995  ;;  %7261 = vpow2.f32 %v3246_v4  ;;  %v7254_v54 = vpop.eup %7253  ;;  %v2850_v26 = vsub.f32 %v13173_v59, %v10714_v6  ;;  %v3254_v29 = vmul.f32 1.442695, %v2837_v17  ;;  %v4915_v23 = vrot.slane %v10752_v1, %v8998_v48  ;;  %v13180_v1 = vld [vmem:[#allocation355_spill] sm:$0xff] }
 0x482   :  { %v4881_v30 = vsel %vm1338_vm2, %v4880_v56, %v4876_v13  ;;  %7263 = vpow2.f32 %v3272_v9  ;;  %v4905_v13 = vrot.slane %v10738_v16, %v8988_v28  ;;  %v13176_v16 = vld [vmem:[#allocation353_spill] sm:$0xff]  ;;  %v4925_v17 = vrot.slane %v10766_v19, %v9008_v21 }
 0x483   :  { %v3957_v32 = vpop.permute.xlu1 %3956  ;;  %v4886_v51 = vsel %vm1345_vm3, %v4885_v34, %v4881_v30  ;;  %4187 = vperm.xlu0 %6934, %v7248_v0   ;;  %v7256_v11 = vpop.eup %7255  ;;  %7265 = vpow2.f32 %v3250_v33  ;;  %v3280_v0 = vmul.f32 1.442695, %v2850_v26  ;;  %v13183_v19 = vld [vmem:[#allocation357_spill] sm:$0xff] }
 0x484   :  { %v4890_v2 = vrot.slane %v3957_v32, %v8959_v12  ;;  %4148 = vperm.xlu1 %6933, %v7246_v31   ;;  %v2839_v31 = vsub.f32 %v13174_v38, %v10714_v6  ;;  %v7258_v32 = vpop.eup %7257  ;;  %7267 = vpow2.f32 %v3276_v22 }
 0x485   :  { %7269 = vpow2.f32 %v3254_v29 }
 0x486   :  { %v4891_v57 = vsel %vm1352_vm4, %v4890_v2, %v4886_v51  ;;  %v10819_v7 = vpop.permute.xlu0 %4001  ;;  %v2852_v2 = vsub.f32 %v13176_v16, %v10714_v6  ;;  %v3258_v58 = vmul.f32 1.442695, %v2839_v31  ;;  %7271 = vpow2.f32 %v3280_v0 }
 0x487   :  { %v3963_v18 = vpop.permute.xlu1 %3962  ;;  %v4896_v56 = vsel %vm13172_vm10, %v4895_v60, %v4891_v57  ;;  %4193 = vperm.xlu0 %6934, %v7252_v24   ;;  %v2854_v24 = vsub.f32 %v13180_v1, %v10714_v6  ;;  %vm13182_vm10 = vcmask 851712   ;;  %v4935_v31 = vrot.slane %v10787_v55, %v9030_v37 }
 0x488   :  { %v4900_v44 = vrot.slane %v3963_v18, %v8968_v40  ;;  %4154 = vperm.xlu1 %6933, %v7250_v27   ;;  %v13177_v27 = vld [vmem:[#allocation340_spill] sm:$0xff]  ;;  %v3284_v43 = vmul.f32 1.442695, %v2852_v2  ;;  %7273 = vpow2.f32 %v3258_v58  ;;  %v4945_v1 = vrot.slane %v10797_v20, %v8940_v41 }
 0x489   :  { %v2841_v42 = vsub.f32 %v13177_v27, %v10714_v6  ;;  %v3288_v38 = vmul.f32 1.442695, %v2854_v24 }
 0x48a   :  { %v4901_v5 = vsel %vm1366_vm6, %v4900_v44, %v4896_v56  ;;  %v10830_v50 = vpop.permute.xlu0 %4007  ;;  %v7260_v57 = vpop.eup %7259  ;;  %7275 = vpow2.f32 %v3284_v43 }
 0x48b   :  { %v3969_v30 = vpop.permute.xlu1 %3968  ;;  %v4906_v53 = vsel %vm1373_vm7, %v4905_v13, %v4901_v5  ;;  %4199 = vperm.xlu0 %6934, %v7256_v11   ;;  %v7262_v44 = vpop.eup %7261  ;;  %v3262_v26 = vmul.f32 1.442695, %v2841_v42  ;;  %v2856_v11 = vsub.f32 %v13183_v19, %v10714_v6  ;;  %v13186_v42 = vld [vmem:[#allocation359_spill] sm:$0xff] }
 0x48c   :  { %v4910_v10 = vrot.slane %v3969_v30, %v8978_v45  ;;  %4160 = vperm.xlu1 %6933, %v7254_v54   ;;  %v7264_v5 = vpop.eup %7263  ;;  %v13181_v54 = vld [vmem:[#allocation342_spill] sm:$0xff]  ;;  %v2858_v58 = vsub.f32 %v13186_v42, %v10714_v6 }
 0x48d   :  { %v2843_v59 = vsub.f32 %v13181_v54, %v10714_v6  ;;  %7277 = vpow2.f32 %v3262_v26  ;;  %v13190_v54 = vld [vmem:[#allocation113_spill] sm:$0xff]  ;;  %v7479_v26 = vld [vmem:[#allocation2 + $0x4a8] sm:$0xff] }
 0x48e   :  { %v4911_v34 = vsel %vm13175_vm11, %v4910_v10, %v4906_v53  ;;  %v10841_v9 = vpop.permute.xlu0 %4013  ;;  %v7266_v10 = vpop.eup %7265  ;;  %vm13185_vm11 = vcmask 1048512   ;;  %7279 = vpow2.f32 %v3288_v38  ;;  %v4954_v38 = vrot.slane %v10808_v25, %v8949_v62 }
 0x48f   :  { %v3975_v4 = vpop.permute.xlu1 %3974  ;;  %v4916_v60 = vsel %vm13178_vm8, %v4915_v23, %v4911_v34  ;;  %4205 = vperm.xlu0 %6934, %v7260_v57   ;;  %v7268_v34 = vpop.eup %7267  ;;  %v3266_v2 = vmul.f32 1.442695, %v2843_v59  ;;  %v7478_v57 = vld [vmem:[#allocation2 + $0x490] sm:$0xff]  ;;  %vm13187_vm8 = vcmask 1042434  }
 0x490   :  { %v4920_v51 = vrot.slane %v3975_v4, %v8991_v46  ;;  %4166 = vperm.xlu1 %6933, %v7258_v32   ;;  %v13184_v32 = vld [vmem:[#allocation344_spill] sm:$0xff]  ;;  %v7270_v27 = vpop.eup %7269 }
 0x491   :  { %v2845_v16 = vsub.f32 %v13184_v32, %v10714_v6  ;;  %v7272_v43 = vpop.eup %7271  ;;  %7281 = vpow2.f32 %v3266_v2 }
 0x492   :  { %v4921_v18 = vsel %vm13179_vm14, %v4920_v51, %v4916_v60  ;;  %v10852_v22 = vpop.permute.xlu0 %4019  ;;  %v7477_v51 = vld [vmem:[#allocation2 + $0x498] sm:$0xff]  ;;  %v3292_v60 = vmul.f32 1.442695, %v2856_v11  ;;  %v3296_v11 = vmul.f32 1.442695, %v2858_v58  ;;  %vm13203_vm14 = vcmask 458112  }
 0x493   :  { %v3981_v33 = vpop.permute.xlu1 %3980  ;;  %v4926_v13 = vsel %vm13182_vm10, %v4925_v17, %v4921_v18  ;;  %4211 = vperm.xlu0 %6934, %v7264_v5   ;;  %v6804_v55 = vpack.c.bf16 %v7477_v51, %v7478_v57  ;;  %v13188_v17 = vld [vmem:[#allocation346_spill] sm:$0xff]  ;;  %v13195_v51 = vld [vmem:[#allocation115_spill] sm:$0xff]  ;;  %vm13212_vm10 = vcmask 654912  }
 0x494   :  { %v4930_v56 = vrot.slane %v3981_v33, %v9005_v15  ;;  %4172 = vperm.xlu1 %6933, %v7262_v44   ;;  %v2847_v33 = vsub.f32 %v13188_v17, %v10714_v6  ;;  %7283 = vpow2.f32 %v3292_v60  ;;  %v13197_v60 = vld [vmem:[#allocation364_spill] sm:$0xff] }
 0x496   :  { %v4931_v30 = vsel %vm1408_vm12, %v4930_v56, %v4926_v13  ;;  %v10863_v0 = vpop.permute.xlu0 %4025  ;;  %v3270_v56 = vmul.f32 1.442695, %v2845_v16  ;;  %v7480_v13 = vld [vmem:[#allocation2 + $0x4a0] sm:$0xff]  ;;  %v3274_v16 = vmul.f32 1.442695, %v2847_v33 }
 0x497   :  { %v3987_v29 = vpop.permute.xlu1 %3986  ;;  %v4936_v23 = vsel %vm1415_vm13, %v4935_v31, %v4931_v30  ;;  %4217 = vperm.xlu0 %6934, %v7268_v34   ;;  %v6808_v30 = vpack.c.bf16 %v7479_v26, %v7480_v13  ;;  %v13193_v34 = vld [vmem:[#allocation348_spill] sm:$0xff]  ;;  %v13199_v26 = vld [vmem:[#allocation117_spill] sm:$0xff] }
 0x498   :  { %v4940_v53 = vrot.slane %v3987_v29, %v9040_v36  ;;  %4178 = vperm.xlu1 %6933, %v7266_v10   ;;  %v13192_v10 = vld [vmem:[#allocation361_spill] sm:$0xff]  ;;  %v2849_v32 = vsub.f32 %v13193_v34, %v10714_v6  ;;  %7285 = vpow2.f32 %v3270_v56  ;;  %v2851_v56 = vsub.f32 %v12756_v49, %v10714_v6 }
 0x499   :  { %v2860_v19 = vsub.f32 %v13192_v10, %v10714_v6  ;;  %7287 = vpow2.f32 %v3296_v11  ;;  %v7484_v10 = vld [vmem:[#allocation2 + $0x4c0] sm:$0xff] }
 0x49a   :  { %v4941_v4 = vsel %vm13185_vm11, %v4940_v53, %v4936_v23  ;;  %v10879_v5 = vpop.permute.xlu0 %4031  ;;  %7289 = vpow2.f32 %v3274_v16  ;;  %v13201_v11 = vld [vmem:[#allocation367_spill] sm:$0xff]  ;;  %v13202_v16 = vld [vmem:[#allocation352_spill] sm:$0xff]  ;;  %vm13215_vm11 = vcmask 720512  }
 0x49b   :  { %v10871_v18 = vsel %vm13187_vm8, %v4941_v4, %v10657_v47  ;;  %5961 = vmatprep.mubr.f32.mxu0 %v4941_v4  ;;  %v3993_v44 = vpop.permute.xlu1 %3992  ;;  %v13189_v47 = vld [vmem:[#allocation112_spill] sm:$0xff]  ;;  %4223 = vperm.xlu0 %6934, %v7272_v43   ;;  %v13194_v4 = vld [vmem:[#allocation114_spill] sm:$0xff]  ;;  %vm13219_vm8 = vcmask 786112  }
 0x49c   :  { %v4949_v24 = vrot.slane %v3993_v44, %v12999_v14  ;;  %4184 = vperm.xlu1 %6933, %v7270_v27   ;;  %5962 = vmatmul.mubr.f32.vlgmr.msra.gmra.mrb[2].mxu0 %v10773_v8  ;;  %v13191_v59 = vpack.c.bf16 %v13189_v47, %v13190_v54  ;;  %v7274_v8 = vpop.eup %7273  ;;  %v13196_v57 = vpack.c.bf16 %v13194_v4, %v13195_v51  ;;  %v7482_v27 = vld [vmem:[#allocation2 + $0x4b0] sm:$0xff]  ;;  %v3278_v47 = vmul.f32 1.442695, %v2849_v32 }
 0x49d   :  { %v7276_v53 = vpop.eup %7275  ;;  %v2862_v44 = vsub.f32 %v13197_v60, %v10714_v6  ;;  %v3282_v4 = vmul.f32 1.442695, %v2851_v56  ;;  %v7486_v60 = vld [vmem:[#allocation2 + $0x4d0] sm:$0xff] }
 0x49e   :  { %6803 = vmatpush3.bf16.msra.mxu0 %v13191_v59  ;;  %v4950_v20 = vsel %vm1324_vm0, %v4949_v24, %v4945_v1  ;;  %v10892_v2 = vpop.permute.xlu0 %4037  ;;  %v7278_v58 = vpop.eup %7277  ;;  %v3300_v1 = vmul.f32 1.442695, %v2860_v19  ;;  %v4964_v24 = vrot.slane %v10819_v7, %v8965_v52  ;;  %v2662_v7 = vsub.s32 6, %v12814_v61 }
 0x49f   :  { %6805 = vmatprep.subr.bf16.mxu0 %v6804_v55  ;;  %v3999_v31 = vpop.permute.xlu1 %3998  ;;  %v4955_v23 = vsel %vm1331_vm1, %v4954_v38, %v4950_v20  ;;  %4229 = vperm.xlu0 %6934, %v7276_v53   ;;  %v7481_v55 = vld [vmem:[#allocation2 + $0x4b8] sm:$0xff]  ;;  %v7280_v33 = vpop.eup %7279  ;;  %v13198_v20 = vld [vmem:[#allocation116_spill] sm:$0xff]  ;;  %v2864_v38 = vsub.f32 %v13201_v11, %v10714_v6  ;;  %v7488_v11 = vld [vmem:[#allocation2 + $0x4e0] sm:$0xff] }
 0x4a0   :  { %v4959_v29 = vrot.slane %v3999_v31, %v8954_v3  ;;  %4190 = vperm.xlu1 %6933, %v7274_v8   ;;  %v6812_v42 = vpack.c.bf16 %v7481_v55, %v7482_v27  ;;  %v13200_v13 = vpack.c.bf16 %v13198_v20, %v13199_v26  ;;  %v7483_v8 = vld [vmem:[#allocation2 + $0x4c8] sm:$0xff]  ;;  %v7282_v49 = vpop.eup %7281  ;;  %v3304_v31 = vmul.f32 1.442695, %v2862_v44  ;;  %v13205_v55 = vld [vmem:[#allocation121_spill] sm:$0xff]  ;;  %v13208_v20 = vld [vmem:[#allocation354_spill] sm:$0xff] }
 0x4a1   :  { %v6816_v19 = vpack.c.bf16 %v7483_v8, %v7484_v10  ;;  %7291 = vpow2.f32 %v3300_v1  ;;  %v7284_v32 = vpop.eup %7283  ;;  %v2855_v26 = vsub.f32 %v13208_v20, %v10714_v6  ;;  %v13209_v8 = vld [vmem:[#allocation122_spill] sm:$0xff]  ;;  %v13210_v10 = vld [vmem:[#allocation123_spill] sm:$0xff]  ;;  %v5004_v20 = vrot.slane %v10863_v0, %v9008_v21 }
 0x4a2   :  { %6807 = vmatpush3.bf16.msra.mxu0 %v13196_v57  ;;  %v4960_v25 = vsel %vm1338_vm2, %v4959_v29, %v4955_v23  ;;  %v10906_v54 = vpop.permute.xlu0 %4043  ;;  %v4974_v29 = vrot.slane %v10830_v50, %v8973_v63  ;;  %v2853_v23 = vsub.f32 %v13202_v16, %v10714_v6  ;;  %7293 = vpow2.f32 %v3278_v47  ;;  %v7286_v1 = vpop.eup %7285 }
 0x4a3   :  { %6809 = vmatprep.subr.bf16.mxu0 %v6808_v30  ;;  %v4005_v43 = vpop.permute.xlu1 %4004  ;;  %v4965_v59 = vsel %vm1345_vm3, %v4964_v24, %v4960_v25  ;;  %4235 = vperm.xlu0 %6934, %v7280_v33   ;;  %v13204_v25 = vld [vmem:[#allocation120_spill] sm:$0xff]  ;;  %v10928_v50 = vrot.slane %v9941_v35, %v2662_v7  ;;  %v13207_v24 = vld [vmem:[#allocation369_spill] sm:$0xff]  ;;  %7295 = vpow2.f32 %v3304_v31  ;;  %v4984_v33 = vrot.slane %v10841_v9, %v8988_v28 }
 0x4a4   :  { %v4969_v17 = vrot.slane %v4005_v43, %v8959_v12  ;;  %4196 = vperm.xlu1 %6933, %v7278_v58   ;;  %v13206_v27 = vpack.c.bf16 %v13204_v25, %v13205_v55  ;;  %v7485_v58 = vld [vmem:[#allocation2 + $0x4d8] sm:$0xff]  ;;  %v2866_v43 = vsub.f32 %v13207_v24, %v10714_v6  ;;  %7297 = vpow2.f32 %v3282_v4 }
 0x4a5   :  { %v6820_v44 = vpack.c.bf16 %v7485_v58, %v7486_v60  ;;  %v3290_v55 = vmul.f32 1.442695, %v2855_v26  ;;  %v13216_v58 = vld [vmem:[#allocation126_spill] sm:$0xff]  ;;  %v13217_v60 = vld [vmem:[#allocation127_spill] sm:$0xff] }
 0x4a6   :  { %6811 = vmatpush3.bf16.msra.mxu0 %v13200_v13  ;;  %v4970_v30 = vsel %vm1352_vm4, %v4969_v17, %v4965_v59  ;;  %v10921_v51 = vpop.permute.xlu0 %4049  ;;  %v3308_v17 = vmul.f32 1.442695, %v2864_v38  ;;  %v7288_v59 = vpop.eup %7287  ;;  %v3286_v13 = vmul.f32 1.442695, %v2853_v23  ;;  %v7489_v24 = vld [vmem:[#allocation2 + $0x4f8] sm:$0xff] }
 0x4a7   :  { %6813 = vmatprep.subr.bf16.mxu0 %v6812_v42  ;;  %v4011_v53 = vpop.permute.xlu1 %4010  ;;  %v4975_v57 = vsel %vm13203_vm14, %v4974_v29, %v4970_v30  ;;  %4241 = vperm.xlu0 %6934, %v7284_v32   ;;  %v7290_v31 = vpop.eup %7289  ;;  %v13213_v29 = vld [vmem:[#allocation387_spill] sm:$0xff]  ;;  %v4994_v32 = vrot.slane %v10852_v22, %v8998_v48  ;;  %v2666_v22 = vsub.s32 7, %v12814_v61  ;;  %vm13222_vm14 = vcmask 851712  }
 0x4a8   :  { %v4979_v34 = vrot.slane %v4011_v53, %v8968_v40  ;;  %4202 = vperm.xlu1 %6933, %v7282_v49   ;;  %v7487_v49 = vld [vmem:[#allocation2 + $0x4e8] sm:$0xff]  ;;  %v2884_v53 = vsub.f32 %v13213_v29, %v10928_v50  ;;  %7299 = vpow2.f32 %v3308_v17 }
 0x4a9   :  { %v6824_v38 = vpack.c.bf16 %v7487_v49, %v7488_v11  ;;  %7301 = vpow2.f32 %v3286_v13  ;;  %v13223_v49 = vld [vmem:[#allocation130_spill] sm:$0xff]  ;;  %v13224_v11 = vld [vmem:[#allocation131_spill] sm:$0xff]  ;;  %v10974_v0 = vrot.slane %v9941_v35, %v2666_v22  ;;  %v13227_v35 = vld [vmem:[#allocation360_spill] sm:$0xff] }
 0x4aa   :  { %6815 = vmatpush3.bf16.msra.mxu0 %v13206_v27  ;;  %v4980_v42 = vsel %vm1366_vm6, %v4979_v34, %v4975_v57  ;;  %v10938_v7 = vpop.permute.xlu0 %4055  ;;  %v3312_v34 = vmul.f32 1.442695, %v2866_v43  ;;  %v13214_v57 = vld [vmem:[#allocation356_spill] sm:$0xff]  ;;  %v7490_v43 = vld [vmem:[#allocation2 + $0x4f0] sm:$0xff] }
 0x4ab   :  { %6817 = vmatprep.subr.bf16.mxu0 %v6816_v19  ;;  %v4017_v56 = vpop.permute.xlu1 %4016  ;;  %v4985_v30 = vsel %vm1373_vm7, %v4984_v33, %v4980_v42  ;;  %v13211_v19 = vpack.c.bf16 %v13209_v8, %v13210_v10  ;;  %4247 = vperm.xlu0 %6934, %v7288_v59   ;;  %v7292_v4 = vpop.eup %7291  ;;  %v2857_v25 = vsub.f32 %v13214_v57, %v10714_v6  ;;  %v3348_v59 = vmul.f32 1.442695, %v2884_v53  ;;  %v13226_v53 = vld [vmem:[#allocation389_spill] sm:$0xff] }
 0x4ac   :  { %v4989_v47 = vrot.slane %v4017_v56, %v8978_v45  ;;  %4208 = vperm.xlu1 %6933, %v7286_v1   ;;  %v6828_v17 = vpack.c.bf16 %v7489_v24, %v7490_v43  ;;  %v7294_v33 = vpop.eup %7293  ;;  %v13220_v56 = vld [vmem:[#allocation371_spill] sm:$0xff]  ;;  %7303 = vpow2.f32 %v3312_v34  ;;  %v2886_v34 = vsub.f32 %v13226_v53, %v10928_v50  ;;  %v13232_v24 = vld [vmem:[#allocation350_spill] sm:$0xff] }
 0x4ad   :  { %v7296_v61 = vpop.eup %7295  ;;  %v3294_v10 = vmul.f32 1.442695, %v2857_v25  ;;  %7305 = vpow2.f32 %v3290_v55  ;;  %v2861_v25 = vsub.f32 %v13227_v35, %v10714_v6  ;;  %v2917_v43 = vsub.f32 %v13232_v24, %v10974_v0  ;;  %v13238_v24 = vld [vmem:[#allocation368_spill] sm:$0xff] }
 0x4ae   :  { %6819 = vmatpush3.bf16.msra.mxu0 %v13211_v19  ;;  %v4990_v9 = vsel %vm13212_vm10, %v4989_v47, %v4985_v30  ;;  %v10952_v27 = vpop.permute.xlu0 %4061  ;;  %v2868_v47 = vsub.f32 %v13220_v56, %v10928_v50  ;;  %v13221_v30 = vld [vmem:[#allocation358_spill] sm:$0xff]  ;;  %v7298_v29 = vpop.eup %7297  ;;  %7307 = vpow2.f32 %v3348_v59  ;;  %vm13231_vm10 = vcmask 1048512  }
 0x4af   :  { %6821 = vmatprep.subr.bf16.mxu0 %v6820_v44  ;;  %v4023_v16 = vpop.permute.xlu1 %4022  ;;  %v4995_v42 = vsel %vm13215_vm11, %v4994_v32, %v4990_v9  ;;  %v13218_v44 = vpack.c.bf16 %v13216_v58, %v13217_v60  ;;  %4253 = vperm.xlu0 %6934, %v7292_v4   ;;  %v2859_v8 = vsub.f32 %v13221_v30, %v10714_v6  ;;  %7309 = vpow2.f32 %v3294_v10  ;;  %v13228_v60 = vld [vmem:[#allocation134_spill] sm:$0xff] }
 0x4b0   :  { %v4999_v23 = vrot.slane %v4023_v16, %v8991_v46  ;;  %4214 = vperm.xlu1 %6933, %v7290_v31   ;;  %v3316_v32 = vmul.f32 1.442695, %v2868_v47  ;;  %v5014_v16 = vrot.slane %v10879_v5, %v9030_v37  ;;  %vm13233_vm11 = vcmask 1043459  }
 0x4b1   :  { %v3298_v55 = vmul.f32 1.442695, %v2859_v8  ;;  %v5024_v47 = vrot.slane %v10892_v2, %v8940_v41  ;;  %v5033_v2 = vrot.slane %v10906_v54, %v8949_v62 }
 0x4b2   :  { %6823 = vmatpush3.bf16.msra.mxu0 %v13218_v44  ;;  %v5000_v1 = vsel %vm13219_vm8, %v4999_v23, %v4995_v42  ;;  %v10967_v19 = vpop.permute.xlu0 %4067  ;;  %v7300_v57 = vpop.eup %7299  ;;  %v13229_v44 = vld [vmem:[#allocation135_spill] sm:$0xff]  ;;  %7311 = vpow2.f32 %v3316_v32  ;;  %vm13241_vm8 = vcmask 458112  }
 0x4b3   :  { %6825 = vmatprep.subr.bf16.mxu0 %v6824_v38  ;;  %v4029_v26 = vpop.permute.xlu1 %4028  ;;  %v5005_v9 = vsel %vm13222_vm14, %v5004_v20, %v5000_v1  ;;  %v13225_v38 = vpack.c.bf16 %v13223_v49, %v13224_v11  ;;  %4259 = vperm.xlu0 %6934, %v7296_v61   ;;  %v13230_v22 = vpack.c.bf16 %v13228_v60, %v13229_v44  ;;  %v7302_v1 = vpop.eup %7301  ;;  %v3302_v61 = vmul.f32 1.442695, %v2861_v25  ;;  %v13237_v25 = vld [vmem:[#allocation402_spill] sm:$0xff] }
 0x4b4   :  { %v5009_v13 = vrot.slane %v4029_v26, %v9005_v15  ;;  %4220 = vperm.xlu1 %6933, %v7294_v33   ;;  %v13234_v26 = vld [vmem:[#allocation363_spill] sm:$0xff]  ;;  %7313 = vpow2.f32 %v3298_v55  ;;  %v3414_v49 = vmul.f32 1.442695, %v2917_v43  ;;  %v2901_v55 = vsub.f32 %v13237_v25, %v10974_v0 }
 0x4b5   :  { %v5043_v60 = vrot.slane %v10921_v51, %v8965_v52  ;;  %v2867_v43 = vsub.f32 %v13238_v24, %v10714_v6  ;;  %v13239_v51 = vld [vmem:[#allocation372_spill] sm:$0xff]  ;;  %vm13244_vm14 = vcmask 654912  }
 0x4b6   :  { %6827 = vmatpush3.bf16.msra.mxu0 %v13225_v38  ;;  %v5010_v31 = vsel %vm1408_vm12, %v5009_v13, %v5005_v9  ;;  %v10984_v42 = vpop.permute.xlu0 %4073  ;;  %v7304_v20 = vpop.eup %7303  ;;  %v2863_v13 = vsub.f32 %v13234_v26, %v10714_v6  ;;  %v2871_v26 = vsub.f32 %v13239_v51, %v10928_v50 }
 0x4b7   :  { %6829 = vmatprep.subr.bf16.mxu0 %v6828_v17  ;;  %v4035_v23 = vpop.permute.xlu1 %4034  ;;  %v5015_v58 = vsel %vm1415_vm13, %v5014_v16, %v5010_v31  ;;  %4265 = vperm.xlu0 %6934, %v7300_v57   ;;  %v3352_v17 = vmul.f32 1.442695, %v2886_v34  ;;  %v7306_v10 = vpop.eup %7305  ;;  %v7492_v57 = vld [vmem:[#allocation2 + $0x580] sm:$0xff] }
 0x4b8   :  { %v5019_v4 = vrot.slane %v4035_v23, %v9040_v36  ;;  %4226 = vperm.xlu1 %6933, %v7298_v29   ;;  %v7308_v31 = vpop.eup %7307  ;;  %v13236_v29 = vld [vmem:[#allocation366_spill] sm:$0xff]  ;;  %v3306_v34 = vmul.f32 1.442695, %v2863_v13  ;;  %v3382_v13 = vmul.f32 1.442695, %v2901_v55 }
 0x4b9   :  { %7315 = vpow2.f32 %v3352_v17  ;;  %v2865_v53 = vsub.f32 %v13236_v29, %v10714_v6  ;;  %v7310_v35 = vpop.eup %7309 }
 0x4ba   :  { %6831 = vmatpush3.bf16.msra.mxu0 %v13230_v22  ;;  %v10991_v5 = vsel %vm13231_vm10, %v5019_v4, %v5015_v58  ;;  %v11005_v30 = vpop.permute.xlu0 %4079  ;;  %7317 = vpow2.f32 %v3302_v61  ;;  %v7491_v4 = vld [vmem:[#allocation2 + $0x588] sm:$0xff]  ;;  %v5053_v61 = vrot.slane %v10938_v7, %v8973_v63  ;;  %v13242_v7 = vld [vmem:[#allocation405_spill] sm:$0xff]  ;;  %vm13247_vm10 = vcmask 720512  }
 0x4bb   :  { %v4041_v33 = vpop.permute.xlu1 %4040  ;;  %v10998_v56 = vsel %vm13233_vm11, %v10991_v5, %v10780_v39  ;;  %4271 = vperm.xlu0 %6934, %v7304_v20   ;;  %v13235_v39 = vld [vmem:[#allocation388_spill] sm:$0xff]  ;;  %v6832_v54 = vpack.c.bf16 %v7491_v4, %v7492_v57  ;;  %7319 = vpow2.f32 %v3414_v49  ;;  %v3310_v17 = vmul.f32 1.442695, %v2865_v53  ;;  %v13243_v57 = vld [vmem:[#allocation370_spill] sm:$0xff] }
 0x4bc   :  { %v5028_v59 = vrot.slane %v4041_v33, %v12999_v14  ;;  %4232 = vperm.xlu1 %6933, %v7302_v1   ;;  %v2887_v9 = vsub.f32 %v13235_v39, %v10928_v50  ;;  %v7312_v1 = vpop.eup %7311  ;;  %7321 = vpow2.f32 %v3306_v34  ;;  %v13240_v39 = vld [vmem:[#allocation386_spill] sm:$0xff]  ;;  %v3314_v49 = vmul.f32 1.442695, %v2867_v43 }
 0x4bd   :  { %6833 = vmatprep.subr.bf16.mxu1 %v6832_v54  ;;  %v2902_v29 = vsub.f32 %v13242_v7, %v10974_v0  ;;  %v3322_v53 = vmul.f32 1.442695, %v2871_v26  ;;  %v5063_v34 = vrot.slane %v10952_v27, %v8988_v28  ;;  %v2869_v54 = vsub.f32 %v13243_v57, %v10928_v50  ;;  %v13245_v27 = vld [vmem:[#allocation375_spill] sm:$0xff] }
 0x4be   :  { %v5029_v8 = vsel %vm1324_vm0, %v5028_v59, %v5024_v47  ;;  %v11015_v32 = vpop.permute.xlu0 %4085  ;;  %v3354_v58 = vmul.f32 1.442695, %v2887_v9  ;;  %v7314_v20 = vpop.eup %7313  ;;  %v2885_v9 = vsub.f32 %v13240_v39, %v10928_v50  ;;  %vm13248_vm11 = vcmask 786112  }
 0x4bf   :  { %v4047_v11 = vpop.permute.xlu1 %4046  ;;  %v5034_v16 = vsel %vm1331_vm1, %v5033_v2, %v5029_v8  ;;  %4325 = vperm.xlu0 %6934, %v7308_v31  }
 0x4c0   :  { %v5038_v38 = vrot.slane %v4047_v11, %v8954_v3  ;;  %4238 = vperm.xlu1 %6933, %v7306_v10   ;;  %7323 = vpow2.f32 %v3354_v58 }
 0x4c1   :  { %7325 = vpow2.f32 %v3310_v17 }
 0x4c2   :  { %v5039_v23 = vsel %vm1338_vm2, %v5038_v38, %v5034_v16  ;;  %v11026_v33 = vpop.permute.xlu0 %4091  ;;  %7327 = vpow2.f32 %v3382_v13 }
 0x4c3   :  { %v4053_v44 = vpop.permute.xlu1 %4052  ;;  %v5044_v47 = vsel %vm1345_vm3, %v5043_v60, %v5039_v23  ;;  %4277 = vperm.xlu0 %6934, %v7312_v1   ;;  %v7316_v10 = vpop.eup %7315  ;;  %7329 = vpow2.f32 %v3314_v49  ;;  %v5073_v1 = vrot.slane %v10967_v19, %v8998_v48  ;;  %v13249_v19 = vld [vmem:[#allocation404_spill] sm:$0xff] }
 0x4c4   :  { %v5048_v22 = vrot.slane %v4053_v44, %v8959_v12  ;;  %4244 = vperm.xlu1 %6933, %v7310_v35   ;;  %v7318_v31 = vpop.eup %7317  ;;  %v3350_v35 = vmul.f32 1.442695, %v2885_v9  ;;  %v2872_v44 = vsub.f32 %v13245_v27, %v10928_v50  ;;  %7331 = vpow2.f32 %v3322_v53 }
 0x4c5   :  { %v7320_v4 = vpop.eup %7319 }
 0x4c6   :  { %v5049_v59 = vsel %vm1352_vm4, %v5048_v22, %v5044_v47  ;;  %v11037_v2 = vpop.permute.xlu0 %4097  ;;  %v7322_v60 = vpop.eup %7321  ;;  %v3384_v22 = vmul.f32 1.442695, %v2902_v29  ;;  %v13246_v47 = vld [vmem:[#allocation419_spill] sm:$0xff]  ;;  %7333 = vpow2.f32 %v3350_v35 }
 0x4c7   :  { %v4059_v8 = vpop.permute.xlu1 %4058  ;;  %v5054_v11 = vsel %vm13241_vm8, %v5053_v61, %v5049_v59  ;;  %4331 = vperm.xlu0 %6934, %v7316_v10   ;;  %v2916_v59 = vsub.f32 %v13246_v47, %v10974_v0  ;;  %v5083_v10 = vrot.slane %v10984_v42, %v9008_v21  ;;  %vm13251_vm8 = vcmask 851712   ;;  %v13252_v42 = vld [vmem:[#allocation374_spill] sm:$0xff] }
 0x4c8   :  { %v5058_v6 = vrot.slane %v4059_v8, %v8968_v40  ;;  %4250 = vperm.xlu1 %6933, %v7314_v20   ;;  %v3318_v20 = vmul.f32 1.442695, %v2869_v54  ;;  %v2903_v8 = vsub.f32 %v13249_v19, %v10974_v0  ;;  %7335 = vpow2.f32 %v3384_v22 }
 0x4ca   :  { %v5059_v38 = vsel %vm1366_vm6, %v5058_v6, %v5054_v11  ;;  %v11048_v25 = vpop.permute.xlu0 %4103  ;;  %v7324_v17 = vpop.eup %7323  ;;  %v3324_v6 = vmul.f32 1.442695, %v2872_v44  ;;  %v13250_v11 = vld [vmem:[#allocation373_spill] sm:$0xff]  ;;  %7337 = vpow2.f32 %v3318_v20 }
 0x4cb   :  { %v4065_v16 = vpop.permute.xlu1 %4064  ;;  %v5064_v55 = vsel %vm1373_vm7, %v5063_v34, %v5059_v38  ;;  %4424 = vperm.xlu0 %6934, %v7320_v4   ;;  %v7326_v61 = vpop.eup %7325  ;;  %v2870_v38 = vsub.f32 %v13250_v11, %v10928_v50  ;;  %v5093_v4 = vrot.slane %v11005_v30, %v9030_v37  ;;  %v7495_v11 = vld [vmem:[#allocation2 + $0x5a8] sm:$0xff] }
 0x4cc   :  { %v5068_v23 = vrot.slane %v4065_v16, %v8978_v45  ;;  %4256 = vperm.xlu1 %6933, %v7318_v31   ;;  %v7328_v49 = vpop.eup %7327  ;;  %v3412_v31 = vmul.f32 1.442695, %v2916_v59  ;;  %v2873_v16 = vsub.f32 %v13252_v42, %v10928_v50  ;;  %7339 = vpow2.f32 %v3324_v6 }
 0x4cd   :  { %v7330_v34 = vpop.eup %7329  ;;  %v5112_v42 = vrot.slane %v11026_v33, %v8949_v62 }
 0x4ce   :  { %v5069_v58 = vsel %vm13244_vm14, %v5068_v23, %v5064_v55  ;;  %v11059_v51 = vpop.permute.xlu0 %4109  ;;  %v3386_v23 = vmul.f32 1.442695, %v2903_v8  ;;  %v7332_v35 = vpop.eup %7331  ;;  %v13253_v55 = vld [vmem:[#allocation403_spill] sm:$0xff]  ;;  %7341 = vpow2.f32 %v3412_v31  ;;  %vm13254_vm14 = vcmask 1048512   ;;  %v13257_v8 = vld [vmem:[#allocation421_spill] sm:$0xff] }
 0x4cf   :  { %v4071_v24 = vpop.permute.xlu1 %4070  ;;  %v5074_v26 = vsel %vm13247_vm10, %v5073_v1, %v5069_v58  ;;  %4334 = vperm.xlu0 %6934, %v7324_v17   ;;  %v2900_v58 = vsub.f32 %v13253_v55, %v10974_v0  ;;  %v7493_v1 = vld [vmem:[#allocation2 + $0x598] sm:$0xff]  ;;  %v13255_v17 = vld [vmem:[#allocation407_spill] sm:$0xff]  ;;  %v3326_v59 = vmul.f32 1.442695, %v2873_v16  ;;  %vm13256_vm10 = vcmask 1043459  }
 0x4d0   :  { %v5078_v43 = vrot.slane %v4071_v24, %v8991_v46  ;;  %4262 = vperm.xlu1 %6933, %v7322_v60   ;;  %v3320_v60 = vmul.f32 1.442695, %v2870_v38  ;;  %v7494_v24 = vld [vmem:[#allocation2 + $0x590] sm:$0xff]  ;;  %v2904_v47 = vsub.f32 %v13255_v17, %v10974_v0  ;;  %7343 = vpow2.f32 %v3386_v23  ;;  %v7496_v38 = vld [vmem:[#allocation2 + $0x5a0] sm:$0xff]  ;;  %v13266_v17 = vld [vmem:[#allocation406_spill] sm:$0xff] }
 0x4d1   :  { %v6836_v30 = vpack.c.bf16 %v7493_v1, %v7494_v24  ;;  %v2918_v6 = vsub.f32 %v13257_v8, %v10974_v0  ;;  %v6840_v31 = vpack.c.bf16 %v7495_v11, %v7496_v38  ;;  %v7497_v1 = vld [vmem:[#allocation2 + $0x5b8] sm:$0xff]  ;;  %v7498_v24 = vld [vmem:[#allocation2 + $0x5b0] sm:$0xff]  ;;  %v13267_v8 = vld [vmem:[#allocation420_spill] sm:$0xff] }
 0x4d2   :  { %v5079_v13 = vsel %vm13248_vm11, %v5078_v43, %v5074_v26  ;;  %v11070_v7 = vpop.permute.xlu0 %4115  ;;  %v7334_v43 = vpop.eup %7333  ;;  %7345 = vpow2.f32 %v3320_v60  ;;  %v13263_v60 = vld [vmem:[#allocation158_spill] sm:$0xff]  ;;  %v7499_v38 = vld [vmem:[#allocation2 + $0x5c8] sm:$0xff]  ;;  %vm13273_vm11 = vcmask 458112  }
 0x4d3   :  { %v4077_v39 = vpop.permute.xlu1 %4076  ;;  %v5084_v29 = vsel %vm13251_vm8, %v5083_v10, %v5079_v13  ;;  %4376 = vperm.xlu0 %6934, %v7328_v49   ;;  %v5103_v13 = vrot.slane %v11015_v32, %v8940_v41  ;;  %v7336_v19 = vpop.eup %7335  ;;  %v3380_v10 = vmul.f32 1.442695, %v2900_v58  ;;  %7347 = vpow2.f32 %v3326_v59 }
 0x4d4   :  { %v5088_v9 = vrot.slane %v4077_v39, %v9005_v15  ;;  %4268 = vperm.xlu1 %6933, %v7326_v61   ;;  %vm13282_vm8 = vcmask 654912  }
 0x4d5   :  { %7349 = vpow2.f32 %v3380_v10 }
 0x4d6   :  { %v5089_v53 = vsel %vm1408_vm12, %v5088_v9, %v5084_v29  ;;  %v11081_v27 = vpop.permute.xlu0 %4121  ;;  %v13259_v9 = vld [vmem:[#allocation155_spill] sm:$0xff]  ;;  %v13261_v29 = vld [vmem:[#allocation377_spill] sm:$0xff] }
 0x4d7   :  { %v4083_v57 = vpop.permute.xlu1 %4082  ;;  %v5094_v44 = vsel %vm1415_vm13, %v5093_v4, %v5089_v53  ;;  %4286 = vperm.xlu0 %6934, %v7332_v35   ;;  %v2874_v53 = vsub.f32 %v13261_v29, %v10928_v50  ;;  %v3416_v35 = vmul.f32 1.442695, %v2918_v6  ;;  %v2919_v6 = vsub.f32 %v13267_v8, %v10974_v0 }
 0x4d8   :  { %v5098_v54 = vrot.slane %v4083_v57, %v9040_v36  ;;  %4274 = vperm.xlu1 %6933, %v7330_v34   ;;  %v3388_v34 = vmul.f32 1.442695, %v2904_v47  ;;  %v13262_v57 = vld [vmem:[#allocation391_spill] sm:$0xff]  ;;  %v2905_v47 = vsub.f32 %v13266_v17, %v10974_v0 }
 0x4d9   :  { %v3328_v59 = vmul.f32 1.442695, %v2874_v53  ;;  %v13271_v53 = vld [vmem:[#allocation376_spill] sm:$0xff] }
 0x4da   :  { %v5099_v22 = vsel %vm13254_vm14, %v5098_v54, %v5094_v44  ;;  %v11097_v39 = vpop.permute.xlu0 %4127  ;;  %v2888_v54 = vsub.f32 %v13262_v57, %v10928_v50  ;;  %v13264_v44 = vld [vmem:[#allocation159_spill] sm:$0xff]  ;;  %7351 = vpow2.f32 %v3388_v34  ;;  %v2875_v34 = vsub.f32 %v13271_v53, %v10928_v50 }
 0x4db   :  { %v11089_v20 = vsel %vm13256_vm10, %v5099_v22, %v10871_v18  ;;  %6033 = vmatprep.mubr.f32.mxu1 %v5099_v22  ;;  %v4089_v26 = vpop.permute.xlu1 %4088  ;;  %v13258_v18 = vld [vmem:[#allocation154_spill] sm:$0xff]  ;;  %4379 = vperm.xlu0 %6934, %v7336_v19   ;;  %v13265_v22 = vpack.c.bf16 %v13263_v60, %v13264_v44  ;;  %7353 = vpow2.f32 %v3416_v35  ;;  %vm13285_vm14 = vcmask 720512  }
 0x4dc   :  { %v5107_v61 = vrot.slane %v4089_v26, %v12999_v14  ;;  %4328 = vperm.xlu1 %6933, %v7334_v43   ;;  %6034 = vmatmul.mubr.f32.vlgmr.msra.gmra.mrb[2].mxu1 %v10991_v5  ;;  %v13260_v49 = vpack.c.bf16 %v13258_v18, %v13259_v9  ;;  %v7338_v5 = vpop.eup %7337  ;;  %v5122_v26 = vrot.slane %v11037_v2, %v8965_v52  ;;  %v3356_v10 = vmul.f32 1.442695, %v2888_v54  ;;  %v13272_v54 = vld [vmem:[#allocation390_spill] sm:$0xff] }
 0x4dd   :  { %v7340_v4 = vpop.eup %7339  ;;  %7355 = vpow2.f32 %v3328_v59  ;;  %v2889_v35 = vsub.f32 %v13272_v54, %v10928_v50  ;;  %v13284_v54 = vld [vmem:[#allocation393_spill] sm:$0xff]  ;;  %vm13289_vm10 = vcmask 786112  }
 0x4de   :  { %6835 = vmatpush3.bf16.msra.mxu1 %v13260_v49  ;;  %v5108_v32 = vsel %vm1324_vm0, %v5107_v61, %v5103_v13  ;;  %v11110_v55 = vpop.permute.xlu0 %4133  ;;  %v7342_v43 = vpop.eup %7341  ;;  %v13268_v49 = vld [vmem:[#allocation162_spill] sm:$0xff]  ;;  %7357 = vpow2.f32 %v3356_v10 }
 0x4df   :  { %6837 = vmatprep.subr.bf16.mxu1 %v6836_v30  ;;  %v4095_v16 = vpop.permute.xlu1 %4094  ;;  %v5113_v58 = vsel %vm1331_vm1, %v5112_v42, %v5108_v32  ;;  %4289 = vperm.xlu0 %6934, %v7340_v4   ;;  %v6844_v30 = vpack.c.bf16 %v7497_v1, %v7498_v24  ;;  %v7344_v19 = vpop.eup %7343  ;;  %v13269_v32 = vld [vmem:[#allocation163_spill] sm:$0xff]  ;;  %v3390_v42 = vmul.f32 1.442695, %v2905_v47  ;;  %v7501_v24 = vld [vmem:[#allocation2 + $0x5d8] sm:$0xff]  ;;  %v13277_v47 = vld [vmem:[#allocation409_spill] sm:$0xff] }
 0x4e0   :  { %v5117_v23 = vrot.slane %v4095_v16, %v8954_v3  ;;  %4280 = vperm.xlu1 %6933, %v7338_v5   ;;  %v13270_v11 = vpack.c.bf16 %v13268_v49, %v13269_v32  ;;  %v7346_v29 = vpop.eup %7345  ;;  %v5132_v16 = vrot.slane %v11048_v25, %v8973_v63  ;;  %v2906_v59 = vsub.f32 %v13277_v47, %v10974_v0  ;;  %v7505_v47 = vld [vmem:[#allocation2 + $0x5f8] sm:$0xff] }
 0x4e1   :  { %v7348_v57 = vpop.eup %7347  ;;  %7359 = vpow2.f32 %v3390_v42 }
 0x4e2   :  { %6839 = vmatpush3.bf16.msra.mxu1 %v13265_v22  ;;  %v5118_v33 = vsel %vm1338_vm2, %v5117_v23, %v5113_v58  ;;  %v11124_v18 = vpop.permute.xlu0 %4139  ;;  %v3418_v58 = vmul.f32 1.442695, %v2919_v6  ;;  %v13274_v22 = vld [vmem:[#allocation168_spill] sm:$0xff]  ;;  %v7350_v17 = vpop.eup %7349  ;;  %v13278_v6 = vld [vmem:[#allocation423_spill] sm:$0xff] }
 0x4e3   :  { %6841 = vmatprep.subr.bf16.mxu1 %v6840_v31  ;;  %v4101_v13 = vpop.permute.xlu1 %4100  ;;  %v5123_v9 = vsel %vm1345_vm3, %v5122_v26, %v5118_v33  ;;  %4382 = vperm.xlu0 %6934, %v7344_v19   ;;  %v7500_v31 = vld [vmem:[#allocation2 + $0x5c0] sm:$0xff]  ;;  %v13275_v33 = vld [vmem:[#allocation169_spill] sm:$0xff]  ;;  %v3330_v26 = vmul.f32 1.442695, %v2875_v34  ;;  %v2920_v10 = vsub.f32 %v13278_v6, %v10974_v0  ;;  %v5162_v6 = vrot.slane %v11081_v27, %v9008_v21 }
 0x4e4   :  { %v5127_v61 = vrot.slane %v4101_v13, %v8959_v12  ;;  %4421 = vperm.xlu1 %6933, %v7342_v43   ;;  %v6848_v5 = vpack.c.bf16 %v7499_v38, %v7500_v31  ;;  %v13276_v1 = vpack.c.bf16 %v13274_v22, %v13275_v33  ;;  %v5142_v13 = vrot.slane %v11059_v51, %v8988_v28  ;;  %v7352_v8 = vpop.eup %7351  ;;  %v7503_v31 = vld [vmem:[#allocation2 + $0x5e8] sm:$0xff]  ;;  %v13283_v34 = vld [vmem:[#allocation379_spill] sm:$0xff] }
 0x4e5   :  { %7361 = vpow2.f32 %v3418_v58  ;;  %v7354_v53 = vpop.eup %7353  ;;  %v2876_v42 = vsub.f32 %v13283_v34, %v10928_v50  ;;  %v3420_v33 = vmul.f32 1.442695, %v2920_v10 }
 0x4e6   :  { %6843 = vmatpush3.bf16.msra.mxu1 %v13270_v11  ;;  %v5128_v2 = vsel %vm1352_vm4, %v5127_v61, %v5123_v9  ;;  %v11138_v60 = vpop.permute.xlu0 %4145  ;;  %v3358_v9 = vmul.f32 1.442695, %v2889_v35  ;;  %v13279_v11 = vld [vmem:[#allocation170_spill] sm:$0xff]  ;;  %7363 = vpow2.f32 %v3330_v26  ;;  %v2890_v35 = vsub.f32 %v13284_v54, %v10928_v50 }
 0x4e7   :  { %6845 = vmatprep.subr.bf16.mxu1 %v6844_v30  ;;  %v4107_v23 = vpop.permute.xlu1 %4106  ;;  %v5133_v44 = vsel %vm13273_vm11, %v5132_v16, %v5128_v2  ;;  %4292 = vperm.xlu0 %6934, %v7348_v57   ;;  %v7502_v30 = vld [vmem:[#allocation2 + $0x5d0] sm:$0xff]  ;;  %v13280_v2 = vld [vmem:[#allocation171_spill] sm:$0xff]  ;;  %v3392_v16 = vmul.f32 1.442695, %v2906_v59  ;;  %v7356_v22 = vpop.eup %7355  ;;  %vm13292_vm11 = vcmask 851712  }
 0x4e8   :  { %v5137_v4 = vrot.slane %v4107_v23, %v8968_v40  ;;  %4283 = vperm.xlu1 %6933, %v7346_v29   ;;  %v6852_v43 = vpack.c.bf16 %v7501_v24, %v7502_v30  ;;  %v13281_v38 = vpack.c.bf16 %v13279_v11, %v13280_v2  ;;  %v5152_v23 = vrot.slane %v11070_v7, %v8998_v48  ;;  %v13286_v30 = vld [vmem:[#allocation174_spill] sm:$0xff]  ;;  %v13287_v7 = vld [vmem:[#allocation175_spill] sm:$0xff]  ;;  %v7506_v59 = vld [vmem:[#allocation2 + $0x5f0] sm:$0xff] }
 0x4e9   :  { %7365 = vpow2.f32 %v3358_v9  ;;  %v6860_v26 = vpack.c.bf16 %v7505_v47, %v7506_v59  ;;  %v13291_v11 = vld [vmem:[#allocation422_spill] sm:$0xff]  ;;  %v13302_v47 = vld [vmem:[#allocation411_spill] sm:$0xff] }
 0x4ea   :  { %6847 = vmatpush3.bf16.msra.mxu1 %v13276_v1  ;;  %v5138_v25 = vsel %vm1366_vm6, %v5137_v4, %v5133_v44  ;;  %v11152_v49 = vpop.permute.xlu0 %4151  ;;  %7367 = vpow2.f32 %v3392_v16  ;;  %v2921_v2 = vsub.f32 %v13291_v11, %v10974_v0  ;;  %v2908_v59 = vsub.f32 %v13302_v47, %v10974_v0 }
 0x4eb   :  { %6849 = vmatprep.subr.bf16.mxu1 %v6848_v5  ;;  %v4113_v61 = vpop.permute.xlu1 %4112  ;;  %v5143_v32 = vsel %vm1373_vm7, %v5142_v13, %v5138_v25  ;;  %4385 = vperm.xlu0 %6934, %v7352_v8   ;;  %v7504_v5 = vld [vmem:[#allocation2 + $0x5e0] sm:$0xff]  ;;  %v7358_v13 = vpop.eup %7357  ;;  %v3332_v8 = vmul.f32 1.442695, %v2876_v42  ;;  %7369 = vpow2.f32 %v3420_v33  ;;  %v13296_v42 = vld [vmem:[#allocation378_spill] sm:$0xff] }
 0x4ec   :  { %v5147_v19 = vrot.slane %v4113_v61, %v8978_v45  ;;  %4373 = vperm.xlu1 %6933, %v7350_v17   ;;  %v6856_v29 = vpack.c.bf16 %v7503_v31, %v7504_v5  ;;  %v13290_v61 = vld [vmem:[#allocation408_spill] sm:$0xff]  ;;  %v13293_v5 = vld [vmem:[#allocation178_spill] sm:$0xff]  ;;  %v2877_v16 = vsub.f32 %v13296_v42, %v10928_v50 }
 0x4ed   :  { %7371 = vpow2.f32 %v3332_v8 }
 0x4ee   :  { %6851 = vmatpush3.bf16.msra.mxu1 %v13281_v38  ;;  %v5148_v51 = vsel %vm13282_vm8, %v5147_v19, %v5143_v32  ;;  %v11166_v1 = vpop.permute.xlu0 %4157  ;;  %v2907_v19 = vsub.f32 %v13290_v61, %v10974_v0  ;;  %v7360_v32 = vpop.eup %7359  ;;  %v3360_v38 = vmul.f32 1.442695, %v2890_v35  ;;  %vm13301_vm8 = vcmask 1048512  }
 0x4ef   :  { %6853 = vmatprep.subr.bf16.mxu1 %v6852_v43  ;;  %v6424_v4 = vpop.f32.mrb[0].mxu0  ;;  %v4119_v57 = vpop.permute.xlu1 %4118  ;;  %v5153_v25 = vsel %vm13285_vm14, %v5152_v23, %v5148_v51  ;;  %v13288_v43 = vpack.c.bf16 %v13286_v30, %v13287_v7  ;;  %4295 = vperm.xlu0 %6934, %v7356_v22   ;;  %v3422_v22 = vmul.f32 1.442695, %v2921_v2  ;;  %v13298_v30 = vld [vmem:[#allocation182_spill] sm:$0xff]  ;;  %v13299_v7 = vld [vmem:[#allocation183_spill] sm:$0xff]  ;;  %vm13310_vm14 = vcmask 458112  }
 0x4f0   :  { %v5157_v58 = vrot.slane %v4119_v57, %v8991_v46  ;;  %v6425_v44 = vpop.f32.mrb[1].mxu0  ;;  %4427 = vperm.xlu1 %6933, %v7354_v53   ;;  %v7362_v34 = vpop.eup %7361  ;;  %v3394_v23 = vmul.f32 1.442695, %v2907_v19  ;;  %7373 = vpow2.f32 %v3360_v38  ;;  %v5182_v19 = vrot.slane %v11110_v55, %v8940_v41 }
 0x4f1   :  { %v11169_v24 = vadd.f32 %v6425_v44, %v6424_v4  ;;  %v5172_v4 = vrot.slane %v11097_v39, %v9030_v37  ;;  %v7364_v35 = vpop.eup %7363  ;;  %v5191_v55 = vrot.slane %v11124_v18, %v8949_v62  ;;  %v13306_v18 = vld [vmem:[#allocation410_spill] sm:$0xff] }
 0x4f2   :  { %6855 = vmatpush3.bf16.msra.mxu1 %v13288_v43  ;;  %v5158_v17 = vsel %vm13289_vm10, %v5157_v58, %v5153_v25  ;;  %v11182_v51 = vpop.permute.xlu0 %4163  ;;  %v13297_v58 = vld [vmem:[#allocation392_spill] sm:$0xff]  ;;  %v13300_v43 = vpack.c.bf16 %v13298_v30, %v13299_v7  ;;  %7375 = vpow2.f32 %v3394_v23  ;;  %vm13313_vm10 = vcmask 654912  }
 0x4f3   :  { %6857 = vmatprep.subr.bf16.mxu1 %v6856_v29  ;;  %v4125_v10 = vpop.permute.xlu1 %4124  ;;  %v5163_v31 = vsel %vm13292_vm11, %v5162_v6, %v5158_v17  ;;  %v13294_v29 = vld [vmem:[#allocation179_spill] sm:$0xff]  ;;  %4388 = vperm.xlu0 %6934, %v7360_v32   ;;  %v2891_v44 = vsub.f32 %v13297_v58, %v10928_v50  ;;  %v7366_v17 = vpop.eup %7365  ;;  %7377 = vpow2.f32 %v3422_v22  ;;  %v13307_v7 = vld [vmem:[#allocation424_spill] sm:$0xff]  ;;  %vm13316_vm11 = vcmask 720512  }
 0x4f4   :  { %v5167_v9 = vrot.slane %v4125_v10, %v9005_v15  ;;  %4337 = vperm.xlu1 %6933, %v7358_v13   ;;  %v13295_v53 = vpack.c.bf16 %v13293_v5, %v13294_v29  ;;  %v7368_v6 = vpop.eup %7367  ;;  %v13303_v10 = vld [vmem:[#allocation425_spill] sm:$0xff]  ;;  %v3396_v5 = vmul.f32 1.442695, %v2908_v59 }
 0x4f5   :  { %v3362_v32 = vmul.f32 1.442695, %v2891_v44  ;;  %v7370_v38 = vpop.eup %7369  ;;  %v5201_v44 = vrot.slane %v11138_v60, %v8965_v52  ;;  %v13308_v60 = vld [vmem:[#allocation380_spill] sm:$0xff] }
 0x4f6   :  { %6859 = vmatpush3.bf16.msra.mxu1 %v13295_v53  ;;  %v5168_v27 = vsel %vm1408_vm12, %v5167_v9, %v5163_v31  ;;  %v11196_v33 = vpop.permute.xlu0 %4169  ;;  %v2922_v9 = vsub.f32 %v13303_v10, %v10974_v0 }
 0x4f7   :  { %6861 = vmatprep.subr.bf16.mxu1 %v6860_v26  ;;  %v4131_v57 = vpop.permute.xlu1 %4130  ;;  %v5173_v25 = vsel %vm1415_vm13, %v5172_v4, %v5168_v27  ;;  %4298 = vperm.xlu0 %6934, %v7364_v35   ;;  %v3334_v26 = vmul.f32 1.442695, %v2877_v16  ;;  %v7372_v27 = vpop.eup %7371  ;;  %v2909_v35 = vsub.f32 %v13306_v18, %v10974_v0 }
 0x4f8   :  { %v5177_v54 = vrot.slane %v4131_v57, %v9040_v36  ;;  %4430 = vperm.xlu1 %6933, %v7362_v34   ;;  %v13305_v34 = vld [vmem:[#allocation395_spill] sm:$0xff]  ;;  %v3424_v16 = vmul.f32 1.442695, %v2922_v9 }
 0x4f9   :  { %7379 = vpow2.f32 %v3334_v26  ;;  %v2892_v42 = vsub.f32 %v13305_v34, %v10928_v50  ;;  %v5221_v34 = vrot.slane %v11166_v1, %v8988_v28  ;;  %v13314_v1 = vld [vmem:[#allocation383_spill] sm:$0xff] }
 0x4fa   :  { %6863 = vmatpush3.bf16.msra.mxu1 %v13300_v43  ;;  %v11203_v39 = vsel %vm13301_vm8, %v5177_v54, %v5173_v25  ;;  %v11217_v11 = vpop.permute.xlu0 %4175  ;;  %7381 = vpow2.f32 %v3362_v32  ;;  %v7374_v54 = vpop.eup %7373  ;;  %v2923_v43 = vsub.f32 %v13307_v7, %v10974_v0  ;;  %v5231_v7 = vrot.slane %v11182_v51, %v8998_v48  ;;  %v13318_v51 = vld [vmem:[#allocation412_spill] sm:$0xff] }
 0x4fb   :  { %v4137_v13 = vpop.permute.xlu1 %4136  ;;  %v11210_v61 = vsel %vm2615_vm5, %v11203_v39, %v10998_v56  ;;  %4391 = vperm.xlu0 %6934, %v7368_v6   ;;  %v13304_v56 = vld [vmem:[#allocation381_spill] sm:$0xff]  ;;  %7383 = vpow2.f32 %v3396_v5  ;;  %v5211_v6 = vrot.slane %v11152_v49, %v8973_v63  ;;  %vm13317_vm8 = vcmask 786112  }
 0x4fc   :  { %v5186_v8 = vrot.slane %v4137_v13, %v12999_v14  ;;  %4340 = vperm.xlu1 %6933, %v7366_v17   ;;  %v2878_v31 = vsub.f32 %v13304_v56, %v10928_v50  ;;  %v7376_v30 = vpop.eup %7375  ;;  %v3364_v17 = vmul.f32 1.442695, %v2892_v42  ;;  %7385 = vpow2.f32 %v3424_v16  ;;  %v13311_v49 = vld [vmem:[#allocation413_spill] sm:$0xff] }
 0x4fd   :  { %v7378_v13 = vpop.eup %7377  ;;  %v3426_v56 = vmul.f32 1.442695, %v2923_v43 }
 0x4fe   :  { %v5187_v2 = vsel %vm1324_vm0, %v5186_v8, %v5182_v19  ;;  %v11227_v23 = vpop.permute.xlu0 %4181  ;;  %v3336_v58 = vmul.f32 1.442695, %v2878_v31  ;;  %v2879_v19 = vsub.f32 %v13308_v60, %v10928_v50  ;;  %v3398_v8 = vmul.f32 1.442695, %v2909_v35 }
 0x4ff   :  { %v4143_v29 = vpop.permute.xlu1 %4142  ;;  %v5192_v4 = vsel %vm1331_vm1, %v5191_v55, %v5187_v2  ;;  %4301 = vperm.xlu0 %6934, %v7372_v27   ;;  %v13309_v2 = vld [vmem:[#allocation394_spill] sm:$0xff] }
 0x500   :  { %v5196_v53 = vrot.slane %v4143_v29, %v8954_v3  ;;  %4433 = vperm.xlu1 %6933, %v7370_v38   ;;  %7387 = vpow2.f32 %v3336_v58  ;;  %v2893_v38 = vsub.f32 %v13309_v2, %v10928_v50  ;;  %v3338_v27 = vmul.f32 1.442695, %v2879_v19 }
 0x501   :  { %7389 = vpow2.f32 %v3364_v17  ;;  %v5241_v2 = vrot.slane %v11196_v33, %v9008_v21  ;;  %v13321_v33 = vld [vmem:[#allocation382_spill] sm:$0xff] }
 0x502   :  { %v5197_v57 = vsel %vm1338_vm2, %v5196_v53, %v5192_v4  ;;  %v11238_v47 = vpop.permute.xlu0 %4187  ;;  %v2910_v53 = vsub.f32 %v13311_v49, %v10974_v0  ;;  %7391 = vpow2.f32 %v3398_v8  ;;  %v3366_v18 = vmul.f32 1.442695, %v2893_v38 }
 0x503   :  { %v4149_v22 = vpop.permute.xlu1 %4148  ;;  %v5202_v59 = vsel %vm1345_vm3, %v5201_v44, %v5197_v57  ;;  %4394 = vperm.xlu0 %6934, %v7376_v30   ;;  %v7380_v32 = vpop.eup %7379  ;;  %v13312_v57 = vld [vmem:[#allocation427_spill] sm:$0xff]  ;;  %7393 = vpow2.f32 %v3426_v56 }
 0x504   :  { %v5206_v25 = vrot.slane %v4149_v22, %v8959_v12  ;;  %4343 = vperm.xlu1 %6933, %v7374_v54   ;;  %v7382_v29 = vpop.eup %7381  ;;  %v2924_v54 = vsub.f32 %v13312_v57, %v10974_v0  ;;  %v3400_v30 = vmul.f32 1.442695, %v2910_v53  ;;  %7395 = vpow2.f32 %v3338_v27 }
 0x505   :  { %v7384_v4 = vpop.eup %7383  ;;  %7397 = vpow2.f32 %v3366_v18  ;;  %v5251_v57 = vrot.slane %v11217_v11, %v9030_v37  ;;  %v13324_v11 = vld [vmem:[#allocation416_spill] sm:$0xff] }
 0x506   :  { %v5207_v26 = vsel %vm1352_vm4, %v5206_v25, %v5202_v59  ;;  %v11249_v31 = vpop.permute.xlu0 %4193  ;;  %v7386_v22 = vpop.eup %7385  ;;  %v2880_v25 = vsub.f32 %v13314_v1, %v10928_v50  ;;  %v3428_v60 = vmul.f32 1.442695, %v2924_v54  ;;  %7399 = vpow2.f32 %v3400_v30 }
 0x507   :  { %v4155_v10 = vpop.permute.xlu1 %4154  ;;  %v5212_v5 = vsel %vm13310_vm14, %v5211_v6, %v5207_v26  ;;  %4304 = vperm.xlu0 %6934, %v7380_v32   ;;  %v13315_v26 = vld [vmem:[#allocation397_spill] sm:$0xff]  ;;  %vm13320_vm14 = vcmask 851712  }
 0x508   :  { %v5216_v9 = vrot.slane %v4155_v10, %v8968_v40  ;;  %4436 = vperm.xlu1 %6933, %v7378_v13   ;;  %v2894_v13 = vsub.f32 %v13315_v26, %v10928_v50  ;;  %v3340_v32 = vmul.f32 1.442695, %v2880_v25  ;;  %7401 = vpow2.f32 %v3428_v60 }
 0x509   :  { %v5261_v60 = vrot.slane %v11227_v23, %v8940_v41 }
 0x50a   :  { %v5217_v55 = vsel %vm1366_vm6, %v5216_v9, %v5212_v5  ;;  %v11260_v35 = vpop.permute.xlu0 %4199  ;;  %v7388_v59 = vpop.eup %7387  ;;  %v2911_v9 = vsub.f32 %v13318_v51, %v10974_v0  ;;  %v3368_v49 = vmul.f32 1.442695, %v2894_v13  ;;  %7403 = vpow2.f32 %v3340_v32 }
 0x50b   :  { %v4161_v42 = vpop.permute.xlu1 %4160  ;;  %v5222_v58 = vsel %vm1373_vm7, %v5221_v34, %v5217_v55  ;;  %4397 = vperm.xlu0 %6934, %v7384_v4   ;;  %v7390_v10 = vpop.eup %7389  ;;  %v13319_v55 = vld [vmem:[#allocation426_spill] sm:$0xff] }
 0x50c   :  { %v5226_v16 = vrot.slane %v4161_v42, %v8978_v45  ;;  %4346 = vperm.xlu1 %6933, %v7382_v29   ;;  %v7392_v5 = vpop.eup %7391  ;;  %v2925_v29 = vsub.f32 %v13319_v55, %v10974_v0  ;;  %v3402_v4 = vmul.f32 1.442695, %v2911_v9  ;;  %7405 = vpow2.f32 %v3368_v49  ;;  %v13327_v49 = vld [vmem:[#allocation399_spill] sm:$0xff] }
 0x50d   :  { %v7394_v42 = vpop.eup %7393 }
 0x50e   :  { %v5227_v44 = vsel %vm13313_vm10, %v5226_v16, %v5222_v58  ;;  %v11271_v19 = vpop.permute.xlu0 %4205  ;;  %v2881_v16 = vsub.f32 %v13321_v33, %v10928_v50  ;;  %v7396_v58 = vpop.eup %7395  ;;  %v3430_v1 = vmul.f32 1.442695, %v2925_v29  ;;  %vm13323_vm10 = vcmask 1048512  }
 0x50f   :  { %v4167_v43 = vpop.permute.xlu1 %4166  ;;  %v5232_v8 = vsel %vm13316_vm11, %v5231_v7, %v5227_v44  ;;  %4307 = vperm.xlu0 %6934, %v7388_v59   ;;  %v13322_v44 = vld [vmem:[#allocation396_spill] sm:$0xff]  ;;  %7407 = vpow2.f32 %v3402_v4  ;;  %vm13332_vm11 = vcmask 458112  }
 0x510   :  { %v5236_v17 = vrot.slane %v4167_v43, %v8991_v46  ;;  %4439 = vperm.xlu1 %6933, %v7386_v22   ;;  %v2895_v22 = vsub.f32 %v13322_v44, %v10928_v50  ;;  %v7398_v43 = vpop.eup %7397  ;;  %v3342_v59 = vmul.f32 1.442695, %v2881_v16  ;;  %7409 = vpow2.f32 %v3430_v1  ;;  %v13329_v1 = vld [vmem:[#allocation428_spill] sm:$0xff] }
 0x512   :  { %v5237_v6 = vsel %vm13317_vm8, %v5236_v17, %v5232_v8  ;;  %v11282_v53 = vpop.permute.xlu0 %4211  ;;  %v2912_v17 = vsub.f32 %v13324_v11, %v10974_v0  ;;  %v3370_v9 = vmul.f32 1.442695, %v2895_v22  ;;  %7411 = vpow2.f32 %v3342_v59 }
 0x513   :  { %v4173_v38 = vpop.permute.xlu1 %4172  ;;  %v5242_v27 = vsel %vm13320_vm14, %v5241_v2, %v5237_v6  ;;  %4400 = vperm.xlu0 %6934, %v7392_v5   ;;  %v7400_v6 = vpop.eup %7399  ;;  %vm13335_vm8 = vcmask 654912   ;;  %vm13337_vm14 = vcmask 720512  }
 0x514   :  { %v5246_v56 = vrot.slane %v4173_v38, %v9005_v15  ;;  %4349 = vperm.xlu1 %6933, %v7390_v10   ;;  %v13325_v10 = vld [vmem:[#allocation429_spill] sm:$0xff]  ;;  %v7402_v2 = vpop.eup %7401  ;;  %7413 = vpow2.f32 %v3370_v9  ;;  %v13331_v9 = vld [vmem:[#allocation398_spill] sm:$0xff] }
 0x515   :  { %v2926_v51 = vsub.f32 %v13325_v10, %v10974_v0  ;;  %v13326_v38 = vld [vmem:[#allocation385_spill] sm:$0xff]  ;;  %v7404_v29 = vpop.eup %7403 }
 0x516   :  { %v5247_v34 = vsel %vm1408_vm12, %v5246_v56, %v5242_v27  ;;  %v11293_v25 = vpop.permute.xlu0 %4217  ;;  %v2882_v23 = vsub.f32 %v13326_v38, %v10928_v50  ;;  %v3404_v56 = vmul.f32 1.442695, %v2912_v17  ;;  %v2896_v27 = vsub.f32 %v13327_v49, %v10928_v50  ;;  %v7406_v4 = vpop.eup %7405 }
 0x517   :  { %v4179_v54 = vpop.permute.xlu1 %4178  ;;  %v5252_v30 = vsel %vm1415_vm13, %v5251_v57, %v5247_v34  ;;  %4310 = vperm.xlu0 %6934, %v7396_v58   ;;  %v3432_v34 = vmul.f32 1.442695, %v2926_v51 }
 0x518   :  { %v5256_v18 = vrot.slane %v4179_v54, %v9040_v36  ;;  %4442 = vperm.xlu1 %6933, %v7394_v42   ;;  %v3344_v54 = vmul.f32 1.442695, %v2882_v23  ;;  %7415 = vpow2.f32 %v3404_v56 }
 0x519   :  { %v7408_v22 = vpop.eup %7407  ;;  %7417 = vpow2.f32 %v3432_v34 }
 0x51a   :  { %v5257_v7 = vsel %vm13323_vm10, %v5256_v18, %v5252_v30  ;;  %v11309_v32 = vpop.permute.xlu0 %4223  ;;  %v5280_v18 = vrot.slane %v11249_v31, %v8965_v52  ;;  %v2927_v30 = vsub.f32 %v13329_v1, %v10974_v0  ;;  %v7410_v59 = vpop.eup %7409  ;;  %v13330_v31 = vld [vmem:[#allocation384_spill] sm:$0xff]  ;;  %7419 = vpow2.f32 %v3344_v54  ;;  %v13336_v1 = vld [vmem:[#allocation401_spill] sm:$0xff] }
 0x51b   :  { %v11301_v26 = vsel %vm2615_vm5, %v5257_v7, %v11089_v20  ;;  %6105 = vmatprep.mubr.f32.mxu0 %v5257_v7  ;;  %v4185_v13 = vpop.permute.xlu1 %4184  ;;  %4403 = vperm.xlu0 %6934, %v7400_v6   ;;  %v3372_v7 = vmul.f32 1.442695, %v2896_v27  ;;  %vm13338_vm10 = vcmask 786112  }
 0x51c   :  { %v5265_v8 = vrot.slane %v4185_v13, %v12999_v14  ;;  %4352 = vperm.xlu1 %6933, %v7398_v43   ;;  %6106 = vmatmul.mubr.f32.vlgmr.msra.gmra.mrb[4].mxu0 %v11203_v39  ;;  %v5270_v39 = vrot.slane %v11238_v47, %v8949_v62  ;;  %v13328_v47 = vld [vmem:[#allocation414_spill] sm:$0xff]  ;;  %v2883_v13 = vsub.f32 %v13330_v31, %v10928_v50  ;;  %v7412_v51 = vpop.eup %7411 }
 0x51d   :  { %v2913_v57 = vsub.f32 %v13328_v47, %v10974_v0  ;;  %7421 = vpow2.f32 %v3372_v7 }
 0x51e   :  { %v5266_v20 = vsel %vm1324_vm0, %v5265_v8, %v5261_v60  ;;  %v11319_v42 = vpop.permute.xlu0 %4229  ;;  %v5290_v8 = vrot.slane %v11260_v35, %v8973_v63  ;;  %v13333_v35 = vld [vmem:[#allocation432_spill] sm:$0xff] }
 0x51f   :  { %v4191_v5 = vpop.permute.xlu1 %4190  ;;  %v5271_v33 = vsel %vm1331_vm1, %v5270_v39, %v5266_v20  ;;  %4313 = vperm.xlu0 %6934, %v7404_v29   ;;  %v3406_v60 = vmul.f32 1.442695, %v2913_v57  ;;  %v2897_v20 = vsub.f32 %v13331_v9, %v10928_v50  ;;  %v7414_v39 = vpop.eup %7413  ;;  %v5300_v29 = vrot.slane %v11271_v19, %v8988_v28 }
 0x520   :  { %v5275_v55 = vrot.slane %v4191_v5, %v8954_v3  ;;  %4445 = vperm.xlu1 %6933, %v7402_v2   ;;  %v3434_v2 = vmul.f32 1.442695, %v2927_v30  ;;  %v2931_v5 = vsub.f32 %v13333_v35, %v10974_v0  ;;  %v5310_v19 = vrot.slane %v11282_v53, %v8998_v48 }
 0x521   :  { %7423 = vpow2.f32 %v3406_v60  ;;  %v2898_v30 = vsub.f32 %v13336_v1, %v10928_v50 }
 0x522   :  { %v5276_v16 = vsel %vm1338_vm2, %v5275_v55, %v5271_v33  ;;  %v11330_v43 = vpop.permute.xlu0 %4235  ;;  %v3346_v55 = vmul.f32 1.442695, %v2883_v13  ;;  %v7416_v34 = vpop.eup %7415  ;;  %v13334_v33 = vld [vmem:[#allocation431_spill] sm:$0xff]  ;;  %7425 = vpow2.f32 %v3434_v2 }
 0x523   :  { %v4197_v58 = vpop.permute.xlu1 %4196  ;;  %v5281_v11 = vsel %vm1345_vm3, %v5280_v18, %v5276_v16  ;;  %4406 = vperm.xlu0 %6934, %v7408_v22   ;;  %v2928_v16 = vsub.f32 %v13334_v33, %v10974_v0  ;;  %v7418_v18 = vpop.eup %7417 }
 0x524   :  { %v5285_v44 = vrot.slane %v4197_v58, %v8959_v12  ;;  %4355 = vperm.xlu1 %6933, %v7406_v4   ;;  %v3374_v4 = vmul.f32 1.442695, %v2897_v20  ;;  %v3442_v58 = vmul.f32 1.442695, %v2931_v5  ;;  %7427 = vpow2.f32 %v3346_v55  ;;  %v13339_v20 = vld [vmem:[#allocation430_spill] sm:$0xff] }
 0x525   :  { %v2929_v2 = vsub.f32 %v13339_v20, %v10974_v0 }
 0x526   :  { %v5286_v17 = vsel %vm1352_vm4, %v5285_v44, %v5281_v11  ;;  %v11341_v38 = vpop.permute.xlu0 %4241  ;;  %7429 = vpow2.f32 %v3374_v4 }
 0x527   :  { %v4203_v6 = vpop.permute.xlu1 %4202  ;;  %v5291_v23 = vsel %vm13332_vm11, %v5290_v8, %v5286_v17  ;;  %4316 = vperm.xlu0 %6934, %v7412_v51   ;;  %v7420_v17 = vpop.eup %7419  ;;  %7431 = vpow2.f32 %v3442_v58  ;;  %vm13340_vm11 = vcmask 851712   ;;  %v7509_v58 = vld [vmem:[#allocation2 + $0x698] sm:$0xff] }
 0x528   :  { %v5295_v10 = vrot.slane %v4203_v6, %v8968_v40  ;;  %4448 = vperm.xlu1 %6933, %v7410_v59   ;;  %v3436_v59 = vmul.f32 1.442695, %v2928_v16  ;;  %v7422_v8 = vpop.eup %7421  ;;  %v5320_v6 = vrot.slane %v11293_v25, %v9008_v21  ;;  %v5330_v25 = vrot.slane %v11309_v32, %v9030_v37  ;;  %v13341_v16 = vld [vmem:[#allocation400_spill] sm:$0xff] }
 0x529   :  { %v2899_v4 = vsub.f32 %v13341_v16, %v10928_v50  ;;  %v13350_v16 = vld [vmem:[#allocation418_spill] sm:$0xff] }
 0x52a   :  { %v5296_v56 = vsel %vm1366_vm6, %v5295_v10, %v5291_v23  ;;  %v11352_v47 = vpop.permute.xlu0 %4247  ;;  %v3376_v23 = vmul.f32 1.442695, %v2898_v30  ;;  %7433 = vpow2.f32 %v3436_v59  ;;  %v13343_v30 = vld [vmem:[#allocation202_spill] sm:$0xff] }
 0x52b   :  { %v4209_v49 = vpop.permute.xlu1 %4208  ;;  %v5301_v57 = vsel %vm1373_vm7, %v5300_v29, %v5296_v56  ;;  %4409 = vperm.xlu0 %6934, %v7416_v34   ;;  %v7424_v9 = vpop.eup %7423 }
 0x52c   :  { %v5305_v27 = vrot.slane %v4209_v49, %v8978_v45  ;;  %4358 = vperm.xlu1 %6933, %v7414_v39   ;;  %v7426_v5 = vpop.eup %7425  ;;  %v7507_v49 = vld [vmem:[#allocation2 + $0x688] sm:$0xff]  ;;  %7435 = vpow2.f32 %v3376_v23 }
 0x52e   :  { %v5306_v54 = vsel %vm13335_vm8, %v5305_v27, %v5301_v57  ;;  %v11361_v31 = vpop.permute.xlu0 %4253  ;;  %v7508_v27 = vld [vmem:[#allocation2 + $0x680] sm:$0xff]  ;;  %v7428_v33 = vpop.eup %7427  ;;  %v3438_v57 = vmul.f32 1.442695, %v2929_v2  ;;  %vm13342_vm8 = vcmask 1048512   ;;  %v7513_v2 = vld [vmem:[#allocation2 + $0x788] sm:$0xff] }
 0x52f   :  { %v6459_v44 = vpop.f32.mrb[0].mxu1  ;;  %v4215_v22 = vpop.permute.xlu1 %4214  ;;  %v5311_v13 = vsel %vm13337_vm14, %v5310_v19, %v5306_v54  ;;  %4319 = vperm.xlu0 %6934, %v7420_v17   ;;  %v6864_v34 = vpack.c.bf16 %v7507_v49, %v7508_v27  ;;  %v7510_v19 = vld [vmem:[#allocation2 + $0x690] sm:$0xff]  ;;  %v5340_v17 = vrot.slane %v11319_v42, %v8940_v41  ;;  %v7514_v42 = vld [vmem:[#allocation2 + $0x780] sm:$0xff]  ;;  %v7515_v27 = vld [vmem:[#allocation2 + $0x6b8] sm:$0xff]  ;;  %vm13358_vm14 = vcmask 458112  }
 0x530   :  { %v5315_v7 = vrot.slane %v4215_v22, %v8991_v46  ;;  %v6460_v11 = vpop.f32.mrb[1].mxu1  ;;  %4451 = vperm.xlu1 %6933, %v7418_v18   ;;  %v7430_v22 = vpop.eup %7429  ;;  %7437 = vpow2.f32 %v3438_v57  ;;  %v6896_v23 = vpack.c.bf16 %v7513_v2, %v7514_v42  ;;  %v13355_v42 = vld [vmem:[#allocation216_spill] sm:$0xff] }
 0x531   :  { %v11364_v60 = vadd.f32 %v6460_v11, %v6459_v44  ;;  %6865 = vmatprep.subr.bf16.mxu0 %v6864_v34  ;;  %v6868_v44 = vpack.c.bf16 %v7509_v58, %v7510_v19  ;;  %v7516_v34 = vld [vmem:[#allocation2 + $0x6b0] sm:$0xff] }
 0x532   :  { %v5316_v53 = vsel %vm13338_vm10, %v5315_v7, %v5311_v13  ;;  %v11372_v56 = vpop.permute.xlu0 %4259  ;;  %v13344_v7 = vld [vmem:[#allocation203_spill] sm:$0xff]  ;;  %v7432_v13 = vpop.eup %7431  ;;  %6897 = vmatprep.subr.bf16.mxu1 %v6896_v23  ;;  %v13356_v23 = vld [vmem:[#allocation217_spill] sm:$0xff]  ;;  %vm13362_vm10 = vcmask 654912  }
 0x533   :  { %v4221_v10 = vpop.permute.xlu1 %4220  ;;  %v5321_v39 = vsel %vm13340_vm11, %v5320_v6, %v5316_v53  ;;  %4412 = vperm.xlu0 %6934, %v7424_v9   ;;  %v13345_v11 = vpack.c.bf16 %v13343_v30, %v13344_v7  ;;  %v13346_v53 = vld [vmem:[#allocation433_spill] sm:$0xff]  ;;  %v3378_v6 = vmul.f32 1.442695, %v2899_v4  ;;  %v7512_v9 = vld [vmem:[#allocation2 + $0x6a0] sm:$0xff]  ;;  %v2914_v4 = vsub.f32 %v13350_v16, %v10974_v0  ;;  %v13359_v16 = vld [vmem:[#allocation218_spill] sm:$0xff] }
 0x534   :  { %v5325_v51 = vrot.slane %v4221_v10, %v9005_v15  ;;  %4361 = vperm.xlu1 %6933, %v7422_v8   ;;  %v2930_v8 = vsub.f32 %v13346_v53, %v10974_v0  ;;  %v13352_v30 = vld [vmem:[#allocation211_spill] sm:$0xff]  ;;  %v13354_v53 = vld [vmem:[#allocation334_spill] sm:$0xff]  ;;  %vm13366_vm11 = vcmask 720512  }
 0x535   :  { %6867 = vmatpush3.bf16.msra.mxu0 %v13345_v11  ;;  %7439 = vpow2.f32 %v3378_v6  ;;  %v3408_v6 = vmul.f32 1.442695, %v2914_v4  ;;  %v13360_v4 = vld [vmem:[#allocation219_spill] sm:$0xff] }
 0x536   :  { %v5326_v35 = vsel %vm1408_vm12, %v5325_v51, %v5321_v39  ;;  %v11381_v54 = vpop.permute.xlu0 %4265  ;;  %6869 = vmatprep.subr.bf16.mxu0 %v6868_v44  ;;  %v7511_v51 = vld [vmem:[#allocation2 + $0x6a8] sm:$0xff]  ;;  %v7434_v39 = vpop.eup %7433  ;;  %v3440_v57 = vmul.f32 1.442695, %v2930_v8  ;;  %v5359_v44 = vrot.slane %v11341_v38, %v8965_v52  ;;  %v2915_v8 = vsub.f32 %v13354_v53, %v10974_v0  ;;  %v7519_v0 = vld [vmem:[#allocation2 + $0x6d8] sm:$0xff] }
 0x537   :  { %v4227_v55 = vpop.permute.xlu1 %4226  ;;  %v5331_v18 = vsel %vm1415_vm13, %v5330_v25, %v5326_v35  ;;  %4322 = vperm.xlu0 %6934, %v7428_v33   ;;  %v6872_v20 = vpack.c.bf16 %v7511_v51, %v7512_v9  ;;  %v5349_v35 = vrot.slane %v11330_v43, %v8949_v62  ;;  %v13347_v25 = vld [vmem:[#allocation206_spill] sm:$0xff]  ;;  %v6876_v33 = vpack.c.bf16 %v7515_v27, %v7516_v34  ;;  %v7436_v19 = vpop.eup %7435 }
 0x538   :  { %v5335_v29 = vrot.slane %v4227_v55, %v9040_v36  ;;  %4454 = vperm.xlu1 %6933, %v7426_v5   ;;  %v13348_v55 = vld [vmem:[#allocation207_spill] sm:$0xff]  ;;  %7441 = vpow2.f32 %v3440_v57  ;;  %v5379_v34 = vrot.slane %v11361_v31, %v8988_v28  ;;  %v13361_v57 = vpack.c.bf16 %v13359_v16, %v13360_v4 }
 0x539   :  { %7443 = vpow2.f32 %v3408_v6  ;;  %v7524_v6 = vld [vmem:[#allocation2 + $0x6f0] sm:$0xff] }
 0x53a   :  { %v11385_v32 = vsel %vm13342_vm8, %v5335_v29, %v5331_v18  ;;  %v11400_v10 = vpop.permute.xlu0 %4271  ;;  %v13349_v29 = vpack.c.bf16 %v13347_v25, %v13348_v55  ;;  %v7438_v9 = vpop.eup %7437  ;;  %v3410_v55 = vmul.f32 1.442695, %v2915_v8  ;;  %v7523_v8 = vld [vmem:[#allocation2 + $0x6f8] sm:$0xff]  ;;  %vm13367_vm8 = vcmask 786112  }
 0x53b   :  { %v4233_v1 = vpop.permute.xlu1 %4232  ;;  %v11390_v50 = vsel %vm2617_vm15, %v11385_v32, %v11210_v61  ;;  %4466 = vperm.xlu0 %6934, %v7432_v13  }
 0x53c   :  { %v5344_v59 = vrot.slane %v4233_v1, %v12999_v14  ;;  %4364 = vperm.xlu1 %6933, %v7430_v22   ;;  %6871 = vmatpush3.bf16.msra.mxu0 %v13349_v29  ;;  %v13351_v1 = vld [vmem:[#allocation210_spill] sm:$0xff]  ;;  %7445 = vpow2.f32 %v3410_v55 }
 0x53d   :  { %6873 = vmatprep.subr.bf16.mxu0 %v6872_v20  ;;  %v13353_v7 = vpack.c.bf16 %v13351_v1, %v13352_v30  ;;  %v5369_v20 = vrot.slane %v11352_v47, %v8973_v63 }
 0x53e   :  { %v5345_v61 = vsel %vm1324_vm0, %v5344_v59, %v5340_v17  ;;  %v11411_v18 = vpop.permute.xlu0 %4325  ;;  %v7517_v17 = vld [vmem:[#allocation2 + $0x6c8] sm:$0xff]  ;;  %v7518_v59 = vld [vmem:[#allocation2 + $0x6c0] sm:$0xff] }
 0x53f   :  { %v4239_v5 = vpop.permute.xlu1 %4238  ;;  %v5350_v43 = vsel %vm1331_vm1, %v5349_v35, %v5345_v61  ;;  %v6880_v13 = vpack.c.bf16 %v7517_v17, %v7518_v59  ;;  %v7440_v27 = vpop.eup %7439  ;;  %v13363_v17 = vld [vmem:[#allocation222_spill] sm:$0xff]  ;;  %v13364_v59 = vld [vmem:[#allocation223_spill] sm:$0xff] }
 0x540   :  { %v5354_v49 = vrot.slane %v4239_v5, %v8954_v3  ;;  %4457 = vperm.xlu1 %6933, %v7434_v39   ;;  %6875 = vmatpush3.bf16.msra.mxu0 %v13353_v7  ;;  %v13357_v39 = vpack.c.bf16 %v13355_v42, %v13356_v23  ;;  %v7520_v5 = vld [vmem:[#allocation2 + $0x6d0] sm:$0xff]  ;;  %v5389_v7 = vrot.slane %v11372_v56, %v8998_v48  ;;  %v13368_v23 = vld [vmem:[#allocation226_spill] sm:$0xff] }
 0x541   :  { %6877 = vmatprep.subr.bf16.mxu0 %v6876_v33  ;;  %v6884_v25 = vpack.c.bf16 %v7519_v0, %v7520_v5  ;;  %v5399_v56 = vrot.slane %v11381_v54, %v9008_v21 }
 0x542   :  { %v5355_v58 = vsel %vm1338_vm2, %v5354_v49, %v5350_v43  ;;  %v11423_v61 = vpop.permute.xlu0 %4277  ;;  %v7442_v31 = vpop.eup %7441 }
 0x543   :  { %v4245_v22 = vpop.permute.xlu1 %4244  ;;  %v5360_v38 = vsel %vm1345_vm3, %v5359_v44, %v5355_v58  ;;  %v7521_v58 = vld [vmem:[#allocation2 + $0x6e8] sm:$0xff] }
 0x544   :  { %v5364_v11 = vrot.slane %v4245_v22, %v8959_v12  ;;  %4367 = vperm.xlu1 %6933, %v7436_v19   ;;  %6879 = vmatpush3.bf16.msra.mxu0 %v13357_v39  ;;  %v7522_v19 = vld [vmem:[#allocation2 + $0x6e0] sm:$0xff] }
 0x545   :  { %6881 = vmatprep.subr.bf16.mxu0 %v6880_v13  ;;  %v6888_v44 = vpack.c.bf16 %v7521_v58, %v7522_v19  ;;  %v13365_v13 = vpack.c.bf16 %v13363_v17, %v13364_v59  ;;  %v13369_v39 = vld [vmem:[#allocation227_spill] sm:$0xff]  ;;  %v7525_v58 = vld [vmem:[#allocation2 + $0x798] sm:$0xff]  ;;  %v7526_v19 = vld [vmem:[#allocation2 + $0x790] sm:$0xff] }
 0x546   :  { %v5365_v51 = vsel %vm1352_vm4, %v5364_v11, %v5360_v38  ;;  %v11433_v29 = vpop.permute.xlu0 %4331  ;;  %v6892_v38 = vpack.c.bf16 %v7523_v8, %v7524_v6  ;;  %v13376_v17 = vld [vmem:[#allocation250_spill] sm:$0xff]  ;;  %v13377_v59 = vld [vmem:[#allocation251_spill] sm:$0xff]  ;;  %v7527_v8 = vld [vmem:[#allocation2 + $0x7a8] sm:$0xff] }
 0x547   :  { %v4251_v2 = vpop.permute.xlu1 %4250  ;;  %v5370_v49 = vsel %vm13358_vm14, %v5369_v20, %v5365_v51  ;;  %vm13371_vm14 = vcmask 851712   ;;  %v7528_v6 = vld [vmem:[#allocation2 + $0x7a0] sm:$0xff] }
 0x548   :  { %v5374_v35 = vrot.slane %v4251_v2, %v8968_v40  ;;  %4460 = vperm.xlu1 %6933, %v7438_v9   ;;  %6883 = vmatpush3.bf16.msra.mxu0 %v13361_v57  ;;  %v7444_v2 = vpop.eup %7443 }
 0x549   :  { %6885 = vmatprep.subr.bf16.mxu0 %v6884_v25 }
 0x54a   :  { %v5375_v47 = vsel %vm1366_vm6, %v5374_v35, %v5370_v49  ;;  %v11443_v22 = vpop.permute.xlu0 %4424  ;;  %v13370_v35 = vpack.c.bf16 %v13368_v23, %v13369_v39  ;;  %v7446_v49 = vpop.eup %7445  ;;  %v7529_v39 = vld [vmem:[#allocation2 + $0x7b8] sm:$0xff] }
 0x54b   :  { %v4257_v33 = vpop.permute.xlu1 %4256  ;;  %v5380_v1 = vsel %vm1373_vm7, %v5379_v34, %v5375_v47  ;;  %v5409_v47 = vrot.slane %v11400_v10, %v9030_v37  ;;  %v13373_v34 = vld [vmem:[#allocation231_spill] sm:$0xff] }
 0x54c   :  { %v5384_v43 = vrot.slane %v4257_v33, %v8978_v45  ;;  %4370 = vperm.xlu1 %6933, %v7440_v27   ;;  %6887 = vmatpush3.bf16.msra.mxu0 %v13365_v13  ;;  %v13372_v27 = vld [vmem:[#allocation230_spill] sm:$0xff]  ;;  %v13378_v13 = vpack.c.bf16 %v13376_v17, %v13377_v59  ;;  %v7534_v59 = vld [vmem:[#allocation2 + $0x7d0] sm:$0xff] }
 0x54d   :  { %6889 = vmatprep.subr.bf16.mxu0 %v6888_v44  ;;  %v13374_v33 = vpack.c.bf16 %v13372_v27, %v13373_v34  ;;  %v6900_v44 = vpack.c.bf16 %v7525_v58, %v7526_v19  ;;  %v7533_v17 = vld [vmem:[#allocation2 + $0x7d8] sm:$0xff] }
 0x54e   :  { %v5385_v30 = vsel %vm13362_vm10, %v5384_v43, %v5380_v1  ;;  %v4335_v51 = vpop.permute.xlu0 %4334  ;;  %vm13375_vm10 = vcmask 1048512  }
 0x54f   :  { %v4263_v11 = vpop.permute.xlu1 %4262  ;;  %v5390_v9 = vsel %vm13366_vm11, %v5389_v7, %v5385_v30  ;;  %v5498_v30 = vrot.slane %v11411_v18, %v8940_v41  ;;  %v5507_v7 = vrot.slane %v11433_v29, %v8949_v62  ;;  %v6904_v18 = vpack.c.bf16 %v7527_v8, %v7528_v6 }
 0x550   :  { %v5394_v53 = vrot.slane %v4263_v11, %v8991_v46  ;;  %4463 = vperm.xlu1 %6933, %v7442_v31   ;;  %6891 = vmatpush3.bf16.msra.mxu0 %v13370_v35  ;;  %v7530_v35 = vld [vmem:[#allocation2 + $0x7b0] sm:$0xff] }
 0x551   :  { %6893 = vmatprep.subr.bf16.mxu0 %v6892_v38 }
 0x552   :  { %v5395_v20 = vsel %vm13367_vm8, %v5394_v53, %v5390_v9  ;;  %v11461_v5 = vpop.permute.xlu0 %4376 }
 0x553   :  { %v4269_v42 = vpop.permute.xlu1 %4268  ;;  %v5400_v25 = vsel %vm13371_vm14, %v5399_v56, %v5395_v20  ;;  %v13379_v56 = vld [vmem:[#allocation254_spill] sm:$0xff] }
 0x554   :  { %v5404_v0 = vrot.slane %v4269_v42, %v9005_v15  ;;  %4415 = vperm.xlu1 %6933, %v7444_v2   ;;  %6895 = vmatpush3.bf16.msra.mxu0 %v13374_v33  ;;  %v7531_v33 = vld [vmem:[#allocation2 + $0x7c8] sm:$0xff] }
 0x556   :  { %v5405_v55 = vsel %vm1408_vm12, %v5404_v0, %v5400_v25  ;;  %v4287_v4 = vpop.permute.xlu0 %4286  ;;  %v6908_v0 = vpack.c.bf16 %v7529_v39, %v7530_v35 }
 0x557   :  { %v4275_v54 = vpop.permute.xlu1 %4274  ;;  %v5410_v57 = vsel %vm1415_vm13, %v5409_v47, %v5405_v55  ;;  %v13382_v47 = vld [vmem:[#allocation258_spill] sm:$0xff]  ;;  %v5433_v19 = vrot.slane %v4287_v4, %v8954_v3  ;;  %v5581_v4 = vrot.slane %v11461_v5, %v12999_v14  ;;  %v7536_v5 = vld [vmem:[#allocation2 + $0x7e0] sm:$0xff] }
 0x558   :  { %v5414_v16 = vrot.slane %v4275_v54, %v9040_v36  ;;  %4418 = vperm.xlu1 %6933, %v7446_v49   ;;  %v13383_v54 = vld [vmem:[#allocation259_spill] sm:$0xff] }
 0x559   :  { %v13384_v27 = vpack.c.bf16 %v13382_v47, %v13383_v54  ;;  %v13391_v54 = vld [vmem:[#allocation270_spill] sm:$0xff] }
 0x55a   :  { %v5415_v43 = vsel %vm13375_vm10, %v5414_v16, %v5410_v57  ;;  %v4380_v11 = vpop.permute.xlu0 %4379  ;;  %v7532_v16 = vld [vmem:[#allocation2 + $0x7c0] sm:$0xff] }
 0x55b   :  { %v11475_v1 = vsel %vm2617_vm15, %v5415_v43, %v11301_v26  ;;  %6177 = vmatprep.mubr.f32.mxu1 %v5415_v43  ;;  %v4329_v10 = vpop.permute.xlu1 %4328  ;;  %v5512_v26 = vrot.slane %v4335_v51, %v8954_v3  ;;  %v13380_v51 = vld [vmem:[#allocation255_spill] sm:$0xff]  ;;  %v6912_v57 = vpack.c.bf16 %v7531_v33, %v7532_v16 }
 0x55c   :  { %v5502_v31 = vrot.slane %v4329_v10, %v12999_v14  ;;  %6178 = vmatmul.mubr.f32.vlgmr.msra.gmra.mrb[4].mxu1 %v11385_v32  ;;  %v5419_v32 = vrot.slane %v11423_v61, %v8940_v41  ;;  %v13381_v42 = vpack.c.bf16 %v13379_v56, %v13380_v51  ;;  %v5660_v61 = vrot.slane %v11443_v22, %v12999_v14  ;;  %v13385_v22 = vld [vmem:[#allocation263_spill] sm:$0xff]  ;;  %v13386_v10 = vld [vmem:[#allocation264_spill] sm:$0xff] }
 0x55d   :  { %6899 = vmatpush3.bf16.msra.mxu1 %v13378_v13  ;;  %v6916_v13 = vpack.c.bf16 %v7533_v17, %v7534_v59 }
 0x55e   :  { %v5503_v53 = vsel %vm1324_vm0, %v5502_v31, %v5498_v30  ;;  %6901 = vmatprep.subr.bf16.mxu1 %v6900_v44  ;;  %v4290_v2 = vpop.permute.xlu0 %4289  ;;  %v13387_v30 = vpack.c.bf16 %v13385_v22, %v13386_v10  ;;  %v13394_v22 = vld [vmem:[#allocation274_spill] sm:$0xff]  ;;  %v13395_v10 = vld [vmem:[#allocation275_spill] sm:$0xff] }
 0x55f   :  { %v5508_v38 = vsel %vm1331_vm1, %v5507_v7, %v5503_v53  ;;  %v4281_v9 = vpop.permute.xlu1 %4280  ;;  %v5438_v31 = vrot.slane %v4290_v2, %v8965_v52  ;;  %v13389_v2 = vld [vmem:[#allocation267_spill] sm:$0xff] }
 0x560   :  { %v5423_v29 = vrot.slane %v4281_v9, %v12999_v14  ;;  %v11493_v20 = vsel %vm1338_vm2, %v5512_v26, %v5508_v38  ;;  %v5586_v38 = vrot.slane %v4380_v11, %v8949_v62  ;;  %v7535_v14 = vld [vmem:[#allocation2 + $0x7e8] sm:$0xff] }
 0x561   :  { %6903 = vmatpush3.bf16.msra.mxu1 %v13381_v42 }
 0x562   :  { %v5424_v23 = vsel %vm1324_vm0, %v5423_v29, %v5419_v32  ;;  %6905 = vmatprep.subr.bf16.mxu1 %v6904_v18  ;;  %v4383_v49 = vpop.permute.xlu0 %4382  ;;  %v13388_v29 = vld [vmem:[#allocation266_spill] sm:$0xff] }
 0x563   :  { %v4422_v25 = vpop.permute.xlu1 %4421  ;;  %v13390_v56 = vpack.c.bf16 %v13388_v29, %v13389_v2  ;;  %v5591_v51 = vrot.slane %v4383_v49, %v8954_v3 }
 0x564   :  { %v5656_v55 = vrot.slane %v4422_v25, %v8940_v41 }
 0x565   :  { %6907 = vmatpush3.bf16.msra.mxu1 %v13384_v27  ;;  %v13392_v27 = vld [vmem:[#allocation271_spill] sm:$0xff] }
 0x566   :  { %v5661_v34 = vsel %vm1324_vm0, %v5660_v61, %v5656_v55  ;;  %6909 = vmatprep.subr.bf16.mxu1 %v6908_v0  ;;  %v4293_v44 = vpop.permute.xlu0 %4292  ;;  %v13393_v33 = vpack.c.bf16 %v13391_v54, %v13392_v27 }
 0x567   :  { %v4284_v43 = vpop.permute.xlu1 %4283  ;;  %v5443_v26 = vrot.slane %v4293_v44, %v8959_v12 }
 0x568   :  { %v5428_v58 = vrot.slane %v4284_v43, %v8949_v62  ;;  %v7538_v43 = vld [vmem:[#allocation2 + $0x7f0] sm:$0xff] }
 0x569   :  { %6911 = vmatpush3.bf16.msra.mxu1 %v13387_v30  ;;  %v13396_v30 = vpack.c.bf16 %v13394_v22, %v13395_v10 }
 0x56a   :  { %v5429_v7 = vsel %vm1331_vm1, %v5428_v58, %v5424_v23  ;;  %6913 = vmatprep.subr.bf16.mxu1 %v6912_v57  ;;  %v4386_v9 = vpop.permute.xlu0 %4385  ;;  %v6920_v23 = vpack.c.bf16 %v7535_v14, %v7536_v5  ;;  %v7537_v57 = vld [vmem:[#allocation2 + $0x7f8] sm:$0xff] }
 0x56b   :  { %v5434_v53 = vsel %vm1338_vm2, %v5433_v19, %v5429_v7  ;;  %v4374_v8 = vpop.permute.xlu1 %4373  ;;  %v6924_v58 = vpack.c.bf16 %v7537_v57, %v7538_v43 }
 0x56c   :  { %v5439_v6 = vsel %vm1345_vm3, %v5438_v31, %v5434_v53  ;;  %v5577_v18 = vrot.slane %v4374_v8, %v8940_v41  ;;  %v5596_v41 = vrot.slane %v4386_v9, %v8965_v52  ;;  %v13398_v53 = vld [vmem:[#allocation279_spill] sm:$0xff] }
 0x56d   :  { %v11521_v32 = vsel %vm1352_vm4, %v5443_v26, %v5439_v6  ;;  %6915 = vmatpush3.bf16.msra.mxu1 %v13390_v56  ;;  %v13397_v26 = vld [vmem:[#allocation278_spill] sm:$0xff] }
 0x56e   :  { %v5582_v42 = vsel %vm1324_vm0, %v5581_v4, %v5577_v18  ;;  %6917 = vmatprep.subr.bf16.mxu1 %v6916_v13  ;;  %v11532_v55 = vpop.permute.xlu0 %4295  ;;  %v13399_v8 = vpack.c.bf16 %v13397_v26, %v13398_v53  ;;  %vm13400_vm0 = vcmask 458112  }
 0x56f   :  { %v5587_v11 = vsel %vm1331_vm1, %v5586_v38, %v5582_v42  ;;  %v6494_v39 = vpop.f32.mrb[2].mxu0  ;;  %v4428_v35 = vpop.permute.xlu1 %4427 }
 0x570   :  { %v5592_v0 = vsel %vm1338_vm2, %v5591_v51, %v5587_v11  ;;  %v5665_v25 = vrot.slane %v4428_v35, %v8949_v62  ;;  %v6495_v61 = vpop.f32.mrb[3].mxu0 }
 0x571   :  { %v5597_v49 = vsel %vm1345_vm3, %v5596_v41, %v5592_v0  ;;  %v11535_v47 = vadd.f32 %v6495_v61, %v6494_v39  ;;  %6919 = vmatpush3.bf16.msra.mxu1 %v13393_v33 }
 0x572   :  { %v5666_v16 = vsel %vm1331_vm1, %v5665_v25, %v5661_v34  ;;  %6921 = vmatprep.subr.bf16.mxu1 %v6920_v23  ;;  %v4389_v44 = vpop.permute.xlu0 %4388  ;;  %vm13401_vm1 = vcmask 654912  }
 0x573   :  { %v4338_v19 = vpop.permute.xlu1 %4337  ;;  %v5601_v31 = vrot.slane %v4389_v44, %v8959_v12 }
 0x574   :  { %v5517_v62 = vrot.slane %v4338_v19, %v8965_v52  ;;  %v5448_v19 = vrot.slane %v11532_v55, %v8973_v63 }
 0x575   :  { %6923 = vmatpush3.bf16.msra.mxu1 %v13396_v30  ;;  %v11549_v34 = vsel %vm1352_vm4, %v5601_v31, %v5597_v49 }
 0x576   :  { %v5518_v7 = vsel %vm1345_vm3, %v5517_v62, %v11493_v20  ;;  %6925 = vmatprep.subr.bf16.mxu1 %v6924_v58  ;;  %v4299_v13 = vpop.permute.xlu0 %4298 }
 0x577   :  { %v4431_v17 = vpop.permute.xlu1 %4430  ;;  %v5453_v22 = vrot.slane %v4299_v13, %v8968_v40 }
 0x578   :  { %v5670_v59 = vrot.slane %v4431_v17, %v8954_v3 }
 0x579   :  { %6927 = vmatpush3.bf16.msra.mxu1 %v13399_v8 }
 0x57a   :  { %v5671_v4 = vsel %vm1338_vm2, %v5670_v59, %v5666_v16  ;;  %v11557_v38 = vpop.permute.xlu0 %4391  ;;  %v5449_v59 = vsel %vm13400_vm0, %v5448_v19, %v11521_v32  ;;  %vm13402_vm2 = vmmov %vm13366_vm11 }
 0x57b   :  { %v4341_v6 = vpop.permute.xlu1 %4340  ;;  %v5454_v55 = vsel %vm1366_vm6, %v5453_v22, %v5449_v59  ;;  %vm13404_vm11 = vmmov %vm13371_vm14 }
 0x57c   :  { %v5522_v18 = vrot.slane %v4341_v6, %v8959_v12  ;;  %vm13406_vm14 = vmmov %vm13400_vm0 }
 0x57d   :  { %vm13408_vm0 = vmmov %vm13402_vm2 }
 0x57e   :  { %v11560_v20 = vsel %vm1352_vm4, %v5522_v18, %v5518_v7  ;;  %v4302_v2 = vpop.permute.xlu0 %4301 }
 0x57f   :  { %v4434_v9 = vpop.permute.xlu1 %4433  ;;  %v5458_v30 = vrot.slane %v4302_v2, %v8988_v28 }
 0x580   :  { %v5675_v29 = vrot.slane %v4434_v9, %v8965_v52 }
 0x581   :  { %v5459_v13 = vsel %vm1373_vm7, %v5458_v30, %v5454_v55 }
 0x582   :  { %v11564_v3 = vsel %vm1345_vm3, %v5675_v29, %v5671_v4  ;;  %v11566_v51 = vpop.permute.xlu0 %4394  ;;  %vm13403_vm3 = vmmov %vm13367_vm8 }
 0x583   :  { %v4344_v56 = vpop.permute.xlu1 %4343  ;;  %vm13405_vm8 = vmmov %vm13375_vm10 }
 0x584   :  { %vm13407_vm10 = vmmov %vm13401_vm1 }
 0x586   :  { %v4305_v14 = vpop.permute.xlu0 %4304 }
 0x587   :  { %v11568_v42 = vpop.permute.xlu1 %4436  ;;  %v5463_v17 = vrot.slane %v4305_v14, %v8978_v45 }
 0x589   :  { %v5464_v18 = vsel %vm13401_vm1, %v5463_v17, %v5459_v13  ;;  %v5680_v13 = vrot.slane %v11568_v42, %v8959_v12  ;;  %vm13409_vm1 = vmmov %vm13406_vm14 }
 0x58a   :  { %v11570_v23 = vpop.permute.xlu0 %4397 }
 0x58b   :  { %v4347_v5 = vpop.permute.xlu1 %4346 }
 0x58c   :  { %v5532_v17 = vrot.slane %v4347_v5, %v8968_v40 }
 0x58e   :  { %v4308_v11 = vpop.permute.xlu0 %4307 }
 0x58f   :  { %v11572_v41 = vpop.permute.xlu1 %4439  ;;  %v5468_v26 = vrot.slane %v4308_v11, %v8998_v48 }
 0x591   :  { %v5469_v29 = vsel %vm13402_vm2, %v5468_v26, %v5464_v18  ;;  %vm13410_vm2 = vmmov %vm13403_vm3 }
 0x592   :  { %v11574_v35 = vpop.permute.xlu0 %4400 }
 0x593   :  { %v4350_v39 = vpop.permute.xlu1 %4349 }
 0x594   :  { %v5537_v59 = vrot.slane %v4350_v39, %v8988_v28 }
 0x596   :  { %v4311_v0 = vpop.permute.xlu0 %4310 }
 0x597   :  { %v11576_v52 = vpop.permute.xlu1 %4442  ;;  %v5473_v8 = vrot.slane %v4311_v0, %v8991_v46 }
 0x599   :  { %v5474_v14 = vsel %vm13403_vm3, %v5473_v8, %v5469_v29  ;;  %vm13411_vm3 = vmmov %vm13404_vm11 }
 0x59a   :  { %v11578_v61 = vpop.permute.xlu0 %4403 }
 0x59b   :  { %v4353_v25 = vpop.permute.xlu1 %4352 }
 0x59c   :  { %v5542_v55 = vrot.slane %v4353_v25, %v8978_v45  ;;  %v5690_v25 = vrot.slane %v11576_v52, %v8968_v40 }
 0x59e   :  { %v4314_v54 = vpop.permute.xlu0 %4313 }
 0x59f   :  { %v11580_v49 = vpop.permute.xlu1 %4445  ;;  %v5478_v4 = vrot.slane %v4314_v54, %v9008_v21 }
 0x5a0   :  { %v5695_v12 = vrot.slane %v11580_v49, %v8988_v28 }
 0x5a1   :  { %v5479_v11 = vsel %vm13404_vm11, %v5478_v4, %v5474_v14  ;;  %vm13413_vm11 = vmmov %vm13408_vm0 }
 0x5a2   :  { %v11582_v33 = vpop.permute.xlu0 %4406 }
 0x5a3   :  { %v4356_v27 = vpop.permute.xlu1 %4355 }
 0x5a4   :  { %v5547_v4 = vrot.slane %v4356_v27, %v8998_v48 }
 0x5a6   :  { %v4317_v57 = vpop.permute.xlu0 %4316 }
 0x5a7   :  { %v11584_v16 = vpop.permute.xlu1 %4448  ;;  %v5483_v9 = vrot.slane %v4317_v57, %v9005_v15 }
 0x5a9   :  { %v5484_v19 = vsel %vm1408_vm12, %v5483_v9, %v5479_v11 }
 0x5aa   :  { %v11586_v58 = vpop.permute.xlu0 %4409 }
 0x5ab   :  { %v4359_v43 = vpop.permute.xlu1 %4358 }
 0x5ac   :  { %v5552_v5 = vrot.slane %v4359_v43, %v8991_v46  ;;  %v5700_v43 = vrot.slane %v11584_v16, %v8978_v45 }
 0x5ae   :  { %v4320_v31 = vpop.permute.xlu0 %4319 }
 0x5af   :  { %v6529_v62 = vpop.f32.mrb[2].mxu1  ;;  %v11590_v44 = vpop.permute.xlu1 %4451  ;;  %v5488_v32 = vrot.slane %v4320_v31, %v9030_v37  ;;  %v5527_v31 = vrot.slane %v4344_v56, %v8973_v63  ;;  %v5685_v56 = vrot.slane %v11572_v41, %v8973_v63  ;;  %v5681_v41 = vsel %vm1352_vm4, %v5680_v13, %v11564_v3  ;;  %vm13412_vm4 = vmmov %vm13407_vm10 }
 0x5b0   :  { %v6530_v10 = vpop.f32.mrb[3].mxu1 }
 0x5b1   :  { %v11594_v7 = vadd.f32 %v6530_v10, %v6529_v62  ;;  %v5489_v62 = vsel %vm1415_vm13, %v5488_v32, %v5484_v19  ;;  %v5528_v8 = vsel %vm13406_vm14, %v5527_v31, %v11560_v20  ;;  %v5705_v32 = vrot.slane %v11590_v44, %v8998_v48  ;;  %vm13414_vm14 = vmmov %vm13410_vm2 }
 0x5b2   :  { %v11604_v6 = vpop.permute.xlu0 %4412 }
 0x5b3   :  { %v4362_v53 = vpop.permute.xlu1 %4361 }
 0x5b4   :  { %v5557_v18 = vrot.slane %v4362_v53, %v9008_v21  ;;  %v5686_v53 = vsel %vm13409_vm1, %v5685_v56, %v5681_v41 }
 0x5b5   :  { %v5691_v49 = vsel %vm1366_vm6, %v5690_v25, %v5686_v53 }
 0x5b6   :  { %v4323_v0 = vpop.permute.xlu0 %4322 }
 0x5b7   :  { %v4455_v2 = vpop.permute.xlu1 %4454  ;;  %v5493_v54 = vrot.slane %v4323_v0, %v9040_v36  ;;  %v5696_v0 = vsel %vm1373_vm7, %v5695_v12, %v5691_v49 }
 0x5b8   :  { %v5710_v3 = vrot.slane %v4455_v2, %v8991_v46  ;;  %v5701_v44 = vsel %vm13412_vm4, %v5700_v43, %v5696_v0  ;;  %v5611_v2 = vrot.slane %v11566_v51, %v8968_v40 }
 0x5b9   :  { %v5494_v10 = vsel %vm13405_vm8, %v5493_v54, %v5489_v62  ;;  %v5606_v62 = vrot.slane %v11557_v38, %v8973_v63 }
 0x5ba   :  { %v11618_v57 = vsel %vm2619_vm9, %v5494_v10, %v11390_v50  ;;  %v5533_v50 = vsel %vm1366_vm6, %v5532_v17, %v5528_v8  ;;  %v5706_v17 = vsel %vm13413_vm11, %v5705_v32, %v5701_v44  ;;  %v5621_v8 = vrot.slane %v11574_v35, %v8978_v45 }
 0x5bb   :  { %v4365_v22 = vpop.permute.xlu1 %4364  ;;  %v5538_v39 = vsel %vm1373_vm7, %v5537_v59, %v5533_v50  ;;  %v4467_v59 = vpop.permute.xlu0 %4466  ;;  %v5631_v45 = vrot.slane %v11582_v33, %v8991_v46 }
 0x5bc   :  { %v5543_v9 = vsel %vm13407_vm10, %v5542_v55, %v5538_v39  ;;  %v5562_v42 = vrot.slane %v4365_v22, %v9005_v15  ;;  %v5711_v55 = vsel %vm13414_vm14, %v5710_v3, %v5706_v17  ;;  %vm13415_vm10 = vmmov %vm13411_vm3 }
 0x5bd   :  { %v5548_v27 = vsel %vm13408_vm0, %v5547_v4, %v5543_v9  ;;  %vm13416_vm0 = vmmov %vm13409_vm1 }
 0x5be   :  { %v5553_v29 = vsel %vm13410_vm2, %v5552_v5, %v5548_v27  ;;  %v5607_v13 = vsel %vm13416_vm0, %v5606_v62, %v11549_v34  ;;  %vm13417_vm1 = vmmov %vm13405_vm8 }
 0x5bf   :  { %v4458_v30 = vpop.permute.xlu1 %4457  ;;  %v5558_v14 = vsel %vm13411_vm3, %v5557_v18, %v5553_v29  ;;  %v5612_v4 = vsel %vm1366_vm6, %v5611_v2, %v5607_v13  ;;  %vm13418_vm2 = vmmov %vm13412_vm4  ;;  %vm13419_vm3 = vcmask 1047559  }
 0x5c0   :  { %v5563_v16 = vsel %vm1408_vm12, %v5562_v42, %v5558_v14  ;;  %v5715_v19 = vrot.slane %v4458_v30, %v9008_v21  ;;  %v5616_v30 = vrot.slane %v11570_v23, %v8988_v28  ;;  %v5626_v28 = vrot.slane %v11578_v61, %v8998_v48  ;;  %vm13420_vm6 = vmmov %vm13413_vm11 }
 0x5c1   :  { %v5730_v23 = vrot.slane %v4467_v59, %v9040_v36  ;;  %v5641_v61 = vrot.slane %v11604_v6, %v9005_v15  ;;  %vm13421_vm4 = vmmov %vm13414_vm14  ;;  %vm13427_vm14 = vcmask 1043459  }
 0x5c2   :  { %v5716_v40 = vsel %vm13415_vm10, %v5715_v19, %v5711_v55  ;;  %v5617_v50 = vsel %vm1373_vm7, %v5616_v30, %v5612_v4  ;;  %vm13422_vm7 = vmmov %vm13415_vm10 }
 0x5c3   :  { %v4368_v26 = vpop.permute.xlu1 %4367  ;;  %v5622_v48 = vsel %vm13418_vm2, %v5621_v8, %v5617_v50  ;;  %vm13423_vm11 = vmmov %vm13417_vm1 }
 0x5c4   :  { %v5567_v52 = vrot.slane %v4368_v26, %v9030_v37  ;;  %v5627_v46 = vsel %vm13420_vm6, %v5626_v28, %v5622_v48 }
 0x5c5   :  { %v5632_v39 = vsel %vm13421_vm4, %v5631_v45, %v5627_v46 }
 0x5c6   :  { %v5568_v31 = vsel %vm1415_vm13, %v5567_v52, %v5563_v16 }
 0x5c7   :  { %v4461_v20 = vpop.permute.xlu1 %4460 }
 0x5c8   :  { %v5720_v22 = vrot.slane %v4461_v20, %v9005_v15 }
 0x5cb   :  { %v4371_v11 = vpop.permute.xlu1 %4370 }
 0x5cc   :  { %v5572_v54 = vrot.slane %v4371_v11, %v9040_v36 }
 0x5ce   :  { %v5573_v26 = vsel %vm13405_vm8, %v5572_v54, %v5568_v31  ;;  %vm13424_vm8 = vmmov %vm13419_vm3 }
 0x5cf   :  { %v5744_v63 = vsel %vm2619_vm9, %v5573_v26, %v11475_v1  ;;  %6249 = vmatprep.mubr.f32.mxu0 %v5573_v26  ;;  %v4464_v38 = vpop.permute.xlu1 %4463  ;;  %v5721_v1 = vsel %vm1408_vm12, %v5720_v22, %v5716_v40 }
 0x5d0   :  { %v5725_v51 = vrot.slane %v4464_v38, %v9030_v37  ;;  %6250 = vmatmul.mubr.f32.vlgmr.msra.gmra.mrb[6].mxu0 %v5494_v10  ;;  %v5636_v10 = vrot.slane %v11586_v58, %v9008_v21 }
 0x5d2   :  { %v5726_v35 = vsel %vm1415_vm13, %v5725_v51, %v5721_v1  ;;  %v5637_v25 = vsel %vm13422_vm7, %v5636_v10, %v5632_v39 }
 0x5d3   :  { %v4416_v34 = vpop.permute.xlu1 %4415  ;;  %v5731_v56 = vsel %vm13417_vm1, %v5730_v23, %v5726_v35  ;;  %v5642_v58 = vsel %vm1408_vm12, %v5641_v61, %v5637_v25  ;;  %vm13425_vm12 = vcmask 1041409  }
 0x5d4   :  { %v5745_v5 = vsel %vm13419_vm3, %v5731_v56, %v5744_v63  ;;  %6321 = vmatprep.mubr.f32.mxu1 %v5731_v56  ;;  %v5646_v33 = vrot.slane %v4416_v34, %v9030_v37 }
 0x5d6   :  { %v5647_v20 = vsel %vm1415_vm13, %v5646_v33, %v5642_v58  ;;  %vm13426_vm13 = vcmask 1042434  }
 0x5d7   :  { %v4419_v21 = vpop.permute.xlu1 %4418 }
 0x5d8   :  { %v5651_v18 = vrot.slane %v4419_v21, %v9040_v36 }
 0x5da   :  { %v5652_v15 = vsel %vm13423_vm11, %v5651_v18, %v5647_v20 }
 0x5db   :  { %6322 = vmatmul.mubr.f32.vlgmr.msra.gmra.mrb[6].mxu1 %v5652_v15  ;;  %v5738_v6 = vsel %vm13424_vm8, %v5652_v15, %v11618_v57 }
 0x5dc   :  { %v5748_v9 = vadd.f32 %v5745_v5, %v5738_v6 }
 0x5de   :  { %5749 = vadd.xlane.f32.xlu0 %v5748_v9 }
 0x5ef   :  { %v6564_v37 = vpop.f32.mrb[4].mxu0 }
 0x5f0   :  { %v6565_v12 = vpop.f32.mrb[5].mxu0 }
 0x5f1   :  { %v6566_v42 = vadd.f32 %v6565_v12, %v6564_v37 }
 0x62f   :  { %v6599_v41 = vpop.f32.mrb[4].mxu1 }
 0x630   :  { %v6600_v27 = vpop.f32.mrb[5].mxu1 }
 0x631   :  { %v6601_v43 = vadd.f32 %v6600_v27, %v6599_v41 }
 0x66b   :  { %v5750_v52 = vpop.xlane.xlu0 %5749 }
 0x66c   :  { %7447 = vrcp.f32 %v5750_v52 }
 0x676   :  { %v7448_v53 = vpop.eup %7447 }
 0x677   :  { %v6329_v36 = vrot.slane %v7448_v53, 1  ;;  %v6330_v29 = vrot.slane %v7448_v53, 2  ;;  %v6331_v32 = vrot.slane %v7448_v53, 3  ;;  %v6332_v49 = vrot.slane %v7448_v53, 4 }
 0x678   :  { %v6333_v14 = vrot.slane %v7448_v53, 5  ;;  %v6344_v16 = vmul.f32 %v7448_v53, %v11169_v24  ;;  %v6334_v24 = vrot.slane %v7448_v53, 6  ;;  %v6335_v13 = vrot.slane %v7448_v53, 7 }
 0x679   :  { %v6345_v3 = vmul.f32 %v11364_v60, %v6329_v36  ;;  %v6346_v57 = vmul.f32 %v11535_v47, %v6330_v29  ;;  %v6347_v11 = vmul.f32 %v11594_v7, %v6331_v32  ;;  %v6348_v0 = vmul.f32 %v6566_v42, %v6332_v49 }
 0x67a   :  { %v6349_v19 = vmul.f32 %v6601_v43, %v6333_v14 }
 0x67b   :  { %v6360_v54 = vrot.slane %v6345_v3, 7  ;;  %v6362_v62 = vrot.slane %v6346_v57, 6  ;;  %v6364_v22 = vrot.slane %v6347_v11, 5  ;;  %v6366_v2 = vrot.slane %v6348_v0, 4 }
 0x67c   :  { %v6368_v59 = vrot.slane %v6349_v19, 3 }
 0x67d   :  { %v6361_v44 = vsel %vm13425_vm12, %v6360_v54, %v6344_v16 }
 0x67e   :  { %v6363_v31 = vsel %vm13426_vm13, %v6362_v62, %v6361_v44 }
 0x67f   :  { %v6365_v17 = vsel %vm13427_vm14, %v6364_v22, %v6363_v31 }
 0x680   :  { %v6367_v60 = vsel %vm2615_vm5, %v6366_v2, %v6365_v17  ;;  %vm13428_vm5 = vmmov %vm13419_vm3 }
 0x681   :  { %v6369_v47 = vsel %vm2617_vm15, %v6368_v59, %v6367_v60 }
 0x6a3   :  { %v6634_v7 = vpop.f32.mrb[6].mxu0 }
 0x6a4   :  { %v6635_v26 = vpop.f32.mrb[7].mxu0 }
 0x6a5   :  { %v6636_v30 = vadd.f32 %v6635_v26, %v6634_v7 }
 0x6a7   :  { %v6350_v55 = vmul.f32 %v6636_v30, %v6334_v24 }
 0x6a9   :  { %v6370_v63 = vrot.slane %v6350_v55, 2 }
 0x6ab   :  { %v6371_v38 = vsel %vm2619_vm9, %v6370_v63, %v6369_v47 }
 0x6ae   :  { %v6669_v8 = vpop.f32.mrb[6].mxu1 }
 0x6af   :  { %v6670_v40 = vpop.f32.mrb[7].mxu1 }
 0x6b0   :  { %v6671_v51 = vadd.f32 %v6670_v40, %v6669_v8 }
 0x6b2   :  { %v6351_v28 = vmul.f32 %v6671_v51, %v6335_v13 }
 0x6b4   :  { %v6372_v23 = vrot.slane %v6351_v28, 1 }
 0x6b6   :  { %v6373_v1 = vsel %vm13428_vm5, %v6372_v23, %v6371_v38 }
 0x6b7   :  { %6375 = vst [vmem:[#allocation5] sm:$0xff] %v6373_v1 }
 0x6b8   :  { %7572 = shalt.err (!%p7569_p12)
}
 0x6b9   :  { %s7573_s4 = scalar_lea.hbm %s11729_s2, 128 }
 0x6ba   :  { %p7574_p13 = scmp.ne.s32.totalorder %s11729_s2, %s7573_s4  ;;  %p7577_p0 = scmp.lt.u32.totalorder %s7573_s4, %s11729_s2 }
 0x6bc   :  { %p7579_p1 = pnand %p7577_p0, %p7574_p13 }
 0x6be   :  { %7582 = shalt.err (!%p7579_p1)
}
 0x6bf   :  { %6385 = dma.vmem_to_hbm [thread:$0]  %s6383_s28, 128, %s11729_s2, [#allocation4]  }
 0x6c0   :  { %7585 = dma.done.wait [#allocation4], 128  }
 0x6c1   :  { %7586 = vsyncadd [#allocation4], 4294967168 }
 0x6c2   :  { %6389 = vsyncpa [#allocation3], 1 }
 0x6c3   :  { %6390 = vsyncpa [#allocation4], 1 }

</bundles_post_ra>
